<compile_context>
chip_gen: v7x
topology: tpu7x:2x2x1
jax: 0.10.0
libtpu: 0.0.40
codegen_flags: <defaults>
</compile_context>

<pallas_src>
import functools

import jax
import jax.numpy as jnp
from jax import lax
from jax.experimental import pallas as pl
from jax.experimental.pallas import tpu as pltpu


def _critic_kernel(T, Bp, H, x_ref, wih_ref, whh_ref, b_ref, wfc_ref, bfc_ref,
                   out_ref, gx_ref, hist_ref):
    """Fused LSTM recurrence + value head.

    x_ref    : (T*Bp, I)   time-major flattened input (row = t*Bp + b), VMEM
    wih_ref  : (I, 4H)     input->gates weight (already transposed)
    whh_ref  : (H, 4H)     hidden->gates weight (already transposed)
    b_ref    : (1, 4H)     combined bias (b_ih + b_hh)
    wfc_ref  : (H, 1)      value head weight (already transposed)
    bfc_ref  : (1, 1)      value head bias
    out_ref  : (T*Bp, 1)   per-timestep value (row = t*Bp + b)
    gx_ref   : (T*Bp, 4H)  scratch: precomputed input projection
    hist_ref : (T*Bp, H)   scratch: hidden-state history
    """
    # Non-recurrent input projection as ONE well-shaped matmul, bias added once.
    gx_ref[...] = (
        jnp.dot(x_ref[...], wih_ref[...], preferred_element_type=jnp.float32)
        + b_ref[...]
    )

    def step(t, carry):
        h, c = carry                                           # (Bp, H) each
        row = pl.multiple_of(t * Bp, 8)                        # sublane-aligned
        gates = gx_ref[pl.ds(row, Bp), :] + jnp.dot(
            h, whh_ref[...], preferred_element_type=jnp.float32
        )                                                      # (Bp, 4H)
        # PyTorch gate order: i, f, g, o.  H is a multiple of 128 -> slices
        # are lane-aligned.
        i_g = jax.nn.sigmoid(gates[:, 0:H])
        f_g = jax.nn.sigmoid(gates[:, H:2 * H])
        g_g = jnp.tanh(gates[:, 2 * H:3 * H])
        o_g = jax.nn.sigmoid(gates[:, 3 * H:4 * H])
        c_new = f_g * c + i_g * g_g
        h_new = o_g * jnp.tanh(c_new)
        hist_ref[pl.ds(row, Bp), :] = h_new                    # aligned, lane-dense
        return h_new, c_new

    h0 = jnp.zeros((Bp, H), jnp.float32)
    c0 = jnp.zeros((Bp, H), jnp.float32)
    lax.fori_loop(0, T, step, (h0, c0), unroll=True)

    # Value head once over all timesteps on the MXU:
    # (T*Bp, H) @ (H, 1) -> (T*Bp, 1); single bulk output store.
    out_ref[...] = (
        jnp.dot(hist_ref[...], wfc_ref[...], preferred_element_type=jnp.float32)
        + bfc_ref[...]
    )


def critic_forward(x, params):
    """x: (B, T, I) float32 -> (B, T) float32."""
    wih_t, whh_t, b, wfc_t, bfc = params
    B, T, I = x.shape
    H = whh_t.shape[0]

    # Pad batch to a multiple of 8 sublanes; LSTM rows are independent so the
    # padded rows are simply discarded at the end.  Extra MXU rows are free
    # (MXU processes >= 8 sublanes per push anyway).
    Bp = max(8, ((B + 7) // 8) * 8)
    x_p = jnp.pad(x.astype(jnp.float32), ((0, Bp - B), (0, 0), (0, 0)))

    # Time-major, flattened so the in-kernel input projection is one matmul.
    x_tm = jnp.transpose(x_p, (1, 0, 2)).reshape(T * Bp, I)

    flops = (2 * T * Bp * I * 4 * H           # input projection
             + 2 * T * Bp * H * 4 * H         # recurrent matmuls
             + 2 * T * Bp * H                 # value head
             + 10 * T * Bp * H)               # gate elementwise
    transcendentals = 5 * T * Bp * H          # 3 sigmoids + 2 tanh per hidden unit
    bytes_accessed = 4 * (
        T * Bp * I + I * 4 * H + H * 4 * H + 4 * H + H + 1 + T * Bp
    )

    kernel = functools.partial(_critic_kernel, T, Bp, H)
    out_flat = pl.pallas_call(
        kernel,
        out_shape=jax.ShapeDtypeStruct((T * Bp, 1), jnp.float32),
        in_specs=[pl.BlockSpec(memory_space=pltpu.MemorySpace.VMEM)] * 6,
        out_specs=pl.BlockSpec(memory_space=pltpu.MemorySpace.VMEM),
        scratch_shapes=[
            pltpu.VMEM((T * Bp, 4 * H), jnp.float32),   # precomputed x-gates
            pltpu.VMEM((T * Bp, H), jnp.float32),       # hidden-state history
        ],
        compiler_params=pltpu.CompilerParams(
            vmem_limit_bytes=32 * 1024 * 1024,
        ),
        cost_estimate=pl.CostEstimate(
            flops=flops,
            transcendentals=transcendentals,
            bytes_accessed=bytes_accessed,
        ),
    )(x_tm, wih_t, whh_t, b, wfc_t, bfc)

    # row = t*Bp + b  ->  (T, Bp)  ->  keep real batch rows  ->  (B, T)
    return out_flat.reshape(T, Bp)[:, :B].T


def init_params(key, input_size, hidden_size):
    """Deterministic init matching the PyTorch module's parameter shapes."""
    k = 1.0 / jnp.sqrt(jnp.float32(hidden_size))
    ks = jax.random.split(key, 6)
    w_ih = jax.random.uniform(ks[0], (4 * hidden_size, input_size), minval=-k, maxval=k)
    w_hh = jax.random.uniform(ks[1], (4 * hidden_size, hidden_size), minval=-k, maxval=k)
    b_ih = jax.random.uniform(ks[2], (4 * hidden_size,), minval=-k, maxval=k)
    b_hh = jax.random.uniform(ks[3], (4 * hidden_size,), minval=-k, maxval=k)
    w_fc = jax.random.uniform(ks[4], (1, hidden_size), minval=-k, maxval=k)
    b_fc = jax.random.uniform(ks[5], (1,), minval=-k, maxval=k)
    return (
        w_ih.T.astype(jnp.float32),                         # (I, 4H)
        w_hh.T.astype(jnp.float32),                         # (H, 4H)
        (b_ih + b_hh).reshape(1, -1).astype(jnp.float32),   # (1, 4H)
        w_fc.T.astype(jnp.float32),                         # (H, 1)
        b_fc.reshape(1, 1).astype(jnp.float32),             # (1, 1)
    )


def critic_ref(x, params):
    """Pure-JAX reference (same math) for correctness checking."""
    wih_t, whh_t, b, wfc_t, bfc = params
    B, T, _ = x.shape
    H = whh_t.shape[0]

    def step(carry, x_t):
        h, c = carry
        gates = x_t @ wih_t + h @ whh_t + b[0]
        i_g = jax.nn.sigmoid(gates[:, :H])
        f_g = jax.nn.sigmoid(gates[:, H:2 * H])
        g_g = jnp.tanh(gates[:, 2 * H:3 * H])
        o_g = jax.nn.sigmoid(gates[:, 3 * H:])
        c = f_g * c + i_g * g_g
        h = o_g * jnp.tanh(c)
        return (h, c), h @ wfc_t[:, 0] + bfc[0, 0]

    init = (jnp.zeros((B, H), jnp.float32), jnp.zeros((B, H), jnp.float32))
    _, outs = lax.scan(step, init, jnp.transpose(x, (1, 0, 2)))
    return outs.T                                            # (B, T)


if __name__ == "__main__":
    input_size = 5
    hidden_size = 256
    B, T = 2, 8

    key = jax.random.PRNGKey(0)
    kx, kp = jax.random.split(key)
    x = jax.random.normal(kx, (B, T, input_size), dtype=jnp.float32)
    params = init_params(kp, input_size, hidden_size)

    out = jax.block_until_ready(critic_forward(x, params))
    ref = jax.block_until_ready(critic_ref(x, params))

    assert out.shape == (B, T)
    assert jnp.allclose(out, ref, atol=1e-3, rtol=1e-3), float(
        jnp.max(jnp.abs(out - ref))
    )

    print("KERNEL_OK")
</pallas_src>

<mosaic_0001>
module attributes {stable_mosaic.version = 11 : i64} {
  func.func @_critic_kernel(%arg0: memref<64x5xf32, #tpu.memory_space<vmem>>, %arg1: memref<5x1024xf32, #tpu.memory_space<vmem>>, %arg2: memref<256x1024xf32, #tpu.memory_space<vmem>>, %arg3: memref<1x1024xf32, #tpu.memory_space<vmem>>, %arg4: memref<256x1xf32, #tpu.memory_space<vmem>>, %arg5: memref<1x1xf32, #tpu.memory_space<vmem>>, %arg6: memref<64x1xf32, #tpu.memory_space<vmem>>, %arg7: memref<64x1024xf32, #tpu.memory_space<vmem>>, %arg8: memref<64x256xf32, #tpu.memory_space<vmem>>) attributes {dimension_semantics = [], scalar_prefetch = 0 : i64, scratch_operands = 2 : i64, tpu.core_type = #tpu.core_type<tc>} {
    %c0 = arith.constant 0 : index
    %c0_0 = arith.constant 0 : index
    %0 = vector.load %arg0[%c0, %c0_0] : memref<64x5xf32, #tpu.memory_space<vmem>>, vector<64x5xf32>
    %c0_1 = arith.constant 0 : index
    %c0_2 = arith.constant 0 : index
    %1 = vector.load %arg1[%c0_1, %c0_2] : memref<5x1024xf32, #tpu.memory_space<vmem>>, vector<5x1024xf32>
    %cst = arith.constant dense<0.000000e+00> : vector<64x1024xf32>
    %2 = tpu.matmul %0, %1, %cst {dimension_numbers = #tpu.dot_dimension_numbers<[1], [0], [0], [1], [0, 0, 1, 1], [], []>} : vector<64x5xf32>, vector<5x1024xf32>, vector<64x1024xf32> -> vector<64x1024xf32>
    %c0_3 = arith.constant 0 : index
    %c0_4 = arith.constant 0 : index
    %3 = vector.load %arg3[%c0_3, %c0_4] : memref<1x1024xf32, #tpu.memory_space<vmem>>, vector<1x1024xf32>
    %4 = vector.broadcast %3 : vector<1x1024xf32> to vector<64x1024xf32>
    %5 = arith.addf %2, %4 : vector<64x1024xf32>
    %c0_5 = arith.constant 0 : index
    %c0_6 = arith.constant 0 : index
    %6 = vector.load %arg7[%c0_5, %c0_6] : memref<64x1024xf32, #tpu.memory_space<vmem>>, vector<64x1024xf32>
    tpu.vector_store %arg7[%c0_5, %c0_6], %5 {strides = array<i32>} : memref<64x1024xf32, #tpu.memory_space<vmem>>, vector<64x1024xf32>,
    %cst_7 = arith.constant 0.000000e+00 : f32
    %7 = vector.broadcast %cst_7 : f32 to vector<8x256xf32>
    %cst_8 = arith.constant 0.000000e+00 : f32
    %8 = vector.broadcast %cst_8 : f32 to vector<8x256xf32>
    %c0_i32 = arith.constant 0 : i32
    %c8_i32 = arith.constant 8 : i32
    %9 = arith.muli %c0_i32, %c8_i32 : i32
    %10 = tpu.assume_multiple %9, 8 : i32
    %11 = arith.index_cast %10 : i32 to index
    %c0_9 = arith.constant 0 : index
    %12 = vector.load %arg7[%11, %c0_9] : memref<64x1024xf32, #tpu.memory_space<vmem>>, vector<8x1024xf32>
    %c0_10 = arith.constant 0 : index
    %c0_11 = arith.constant 0 : index
    %13 = vector.load %arg2[%c0_10, %c0_11] : memref<256x1024xf32, #tpu.memory_space<vmem>>, vector<256x1024xf32>
    %cst_12 = arith.constant dense<0.000000e+00> : vector<8x1024xf32>
    %14 = tpu.matmul %7, %13, %cst_12 {dimension_numbers = #tpu.dot_dimension_numbers<[1], [0], [0], [1], [0, 0, 1, 1], [], []>} : vector<8x256xf32>, vector<256x1024xf32>, vector<8x1024xf32> -> vector<8x1024xf32>
    %15 = arith.addf %12, %14 : vector<8x1024xf32>
    %16 = vector.extract_strided_slice %15 {offsets = [0, 0], sizes = [8, 256], strides = [1, 1]} : vector<8x1024xf32> to vector<8x256xf32>
    %17 = arith.negf %16 : vector<8x256xf32>
    %18 = math.exp %17 : vector<8x256xf32>
    %cst_13 = arith.constant 1.000000e+00 : f32
    %19 = vector.broadcast %cst_13 : f32 to vector<8x256xf32>
    %20 = arith.addf %19, %18 : vector<8x256xf32>
    %21 = arith.divf %19, %20 : vector<8x256xf32>
    %22 = vector.extract_strided_slice %15 {offsets = [0, 256], sizes = [8, 256], strides = [1, 1]} : vector<8x1024xf32> to vector<8x256xf32>
    %23 = arith.negf %22 : vector<8x256xf32>
    %24 = math.exp %23 : vector<8x256xf32>
    %cst_14 = arith.constant 1.000000e+00 : f32
    %25 = vector.broadcast %cst_14 : f32 to vector<8x256xf32>
    %26 = arith.addf %25, %24 : vector<8x256xf32>
    %27 = arith.divf %25, %26 : vector<8x256xf32>
    %28 = vector.extract_strided_slice %15 {offsets = [0, 512], sizes = [8, 256], strides = [1, 1]} : vector<8x1024xf32> to vector<8x256xf32>
    %29 = math.tanh %28 : vector<8x256xf32>
    %30 = vector.extract_strided_slice %15 {offsets = [0, 768], sizes = [8, 256], strides = [1, 1]} : vector<8x1024xf32> to vector<8x256xf32>
    %31 = arith.negf %30 : vector<8x256xf32>
    %32 = math.exp %31 : vector<8x256xf32>
    %cst_15 = arith.constant 1.000000e+00 : f32
    %33 = vector.broadcast %cst_15 : f32 to vector<8x256xf32>
    %34 = arith.addf %33, %32 : vector<8x256xf32>
    %35 = arith.divf %33, %34 : vector<8x256xf32>
    %36 = arith.mulf %27, %8 : vector<8x256xf32>
    %37 = arith.mulf %21, %29 : vector<8x256xf32>
    %38 = arith.addf %36, %37 : vector<8x256xf32>
    %39 = math.tanh %38 : vector<8x256xf32>
    %40 = arith.mulf %35, %39 : vector<8x256xf32>
    %41 = arith.index_cast %10 : i32 to index
    %c0_16 = arith.constant 0 : index
    %42 = vector.load %arg8[%41, %c0_16] : memref<64x256xf32, #tpu.memory_space<vmem>>, vector<8x256xf32>
    tpu.vector_store %arg8[%41, %c0_16], %40 {strides = array<i32>} : memref<64x256xf32, #tpu.memory_space<vmem>>, vector<8x256xf32>,
    %c1_i32 = arith.constant 1 : i32
    %c8_i32_17 = arith.constant 8 : i32
    %43 = arith.muli %c1_i32, %c8_i32_17 : i32
    %44 = tpu.assume_multiple %43, 8 : i32
    %45 = arith.index_cast %44 : i32 to index
    %c0_18 = arith.constant 0 : index
    %46 = vector.load %arg7[%45, %c0_18] : memref<64x1024xf32, #tpu.memory_space<vmem>>, vector<8x1024xf32>
    %c0_19 = arith.constant 0 : index
    %c0_20 = arith.constant 0 : index
    %47 = vector.load %arg2[%c0_19, %c0_20] : memref<256x1024xf32, #tpu.memory_space<vmem>>, vector<256x1024xf32>
    %cst_21 = arith.constant dense<0.000000e+00> : vector<8x1024xf32>
    %48 = tpu.matmul %40, %47, %cst_21 {dimension_numbers = #tpu.dot_dimension_numbers<[1], [0], [0], [1], [0, 0, 1, 1], [], []>} : vector<8x256xf32>, vector<256x1024xf32>, vector<8x1024xf32> -> vector<8x1024xf32>
    %49 = arith.addf %46, %48 : vector<8x1024xf32>
    %50 = vector.extract_strided_slice %49 {offsets = [0, 0], sizes = [8, 256], strides = [1, 1]} : vector<8x1024xf32> to vector<8x256xf32>
    %51 = arith.negf %50 : vector<8x256xf32>
    %52 = math.exp %51 : vector<8x256xf32>
    %cst_22 = arith.constant 1.000000e+00 : f32
    %53 = vector.broadcast %cst_22 : f32 to vector<8x256xf32>
    %54 = arith.addf %53, %52 : vector<8x256xf32>
    %55 = arith.divf %53, %54 : vector<8x256xf32>
    %56 = vector.extract_strided_slice %49 {offsets = [0, 256], sizes = [8, 256], strides = [1, 1]} : vector<8x1024xf32> to vector<8x256xf32>
    %57 = arith.negf %56 : vector<8x256xf32>
    %58 = math.exp %57 : vector<8x256xf32>
    %cst_23 = arith.constant 1.000000e+00 : f32
    %59 = vector.broadcast %cst_23 : f32 to vector<8x256xf32>
    %60 = arith.addf %59, %58 : vector<8x256xf32>
    %61 = arith.divf %59, %60 : vector<8x256xf32>
    %62 = vector.extract_strided_slice %49 {offsets = [0, 512], sizes = [8, 256], strides = [1, 1]} : vector<8x1024xf32> to vector<8x256xf32>
    %63 = math.tanh %62 : vector<8x256xf32>
    %64 = vector.extract_strided_slice %49 {offsets = [0, 768], sizes = [8, 256], strides = [1, 1]} : vector<8x1024xf32> to vector<8x256xf32>
    %65 = arith.negf %64 : vector<8x256xf32>
    %66 = math.exp %65 : vector<8x256xf32>
    %cst_24 = arith.constant 1.000000e+00 : f32
    %67 = vector.broadcast %cst_24 : f32 to vector<8x256xf32>
    %68 = arith.addf %67, %66 : vector<8x256xf32>
    %69 = arith.divf %67, %68 : vector<8x256xf32>
    %70 = arith.mulf %61, %38 : vector<8x256xf32>
    %71 = arith.mulf %55, %63 : vector<8x256xf32>
    %72 = arith.addf %70, %71 : vector<8x256xf32>
    %73 = math.tanh %72 : vector<8x256xf32>
    %74 = arith.mulf %69, %73 : vector<8x256xf32>
    %75 = arith.index_cast %44 : i32 to index
    %c0_25 = arith.constant 0 : index
    %76 = vector.load %arg8[%75, %c0_25] : memref<64x256xf32, #tpu.memory_space<vmem>>, vector<8x256xf32>
    tpu.vector_store %arg8[%75, %c0_25], %74 {strides = array<i32>} : memref<64x256xf32, #tpu.memory_space<vmem>>, vector<8x256xf32>,
    %c2_i32 = arith.constant 2 : i32
    %c8_i32_26 = arith.constant 8 : i32
    %77 = arith.muli %c2_i32, %c8_i32_26 : i32
    %78 = tpu.assume_multiple %77, 8 : i32
    %79 = arith.index_cast %78 : i32 to index
    %c0_27 = arith.constant 0 : index
    %80 = vector.load %arg7[%79, %c0_27] : memref<64x1024xf32, #tpu.memory_space<vmem>>, vector<8x1024xf32>
    %c0_28 = arith.constant 0 : index
    %c0_29 = arith.constant 0 : index
    %81 = vector.load %arg2[%c0_28, %c0_29] : memref<256x1024xf32, #tpu.memory_space<vmem>>, vector<256x1024xf32>
    %cst_30 = arith.constant dense<0.000000e+00> : vector<8x1024xf32>
    %82 = tpu.matmul %74, %81, %cst_30 {dimension_numbers = #tpu.dot_dimension_numbers<[1], [0], [0], [1], [0, 0, 1, 1], [], []>} : vector<8x256xf32>, vector<256x1024xf32>, vector<8x1024xf32> -> vector<8x1024xf32>
    %83 = arith.addf %80, %82 : vector<8x1024xf32>
    %84 = vector.extract_strided_slice %83 {offsets = [0, 0], sizes = [8, 256], strides = [1, 1]} : vector<8x1024xf32> to vector<8x256xf32>
    %85 = arith.negf %84 : vector<8x256xf32>
    %86 = math.exp %85 : vector<8x256xf32>
    %cst_31 = arith.constant 1.000000e+00 : f32
    %87 = vector.broadcast %cst_31 : f32 to vector<8x256xf32>
    %88 = arith.addf %87, %86 : vector<8x256xf32>
    %89 = arith.divf %87, %88 : vector<8x256xf32>
    %90 = vector.extract_strided_slice %83 {offsets = [0, 256], sizes = [8, 256], strides = [1, 1]} : vector<8x1024xf32> to vector<8x256xf32>
    %91 = arith.negf %90 : vector<8x256xf32>
    %92 = math.exp %91 : vector<8x256xf32>
    %cst_32 = arith.constant 1.000000e+00 : f32
    %93 = vector.broadcast %cst_32 : f32 to vector<8x256xf32>
    %94 = arith.addf %93, %92 : vector<8x256xf32>
    %95 = arith.divf %93, %94 : vector<8x256xf32>
    %96 = vector.extract_strided_slice %83 {offsets = [0, 512], sizes = [8, 256], strides = [1, 1]} : vector<8x1024xf32> to vector<8x256xf32>
    %97 = math.tanh %96 : vector<8x256xf32>
    %98 = vector.extract_strided_slice %83 {offsets = [0, 768], sizes = [8, 256], strides = [1, 1]} : vector<8x1024xf32> to vector<8x256xf32>
    %99 = arith.negf %98 : vector<8x256xf32>
    %100 = math.exp %99 : vector<8x256xf32>
    %cst_33 = arith.constant 1.000000e+00 : f32
    %101 = vector.broadcast %cst_33 : f32 to vector<8x256xf32>
    %102 = arith.addf %101, %100 : vector<8x256xf32>
    %103 = arith.divf %101, %102 : vector<8x256xf32>
    %104 = arith.mulf %95, %72 : vector<8x256xf32>
    %105 = arith.mulf %89, %97 : vector<8x256xf32>
    %106 = arith.addf %104, %105 : vector<8x256xf32>
    %107 = math.tanh %106 : vector<8x256xf32>
    %108 = arith.mulf %103, %107 : vector<8x256xf32>
    %109 = arith.index_cast %78 : i32 to index
    %c0_34 = arith.constant 0 : index
    %110 = vector.load %arg8[%109, %c0_34] : memref<64x256xf32, #tpu.memory_space<vmem>>, vector<8x256xf32>
    tpu.vector_store %arg8[%109, %c0_34], %108 {strides = array<i32>} : memref<64x256xf32, #tpu.memory_space<vmem>>, vector<8x256xf32>,
    %c3_i32 = arith.constant 3 : i32
    %c8_i32_35 = arith.constant 8 : i32
    %111 = arith.muli %c3_i32, %c8_i32_35 : i32
    %112 = tpu.assume_multiple %111, 8 : i32
    %113 = arith.index_cast %112 : i32 to index
    %c0_36 = arith.constant 0 : index
    %114 = vector.load %arg7[%113, %c0_36] : memref<64x1024xf32, #tpu.memory_space<vmem>>, vector<8x1024xf32>
    %c0_37 = arith.constant 0 : index
    %c0_38 = arith.constant 0 : index
    %115 = vector.load %arg2[%c0_37, %c0_38] : memref<256x1024xf32, #tpu.memory_space<vmem>>, vector<256x1024xf32>
    %cst_39 = arith.constant dense<0.000000e+00> : vector<8x1024xf32>
    %116 = tpu.matmul %108, %115, %cst_39 {dimension_numbers = #tpu.dot_dimension_numbers<[1], [0], [0], [1], [0, 0, 1, 1], [], []>} : vector<8x256xf32>, vector<256x1024xf32>, vector<8x1024xf32> -> vector<8x1024xf32>
    %117 = arith.addf %114, %116 : vector<8x1024xf32>
    %118 = vector.extract_strided_slice %117 {offsets = [0, 0], sizes = [8, 256], strides = [1, 1]} : vector<8x1024xf32> to vector<8x256xf32>
    %119 = arith.negf %118 : vector<8x256xf32>
    %120 = math.exp %119 : vector<8x256xf32>
    %cst_40 = arith.constant 1.000000e+00 : f32
    %121 = vector.broadcast %cst_40 : f32 to vector<8x256xf32>
    %122 = arith.addf %121, %120 : vector<8x256xf32>
    %123 = arith.divf %121, %122 : vector<8x256xf32>
    %124 = vector.extract_strided_slice %117 {offsets = [0, 256], sizes = [8, 256], strides = [1, 1]} : vector<8x1024xf32> to vector<8x256xf32>
    %125 = arith.negf %124 : vector<8x256xf32>
    %126 = math.exp %125 : vector<8x256xf32>
    %cst_41 = arith.constant 1.000000e+00 : f32
    %127 = vector.broadcast %cst_41 : f32 to vector<8x256xf32>
    %128 = arith.addf %127, %126 : vector<8x256xf32>
    %129 = arith.divf %127, %128 : vector<8x256xf32>
    %130 = vector.extract_strided_slice %117 {offsets = [0, 512], sizes = [8, 256], strides = [1, 1]} : vector<8x1024xf32> to vector<8x256xf32>
    %131 = math.tanh %130 : vector<8x256xf32>
    %132 = vector.extract_strided_slice %117 {offsets = [0, 768], sizes = [8, 256], strides = [1, 1]} : vector<8x1024xf32> to vector<8x256xf32>
    %133 = arith.negf %132 : vector<8x256xf32>
    %134 = math.exp %133 : vector<8x256xf32>
    %cst_42 = arith.constant 1.000000e+00 : f32
    %135 = vector.broadcast %cst_42 : f32 to vector<8x256xf32>
    %136 = arith.addf %135, %134 : vector<8x256xf32>
    %137 = arith.divf %135, %136 : vector<8x256xf32>
    %138 = arith.mulf %129, %106 : vector<8x256xf32>
    %139 = arith.mulf %123, %131 : vector<8x256xf32>
    %140 = arith.addf %138, %139 : vector<8x256xf32>
    %141 = math.tanh %140 : vector<8x256xf32>
    %142 = arith.mulf %137, %141 : vector<8x256xf32>
    %143 = arith.index_cast %112 : i32 to index
    %c0_43 = arith.constant 0 : index
    %144 = vector.load %arg8[%143, %c0_43] : memref<64x256xf32, #tpu.memory_space<vmem>>, vector<8x256xf32>
    tpu.vector_store %arg8[%143, %c0_43], %142 {strides = array<i32>} : memref<64x256xf32, #tpu.memory_space<vmem>>, vector<8x256xf32>,
    %c4_i32 = arith.constant 4 : i32
    %c8_i32_44 = arith.constant 8 : i32
    %145 = arith.muli %c4_i32, %c8_i32_44 : i32
    %146 = tpu.assume_multiple %145, 8 : i32
    %147 = arith.index_cast %146 : i32 to index
    %c0_45 = arith.constant 0 : index
    %148 = vector.load %arg7[%147, %c0_45] : memref<64x1024xf32, #tpu.memory_space<vmem>>, vector<8x1024xf32>
    %c0_46 = arith.constant 0 : index
    %c0_47 = arith.constant 0 : index
    %149 = vector.load %arg2[%c0_46, %c0_47] : memref<256x1024xf32, #tpu.memory_space<vmem>>, vector<256x1024xf32>
    %cst_48 = arith.constant dense<0.000000e+00> : vector<8x1024xf32>
    %150 = tpu.matmul %142, %149, %cst_48 {dimension_numbers = #tpu.dot_dimension_numbers<[1], [0], [0], [1], [0, 0, 1, 1], [], []>} : vector<8x256xf32>, vector<256x1024xf32>, vector<8x1024xf32> -> vector<8x1024xf32>
    %151 = arith.addf %148, %150 : vector<8x1024xf32>
    %152 = vector.extract_strided_slice %151 {offsets = [0, 0], sizes = [8, 256], strides = [1, 1]} : vector<8x1024xf32> to vector<8x256xf32>
    %153 = arith.negf %152 : vector<8x256xf32>
    %154 = math.exp %153 : vector<8x256xf32>
    %cst_49 = arith.constant 1.000000e+00 : f32
    %155 = vector.broadcast %cst_49 : f32 to vector<8x256xf32>
    %156 = arith.addf %155, %154 : vector<8x256xf32>
    %157 = arith.divf %155, %156 : vector<8x256xf32>
    %158 = vector.extract_strided_slice %151 {offsets = [0, 256], sizes = [8, 256], strides = [1, 1]} : vector<8x1024xf32> to vector<8x256xf32>
    %159 = arith.negf %158 : vector<8x256xf32>
    %160 = math.exp %159 : vector<8x256xf32>
    %cst_50 = arith.constant 1.000000e+00 : f32
    %161 = vector.broadcast %cst_50 : f32 to vector<8x256xf32>
    %162 = arith.addf %161, %160 : vector<8x256xf32>
    %163 = arith.divf %161, %162 : vector<8x256xf32>
    %164 = vector.extract_strided_slice %151 {offsets = [0, 512], sizes = [8, 256], strides = [1, 1]} : vector<8x1024xf32> to vector<8x256xf32>
    %165 = math.tanh %164 : vector<8x256xf32>
    %166 = vector.extract_strided_slice %151 {offsets = [0, 768], sizes = [8, 256], strides = [1, 1]} : vector<8x1024xf32> to vector<8x256xf32>
    %167 = arith.negf %166 : vector<8x256xf32>
    %168 = math.exp %167 : vector<8x256xf32>
    %cst_51 = arith.constant 1.000000e+00 : f32
    %169 = vector.broadcast %cst_51 : f32 to vector<8x256xf32>
    %170 = arith.addf %169, %168 : vector<8x256xf32>
    %171 = arith.divf %169, %170 : vector<8x256xf32>
    %172 = arith.mulf %163, %140 : vector<8x256xf32>
    %173 = arith.mulf %157, %165 : vector<8x256xf32>
    %174 = arith.addf %172, %173 : vector<8x256xf32>
    %175 = math.tanh %174 : vector<8x256xf32>
    %176 = arith.mulf %171, %175 : vector<8x256xf32>
    %177 = arith.index_cast %146 : i32 to index
    %c0_52 = arith.constant 0 : index
    %178 = vector.load %arg8[%177, %c0_52] : memref<64x256xf32, #tpu.memory_space<vmem>>, vector<8x256xf32>
    tpu.vector_store %arg8[%177, %c0_52], %176 {strides = array<i32>} : memref<64x256xf32, #tpu.memory_space<vmem>>, vector<8x256xf32>,
    %c5_i32 = arith.constant 5 : i32
    %c8_i32_53 = arith.constant 8 : i32
    %179 = arith.muli %c5_i32, %c8_i32_53 : i32
    %180 = tpu.assume_multiple %179, 8 : i32
    %181 = arith.index_cast %180 : i32 to index
    %c0_54 = arith.constant 0 : index
    %182 = vector.load %arg7[%181, %c0_54] : memref<64x1024xf32, #tpu.memory_space<vmem>>, vector<8x1024xf32>
    %c0_55 = arith.constant 0 : index
    %c0_56 = arith.constant 0 : index
    %183 = vector.load %arg2[%c0_55, %c0_56] : memref<256x1024xf32, #tpu.memory_space<vmem>>, vector<256x1024xf32>
    %cst_57 = arith.constant dense<0.000000e+00> : vector<8x1024xf32>
    %184 = tpu.matmul %176, %183, %cst_57 {dimension_numbers = #tpu.dot_dimension_numbers<[1], [0], [0], [1], [0, 0, 1, 1], [], []>} : vector<8x256xf32>, vector<256x1024xf32>, vector<8x1024xf32> -> vector<8x1024xf32>
    %185 = arith.addf %182, %184 : vector<8x1024xf32>
    %186 = vector.extract_strided_slice %185 {offsets = [0, 0], sizes = [8, 256], strides = [1, 1]} : vector<8x1024xf32> to vector<8x256xf32>
    %187 = arith.negf %186 : vector<8x256xf32>
    %188 = math.exp %187 : vector<8x256xf32>
    %cst_58 = arith.constant 1.000000e+00 : f32
    %189 = vector.broadcast %cst_58 : f32 to vector<8x256xf32>
    %190 = arith.addf %189, %188 : vector<8x256xf32>
    %191 = arith.divf %189, %190 : vector<8x256xf32>
    %192 = vector.extract_strided_slice %185 {offsets = [0, 256], sizes = [8, 256], strides = [1, 1]} : vector<8x1024xf32> to vector<8x256xf32>
    %193 = arith.negf %192 : vector<8x256xf32>
    %194 = math.exp %193 : vector<8x256xf32>
    %cst_59 = arith.constant 1.000000e+00 : f32
    %195 = vector.broadcast %cst_59 : f32 to vector<8x256xf32>
    %196 = arith.addf %195, %194 : vector<8x256xf32>
    %197 = arith.divf %195, %196 : vector<8x256xf32>
    %198 = vector.extract_strided_slice %185 {offsets = [0, 512], sizes = [8, 256], strides = [1, 1]} : vector<8x1024xf32> to vector<8x256xf32>
    %199 = math.tanh %198 : vector<8x256xf32>
    %200 = vector.extract_strided_slice %185 {offsets = [0, 768], sizes = [8, 256], strides = [1, 1]} : vector<8x1024xf32> to vector<8x256xf32>
    %201 = arith.negf %200 : vector<8x256xf32>
    %202 = math.exp %201 : vector<8x256xf32>
    %cst_60 = arith.constant 1.000000e+00 : f32
    %203 = vector.broadcast %cst_60 : f32 to vector<8x256xf32>
    %204 = arith.addf %203, %202 : vector<8x256xf32>
    %205 = arith.divf %203, %204 : vector<8x256xf32>
    %206 = arith.mulf %197, %174 : vector<8x256xf32>
    %207 = arith.mulf %191, %199 : vector<8x256xf32>
    %208 = arith.addf %206, %207 : vector<8x256xf32>
    %209 = math.tanh %208 : vector<8x256xf32>
    %210 = arith.mulf %205, %209 : vector<8x256xf32>
    %211 = arith.index_cast %180 : i32 to index
    %c0_61 = arith.constant 0 : index
    %212 = vector.load %arg8[%211, %c0_61] : memref<64x256xf32, #tpu.memory_space<vmem>>, vector<8x256xf32>
    tpu.vector_store %arg8[%211, %c0_61], %210 {strides = array<i32>} : memref<64x256xf32, #tpu.memory_space<vmem>>, vector<8x256xf32>,
    %c6_i32 = arith.constant 6 : i32
    %c8_i32_62 = arith.constant 8 : i32
    %213 = arith.muli %c6_i32, %c8_i32_62 : i32
    %214 = tpu.assume_multiple %213, 8 : i32
    %215 = arith.index_cast %214 : i32 to index
    %c0_63 = arith.constant 0 : index
    %216 = vector.load %arg7[%215, %c0_63] : memref<64x1024xf32, #tpu.memory_space<vmem>>, vector<8x1024xf32>
    %c0_64 = arith.constant 0 : index
    %c0_65 = arith.constant 0 : index
    %217 = vector.load %arg2[%c0_64, %c0_65] : memref<256x1024xf32, #tpu.memory_space<vmem>>, vector<256x1024xf32>
    %cst_66 = arith.constant dense<0.000000e+00> : vector<8x1024xf32>
    %218 = tpu.matmul %210, %217, %cst_66 {dimension_numbers = #tpu.dot_dimension_numbers<[1], [0], [0], [1], [0, 0, 1, 1], [], []>} : vector<8x256xf32>, vector<256x1024xf32>, vector<8x1024xf32> -> vector<8x1024xf32>
    %219 = arith.addf %216, %218 : vector<8x1024xf32>
    %220 = vector.extract_strided_slice %219 {offsets = [0, 0], sizes = [8, 256], strides = [1, 1]} : vector<8x1024xf32> to vector<8x256xf32>
    %221 = arith.negf %220 : vector<8x256xf32>
    %222 = math.exp %221 : vector<8x256xf32>
    %cst_67 = arith.constant 1.000000e+00 : f32
    %223 = vector.broadcast %cst_67 : f32 to vector<8x256xf32>
    %224 = arith.addf %223, %222 : vector<8x256xf32>
    %225 = arith.divf %223, %224 : vector<8x256xf32>
    %226 = vector.extract_strided_slice %219 {offsets = [0, 256], sizes = [8, 256], strides = [1, 1]} : vector<8x1024xf32> to vector<8x256xf32>
    %227 = arith.negf %226 : vector<8x256xf32>
    %228 = math.exp %227 : vector<8x256xf32>
    %cst_68 = arith.constant 1.000000e+00 : f32
    %229 = vector.broadcast %cst_68 : f32 to vector<8x256xf32>
    %230 = arith.addf %229, %228 : vector<8x256xf32>
    %231 = arith.divf %229, %230 : vector<8x256xf32>
    %232 = vector.extract_strided_slice %219 {offsets = [0, 512], sizes = [8, 256], strides = [1, 1]} : vector<8x1024xf32> to vector<8x256xf32>
    %233 = math.tanh %232 : vector<8x256xf32>
    %234 = vector.extract_strided_slice %219 {offsets = [0, 768], sizes = [8, 256], strides = [1, 1]} : vector<8x1024xf32> to vector<8x256xf32>
    %235 = arith.negf %234 : vector<8x256xf32>
    %236 = math.exp %235 : vector<8x256xf32>
    %cst_69 = arith.constant 1.000000e+00 : f32
    %237 = vector.broadcast %cst_69 : f32 to vector<8x256xf32>
    %238 = arith.addf %237, %236 : vector<8x256xf32>
    %239 = arith.divf %237, %238 : vector<8x256xf32>
    %240 = arith.mulf %231, %208 : vector<8x256xf32>
    %241 = arith.mulf %225, %233 : vector<8x256xf32>
    %242 = arith.addf %240, %241 : vector<8x256xf32>
    %243 = math.tanh %242 : vector<8x256xf32>
    %244 = arith.mulf %239, %243 : vector<8x256xf32>
    %245 = arith.index_cast %214 : i32 to index
    %c0_70 = arith.constant 0 : index
    %246 = vector.load %arg8[%245, %c0_70] : memref<64x256xf32, #tpu.memory_space<vmem>>, vector<8x256xf32>
    tpu.vector_store %arg8[%245, %c0_70], %244 {strides = array<i32>} : memref<64x256xf32, #tpu.memory_space<vmem>>, vector<8x256xf32>,
    %c7_i32 = arith.constant 7 : i32
    %c8_i32_71 = arith.constant 8 : i32
    %247 = arith.muli %c7_i32, %c8_i32_71 : i32
    %248 = tpu.assume_multiple %247, 8 : i32
    %249 = arith.index_cast %248 : i32 to index
    %c0_72 = arith.constant 0 : index
    %250 = vector.load %arg7[%249, %c0_72] : memref<64x1024xf32, #tpu.memory_space<vmem>>, vector<8x1024xf32>
    %c0_73 = arith.constant 0 : index
    %c0_74 = arith.constant 0 : index
    %251 = vector.load %arg2[%c0_73, %c0_74] : memref<256x1024xf32, #tpu.memory_space<vmem>>, vector<256x1024xf32>
    %cst_75 = arith.constant dense<0.000000e+00> : vector<8x1024xf32>
    %252 = tpu.matmul %244, %251, %cst_75 {dimension_numbers = #tpu.dot_dimension_numbers<[1], [0], [0], [1], [0, 0, 1, 1], [], []>} : vector<8x256xf32>, vector<256x1024xf32>, vector<8x1024xf32> -> vector<8x1024xf32>
    %253 = arith.addf %250, %252 : vector<8x1024xf32>
    %254 = vector.extract_strided_slice %253 {offsets = [0, 0], sizes = [8, 256], strides = [1, 1]} : vector<8x1024xf32> to vector<8x256xf32>
    %255 = arith.negf %254 : vector<8x256xf32>
    %256 = math.exp %255 : vector<8x256xf32>
    %cst_76 = arith.constant 1.000000e+00 : f32
    %257 = vector.broadcast %cst_76 : f32 to vector<8x256xf32>
    %258 = arith.addf %257, %256 : vector<8x256xf32>
    %259 = arith.divf %257, %258 : vector<8x256xf32>
    %260 = vector.extract_strided_slice %253 {offsets = [0, 256], sizes = [8, 256], strides = [1, 1]} : vector<8x1024xf32> to vector<8x256xf32>
    %261 = arith.negf %260 : vector<8x256xf32>
    %262 = math.exp %261 : vector<8x256xf32>
    %cst_77 = arith.constant 1.000000e+00 : f32
    %263 = vector.broadcast %cst_77 : f32 to vector<8x256xf32>
    %264 = arith.addf %263, %262 : vector<8x256xf32>
    %265 = arith.divf %263, %264 : vector<8x256xf32>
    %266 = vector.extract_strided_slice %253 {offsets = [0, 512], sizes = [8, 256], strides = [1, 1]} : vector<8x1024xf32> to vector<8x256xf32>
    %267 = math.tanh %266 : vector<8x256xf32>
    %268 = vector.extract_strided_slice %253 {offsets = [0, 768], sizes = [8, 256], strides = [1, 1]} : vector<8x1024xf32> to vector<8x256xf32>
    %269 = arith.negf %268 : vector<8x256xf32>
    %270 = math.exp %269 : vector<8x256xf32>
    %cst_78 = arith.constant 1.000000e+00 : f32
    %271 = vector.broadcast %cst_78 : f32 to vector<8x256xf32>
    %272 = arith.addf %271, %270 : vector<8x256xf32>
    %273 = arith.divf %271, %272 : vector<8x256xf32>
    %274 = arith.mulf %265, %242 : vector<8x256xf32>
    %275 = arith.mulf %259, %267 : vector<8x256xf32>
    %276 = arith.addf %274, %275 : vector<8x256xf32>
    %277 = math.tanh %276 : vector<8x256xf32>
    %278 = arith.mulf %273, %277 : vector<8x256xf32>
    %279 = arith.index_cast %248 : i32 to index
    %c0_79 = arith.constant 0 : index
    %280 = vector.load %arg8[%279, %c0_79] : memref<64x256xf32, #tpu.memory_space<vmem>>, vector<8x256xf32>
    tpu.vector_store %arg8[%279, %c0_79], %278 {strides = array<i32>} : memref<64x256xf32, #tpu.memory_space<vmem>>, vector<8x256xf32>,
    %c8_i32_80 = arith.constant 8 : i32
    %c0_81 = arith.constant 0 : index
    %c0_82 = arith.constant 0 : index
    %281 = vector.load %arg8[%c0_81, %c0_82] : memref<64x256xf32, #tpu.memory_space<vmem>>, vector<64x256xf32>
    %c0_83 = arith.constant 0 : index
    %c0_84 = arith.constant 0 : index
    %282 = vector.load %arg4[%c0_83, %c0_84] : memref<256x1xf32, #tpu.memory_space<vmem>>, vector<256x1xf32>
    %cst_85 = arith.constant dense<0.000000e+00> : vector<64x1xf32>
    %283 = tpu.matmul %281, %282, %cst_85 {dimension_numbers = #tpu.dot_dimension_numbers<[1], [0], [0], [1], [0, 0, 1, 1], [], []>} : vector<64x256xf32>, vector<256x1xf32>, vector<64x1xf32> -> vector<64x1xf32>
    %c0_86 = arith.constant 0 : index
    %c0_87 = arith.constant 0 : index
    %284 = vector.load %arg5[%c0_86, %c0_87] : memref<1x1xf32, #tpu.memory_space<vmem>>, vector<1x1xf32>
    %285 = vector.broadcast %284 : vector<1x1xf32> to vector<64x1xf32>
    %286 = arith.addf %283, %285 : vector<64x1xf32>
    %c0_88 = arith.constant 0 : index
    %c0_89 = arith.constant 0 : index
    %287 = vector.load %arg6[%c0_88, %c0_89] : memref<64x1xf32, #tpu.memory_space<vmem>>, vector<64x1xf32>
    tpu.vector_store %arg6[%c0_88, %c0_89], %286 {strides = array<i32>} : memref<64x1xf32, #tpu.memory_space<vmem>>, vector<64x1xf32>,
    return
  }
}

</mosaic_0001>

<bundles_post_ra>
// kernel: tpu_custom_call.1
= control target key start
LH: loop header
LB: loop body
LE: loop exit
PB: predicated region body
PF: predicated region fallthrough
CT: control target
= control target key end

     0   :  { %s9193_s0 = inlined_call_operand.vmem [shape: f32[64,5], index: 0, kind: input, shape index: {}]   ;;  %s9194_s1 = inlined_call_operand.vmem [shape: f32[5,1024], index: 1, kind: input, shape index: {}]   ;;  %s9195_s2 = inlined_call_operand.hbm [shape: f32[256,1024], index: 2, kind: input, shape index: {}]   ;;  %s9196_s3 = inlined_call_operand.vmem [shape: f32[1,1024], index: 3, kind: input, shape index: {}]   ;;  %s9197_s4 = inlined_call_operand.vmem [shape: f32[256,1], index: 4, kind: input, shape index: {}]   ;;  %s9198_s5 = inlined_call_operand.<no memory space> [shape: f32[1,1], index: 5, kind: input, shape index: {}]   ;;  %s9199_s6 = inlined_call_operand.vmem [shape: f32[64,1], index: 6, kind: output, shape index: {}]  }
   0x1   :  { %v11_v0 = vstv %s9198_s5 }
   0x2   :  { %12 = vst [vmem:[#allocation4] sm:$0x1] %v11_v0 }
   0x3   :  { %13 = vsyncpa [#allocation6], 0  ;;  %s8384_s23 = smov [#allocation5]   ;;  %s8360_s27 = scalar_lea.hbm %s9195_s2, 32768 }
   0x4   :  { %s23_s24 = sshll.u32 %s8384_s23, 4  ;;  %p8361_p0 = scmp.ne.s32.totalorder %s9195_s2, %s8360_s27  ;;  %s24_s24 = int_to_ptr.vmem [resolvable:$true] %s23_s24 }
   0x5   :  { %p8364_p1 = scmp.lt.u32.totalorder %s8360_s27, %s9195_s2 }
   0x7   :  { %p8366_p2 = pnand %p8364_p1, %p8361_p0 }
   0x9   :  { %8369 = shalt.err (!%p8366_p2)
}
   0xa   :  { %s8370_s5 = scalar_lea.vmem %s24_s24, 32768  ;;  %p8375_p4 = scmp.lt.s32.totalorder %s24_s24, %s24_s24 }
   0xb   :  { %p8371_p3 = scmp.ne.s32.totalorder %s24_s24, %s8370_s5  ;;  %p8376_p5 = scmp.lt.s32.totalorder %s8370_s5, %s8370_s5 }
   0xd   :  { %p8377_p6 = por %p8376_p5, %p8375_p4 }
   0xf   :  { %p8378_p7 = pnand %p8377_p6, %p8371_p3 }
  0x11   :  { %8381 = shalt.err (!%p8378_p7)
}
  0x12   :  { %s8385_s8 = smov 1024   ;;  %s8386_s9 = smov 64  }
  0x13   :  { %29 = dma.hbm_to_vmem [thread:$0]  %s9195_s2, 32768, %s24_s24, [#allocation6], %s8385_s8, %s8385_s8, %s8386_s9  }
  0x14   :  { %8382 = dma.done.wait [#allocation6], 32768  }
  0x15   :  { %8383 = vsyncadd [#allocation6], 4294934528  ;;  %v8387_v1 = vmov 0.0   ;;  %vm122_vm0 = vcmask 1044480   ;;  %vm97_vm1 = vcmask 39936   ;;  %v8457_v6 = vld [vmem:[%s9193_s0] sm:$0xff] }
  0x16   :  { %211 = vmatprep.mubr.f32.mxu1 %v8387_v1  ;;  %437 = vmatprep.mubr.f32.mxu0 %v8387_v1  ;;  %v48_v2 = vld [vmem:[%s9194_s1 + $0x8] sm:$0x1f]  ;;  %v47_v4 = vld [vmem:[%s9194_s1] sm:$0x1f]  ;;  %v50_v7 = vld [vmem:[%s9194_s1 + $0x18] sm:$0x1f] }
  0x17   :  { %v52_v3 = vld [vmem:[%s9194_s1 + $0x28] sm:$0x1f]  ;;  %5747 = vmatprep.subr.msk.mxu1 %vm122_vm0, %v48_v2  ;;  %v51_v5 = vld [vmem:[%s9194_s1 + $0x20] sm:$0x1f]  ;;  %v49_v10 = vld [vmem:[%s9194_s1 + $0x10] sm:$0x1f] }
  0x18   :  { %5767 = vmatprep.subr.msk.mxu0 %vm122_vm0, %v52_v3  ;;  %5748 = vmatpush1.msk.msra.mxu1 %vm122_vm0, %v47_v4  ;;  %v675_v8 = vld [vmem:[#allocation5 + $0x8] sm:$0xff]  ;;  %v674_v12 = vld [vmem:[#allocation5] sm:$0xff]  ;;  %v8497_v34 = vld [vmem:[%s9193_s0 + $0x18] sm:$0xff]  ;;  %vm5719_vm2 = vcmask 7168  }
  0x19   :  { %5768 = vmatpush1.msk.msra.mxu0 %vm122_vm0, %v51_v5  ;;  %v683_v9 = vld [vmem:[#allocation5 + $0x48] sm:$0xff]  ;;  %5749 = vmatmul.mubr.msk.f32.vlgmr.msra.gmra.mrb[0].mxu1 %vm97_vm1, %v8457_v6  ;;  %v682_v13 = vld [vmem:[#allocation5 + $0x40] sm:$0xff]  ;;  %v54_v41 = vld [vmem:[%s9194_s1 + $0x38] sm:$0x1f] }
  0x1a   :  { %5757 = vmatprep.subr.msk.mxu1 %vm122_vm0, %v50_v7  ;;  %v5892_v11 = vpack.c.bf16 %v683_v9, %v675_v8  ;;  %v8473_v14 = vld [vmem:[%s9193_s0 + $0x8] sm:$0xff]  ;;  %5769 = vmatmul.mubr.msk.f32.vlgmr.msra.gmra.mrb[0].mxu0 %vm97_vm1, %v8457_v6  ;;  %v5894_v15 = vpack.c.bf16 %v682_v13, %v674_v12  ;;  %v8486_v27 = vld [vmem:[%s9193_s0 + $0x10] sm:$0xff]  ;;  %v8511_v42 = vld [vmem:[%s9193_s0 + $0x20] sm:$0xff] }
  0x1b   :  { %5758 = vmatpush1.msk.msra.mxu1 %vm122_vm0, %v49_v10  ;;  %v691_v16 = vld [vmem:[#allocation5 + $0x88] sm:$0xff]  ;;  %v690_v18 = vld [vmem:[#allocation5 + $0x80] sm:$0xff]  ;;  %217 = vmatprep.mubr.f32.mxu1 %v8387_v1  ;;  %v8545_v63 = vld [vmem:[%s9193_s0 + $0x38] sm:$0xff] }
  0x1c   :  { %v699_v17 = vld [vmem:[#allocation5 + $0xc8] sm:$0xff]  ;;  %5893 = vmatprep.subr.bf16.mxu0 %v5892_v11  ;;  %v698_v20 = vld [vmem:[#allocation5 + $0xc0] sm:$0xff]  ;;  %443 = vmatprep.mubr.f32.mxu0 %v8387_v1  ;;  %v677_v4 = vld [vmem:[#allocation5 + $0x18] sm:$0xff] }
  0x1d   :  { %v5896_v19 = vpack.c.bf16 %v699_v17, %v691_v16  ;;  %v707_v21 = vld [vmem:[#allocation5 + $0x108] sm:$0xff]  ;;  %5895 = vmatpush1.bf16.msra.mxu0 %v5894_v15  ;;  %v5898_v22 = vpack.c.bf16 %v698_v20, %v690_v18  ;;  %5750 = vmatmul.mubr.msk.f32.gmra.mrb[2].mxu1 %vm97_vm1, %v8473_v14  ;;  %v706_v25 = vld [vmem:[#allocation5 + $0x100] sm:$0xff]  ;;  %v685_v5 = vld [vmem:[#allocation5 + $0x58] sm:$0xff] }
  0x1e   :  { %v715_v23 = vld [vmem:[#allocation5 + $0x148] sm:$0xff]  ;;  %v714_v26 = vld [vmem:[#allocation5 + $0x140] sm:$0xff]  ;;  %223 = vmatprep.mubr.f32.mxu1 %v8387_v1  ;;  %5770 = vmatmul.mubr.msk.f32.gmra.mrb[2].mxu0 %vm97_vm1, %v8473_v14  ;;  %v8558_v13 = vpack.c.bf16 %v685_v5, %v677_v4  ;;  %v701_v4 = vld [vmem:[#allocation5 + $0xd8] sm:$0xff] }
  0x1f   :  { %5897 = vmatprep.subr.bf16.mxu0 %v5896_v19  ;;  %v5900_v24 = vpack.c.bf16 %v715_v23, %v707_v21  ;;  %v723_v28 = vld [vmem:[#allocation5 + $0x188] sm:$0xff]  ;;  %449 = vmatprep.mubr.f32.mxu0 %v8387_v1  ;;  %v5902_v30 = vpack.c.bf16 %v714_v26, %v706_v25  ;;  %v722_v32 = vld [vmem:[#allocation5 + $0x180] sm:$0xff] }
  0x20   :  { %v731_v29 = vld [vmem:[#allocation5 + $0x1c8] sm:$0xff]  ;;  %v730_v33 = vld [vmem:[#allocation5 + $0x1c0] sm:$0xff]  ;;  %5777 = vmatprep.subr.msk.mxu1 %vm122_vm0, %v54_v41 }
  0x21   :  { %5899 = vmatpush1.bf16.msra.mxu0 %v5898_v22  ;;  %5751 = vmatmul.mubr.msk.f32.gmra.mrb[4].mxu1 %vm97_vm1, %v8486_v27  ;;  %v5904_v31 = vpack.c.bf16 %v731_v29, %v723_v28  ;;  %v739_v35 = vld [vmem:[#allocation5 + $0x208] sm:$0xff]  ;;  %v5906_v37 = vpack.c.bf16 %v730_v33, %v722_v32  ;;  %v738_v39 = vld [vmem:[#allocation5 + $0x200] sm:$0xff] }
  0x22   :  { %5901 = vmatprep.subr.bf16.mxu0 %v5900_v24  ;;  %229 = vmatprep.mubr.f32.mxu1 %v8387_v1  ;;  %v747_v36 = vld [vmem:[#allocation5 + $0x248] sm:$0xff]  ;;  %v746_v40 = vld [vmem:[#allocation5 + $0x240] sm:$0xff] }
  0x23   :  { %5771 = vmatmul.mubr.msk.f32.gmra.mrb[4].mxu0 %vm97_vm1, %v8486_v27  ;;  %v5908_v38 = vpack.c.bf16 %v747_v36, %v739_v35  ;;  %v755_v43 = vld [vmem:[#allocation5 + $0x288] sm:$0xff]  ;;  %v5910_v45 = vpack.c.bf16 %v746_v40, %v738_v39  ;;  %v754_v47 = vld [vmem:[#allocation5 + $0x280] sm:$0xff] }
  0x24   :  { %455 = vmatprep.mubr.f32.mxu0 %v8387_v1  ;;  %v763_v44 = vld [vmem:[#allocation5 + $0x2c8] sm:$0xff]  ;;  %v762_v48 = vld [vmem:[#allocation5 + $0x2c0] sm:$0xff] }
  0x25   :  { %5903 = vmatpush1.bf16.msra.mxu0 %v5902_v30  ;;  %5752 = vmatmul.mubr.msk.f32.gmra.mrb[6].mxu1 %vm97_vm1, %v8497_v34  ;;  %v5912_v46 = vpack.c.bf16 %v763_v44, %v755_v43  ;;  %v8523_v49 = vld [vmem:[%s9193_s0 + $0x28] sm:$0xff]  ;;  %v5914_v52 = vpack.c.bf16 %v762_v48, %v754_v47  ;;  %v8534_v56 = vld [vmem:[%s9193_s0 + $0x30] sm:$0xff] }
  0x26   :  { %5905 = vmatprep.subr.bf16.mxu0 %v5904_v31  ;;  %235 = vmatprep.mubr.f32.mxu1 %v8387_v1  ;;  %v771_v50 = vld [vmem:[#allocation5 + $0x308] sm:$0xff]  ;;  %v770_v54 = vld [vmem:[#allocation5 + $0x300] sm:$0xff] }
  0x27   :  { %5772 = vmatmul.mubr.msk.f32.gmra.mrb[6].mxu0 %vm97_vm1, %v8497_v34  ;;  %v779_v51 = vld [vmem:[#allocation5 + $0x348] sm:$0xff]  ;;  %v778_v55 = vld [vmem:[#allocation5 + $0x340] sm:$0xff] }
  0x28   :  { %461 = vmatprep.mubr.f32.mxu0 %v8387_v1  ;;  %v5916_v53 = vpack.c.bf16 %v779_v51, %v771_v50  ;;  %v787_v57 = vld [vmem:[#allocation5 + $0x388] sm:$0xff]  ;;  %v5918_v59 = vpack.c.bf16 %v778_v55, %v770_v54  ;;  %v786_v61 = vld [vmem:[#allocation5 + $0x380] sm:$0xff] }
  0x29   :  { %5907 = vmatpush1.bf16.msra.mxu0 %v5906_v37  ;;  %5753 = vmatmul.mubr.msk.f32.gmra.mrb[8].mxu1 %vm97_vm1, %v8511_v42  ;;  %v795_v58 = vld [vmem:[#allocation5 + $0x3c8] sm:$0xff]  ;;  %v794_v62 = vld [vmem:[#allocation5 + $0x3c0] sm:$0xff] }
  0x2a   :  { %5909 = vmatprep.subr.bf16.mxu0 %v5908_v38  ;;  %241 = vmatprep.mubr.f32.mxu1 %v8387_v1  ;;  %v5920_v60 = vpack.c.bf16 %v795_v58, %v787_v57  ;;  %v803_v0 = vld [vmem:[#allocation5 + $0x408] sm:$0xff]  ;;  %v5922_v3 = vpack.c.bf16 %v794_v62, %v786_v61  ;;  %v802_v8 = vld [vmem:[#allocation5 + $0x400] sm:$0xff]  ;;  %v676_v62 = vld [vmem:[#allocation5 + $0x10] sm:$0xff] }
  0x2b   :  { %5773 = vmatmul.mubr.msk.f32.gmra.mrb[8].mxu0 %vm97_vm1, %v8511_v42  ;;  %v811_v2 = vld [vmem:[#allocation5 + $0x448] sm:$0xff]  ;;  %v810_v9 = vld [vmem:[#allocation5 + $0x440] sm:$0xff] }
  0x2c   :  { %467 = vmatprep.mubr.f32.mxu0 %v8387_v1  ;;  %v5924_v7 = vpack.c.bf16 %v811_v2, %v803_v0  ;;  %v819_v10 = vld [vmem:[#allocation5 + $0x488] sm:$0xff]  ;;  %v5926_v15 = vpack.c.bf16 %v810_v9, %v802_v8  ;;  %v818_v17 = vld [vmem:[#allocation5 + $0x480] sm:$0xff]  ;;  %v684_v0 = vld [vmem:[#allocation5 + $0x50] sm:$0xff] }
  0x2d   :  { %5911 = vmatpush1.bf16.msra.mxu0 %v5910_v45  ;;  %5754 = vmatmul.mubr.msk.f32.gmra.mrb[10].mxu1 %vm97_vm1, %v8523_v49  ;;  %v827_v11 = vld [vmem:[#allocation5 + $0x4c8] sm:$0xff]  ;;  %v826_v18 = vld [vmem:[#allocation5 + $0x4c0] sm:$0xff]  ;;  %v8587_v9 = vpack.c.bf16 %v684_v0, %v676_v62 }
  0x2e   :  { %5913 = vmatprep.subr.bf16.mxu0 %v5912_v46  ;;  %247 = vmatprep.mubr.f32.mxu1 %v8387_v1  ;;  %v53_v12 = vld [vmem:[%s9194_s1 + $0x30] sm:$0x1f]  ;;  %v5928_v16 = vpack.c.bf16 %v827_v11, %v819_v10  ;;  %v5930_v21 = vpack.c.bf16 %v826_v18, %v818_v17  ;;  %v834_v23 = vld [vmem:[#allocation5 + $0x500] sm:$0xff]  ;;  %v709_v18 = vld [vmem:[#allocation5 + $0x118] sm:$0xff] }
  0x2f   :  { %5774 = vmatmul.mubr.msk.f32.gmra.mrb[10].mxu0 %vm97_vm1, %v8523_v49  ;;  %v835_v19 = vld [vmem:[#allocation5 + $0x508] sm:$0xff]  ;;  %v842_v24 = vld [vmem:[#allocation5 + $0x540] sm:$0xff] }
  0x30   :  { %473 = vmatprep.mubr.f32.mxu0 %v8387_v1  ;;  %v843_v20 = vld [vmem:[#allocation5 + $0x548] sm:$0xff]  ;;  %v5934_v28 = vpack.c.bf16 %v842_v24, %v834_v23  ;;  %v850_v30 = vld [vmem:[#allocation5 + $0x580] sm:$0xff] }
  0x31   :  { %5915 = vmatpush1.bf16.msra.mxu0 %v5914_v52  ;;  %5755 = vmatmul.mubr.msk.f32.gmra.mrb[12].mxu1 %vm97_vm1, %v8534_v56  ;;  %v5932_v22 = vpack.c.bf16 %v843_v20, %v835_v19  ;;  %v851_v25 = vld [vmem:[#allocation5 + $0x588] sm:$0xff]  ;;  %v858_v31 = vld [vmem:[#allocation5 + $0x5c0] sm:$0xff]  ;;  %v717_v19 = vld [vmem:[#allocation5 + $0x158] sm:$0xff] }
  0x32   :  { %5917 = vmatprep.subr.bf16.mxu0 %v5916_v53  ;;  %253 = vmatprep.mubr.f32.mxu1 %v8387_v1  ;;  %v859_v26 = vld [vmem:[#allocation5 + $0x5c8] sm:$0xff]  ;;  %v5938_v35 = vpack.c.bf16 %v858_v31, %v850_v30  ;;  %v866_v37 = vld [vmem:[#allocation5 + $0x600] sm:$0xff]  ;;  %v725_v30 = vld [vmem:[#allocation5 + $0x198] sm:$0xff] }
  0x33   :  { %5775 = vmatmul.mubr.msk.f32.gmra.mrb[12].mxu0 %vm97_vm1, %v8534_v56  ;;  %v5936_v29 = vpack.c.bf16 %v859_v26, %v851_v25  ;;  %v867_v32 = vld [vmem:[#allocation5 + $0x608] sm:$0xff]  ;;  %v874_v38 = vld [vmem:[#allocation5 + $0x640] sm:$0xff]  ;;  %v8599_v26 = vpack.c.bf16 %v717_v19, %v709_v18  ;;  %v733_v31 = vld [vmem:[#allocation5 + $0x1d8] sm:$0xff] }
  0x34   :  { %479 = vmatprep.mubr.f32.mxu0 %v8387_v1  ;;  %v875_v33 = vld [vmem:[#allocation5 + $0x648] sm:$0xff]  ;;  %v5942_v41 = vpack.c.bf16 %v874_v38, %v866_v37  ;;  %v882_v44 = vld [vmem:[#allocation5 + $0x680] sm:$0xff]  ;;  %v772_v19 = vld [vmem:[#allocation5 + $0x310] sm:$0xff] }
  0x35   :  { %5919 = vmatpush1.bf16.msra.mxu0 %v5918_v59  ;;  %5756 = vmatmul.mubr.msk.f32.gmra.mrb[14].mxu1 %vm97_vm1, %v8545_v63  ;;  %v5940_v36 = vpack.c.bf16 %v875_v33, %v867_v32  ;;  %v883_v39 = vld [vmem:[#allocation5 + $0x688] sm:$0xff]  ;;  %v890_v45 = vld [vmem:[#allocation5 + $0x6c0] sm:$0xff] }
  0x36   :  { %5921 = vmatprep.subr.bf16.mxu0 %v5920_v60  ;;  %324 = vmatprep.mubr.f32.mxu1 %v8387_v1  ;;  %v891_v40 = vld [vmem:[#allocation5 + $0x6c8] sm:$0xff]  ;;  %v5946_v48 = vpack.c.bf16 %v890_v45, %v882_v44  ;;  %v898_v51 = vld [vmem:[#allocation5 + $0x700] sm:$0xff]  ;;  %v741_v44 = vld [vmem:[#allocation5 + $0x218] sm:$0xff] }
  0x37   :  { %5776 = vmatmul.mubr.msk.f32.gmra.mrb[14].mxu0 %vm97_vm1, %v8545_v63  ;;  %v5944_v43 = vpack.c.bf16 %v891_v40, %v883_v39  ;;  %v899_v46 = vld [vmem:[#allocation5 + $0x708] sm:$0xff]  ;;  %v906_v52 = vld [vmem:[#allocation5 + $0x740] sm:$0xff]  ;;  %v8609_v39 = vpack.c.bf16 %v733_v31, %v725_v30  ;;  %v724_v40 = vld [vmem:[#allocation5 + $0x190] sm:$0xff] }
  0x38   :  { %994 = vmatprep.mubr.f32.mxu0 %v8387_v1  ;;  %v907_v47 = vld [vmem:[#allocation5 + $0x748] sm:$0xff]  ;;  %v5950_v55 = vpack.c.bf16 %v906_v52, %v898_v51  ;;  %v914_v58 = vld [vmem:[#allocation5 + $0x780] sm:$0xff]  ;;  %v749_v45 = vld [vmem:[#allocation5 + $0x258] sm:$0xff] }
  0x39   :  { %5923 = vmatpush1.bf16.msra.mxu0 %v5922_v3  ;;  %5759 = vmatmul.mubr.msk.f32.vlgmr.msra.gmra.mrb[16].mxu1 %vm97_vm1, %v8457_v6  ;;  %v5948_v50 = vpack.c.bf16 %v907_v47, %v899_v46  ;;  %v915_v53 = vld [vmem:[#allocation5 + $0x788] sm:$0xff]  ;;  %v922_v59 = vld [vmem:[#allocation5 + $0x7c0] sm:$0xff]  ;;  %v693_v3 = vld [vmem:[#allocation5 + $0x98] sm:$0xff]  ;;  %v8618_v52 = vpack.c.bf16 %v749_v45, %v741_v44 }
  0x3a   :  { %5925 = vmatprep.subr.bf16.mxu0 %v5924_v7  ;;  %5778 = vmatpush1.msk.msra.mxu1 %vm122_vm0, %v53_v12  ;;  %v923_v54 = vld [vmem:[#allocation5 + $0x7c8] sm:$0xff]  ;;  %v5954_v2 = vpack.c.bf16 %v922_v59, %v914_v58  ;;  %v678_v7 = vld [vmem:[#allocation5 + $0x20] sm:$0xff]  ;;  %v8589_v12 = vpack.c.bf16 %v701_v4, %v693_v3  ;;  %v765_v58 = vld [vmem:[#allocation5 + $0x2d8] sm:$0xff] }
  0x3b   :  { %330 = vmatprep.mubr.f32.mxu1 %v8387_v1  ;;  %5957 = vmatprep.subr.bf16.mxu1 %v8558_v13  ;;  %v5952_v57 = vpack.c.bf16 %v923_v54, %v915_v53  ;;  %v679_v60 = vld [vmem:[#allocation5 + $0x28] sm:$0xff]  ;;  %v686_v8 = vld [vmem:[#allocation5 + $0x60] sm:$0xff]  ;;  %v740_v53 = vld [vmem:[#allocation5 + $0x210] sm:$0xff] }
  0x3c   :  { %v687_v61 = vld [vmem:[#allocation5 + $0x68] sm:$0xff]  ;;  %v6022_v17 = vpack.c.bf16 %v686_v8, %v678_v7  ;;  %v710_v33 = vld [vmem:[#allocation5 + $0x120] sm:$0xff]  ;;  %v748_v54 = vld [vmem:[#allocation5 + $0x250] sm:$0xff] }
  0x3d   :  { %5927 = vmatpush1.bf16.msra.mxu0 %v5926_v15  ;;  %5760 = vmatmul.mubr.msk.f32.gmra.mrb[18].mxu1 %vm97_vm1, %v8473_v14  ;;  %v6020_v5 = vpack.c.bf16 %v687_v61, %v679_v60  ;;  %v695_v10 = vld [vmem:[#allocation5 + $0xa8] sm:$0xff]  ;;  %v692_v15 = vld [vmem:[#allocation5 + $0x90] sm:$0xff]  ;;  %v726_v46 = vld [vmem:[#allocation5 + $0x1a0] sm:$0xff]  ;;  %v8623_v61 = vpack.c.bf16 %v748_v54, %v740_v53 }
  0x3e   :  { %5929 = vmatprep.subr.bf16.mxu0 %v5928_v16  ;;  %336 = vmatprep.mubr.f32.mxu1 %v8387_v1  ;;  %v703_v11 = vld [vmem:[#allocation5 + $0xe8] sm:$0xff]  ;;  %v700_v16 = vld [vmem:[#allocation5 + $0xd0] sm:$0xff]  ;;  %v734_v47 = vld [vmem:[#allocation5 + $0x1e0] sm:$0xff] }
  0x3f   :  { %v6024_v20 = vpack.c.bf16 %v703_v11, %v695_v10  ;;  %v8594_v23 = vpack.c.bf16 %v700_v16, %v692_v15  ;;  %v711_v24 = vld [vmem:[#allocation5 + $0x128] sm:$0xff]  ;;  %v742_v59 = vld [vmem:[#allocation5 + $0x220] sm:$0xff]  ;;  %v756_v3 = vld [vmem:[#allocation5 + $0x290] sm:$0xff] }
  0x40   :  { %v719_v25 = vld [vmem:[#allocation5 + $0x168] sm:$0xff]  ;;  %v750_v60 = vld [vmem:[#allocation5 + $0x260] sm:$0xff]  ;;  %v764_v4 = vld [vmem:[#allocation5 + $0x2d0] sm:$0xff] }
  0x41   :  { %5931 = vmatpush1.bf16.msra.mxu0 %v5930_v21  ;;  %5761 = vmatmul.mubr.msk.f32.gmra.mrb[20].mxu1 %vm97_vm1, %v8486_v27  ;;  %v694_v21 = vld [vmem:[#allocation5 + $0xa0] sm:$0xff]  ;;  %v6028_v32 = vpack.c.bf16 %v719_v25, %v711_v24  ;;  %v727_v37 = vld [vmem:[#allocation5 + $0x1a8] sm:$0xff]  ;;  %v773_v7 = vld [vmem:[#allocation5 + $0x318] sm:$0xff]  ;;  %v8632_v15 = vpack.c.bf16 %v764_v4, %v756_v3 }
  0x42   :  { %5933 = vmatprep.subr.bf16.mxu0 %v5932_v22  ;;  %342 = vmatprep.mubr.f32.mxu1 %v8387_v1  ;;  %v702_v22 = vld [vmem:[#allocation5 + $0xe0] sm:$0xff]  ;;  %v735_v38 = vld [vmem:[#allocation5 + $0x1e8] sm:$0xff]  ;;  %v781_v8 = vld [vmem:[#allocation5 + $0x358] sm:$0xff] }
  0x43   :  { %v751_v51 = vld [vmem:[#allocation5 + $0x268] sm:$0xff]  ;;  %v758_v10 = vld [vmem:[#allocation5 + $0x2a0] sm:$0xff]  ;;  %v8636_v18 = vpack.c.bf16 %v781_v8, %v773_v7  ;;  %v797_v24 = vld [vmem:[#allocation5 + $0x3d8] sm:$0xff] }
  0x44   :  { %v759_v62 = vld [vmem:[#allocation5 + $0x2a8] sm:$0xff]  ;;  %v766_v11 = vld [vmem:[#allocation5 + $0x2e0] sm:$0xff]  ;;  %v829_v53 = vld [vmem:[#allocation5 + $0x4d8] sm:$0xff] }
  0x45   :  { %5935 = vmatpush1.bf16.msra.mxu0 %v5934_v28  ;;  %5762 = vmatmul.mubr.msk.f32.gmra.mrb[22].mxu1 %vm97_vm1, %v8497_v34  ;;  %v708_v28 = vld [vmem:[#allocation5 + $0x110] sm:$0xff]  ;;  %v767_v0 = vld [vmem:[#allocation5 + $0x2e8] sm:$0xff]  ;;  %v774_v25 = vld [vmem:[#allocation5 + $0x320] sm:$0xff] }
  0x46   :  { %5937 = vmatprep.subr.bf16.mxu0 %v5936_v29  ;;  %348 = vmatprep.mubr.f32.mxu1 %v8387_v1  ;;  %v6026_v29 = vpack.c.bf16 %v702_v22, %v694_v21  ;;  %v775_v16 = vld [vmem:[#allocation5 + $0x328] sm:$0xff]  ;;  %v6042_v21 = vpack.c.bf16 %v766_v11, %v758_v10  ;;  %v789_v22 = vld [vmem:[#allocation5 + $0x398] sm:$0xff]  ;;  %v806_v54 = vld [vmem:[#allocation5 + $0x420] sm:$0xff] }
  0x47   :  { %v799_v30 = vld [vmem:[#allocation5 + $0x3e8] sm:$0xff]  ;;  %v8645_v31 = vpack.c.bf16 %v797_v24, %v789_v22  ;;  %v837_v3 = vld [vmem:[#allocation5 + $0x518] sm:$0xff]  ;;  %v830_v7 = vld [vmem:[#allocation5 + $0x4e0] sm:$0xff] }
  0x48   :  { %v807_v44 = vld [vmem:[#allocation5 + $0x428] sm:$0xff]  ;;  %v845_v4 = vld [vmem:[#allocation5 + $0x558] sm:$0xff]  ;;  %v838_v24 = vld [vmem:[#allocation5 + $0x520] sm:$0xff] }
  0x49   :  { %5939 = vmatpush1.bf16.msra.mxu0 %v5938_v35  ;;  %5763 = vmatmul.mubr.msk.f32.gmra.mrb[24].mxu1 %vm97_vm1, %v8511_v42  ;;  %v718_v35 = vld [vmem:[#allocation5 + $0x160] sm:$0xff]  ;;  %v815_v45 = vld [vmem:[#allocation5 + $0x468] sm:$0xff]  ;;  %v8666_v11 = vpack.c.bf16 %v845_v4, %v837_v3  ;;  %v884_v3 = vld [vmem:[#allocation5 + $0x690] sm:$0xff] }
  0x4a   :  { %5941 = vmatprep.subr.bf16.mxu0 %v5940_v36  ;;  %354 = vmatprep.mubr.f32.mxu1 %v8387_v1  ;;  %v847_v10 = vld [vmem:[#allocation5 + $0x568] sm:$0xff]  ;;  %v892_v4 = vld [vmem:[#allocation5 + $0x6d0] sm:$0xff] }
  0x4d   :  { %5943 = vmatpush1.bf16.msra.mxu0 %v5942_v41  ;;  %5764 = vmatmul.mubr.msk.f32.gmra.mrb[26].mxu1 %vm97_vm1, %v8523_v49  ;;  %v732_v41 = vld [vmem:[#allocation5 + $0x1d0] sm:$0xff] }
  0x4e   :  { %5945 = vmatprep.subr.bf16.mxu0 %v5944_v43  ;;  %360 = vmatprep.mubr.f32.mxu1 %v8387_v1  ;;  %v6030_v43 = vpack.c.bf16 %v718_v35, %v710_v33  ;;  %v796_v33 = vld [vmem:[#allocation5 + $0x3d0] sm:$0xff] }
  0x51   :  { %5947 = vmatpush1.bf16.msra.mxu0 %v5946_v48  ;;  %5765 = vmatmul.mubr.msk.f32.gmra.mrb[28].mxu1 %vm97_vm1, %v8534_v56  ;;  %v8614_v48 = vpack.c.bf16 %v732_v41, %v724_v40  ;;  %v790_v40 = vld [vmem:[#allocation5 + $0x3a0] sm:$0xff] }
  0x52   :  { %5949 = vmatprep.subr.bf16.mxu0 %v5948_v50  ;;  %366 = vmatprep.mubr.f32.mxu1 %v8387_v1  ;;  %v743_v50 = vld [vmem:[#allocation5 + $0x228] sm:$0xff]  ;;  %v798_v41 = vld [vmem:[#allocation5 + $0x3e0] sm:$0xff] }
  0x55   :  { %5951 = vmatpush1.bf16.msra.mxu0 %v5950_v55  ;;  %5766 = vmatmul.mubr.msk.f32.gmra.mrb[30].mxu1 %vm97_vm1, %v8545_v63  ;;  %v6034_v55 = vpack.c.bf16 %v734_v47, %v726_v46  ;;  %v804_v46 = vld [vmem:[#allocation5 + $0x410] sm:$0xff] }
  0x56   :  { %5953 = vmatprep.subr.bf16.mxu0 %v5952_v57  ;;  %550 = vmatprep.mubr.f32.mxu1 %v8387_v1  ;;  %v757_v57 = vld [vmem:[#allocation5 + $0x298] sm:$0xff]  ;;  %v812_v47 = vld [vmem:[#allocation5 + $0x450] sm:$0xff] }
  0x59   :  { %5955 = vmatpush1.bf16.msra.mxu0 %v5954_v2  ;;  %5779 = vmatmul.mubr.msk.f32.vlgmr.msra.gmra.mrb[32].mxu1 %vm97_vm1, %v8457_v6  ;;  %v716_v6 = vld [vmem:[#allocation5 + $0x150] sm:$0xff]  ;;  %v8627_v2 = vpack.c.bf16 %v765_v58, %v757_v57  ;;  %v5990_v57 = vpack.c.bf16 %v812_v47, %v804_v46  ;;  %v823_v58 = vld [vmem:[#allocation5 + $0x4a8] sm:$0xff] }
  0x5a   :  { %6021 = vmatprep.subr.bf16.mxu0 %v6020_v5  ;;  %5959 = vmatpush1.bf16.msra.mxu1 %v8587_v9  ;;  %v8605_v36 = vpack.c.bf16 %v716_v6, %v708_v28  ;;  %v6038_v5 = vpack.c.bf16 %v750_v60, %v742_v59  ;;  %v782_v28 = vld [vmem:[#allocation5 + $0x360] sm:$0xff]  ;;  %v820_v60 = vld [vmem:[#allocation5 + $0x490] sm:$0xff]  ;;  %v879_v46 = vld [vmem:[#allocation5 + $0x668] sm:$0xff] }
  0x5b   :  { %556 = vmatprep.mubr.f32.mxu1 %v8387_v1  ;;  %5961 = vmatprep.subr.bf16.mxu1 %v8589_v12  ;;  %v6046_v35 = vpack.c.bf16 %v782_v28, %v774_v25  ;;  %v855_v28 = vld [vmem:[#allocation5 + $0x5a8] sm:$0xff] }
  0x5c   :  { %995 = vmatmul.mubr.f32.vlgmr.msra.gmra.mrb[16].mxu0 %v8387_v1 }
  0x5d   :  { %6023 = vmatpush1.bf16.msra.mxu0 %v6022_v17  ;;  %1136 = vmatprep.mubr.f32.mxu0 %v8387_v1  ;;  %v783_v17 = vld [vmem:[#allocation5 + $0x368] sm:$0xff] }
  0x5e   :  { %6025 = vmatprep.subr.bf16.mxu0 %v6024_v20  ;;  %5780 = vmatmul.mubr.msk.f32.gmra.mrb[34].mxu1 %vm97_vm1, %v8473_v14  ;;  %v6032_v14 = vpack.c.bf16 %v735_v38, %v727_v37  ;;  %v780_v20 = vld [vmem:[#allocation5 + $0x350] sm:$0xff]  ;;  %v805_v37 = vld [vmem:[#allocation5 + $0x418] sm:$0xff] }
  0x5f   :  { %5963 = vmatpush1.bf16.msra.mxu1 %v8594_v23  ;;  %562 = vmatprep.mubr.f32.mxu1 %v8387_v1  ;;  %v8641_v6 = vpack.c.bf16 %v780_v20, %v772_v19  ;;  %v813_v38 = vld [vmem:[#allocation5 + $0x458] sm:$0xff] }
  0x60   :  { %5965 = vmatprep.subr.bf16.mxu1 %v8599_v26  ;;  %v853_v20 = vld [vmem:[#allocation5 + $0x598] sm:$0xff] }
  0x61   :  { %6027 = vmatpush1.bf16.msra.mxu0 %v6026_v29  ;;  %v791_v29 = vld [vmem:[#allocation5 + $0x3a8] sm:$0xff] }
  0x62   :  { %6029 = vmatprep.subr.bf16.mxu0 %v6028_v32  ;;  %5781 = vmatmul.mubr.msk.f32.gmra.mrb[36].mxu1 %vm97_vm1, %v8486_v27  ;;  %v6036_v27 = vpack.c.bf16 %v751_v51, %v743_v50  ;;  %v788_v32 = vld [vmem:[#allocation5 + $0x390] sm:$0xff]  ;;  %v6050_v50 = vpack.c.bf16 %v798_v41, %v790_v40  ;;  %v821_v51 = vld [vmem:[#allocation5 + $0x498] sm:$0xff]  ;;  %v854_v40 = vld [vmem:[#allocation5 + $0x5a0] sm:$0xff] }
  0x63   :  { %5967 = vmatpush1.bf16.msra.mxu1 %v8605_v36  ;;  %568 = vmatprep.mubr.f32.mxu1 %v8387_v1  ;;  %v8661_v59 = vpack.c.bf16 %v829_v53, %v821_v51  ;;  %v862_v41 = vld [vmem:[#allocation5 + $0x5e0] sm:$0xff]  ;;  %v876_v51 = vld [vmem:[#allocation5 + $0x650] sm:$0xff] }
  0x64   :  { %5969 = vmatprep.subr.bf16.mxu1 %v8609_v39  ;;  %v6066_v53 = vpack.c.bf16 %v862_v41, %v854_v40  ;;  %v916_v41 = vld [vmem:[#allocation5 + $0x790] sm:$0xff] }
  0x65   :  { %6031 = vmatpush1.bf16.msra.mxu0 %v6030_v43  ;;  %v8650_v43 = vpack.c.bf16 %v796_v33, %v788_v32  ;;  %v852_v32 = vld [vmem:[#allocation5 + $0x590] sm:$0xff] }
  0x66   :  { %6033 = vmatprep.subr.bf16.mxu0 %v6032_v14  ;;  %5782 = vmatmul.mubr.msk.f32.gmra.mrb[38].mxu1 %vm97_vm1, %v8497_v34  ;;  %v6040_v34 = vpack.c.bf16 %v767_v0, %v759_v62  ;;  %v8654_v14 = vpack.c.bf16 %v813_v38, %v805_v37  ;;  %v828_v62 = vld [vmem:[#allocation5 + $0x4d0] sm:$0xff]  ;;  %v869_v37 = vld [vmem:[#allocation5 + $0x618] sm:$0xff] }
  0x67   :  { %5971 = vmatpush1.bf16.msra.mxu1 %v8614_v48  ;;  %574 = vmatprep.mubr.f32.mxu1 %v8387_v1  ;;  %v8663_v8 = vpack.c.bf16 %v828_v62, %v820_v60  ;;  %v860_v33 = vld [vmem:[#allocation5 + $0x5d0] sm:$0xff]  ;;  %v877_v38 = vld [vmem:[#allocation5 + $0x658] sm:$0xff]  ;;  %v887_v60 = vld [vmem:[#allocation5 + $0x6a8] sm:$0xff] }
  0x68   :  { %5973 = vmatprep.subr.bf16.mxu1 %v8618_v52  ;;  %v8678_v47 = vpack.c.bf16 %v877_v38, %v869_v37  ;;  %v895_v62 = vld [vmem:[#allocation5 + $0x6e8] sm:$0xff] }
  0x69   :  { %6035 = vmatpush1.bf16.msra.mxu0 %v6034_v55  ;;  %v814_v55 = vld [vmem:[#allocation5 + $0x460] sm:$0xff]  ;;  %v919_v38 = vld [vmem:[#allocation5 + $0x7a8] sm:$0xff] }
  0x6a   :  { %6037 = vmatprep.subr.bf16.mxu0 %v6036_v27  ;;  %5783 = vmatmul.mubr.msk.f32.gmra.mrb[40].mxu1 %vm97_vm1, %v8511_v42  ;;  %v6044_v42 = vpack.c.bf16 %v783_v17, %v775_v16  ;;  %v831_v27 = vld [vmem:[#allocation5 + $0x4e8] sm:$0xff]  ;;  %v6054_v0 = vpack.c.bf16 %v814_v55, %v806_v54  ;;  %v836_v16 = vld [vmem:[#allocation5 + $0x510] sm:$0xff]  ;;  %v893_v54 = vld [vmem:[#allocation5 + $0x6d8] sm:$0xff] }
  0x6b   :  { %5975 = vmatpush1.bf16.msra.mxu1 %v8623_v61  ;;  %580 = vmatprep.mubr.f32.mxu1 %v8387_v1  ;;  %v844_v17 = vld [vmem:[#allocation5 + $0x550] sm:$0xff] }
  0x6c   :  { %5977 = vmatprep.subr.bf16.mxu1 %v8627_v2  ;;  %v8669_v25 = vpack.c.bf16 %v844_v17, %v836_v16  ;;  %v894_v16 = vld [vmem:[#allocation5 + $0x6e0] sm:$0xff]  ;;  %v8687_v17 = vpack.c.bf16 %v892_v4, %v884_v3  ;;  %v697_v3 = vld [vmem:[#allocation5 + $0xb8] sm:$0xff] }
  0x6d   :  { %6039 = vmatpush1.bf16.msra.mxu0 %v6038_v5  ;;  %v6056_v5 = vpack.c.bf16 %v831_v27, %v823_v58  ;;  %v878_v58 = vld [vmem:[#allocation5 + $0x660] sm:$0xff]  ;;  %v705_v4 = vld [vmem:[#allocation5 + $0xf8] sm:$0xff] }
  0x6e   :  { %6041 = vmatprep.subr.bf16.mxu0 %v6040_v34  ;;  %5784 = vmatmul.mubr.msk.f32.gmra.mrb[42].mxu1 %vm97_vm1, %v8523_v49  ;;  %v6048_v49 = vpack.c.bf16 %v799_v30, %v791_v29  ;;  %v839_v34 = vld [vmem:[#allocation5 + $0x528] sm:$0xff] }
  0x6f   :  { %5979 = vmatpush1.bf16.msra.mxu1 %v8632_v15  ;;  %586 = vmatprep.mubr.f32.mxu1 %v8387_v1  ;;  %v6060_v22 = vpack.c.bf16 %v847_v10, %v839_v34  ;;  %v863_v29 = vld [vmem:[#allocation5 + $0x5e8] sm:$0xff]  ;;  %v6072_v34 = vpack.c.bf16 %v895_v62, %v887_v60  ;;  %v886_v10 = vld [vmem:[#allocation5 + $0x6a0] sm:$0xff]  ;;  %v688_v60 = vld [vmem:[#allocation5 + $0x70] sm:$0xff] }
  0x70   :  { %5981 = vmatprep.subr.bf16.mxu1 %v8636_v18 }
  0x71   :  { %6043 = vmatpush1.bf16.msra.mxu0 %v6042_v21  ;;  %v861_v21 = vld [vmem:[#allocation5 + $0x5d8] sm:$0xff] }
  0x72   :  { %6045 = vmatprep.subr.bf16.mxu0 %v6044_v42  ;;  %5785 = vmatmul.mubr.msk.f32.gmra.mrb[44].mxu1 %vm97_vm1, %v8534_v56  ;;  %v6052_v56 = vpack.c.bf16 %v815_v45, %v807_v44  ;;  %v846_v42 = vld [vmem:[#allocation5 + $0x560] sm:$0xff]  ;;  %v8672_v30 = vpack.c.bf16 %v861_v21, %v853_v20  ;;  %v8675_v44 = vpack.c.bf16 %v860_v33, %v852_v32  ;;  %v871_v45 = vld [vmem:[#allocation5 + $0x628] sm:$0xff] }
  0x73   :  { %5983 = vmatpush1.bf16.msra.mxu1 %v8641_v6  ;;  %592 = vmatprep.mubr.f32.mxu1 %v8387_v1  ;;  %v6068_v55 = vpack.c.bf16 %v879_v46, %v871_v45  ;;  %v911_v20 = vld [vmem:[#allocation5 + $0x768] sm:$0xff]  ;;  %v902_v33 = vld [vmem:[#allocation5 + $0x720] sm:$0xff]  ;;  %v924_v45 = vld [vmem:[#allocation5 + $0x7d0] sm:$0xff] }
  0x74   :  { %5985 = vmatprep.subr.bf16.mxu1 %v8645_v31 }
  0x75   :  { %6047 = vmatpush1.bf16.msra.mxu0 %v6046_v35  ;;  %v6062_v35 = vpack.c.bf16 %v846_v42, %v838_v24  ;;  %v908_v24 = vld [vmem:[#allocation5 + $0x750] sm:$0xff]  ;;  %v6074_v42 = vpack.c.bf16 %v894_v16, %v886_v10  ;;  %v713_v10 = vld [vmem:[#allocation5 + $0x138] sm:$0xff] }
  0x76   :  { %6049 = vmatprep.subr.bf16.mxu0 %v6048_v49  ;;  %5786 = vmatmul.mubr.msk.f32.gmra.mrb[46].mxu1 %vm97_vm1, %v8545_v63  ;;  %v822_v63 = vld [vmem:[#allocation5 + $0x4a0] sm:$0xff]  ;;  %v6064_v49 = vpack.c.bf16 %v863_v29, %v855_v28  ;;  %v917_v28 = vld [vmem:[#allocation5 + $0x798] sm:$0xff] }
  0x77   :  { %5987 = vmatpush1.bf16.msra.mxu1 %v8650_v43  ;;  %1065 = vmatprep.mubr.f32.mxu1 %v8387_v1  ;;  %v6058_v19 = vpack.c.bf16 %v830_v7, %v822_v63  ;;  %v901_v63 = vld [vmem:[#allocation5 + $0x718] sm:$0xff] }
  0x78   :  { %5989 = vmatprep.subr.bf16.mxu1 %v8654_v14  ;;  %v909_v7 = vld [vmem:[#allocation5 + $0x758] sm:$0xff] }
  0x79   :  { %6051 = vmatpush1.bf16.msra.mxu0 %v6050_v50  ;;  %v868_v50 = vld [vmem:[#allocation5 + $0x610] sm:$0xff]  ;;  %v8690_v21 = vpack.c.bf16 %v909_v7, %v901_v63  ;;  %v925_v29 = vld [vmem:[#allocation5 + $0x7d8] sm:$0xff]  ;;  %v8708_v63 = vpack.c.bf16 %v705_v4, %v697_v3 }
  0x7a   :  { %6053 = vmatprep.subr.bf16.mxu0 %v6052_v56  ;;  %v885_v56 = vld [vmem:[#allocation5 + $0x698] sm:$0xff]  ;;  %v8681_v27 = vpack.c.bf16 %v876_v51, %v868_v50  ;;  %v8696_v40 = vpack.c.bf16 %v925_v29, %v917_v28  ;;  %v696_v7 = vld [vmem:[#allocation5 + $0xb0] sm:$0xff] }
  0x7b   :  { %5991 = vmatpush1.bf16.msra.mxu1 %v5990_v57  ;;  %v870_v57 = vld [vmem:[#allocation5 + $0x620] sm:$0xff]  ;;  %v681_v50 = vld [vmem:[#allocation5 + $0x38] sm:$0xff] }
  0x7c   :  { %5993 = vmatprep.subr.bf16.mxu1 %v8661_v59  ;;  %v689_v51 = vld [vmem:[#allocation5 + $0x78] sm:$0xff] }
  0x7d   :  { %6055 = vmatpush1.bf16.msra.mxu0 %v6054_v0  ;;  %v8684_v0 = vpack.c.bf16 %v893_v54, %v885_v56  ;;  %v918_v56 = vld [vmem:[#allocation5 + $0x7a0] sm:$0xff]  ;;  %v721_v16 = vld [vmem:[#allocation5 + $0x178] sm:$0xff] }
  0x7e   :  { %6057 = vmatprep.subr.bf16.mxu0 %v6056_v5  ;;  %v6070_v5 = vpack.c.bf16 %v878_v58, %v870_v57  ;;  %v926_v54 = vld [vmem:[#allocation5 + $0x7e0] sm:$0xff]  ;;  %v8702_v57 = vpack.c.bf16 %v689_v51, %v681_v50  ;;  %v680_v58 = vld [vmem:[#allocation5 + $0x30] sm:$0xff]  ;;  %v737_v28 = vld [vmem:[#allocation5 + $0x1f8] sm:$0xff] }
  0x7f   :  { %5995 = vmatpush1.bf16.msra.mxu1 %v8663_v8  ;;  %v6082_v62 = vpack.c.bf16 %v926_v54, %v918_v56  ;;  %v752_v50 = vld [vmem:[#allocation5 + $0x270] sm:$0xff]  ;;  %v761_v51 = vld [vmem:[#allocation5 + $0x2b8] sm:$0xff] }
  0x80   :  { %5997 = vmatprep.subr.bf16.mxu1 %v8666_v11  ;;  %v785_v3 = vld [vmem:[#allocation5 + $0x378] sm:$0xff] }
  0x81   :  { %6059 = vmatpush1.bf16.msra.mxu0 %v6058_v19  ;;  %v903_v19 = vld [vmem:[#allocation5 + $0x728] sm:$0xff] }
  0x82   :  { %6061 = vmatprep.subr.bf16.mxu0 %v6060_v22  ;;  %v900_v22 = vld [vmem:[#allocation5 + $0x710] sm:$0xff]  ;;  %v6076_v32 = vpack.c.bf16 %v911_v20, %v903_v19  ;;  %v6092_v20 = vpack.c.bf16 %v721_v16, %v713_v10  ;;  %v793_v16 = vld [vmem:[#allocation5 + $0x3b8] sm:$0xff] }
  0x83   :  { %5999 = vmatpush1.bf16.msra.mxu1 %v8669_v25  ;;  %v8693_v37 = vpack.c.bf16 %v908_v24, %v900_v22  ;;  %v712_v22 = vld [vmem:[#allocation5 + $0x130] sm:$0xff] }
  0x84   :  { %6001 = vmatprep.subr.bf16.mxu1 %v8672_v30  ;;  %v720_v24 = vld [vmem:[#allocation5 + $0x170] sm:$0xff] }
  0x85   :  { %6063 = vmatpush1.bf16.msra.mxu0 %v6062_v35  ;;  %v910_v35 = vld [vmem:[#allocation5 + $0x760] sm:$0xff]  ;;  %v6094_v29 = vpack.c.bf16 %v720_v24, %v712_v22  ;;  %v784_v10 = vld [vmem:[#allocation5 + $0x370] sm:$0xff] }
  0x86   :  { %6065 = vmatprep.subr.bf16.mxu0 %v6064_v49  ;;  %v927_v49 = vld [vmem:[#allocation5 + $0x7e8] sm:$0xff]  ;;  %v6078_v46 = vpack.c.bf16 %v910_v35, %v902_v33  ;;  %v728_v33 = vld [vmem:[#allocation5 + $0x1b0] sm:$0xff] }
  0x87   :  { %6003 = vmatpush1.bf16.msra.mxu1 %v8675_v44  ;;  %v736_v35 = vld [vmem:[#allocation5 + $0x1f0] sm:$0xff] }
  0x88   :  { %6005 = vmatprep.subr.bf16.mxu1 %v8678_v47 }
  0x89   :  { %6067 = vmatpush1.bf16.msra.mxu0 %v6066_v53  ;;  %v6080_v53 = vpack.c.bf16 %v927_v49, %v919_v38  ;;  %v745_v38 = vld [vmem:[#allocation5 + $0x238] sm:$0xff] }
  0x8a   :  { %6069 = vmatprep.subr.bf16.mxu0 %v6068_v55  ;;  %v8699_v55 = vpack.c.bf16 %v924_v45, %v916_v41  ;;  %v753_v49 = vld [vmem:[#allocation5 + $0x278] sm:$0xff]  ;;  %v6098_v41 = vpack.c.bf16 %v736_v35, %v728_v33 }
  0x8b   :  { %6007 = vmatpush1.bf16.msra.mxu1 %v8681_v27  ;;  %v6100_v45 = vpack.c.bf16 %v753_v49, %v745_v38  ;;  %v808_v38 = vld [vmem:[#allocation5 + $0x430] sm:$0xff] }
  0x8c   :  { %6009 = vmatprep.subr.bf16.mxu1 %v8684_v0  ;;  %v816_v49 = vld [vmem:[#allocation5 + $0x470] sm:$0xff] }
  0x8d   :  { %6071 = vmatpush1.bf16.msra.mxu0 %v6070_v5  ;;  %v8705_v5 = vpack.c.bf16 %v688_v60, %v680_v58  ;;  %v760_v58 = vld [vmem:[#allocation5 + $0x2b0] sm:$0xff] }
  0x8e   :  { %6073 = vmatprep.subr.bf16.mxu0 %v6072_v34  ;;  %v704_v34 = vld [vmem:[#allocation5 + $0xf0] sm:$0xff] }
  0x8f   :  { %6011 = vmatpush1.bf16.msra.mxu1 %v8687_v17  ;;  %v8712_v19 = vpack.c.bf16 %v704_v34, %v696_v7  ;;  %v768_v60 = vld [vmem:[#allocation5 + $0x2f0] sm:$0xff] }
  0x90   :  { %6013 = vmatprep.subr.bf16.mxu1 %v8690_v21  ;;  %v6106_v4 = vpack.c.bf16 %v768_v60, %v760_v58  ;;  %v776_v34 = vld [vmem:[#allocation5 + $0x330] sm:$0xff] }
  0x91   :  { %6075 = vmatpush1.bf16.msra.mxu0 %v6074_v42  ;;  %v729_v42 = vld [vmem:[#allocation5 + $0x1b8] sm:$0xff]  ;;  %v6110_v22 = vpack.c.bf16 %v784_v10, %v776_v34 }
  0x92   :  { %6077 = vmatprep.subr.bf16.mxu0 %v6076_v32  ;;  %v6096_v32 = vpack.c.bf16 %v737_v28, %v729_v42  ;;  %v792_v42 = vld [vmem:[#allocation5 + $0x3b0] sm:$0xff] }
  0x93   :  { %6015 = vmatpush1.bf16.msra.mxu1 %v8693_v37  ;;  %v800_v28 = vld [vmem:[#allocation5 + $0x3f0] sm:$0xff] }
  0x94   :  { %6017 = vmatprep.subr.bf16.mxu1 %v8696_v40  ;;  %v6114_v33 = vpack.c.bf16 %v800_v28, %v792_v42 }
  0x95   :  { %6079 = vmatpush1.bf16.msra.mxu0 %v6078_v46  ;;  %v744_v46 = vld [vmem:[#allocation5 + $0x230] sm:$0xff] }
  0x96   :  { %6081 = vmatprep.subr.bf16.mxu0 %v6080_v53  ;;  %v769_v53 = vld [vmem:[#allocation5 + $0x2f8] sm:$0xff]  ;;  %v6102_v56 = vpack.c.bf16 %v752_v50, %v744_v46  ;;  %v6118_v46 = vpack.c.bf16 %v816_v49, %v808_v38 }
  0x97   :  { %6019 = vmatpush1.bf16.msra.mxu1 %v8699_v55  ;;  %v6104_v54 = vpack.c.bf16 %v769_v53, %v761_v51  ;;  %v824_v51 = vld [vmem:[#allocation5 + $0x4b0] sm:$0xff] }
  0x98   :  { %6085 = vmatprep.subr.bf16.mxu1 %v8702_v57  ;;  %v832_v53 = vld [vmem:[#allocation5 + $0x4f0] sm:$0xff] }
  0x99   :  { %6083 = vmatpush1.bf16.msra.mxu0 %v6082_v62  ;;  %v777_v62 = vld [vmem:[#allocation5 + $0x338] sm:$0xff]  ;;  %v6122_v58 = vpack.c.bf16 %v832_v53, %v824_v51 }
  0x9a   :  { %1066 = vmatmul.mubr.f32.vlgmr.msra.gmra.mrb[16].mxu1 %v8387_v1  ;;  %v6108_v7 = vpack.c.bf16 %v785_v3, %v777_v62  ;;  %v840_v62 = vld [vmem:[#allocation5 + $0x530] sm:$0xff] }
  0x9b   :  { %6087 = vmatpush1.bf16.msra.mxu1 %v8705_v5  ;;  %1207 = vmatprep.mubr.f32.mxu1 %v8387_v1  ;;  %v848_v3 = vld [vmem:[#allocation5 + $0x570] sm:$0xff] }
  0x9c   :  { %1137 = vmatmul.mubr.f32.vlgmr.msra.gmra.mrb[0].mxu0 %v8387_v1  ;;  %6089 = vmatprep.subr.bf16.mxu1 %v8708_v63  ;;  %v6126_v34 = vpack.c.bf16 %v848_v3, %v840_v62 }
  0x9f   :  { %6091 = vmatpush1.bf16.msra.mxu1 %v8712_v19 }
  0xa0   :  { %6093 = vmatprep.subr.bf16.mxu1 %v6092_v20  ;;  %v801_v20 = vld [vmem:[#allocation5 + $0x3f8] sm:$0xff] }
  0xa1   :  { %v6112_v24 = vpack.c.bf16 %v801_v20, %v793_v16  ;;  %v856_v16 = vld [vmem:[#allocation5 + $0x5b0] sm:$0xff] }
  0xa2   :  { %v864_v20 = vld [vmem:[#allocation5 + $0x5f0] sm:$0xff] }
  0xa3   :  { %6095 = vmatpush1.bf16.msra.mxu1 %v6094_v29  ;;  %v809_v29 = vld [vmem:[#allocation5 + $0x438] sm:$0xff]  ;;  %v6130_v42 = vpack.c.bf16 %v864_v20, %v856_v16 }
  0xa4   :  { %6097 = vmatprep.subr.bf16.mxu1 %v6096_v32  ;;  %v817_v32 = vld [vmem:[#allocation5 + $0x478] sm:$0xff] }
  0xa5   :  { %v6116_v35 = vpack.c.bf16 %v817_v32, %v809_v29  ;;  %v872_v29 = vld [vmem:[#allocation5 + $0x630] sm:$0xff] }
  0xa6   :  { %v880_v32 = vld [vmem:[#allocation5 + $0x670] sm:$0xff] }
  0xa7   :  { %6099 = vmatpush1.bf16.msra.mxu1 %v6098_v41  ;;  %v825_v41 = vld [vmem:[#allocation5 + $0x4b8] sm:$0xff]  ;;  %v6134_v38 = vpack.c.bf16 %v880_v32, %v872_v29 }
  0xa8   :  { %6101 = vmatprep.subr.bf16.mxu1 %v6100_v45  ;;  %v833_v45 = vld [vmem:[#allocation5 + $0x4f8] sm:$0xff] }
  0xa9   :  { %v6120_v50 = vpack.c.bf16 %v833_v45, %v825_v41  ;;  %v888_v41 = vld [vmem:[#allocation5 + $0x6b0] sm:$0xff] }
  0xaa   :  { %v896_v45 = vld [vmem:[#allocation5 + $0x6f0] sm:$0xff] }
  0xab   :  { %6103 = vmatpush1.bf16.msra.mxu1 %v6102_v56  ;;  %v841_v56 = vld [vmem:[#allocation5 + $0x538] sm:$0xff]  ;;  %v6138_v51 = vpack.c.bf16 %v896_v45, %v888_v41 }
  0xac   :  { %6105 = vmatprep.subr.bf16.mxu1 %v6104_v54  ;;  %v849_v54 = vld [vmem:[#allocation5 + $0x578] sm:$0xff] }
  0xad   :  { %v6124_v60 = vpack.c.bf16 %v849_v54, %v841_v56  ;;  %v904_v56 = vld [vmem:[#allocation5 + $0x730] sm:$0xff] }
  0xae   :  { %v912_v54 = vld [vmem:[#allocation5 + $0x770] sm:$0xff] }
  0xaf   :  { %6107 = vmatpush1.bf16.msra.mxu1 %v6106_v4  ;;  %v857_v4 = vld [vmem:[#allocation5 + $0x5b8] sm:$0xff]  ;;  %v6142_v62 = vpack.c.bf16 %v912_v54, %v904_v56  ;;  %v1287_v56 = vld [vmem:[#allocation5 + $0x8] sm:$0xff] }
  0xb0   :  { %6109 = vmatprep.subr.bf16.mxu1 %v6108_v7  ;;  %v865_v7 = vld [vmem:[#allocation5 + $0x5f8] sm:$0xff]  ;;  %v1295_v54 = vld [vmem:[#allocation5 + $0x48] sm:$0xff] }
  0xb1   :  { %v6128_v10 = vpack.c.bf16 %v865_v7, %v857_v4  ;;  %v920_v4 = vld [vmem:[#allocation5 + $0x7b0] sm:$0xff] }
  0xb2   :  { %v928_v7 = vld [vmem:[#allocation5 + $0x7f0] sm:$0xff] }
  0xb3   :  { %6111 = vmatpush1.bf16.msra.mxu1 %v6110_v22  ;;  %v873_v22 = vld [vmem:[#allocation5 + $0x638] sm:$0xff] }
  0xb4   :  { %6113 = vmatprep.subr.bf16.mxu1 %v6112_v24  ;;  %v881_v24 = vld [vmem:[#allocation5 + $0x678] sm:$0xff] }
  0xb5   :  { %v6132_v28 = vpack.c.bf16 %v881_v24, %v873_v22 }
  0xb7   :  { %6115 = vmatpush1.bf16.msra.mxu1 %v6114_v33  ;;  %v889_v33 = vld [vmem:[#allocation5 + $0x6b8] sm:$0xff] }
  0xb8   :  { %6117 = vmatprep.subr.bf16.mxu1 %v6116_v35  ;;  %v897_v35 = vld [vmem:[#allocation5 + $0x6f8] sm:$0xff] }
  0xb9   :  { %v6136_v49 = vpack.c.bf16 %v897_v35, %v889_v33 }
  0xbb   :  { %6119 = vmatpush1.bf16.msra.mxu1 %v6118_v46  ;;  %v905_v46 = vld [vmem:[#allocation5 + $0x738] sm:$0xff] }
  0xbc   :  { %6121 = vmatprep.subr.bf16.mxu1 %v6120_v50  ;;  %v913_v50 = vld [vmem:[#allocation5 + $0x778] sm:$0xff] }
  0xbd   :  { %v6140_v53 = vpack.c.bf16 %v913_v50, %v905_v46 }
  0xbf   :  { %6123 = vmatpush1.bf16.msra.mxu1 %v6122_v58  ;;  %v921_v58 = vld [vmem:[#allocation5 + $0x7b8] sm:$0xff] }
  0xc0   :  { %6125 = vmatprep.subr.bf16.mxu1 %v6124_v60  ;;  %v929_v60 = vld [vmem:[#allocation5 + $0x7f8] sm:$0xff] }
  0xc1   :  { %v6144_v3 = vpack.c.bf16 %v929_v60, %v921_v58  ;;  %v6148_v58 = vpack.c.bf16 %v1295_v54, %v1287_v56  ;;  %v1286_v60 = vld [vmem:[#allocation5] sm:$0xff] }
  0xc2   :  { %v1350_v54 = vld [vmem:[#allocation5 + $0x200] sm:$0xff] }
  0xc3   :  { %6127 = vmatpush1.bf16.msra.mxu1 %v6126_v34  ;;  %v6146_v34 = vpack.c.bf16 %v928_v7, %v920_v4  ;;  %v1303_v4 = vld [vmem:[#allocation5 + $0x88] sm:$0xff]  ;;  %6149 = vmatprep.subr.bf16.mxu0 %v6148_v58  ;;  %v1358_v58 = vld [vmem:[#allocation5 + $0x240] sm:$0xff] }
  0xc4   :  { %6129 = vmatprep.subr.bf16.mxu1 %v6128_v10  ;;  %v57_v10 = vlaneseq  ;;  %v1311_v7 = vld [vmem:[#allocation5 + $0xc8] sm:$0xff] }
  0xc6   :  { %v8727_v16 = vshrl.u32 %v57_v10, 7  ;;  %v6152_v10 = vpack.c.bf16 %v1311_v7, %v1303_v4  ;;  %v1366_v7 = vld [vmem:[#allocation5 + $0x280] sm:$0xff] }
  0xc7   :  { %6131 = vmatpush1.bf16.msra.mxu1 %v6130_v42 }
  0xc8   :  { %6133 = vmatprep.subr.bf16.mxu1 %v6132_v28 }
  0xcb   :  { %6135 = vmatpush1.bf16.msra.mxu1 %v6134_v38 }
  0xcc   :  { %6137 = vmatprep.subr.bf16.mxu1 %v6136_v49 }
  0xcf   :  { %6139 = vmatpush1.bf16.msra.mxu1 %v6138_v51 }
  0xd0   :  { %6141 = vmatprep.subr.bf16.mxu1 %v6140_v53 }
  0xd3   :  { %6143 = vmatpush1.bf16.msra.mxu1 %v6142_v62  ;;  %v1294_v62 = vld [vmem:[#allocation5 + $0x40] sm:$0xff] }
  0xd4   :  { %6145 = vmatprep.subr.bf16.mxu1 %v6144_v3  ;;  %v6150_v3 = vpack.c.bf16 %v1294_v62, %v1286_v60  ;;  %v1367_v60 = vld [vmem:[#allocation5 + $0x288] sm:$0xff] }
  0xd5   :  { %v1375_v62 = vld [vmem:[#allocation5 + $0x2c8] sm:$0xff] }
  0xd6   :  { %6151 = vmatpush1.bf16.msra.mxu0 %v6150_v3  ;;  %v6166_v3 = vpack.c.bf16 %v1358_v58, %v1350_v54  ;;  %v6168_v4 = vpack.c.bf16 %v1375_v62, %v1367_v60  ;;  %v1422_v54 = vld [vmem:[#allocation5 + $0x440] sm:$0xff]  ;;  %v1416_v58 = vld [vmem:[#allocation5 + $0x410] sm:$0xff] }
  0xd7   :  { %6147 = vmatpush1.bf16.msra.mxu1 %v6146_v34  ;;  %v1302_v34 = vld [vmem:[#allocation5 + $0x80] sm:$0xff]  ;;  %6153 = vmatprep.subr.bf16.mxu0 %v6152_v10  ;;  %v1383_v10 = vld [vmem:[#allocation5 + $0x308] sm:$0xff] }
  0xd8   :  { %6213 = vmatprep.subr.bf16.mxu1 %v8558_v13  ;;  %v8736_v13 = vld [vmem:[%s9196_s3] sm:$0xff] }
  0xda   :  { %1208 = vmatmul.mubr.f32.vlgmr.msra.gmra.mrb[32].mxu1 %v8387_v1  ;;  %v59_v1 = vsub.s32 0, %v8727_v16 }
  0xdb   :  { %6215 = vmatpush1.bf16.msra.mxu1 %v8587_v9 }
  0xdc   :  { %6217 = vmatprep.subr.bf16.mxu1 %v8589_v12  ;;  %v63_v12 = vsub.s32 1, %v8727_v16 }
  0xdf   :  { %6219 = vmatpush1.bf16.msra.mxu1 %v8594_v23 }
  0xe0   :  { %6221 = vmatprep.subr.bf16.mxu1 %v8599_v26  ;;  %v8745_v26 = vrot.slane %v8736_v13, %v59_v1  ;;  %v1310_v1 = vld [vmem:[#allocation5 + $0xc0] sm:$0xff] }
  0xe3   :  { %6223 = vmatpush1.bf16.msra.mxu1 %v8605_v36  ;;  %v8749_v36 = vrot.slane %v8736_v13, %v63_v12  ;;  %v1319_v12 = vld [vmem:[#allocation5 + $0x108] sm:$0xff] }
  0xe4   :  { %6225 = vmatprep.subr.bf16.mxu1 %v8609_v39 }
  0xe7   :  { %6227 = vmatpush1.bf16.msra.mxu1 %v8614_v48 }
  0xe8   :  { %6229 = vmatprep.subr.bf16.mxu1 %v8618_v52 }
  0xeb   :  { %6231 = vmatpush1.bf16.msra.mxu1 %v8623_v61 }
  0xec   :  { %6233 = vmatprep.subr.bf16.mxu1 %v8627_v2  ;;  %v8738_v9 = vpop.f32.mrb[0].mxu1 }
  0xed   :  { %v8741_v23 = vpop.f32.mrb[1].mxu1 }
  0xee   :  { %v216_v60 = vadd.f32 %v8741_v23, %v8749_v36 }
  0xef   :  { %6235 = vmatpush1.bf16.msra.mxu1 %v8632_v15 }
  0xf0   :  { %6237 = vmatprep.subr.bf16.mxu1 %v8636_v18  ;;  %v219_v39 = vpop.f32.mrb[2].mxu1 }
  0xf1   :  { %v8752_v48 = vadd.f32 %v219_v39, %v8745_v26  ;;  %v221_v52 = vpop.f32.mrb[3].mxu1  ;;  %v1327_v39 = vld [vmem:[#allocation5 + $0x148] sm:$0xff] }
  0xf2   :  { %v8755_v61 = vadd.f32 %v221_v52, %v8749_v36  ;;  %v6154_v52 = vpack.c.bf16 %v1310_v1, %v1302_v34  ;;  %v1374_v34 = vld [vmem:[#allocation5 + $0x2c0] sm:$0xff]  ;;  %v1391_v1 = vld [vmem:[#allocation5 + $0x348] sm:$0xff] }
  0xf3   :  { %6239 = vmatpush1.bf16.msra.mxu1 %v8641_v6 }
  0xf4   :  { %6241 = vmatprep.subr.bf16.mxu1 %v8645_v31  ;;  %v225_v2 = vpop.f32.mrb[4].mxu1  ;;  %6155 = vmatpush1.bf16.msra.mxu0 %v6154_v52  ;;  %v1382_v52 = vld [vmem:[#allocation5 + $0x300] sm:$0xff] }
  0xf5   :  { %v8760_v15 = vadd.f32 %v225_v2, %v8745_v26  ;;  %v227_v18 = vpop.f32.mrb[5].mxu1  ;;  %v6156_v2 = vpack.c.bf16 %v1327_v39, %v1319_v12  ;;  %v6170_v12 = vpack.c.bf16 %v1374_v34, %v1366_v7  ;;  %v6172_v39 = vpack.c.bf16 %v1391_v1, %v1383_v10 }
  0xf6   :  { %v8763_v20 = vadd.f32 %v227_v18, %v8749_v36  ;;  %v1318_v18 = vld [vmem:[#allocation5 + $0x100] sm:$0xff] }
  0xf7   :  { %6243 = vmatpush1.bf16.msra.mxu1 %v8650_v43  ;;  %6157 = vmatprep.subr.bf16.mxu0 %v6156_v2  ;;  %v1390_v2 = vld [vmem:[#allocation5 + $0x340] sm:$0xff] }
  0xf8   :  { %6245 = vmatprep.subr.bf16.mxu1 %v8654_v14  ;;  %v231_v22 = vpop.f32.mrb[6].mxu1 }
  0xf9   :  { %v8768_v24 = vadd.f32 %v231_v22, %v8745_v26  ;;  %v233_v42 = vpop.f32.mrb[7].mxu1  ;;  %v1326_v22 = vld [vmem:[#allocation5 + $0x140] sm:$0xff] }
  0xfa   :  { %v8771_v6 = vadd.f32 %v233_v42, %v8749_v36  ;;  %v1335_v42 = vld [vmem:[#allocation5 + $0x188] sm:$0xff] }
  0xfc   :  { %v237_v31 = vpop.f32.mrb[8].mxu1 }
  0xfd   :  { %v8774_v28 = vadd.f32 %v237_v31, %v8745_v26  ;;  %v239_v29 = vpop.f32.mrb[9].mxu1  ;;  %v1343_v31 = vld [vmem:[#allocation5 + $0x1c8] sm:$0xff] }
  0xfe   :  { %v8777_v32 = vadd.f32 %v239_v29, %v8749_v36  ;;  %v6158_v29 = vpack.c.bf16 %v1326_v22, %v1318_v18  ;;  %v1399_v18 = vld [vmem:[#allocation5 + $0x388] sm:$0xff] }
  0xff   :  { %v1407_v22 = vld [vmem:[#allocation5 + $0x3c8] sm:$0xff] }
 0x100   :  { %v243_v33 = vpop.f32.mrb[10].mxu1  ;;  %6159 = vmatpush1.bf16.msra.mxu0 %v6158_v29  ;;  %v1398_v29 = vld [vmem:[#allocation5 + $0x380] sm:$0xff] }
 0x101   :  { %v8780_v43 = vadd.f32 %v243_v33, %v8745_v26  ;;  %v245_v14 = vpop.f32.mrb[11].mxu1  ;;  %v6160_v33 = vpack.c.bf16 %v1343_v31, %v1335_v42  ;;  %v6174_v42 = vpack.c.bf16 %v1390_v2, %v1382_v52  ;;  %v6176_v31 = vpack.c.bf16 %v1407_v22, %v1399_v18  ;;  %v1438_v52 = vld [vmem:[#allocation5 + $0x4c0] sm:$0xff]  ;;  %v1455_v2 = vld [vmem:[#allocation5 + $0x548] sm:$0xff] }
 0x102   :  { %v8783_v35 = vadd.f32 %v245_v14, %v8749_v36  ;;  %v1334_v14 = vld [vmem:[#allocation5 + $0x180] sm:$0xff] }
 0x103   :  { %6161 = vmatprep.subr.bf16.mxu0 %v6160_v33  ;;  %v1406_v33 = vld [vmem:[#allocation5 + $0x3c0] sm:$0xff] }
 0x104   :  { %v249_v38 = vpop.f32.mrb[12].mxu1  ;;  %v1446_v22 = vld [vmem:[#allocation5 + $0x500] sm:$0xff] }
 0x105   :  { %v8786_v49 = vadd.f32 %v249_v38, %v8745_v26  ;;  %v251_v41 = vpop.f32.mrb[13].mxu1  ;;  %v1342_v38 = vld [vmem:[#allocation5 + $0x1c0] sm:$0xff] }
 0x106   :  { %v8789_v45 = vadd.f32 %v251_v41, %v8749_v36  ;;  %v1351_v41 = vld [vmem:[#allocation5 + $0x208] sm:$0xff] }
 0x108   :  { %v255_v46 = vpop.f32.mrb[14].mxu1 }
 0x109   :  { %v8792_v50 = vadd.f32 %v255_v46, %v8745_v26  ;;  %v257_v51 = vpop.f32.mrb[15].mxu1  ;;  %v1359_v46 = vld [vmem:[#allocation5 + $0x248] sm:$0xff] }
 0x10a   :  { %v8795_v53 = vadd.f32 %v257_v51, %v8749_v36  ;;  %v6162_v51 = vpack.c.bf16 %v1342_v38, %v1334_v14  ;;  %v6164_v56 = vpack.c.bf16 %v1359_v46, %v1351_v41  ;;  %v6178_v14 = vpack.c.bf16 %v1406_v33, %v1398_v29  ;;  %v1415_v38 = vld [vmem:[#allocation5 + $0x408] sm:$0xff] }
 0x10b   :  { %v1423_v41 = vld [vmem:[#allocation5 + $0x448] sm:$0xff]  ;;  %v214_v46 = vadd.f32 %v8738_v9, %v8745_v26 }
 0x10c   :  { %6163 = vmatpush1.bf16.msra.mxu0 %v6162_v51  ;;  %v6180_v51 = vpack.c.bf16 %v1423_v41, %v1415_v38  ;;  %v1439_v9 = vld [vmem:[#allocation5 + $0x4c8] sm:$0xff]  ;;  %v1470_v38 = vld [vmem:[#allocation5 + $0x5c0] sm:$0xff] }
 0x10d   :  { %6165 = vmatprep.subr.bf16.mxu0 %v6164_v56  ;;  %v1414_v56 = vld [vmem:[#allocation5 + $0x400] sm:$0xff]  ;;  %v1447_v36 = vld [vmem:[#allocation5 + $0x508] sm:$0xff] }
 0x10e   :  { %v6188_v18 = vpack.c.bf16 %v1455_v2, %v1447_v36  ;;  %v1463_v29 = vld [vmem:[#allocation5 + $0x588] sm:$0xff] }
 0x10f   :  { %v1471_v33 = vld [vmem:[#allocation5 + $0x5c8] sm:$0xff] }
 0x110   :  { %6167 = vmatpush1.bf16.msra.mxu0 %v6166_v3  ;;  %v6182_v3 = vpack.c.bf16 %v1422_v54, %v1414_v56  ;;  %v1486_v56 = vld [vmem:[#allocation5 + $0x640] sm:$0xff]  ;;  %v1299_v36 = vld [vmem:[#allocation5 + $0x68] sm:$0xff] }
 0x111   :  { %6169 = vmatprep.subr.bf16.mxu0 %v6168_v4  ;;  %v1424_v4 = vld [vmem:[#allocation5 + $0x450] sm:$0xff] }
 0x112   :  { %v6246_v10 = vpack.c.bf16 %v1424_v4, %v1416_v58  ;;  %v1503_v58 = vld [vmem:[#allocation5 + $0x6c8] sm:$0xff] }
 0x113   :  { %v1519_v4 = vld [vmem:[#allocation5 + $0x748] sm:$0xff] }
 0x114   :  { %6171 = vmatpush1.bf16.msra.mxu0 %v6170_v12  ;;  %v1431_v12 = vld [vmem:[#allocation5 + $0x488] sm:$0xff]  ;;  %6247 = vmatpush1.bf16.msra.mxu1 %v6246_v10 }
 0x115   :  { %6173 = vmatprep.subr.bf16.mxu0 %v6172_v39  ;;  %v6184_v26 = vpack.c.bf16 %v1439_v9, %v1431_v12  ;;  %v1430_v39 = vld [vmem:[#allocation5 + $0x480] sm:$0xff]  ;;  %6249 = vmatprep.subr.bf16.mxu1 %v8661_v59  ;;  %v6192_v59 = vpack.c.bf16 %v1471_v33, %v1463_v29  ;;  %v1535_v9 = vld [vmem:[#allocation5 + $0x7c8] sm:$0xff] }
 0x116   :  { %v6186_v23 = vpack.c.bf16 %v1438_v52, %v1430_v39  ;;  %v1518_v12 = vld [vmem:[#allocation5 + $0x740] sm:$0xff] }
 0x117   :  { %v1526_v52 = vld [vmem:[#allocation5 + $0x780] sm:$0xff] }
 0x118   :  { %6175 = vmatpush1.bf16.msra.mxu0 %v6174_v42  ;;  %6251 = vmatpush1.bf16.msra.mxu1 %v8663_v8  ;;  %v1454_v42 = vld [vmem:[#allocation5 + $0x540] sm:$0xff]  ;;  %v1479_v8 = vld [vmem:[#allocation5 + $0x608] sm:$0xff] }
 0x119   :  { %6177 = vmatprep.subr.bf16.mxu0 %v6176_v31  ;;  %6253 = vmatprep.subr.bf16.mxu1 %v8666_v11  ;;  %v6190_v31 = vpack.c.bf16 %v1454_v42, %v1446_v22  ;;  %v79_v42 = vsub.s32 5, %v8727_v16 }
 0x11c   :  { %6179 = vmatpush1.bf16.msra.mxu0 %v6178_v14  ;;  %6255 = vmatpush1.bf16.msra.mxu1 %v8669_v25  ;;  %v1462_v14 = vld [vmem:[#allocation5 + $0x580] sm:$0xff]  ;;  %v1495_v25 = vld [vmem:[#allocation5 + $0x688] sm:$0xff] }
 0x11d   :  { %6181 = vmatprep.subr.bf16.mxu0 %v6180_v51  ;;  %6257 = vmatprep.subr.bf16.mxu1 %v8672_v30  ;;  %v6194_v41 = vpack.c.bf16 %v1470_v38, %v1462_v14  ;;  %v1478_v51 = vld [vmem:[#allocation5 + $0x600] sm:$0xff] }
 0x11e   :  { %v6198_v54 = vpack.c.bf16 %v1486_v56, %v1478_v51  ;;  %v1502_v30 = vld [vmem:[#allocation5 + $0x6c0] sm:$0xff] }
 0x120   :  { %6183 = vmatpush1.bf16.msra.mxu0 %v6182_v3  ;;  %6259 = vmatpush1.bf16.msra.mxu1 %v8675_v44  ;;  %v1511_v3 = vld [vmem:[#allocation5 + $0x708] sm:$0xff]  ;;  %v1510_v44 = vld [vmem:[#allocation5 + $0x700] sm:$0xff] }
 0x121   :  { %6185 = vmatprep.subr.bf16.mxu0 %v6184_v26  ;;  %6261 = vmatprep.subr.bf16.mxu1 %v8678_v47  ;;  %v6204_v10 = vpack.c.bf16 %v1519_v4, %v1511_v3  ;;  %v1527_v47 = vld [vmem:[#allocation5 + $0x788] sm:$0xff]  ;;  %v6206_v26 = vpack.c.bf16 %v1518_v12, %v1510_v44 }
 0x122   :  { %v6208_v39 = vpack.c.bf16 %v1535_v9, %v1527_v47 }
 0x124   :  { %6187 = vmatpush1.bf16.msra.mxu0 %v6186_v23  ;;  %6263 = vmatpush1.bf16.msra.mxu1 %v8681_v27  ;;  %v1534_v23 = vld [vmem:[#allocation5 + $0x7c0] sm:$0xff] }
 0x125   :  { %6189 = vmatprep.subr.bf16.mxu0 %v6188_v18  ;;  %6265 = vmatprep.subr.bf16.mxu1 %v8684_v0  ;;  %v6210_v27 = vpack.c.bf16 %v1534_v23, %v1526_v52  ;;  %v1291_v0 = vld [vmem:[#allocation5 + $0x28] sm:$0xff]  ;;  %v71_v18 = vsub.s32 3, %v8727_v16  ;;  %v83_v23 = vsub.s32 6, %v8727_v16 }
 0x126   :  { %v6276_v2 = vpack.c.bf16 %v1299_v36, %v1291_v0 }
 0x127   :  { %v8849_v0 = vrot.slane %v8736_v13, %v83_v23  ;;  %v1341_v23 = vld [vmem:[#allocation5 + $0x1b8] sm:$0xff] }
 0x128   :  { %6191 = vmatpush1.bf16.msra.mxu0 %v6190_v31  ;;  %6267 = vmatpush1.bf16.msra.mxu1 %v8687_v17 }
 0x129   :  { %6193 = vmatprep.subr.bf16.mxu0 %v6192_v59  ;;  %6269 = vmatprep.subr.bf16.mxu1 %v8690_v21  ;;  %v8836_v59 = vrot.slane %v8736_v13, %v79_v42 }
 0x12c   :  { %6195 = vmatpush1.bf16.msra.mxu0 %v6194_v41  ;;  %6271 = vmatpush1.bf16.msra.mxu1 %v8693_v37  ;;  %v67_v37 = vsub.s32 2, %v8727_v16 }
 0x12d   :  { %6273 = vmatprep.subr.bf16.mxu1 %v8696_v40  ;;  %v75_v40 = vsub.s32 4, %v8727_v16 }
 0x12e   :  { %v8827_v31 = vrot.slane %v8736_v13, %v67_v37 }
 0x12f   :  { %v996_v62 = vpop.f32.mrb[16].mxu0 }
 0x130   :  { %v8801_v7 = vadd.f32 %v996_v62, %v214_v46  ;;  %v998_v34 = vpop.f32.mrb[17].mxu0  ;;  %v1487_v46 = vld [vmem:[#allocation5 + $0x648] sm:$0xff]  ;;  %v6200_v62 = vpack.c.bf16 %v1503_v58, %v1495_v25  ;;  %6275 = vmatpush1.bf16.msra.mxu1 %v8699_v55 }
 0x131   :  { %v8803_v1 = vadd.f32 %v998_v34, %v216_v60  ;;  %v6196_v11 = vpack.c.bf16 %v1487_v46, %v1479_v8  ;;  %v1494_v60 = vld [vmem:[#allocation5 + $0x680] sm:$0xff]  ;;  %6341 = vmatprep.subr.bf16.mxu1 %v8702_v57  ;;  %v8830_v57 = vrot.slane %v8736_v13, %v71_v18 }
 0x132   :  { %v6202_v34 = vpack.c.bf16 %v1502_v30, %v1494_v60  ;;  %v5787_v17 = vmul.f32 -1.442695, %v8801_v7 }
 0x133   :  { %6197 = vmatprep.subr.bf16.mxu0 %v6196_v11  ;;  %v5788_v21 = vmul.f32 -1.442695, %v8803_v1  ;;  %v8833_v1 = vrot.slane %v8736_v13, %v75_v40 }
 0x134   :  { %6199 = vmatpush1.bf16.msra.mxu0 %v6198_v54  ;;  %8104 = vpow2.f32 %v5787_v17 }
 0x135   :  { %6201 = vmatprep.subr.bf16.mxu0 %v6200_v62  ;;  %8106 = vpow2.f32 %v5788_v21 }
 0x138   :  { %6203 = vmatpush1.bf16.msra.mxu0 %v6202_v34 }
 0x139   :  { %6205 = vmatprep.subr.bf16.mxu0 %v6204_v10 }
 0x13c   :  { %6207 = vmatpush1.bf16.msra.mxu0 %v6206_v26 }
 0x13d   :  { %6209 = vmatprep.subr.bf16.mxu0 %v6208_v39 }
 0x13e   :  { %v8105_v22 = vpop.eup %8104 }
 0x13f   :  { %v8107_v55 = vpop.eup %8106  ;;  %v1228_v7 = vadd.f32 1.0, %v8105_v22 }
 0x140   :  { %6211 = vmatpush1.bf16.msra.mxu0 %v6210_v27  ;;  %v1229_v29 = vadd.f32 1.0, %v8107_v55  ;;  %v87_v27 = vsub.s32 7, %v8727_v16 }
 0x141   :  { %6277 = vmatprep.subr.bf16.mxu0 %v6276_v2  ;;  %8108 = vrcp.f32 %v1228_v7  ;;  %v1290_v7 = vld [vmem:[#allocation5 + $0x20] sm:$0xff] }
 0x142   :  { %8110 = vrcp.f32 %v1229_v29  ;;  %v8852_v36 = vrot.slane %v8736_v13, %v87_v27  ;;  %v1298_v29 = vld [vmem:[#allocation5 + $0x60] sm:$0xff]  ;;  %v1349_v27 = vld [vmem:[#allocation5 + $0x1f8] sm:$0xff] }
 0x14b   :  { %v8109_v25 = vpop.eup %8108 }
 0x14c   :  { %v8111_v58 = vpop.eup %8110 }
 0x16d   :  { %v1067_v33 = vpop.f32.mrb[16].mxu1 }
 0x16e   :  { %v8004_v14 = vadd.f32 %v1067_v33, %v8827_v31  ;;  %v1069_v38 = vpop.f32.mrb[17].mxu1 }
 0x16f   :  { %v8005_v41 = vadd.f32 %v1069_v38, %v8830_v57  ;;  %v1138_v8 = vpop.f32.mrb[0].mxu0  ;;  %v1307_v38 = vld [vmem:[#allocation5 + $0xa8] sm:$0xff] }
 0x170   :  { %v5789_v46 = vmul.f32 -1.442695, %v8004_v14  ;;  %v8020_v11 = vadd.f32 %v1138_v8, %v8833_v1  ;;  %v1140_v51 = vpop.f32.mrb[1].mxu0 }
 0x171   :  { %v5790_v56 = vmul.f32 -1.442695, %v8005_v41  ;;  %v8021_v54 = vadd.f32 %v1140_v51, %v8836_v59  ;;  %v1315_v41 = vld [vmem:[#allocation5 + $0xe8] sm:$0xff] }
 0x172   :  { %8112 = vpow2.f32 %v5789_v46 }
 0x173   :  { %8114 = vpow2.f32 %v5790_v56  ;;  %v1306_v56 = vld [vmem:[#allocation5 + $0xa0] sm:$0xff] }
 0x174   :  { %8116 = vtanh.f32 %v8020_v11  ;;  %v6278_v11 = vpack.c.bf16 %v1298_v29, %v1290_v7  ;;  %v1354_v29 = vld [vmem:[#allocation5 + $0x220] sm:$0xff] }
 0x175   :  { %8118 = vtanh.f32 %v8021_v54  ;;  %v1314_v54 = vld [vmem:[#allocation5 + $0xe0] sm:$0xff] }
 0x17c   :  { %v8113_v60 = vpop.eup %8112 }
 0x17d   :  { %v8115_v62 = vpop.eup %8114  ;;  %v1240_v30 = vadd.f32 1.0, %v8113_v60  ;;  %v1331_v60 = vld [vmem:[#allocation5 + $0x168] sm:$0xff] }
 0x17e   :  { %v8117_v3 = vpop.eup %8116  ;;  %v1241_v4 = vadd.f32 1.0, %v8115_v62  ;;  %v1325_v62 = vld [vmem:[#allocation5 + $0x138] sm:$0xff] }
 0x17f   :  { %v8119_v34 = vpop.eup %8118  ;;  %8120 = vrcp.f32 %v1240_v30  ;;  %v1262_v10 = vmul.f32 %v8117_v3, %v8109_v25  ;;  %v1323_v25 = vld [vmem:[#allocation5 + $0x128] sm:$0xff]  ;;  %v1333_v30 = vld [vmem:[#allocation5 + $0x178] sm:$0xff]  ;;  %v6282_v3 = vpack.c.bf16 %v1314_v54, %v1306_v56 }
 0x180   :  { %8122 = vrcp.f32 %v1241_v4  ;;  %v1263_v44 = vmul.f32 %v8119_v34, %v8111_v58  ;;  %v6280_v58 = vpack.c.bf16 %v1315_v41, %v1307_v38  ;;  %v1322_v4 = vld [vmem:[#allocation5 + $0x120] sm:$0xff]  ;;  %v1356_v38 = vld [vmem:[#allocation5 + $0x230] sm:$0xff]  ;;  %v1373_v56 = vld [vmem:[#allocation5 + $0x2b8] sm:$0xff] }
 0x181   :  { %v1330_v34 = vld [vmem:[#allocation5 + $0x160] sm:$0xff]  ;;  %v1364_v41 = vld [vmem:[#allocation5 + $0x270] sm:$0xff]  ;;  %v1381_v54 = vld [vmem:[#allocation5 + $0x2f8] sm:$0xff] }
 0x189   :  { %v8121_v12 = vpop.eup %8120 }
 0x18a   :  { %v8123_v47 = vpop.eup %8122  ;;  %v1260_v9 = vmul.f32 0.0, %v8121_v12  ;;  %v1324_v12 = vld [vmem:[#allocation5 + $0x130] sm:$0xff] }
 0x18b   :  { %v1261_v26 = vmul.f32 0.0, %v8123_v47  ;;  %v1332_v47 = vld [vmem:[#allocation5 + $0x170] sm:$0xff] }
 0x18c   :  { %v8842_v39 = vadd.f32 %v1262_v10, %v1260_v9  ;;  %v6284_v10 = vpack.c.bf16 %v1331_v60, %v1323_v25  ;;  %v1339_v9 = vld [vmem:[#allocation5 + $0x1a8] sm:$0xff]  ;;  %v1370_v60 = vld [vmem:[#allocation5 + $0x2a0] sm:$0xff] }
 0x18d   :  { %v8844_v52 = vadd.f32 %v1263_v44, %v1261_v26  ;;  %v6348_v44 = vpack.c.bf16 %v1333_v30, %v1325_v62  ;;  %v1347_v26 = vld [vmem:[#allocation5 + $0x1e8] sm:$0xff]  ;;  %v1378_v62 = vld [vmem:[#allocation5 + $0x2e0] sm:$0xff] }
 0x1ad   :  { %v1209_v2 = vpop.f32.mrb[32].mxu1 }
 0x1ae   :  { %v8036_v17 = vadd.f32 %v1209_v2, %v8849_v0  ;;  %v1211_v21 = vpop.f32.mrb[33].mxu1  ;;  %v6350_v2 = vpack.c.bf16 %v1332_v47, %v1324_v12  ;;  %v1389_v12 = vld [vmem:[#allocation5 + $0x338] sm:$0xff] }
 0x1af   :  { %v8037_v37 = vadd.f32 %v1211_v21, %v8852_v36  ;;  %v1346_v21 = vld [vmem:[#allocation5 + $0x1e0] sm:$0xff]  ;;  %v1397_v47 = vld [vmem:[#allocation5 + $0x378] sm:$0xff] }
 0x1b0   :  { %v5791_v18 = vmul.f32 -1.442695, %v8036_v17  ;;  %v1338_v17 = vld [vmem:[#allocation5 + $0x1a0] sm:$0xff] }
 0x1b1   :  { %v5792_v40 = vmul.f32 -1.442695, %v8037_v37  ;;  %v6288_v37 = vpack.c.bf16 %v1347_v26, %v1339_v9  ;;  %v6298_v9 = vpack.c.bf16 %v1378_v62, %v1370_v60  ;;  %v1420_v60 = vld [vmem:[#allocation5 + $0x430] sm:$0xff] }
 0x1b2   :  { %8124 = vpow2.f32 %v5791_v18  ;;  %v6352_v18 = vpack.c.bf16 %v1349_v27, %v1341_v23  ;;  %v1386_v23 = vld [vmem:[#allocation5 + $0x320] sm:$0xff]  ;;  %v1428_v62 = vld [vmem:[#allocation5 + $0x470] sm:$0xff] }
 0x1b3   :  { %8126 = vpow2.f32 %v5792_v40  ;;  %v1340_v40 = vld [vmem:[#allocation5 + $0x1b0] sm:$0xff]  ;;  %v1394_v27 = vld [vmem:[#allocation5 + $0x360] sm:$0xff] }
 0x1b4   :  { %8128 = vtanh.f32 %v8844_v52 }
 0x1bc   :  { %v8125_v22 = vpop.eup %8124 }
 0x1bd   :  { %v8127_v42 = vpop.eup %8126  ;;  %v1254_v55 = vadd.f32 1.0, %v8125_v22  ;;  %v1348_v22 = vld [vmem:[#allocation5 + $0x1f0] sm:$0xff] }
 0x1be   :  { %v1255_v16 = vadd.f32 1.0, %v8127_v42  ;;  %v8129_v13 = vpop.eup %8128  ;;  %v1355_v42 = vld [vmem:[#allocation5 + $0x228] sm:$0xff]  ;;  %v6354_v7 = vpack.c.bf16 %v1348_v22, %v1340_v40  ;;  %v1405_v40 = vld [vmem:[#allocation5 + $0x3b8] sm:$0xff] }
 0x1bf   :  { %8130 = vrcp.f32 %v1254_v55  ;;  %v1363_v55 = vld [vmem:[#allocation5 + $0x268] sm:$0xff]  ;;  %v1413_v22 = vld [vmem:[#allocation5 + $0x3f8] sm:$0xff] }
 0x1c0   :  { %8132 = vrcp.f32 %v1255_v16  ;;  %v1357_v16 = vld [vmem:[#allocation5 + $0x238] sm:$0xff] }
 0x1c1   :  { %8134 = vtanh.f32 %v8842_v39 }
 0x1c9   :  { %v8131_v33 = vpop.eup %8130 }
 0x1ca   :  { %v8133_v14 = vpop.eup %8132 }
 0x1cb   :  { %v8135_v8 = vpop.eup %8134  ;;  %v8858_v46 = vmul.f32 %v8133_v14, %v8129_v13  ;;  %v6290_v13 = vpack.c.bf16 %v1346_v21, %v1338_v17  ;;  %v1388_v17 = vld [vmem:[#allocation5 + $0x330] sm:$0xff] }
 0x1cc   :  { %v8860_v51 = vmul.f32 %v8135_v8, %v8131_v33  ;;  %v6292_v33 = vpack.c.bf16 %v1363_v55, %v1355_v42  ;;  %v1371_v8 = vld [vmem:[#allocation5 + $0x2a8] sm:$0xff]  ;;  %v1396_v21 = vld [vmem:[#allocation5 + $0x370] sm:$0xff]  ;;  %v6302_v42 = vpack.c.bf16 %v1394_v27, %v1386_v23 }
 0x1cd   :  { %1606 = vmatprep.mubr.f32.mxu0 %v8858_v46  ;;  %1677 = vmatprep.mubr.f32.mxu1 %v8858_v46  ;;  %v6366_v55 = vpack.c.bf16 %v1396_v21, %v1388_v17  ;;  %v1436_v23 = vld [vmem:[#allocation5 + $0x4b0] sm:$0xff]  ;;  %v1453_v17 = vld [vmem:[#allocation5 + $0x538] sm:$0xff] }
 0x1ce   :  { %1607 = vmatmul.mubr.f32.vlgmr.msra.gmra.mrb[18].mxu0 %v8860_v51  ;;  %1678 = vmatmul.mubr.f32.vlgmr.msra.gmra.mrb[18].mxu1 %v8860_v51  ;;  %v1444_v27 = vld [vmem:[#allocation5 + $0x4f0] sm:$0xff]  ;;  %v1461_v21 = vld [vmem:[#allocation5 + $0x578] sm:$0xff] }
 0x1cf   :  { %6279 = vmatpush1.bf16.msra.mxu0 %v6278_v11  ;;  %6343 = vmatpush1.bf16.msra.mxu1 %v8705_v5  ;;  %v6286_v5 = vpack.c.bf16 %v1330_v34, %v1322_v4  ;;  %v1379_v11 = vld [vmem:[#allocation5 + $0x2e8] sm:$0xff]  ;;  %v1372_v4 = vld [vmem:[#allocation5 + $0x2b0] sm:$0xff] }
 0x1d0   :  { %1748 = vmatprep.mubr.f32.mxu0 %v8858_v46  ;;  %1819 = vmatprep.mubr.f32.mxu1 %v8858_v46  ;;  %v6296_v30 = vpack.c.bf16 %v1379_v11, %v1371_v8  ;;  %v1380_v34 = vld [vmem:[#allocation5 + $0x2f0] sm:$0xff] }
 0x1d1   :  { %6281 = vmatprep.subr.bf16.mxu0 %v6280_v58  ;;  %6345 = vmatprep.subr.bf16.mxu1 %v8708_v63  ;;  %v1365_v63 = vld [vmem:[#allocation5 + $0x278] sm:$0xff]  ;;  %v6358_v58 = vpack.c.bf16 %v1364_v41, %v1356_v38  ;;  %v6362_v26 = vpack.c.bf16 %v1380_v34, %v1372_v4 }
 0x1d2   :  { %v6356_v14 = vpack.c.bf16 %v1365_v63, %v1357_v16  ;;  %v1402_v16 = vld [vmem:[#allocation5 + $0x3a0] sm:$0xff]  ;;  %v1421_v38 = vld [vmem:[#allocation5 + $0x438] sm:$0xff] }
 0x1d3   :  { %6283 = vmatpush1.bf16.msra.mxu0 %v6282_v3  ;;  %6347 = vmatpush1.bf16.msra.mxu1 %v8712_v19  ;;  %v1362_v19 = vld [vmem:[#allocation5 + $0x260] sm:$0xff]  ;;  %v6360_v3 = vpack.c.bf16 %v1381_v54, %v1373_v56  ;;  %v1429_v41 = vld [vmem:[#allocation5 + $0x478] sm:$0xff] }
 0x1d4   :  { %6285 = vmatprep.subr.bf16.mxu0 %v6284_v10  ;;  %6349 = vmatprep.subr.bf16.mxu1 %v6348_v44  ;;  %v6294_v25 = vpack.c.bf16 %v1362_v19, %v1354_v29  ;;  %v1387_v10 = vld [vmem:[#allocation5 + $0x328] sm:$0xff]  ;;  %v1410_v63 = vld [vmem:[#allocation5 + $0x3e0] sm:$0xff]  ;;  %v1404_v29 = vld [vmem:[#allocation5 + $0x3b0] sm:$0xff] }
 0x1d5   :  { %v1395_v44 = vld [vmem:[#allocation5 + $0x368] sm:$0xff]  ;;  %v1412_v19 = vld [vmem:[#allocation5 + $0x3f0] sm:$0xff]  ;;  %v6306_v8 = vpack.c.bf16 %v1410_v63, %v1402_v16  ;;  %v1418_v56 = vld [vmem:[#allocation5 + $0x420] sm:$0xff] }
 0x1d6   :  { %v6370_v11 = vpack.c.bf16 %v1412_v19, %v1404_v29  ;;  %v1426_v54 = vld [vmem:[#allocation5 + $0x460] sm:$0xff]  ;;  %v1437_v4 = vld [vmem:[#allocation5 + $0x4b8] sm:$0xff]  ;;  %v1452_v16 = vld [vmem:[#allocation5 + $0x530] sm:$0xff] }
 0x1d7   :  { %6287 = vmatpush1.bf16.msra.mxu0 %v6286_v5  ;;  %6351 = vmatpush1.bf16.msra.mxu1 %v6350_v2  ;;  %v6300_v5 = vpack.c.bf16 %v1395_v44, %v1387_v10  ;;  %v6364_v2 = vpack.c.bf16 %v1397_v47, %v1389_v12  ;;  %v1445_v34 = vld [vmem:[#allocation5 + $0x4f8] sm:$0xff]  ;;  %v6310_v10 = vpack.c.bf16 %v1426_v54, %v1418_v56  ;;  %v1434_v12 = vld [vmem:[#allocation5 + $0x4a0] sm:$0xff]  ;;  %v1460_v63 = vld [vmem:[#allocation5 + $0x570] sm:$0xff] }
 0x1d8   :  { %6289 = vmatprep.subr.bf16.mxu0 %v6288_v37  ;;  %6353 = vmatprep.subr.bf16.mxu1 %v6352_v18  ;;  %v1403_v37 = vld [vmem:[#allocation5 + $0x3a8] sm:$0xff]  ;;  %v6374_v44 = vpack.c.bf16 %v1428_v62, %v1420_v60  ;;  %v1442_v47 = vld [vmem:[#allocation5 + $0x4e0] sm:$0xff]  ;;  %v1469_v29 = vld [vmem:[#allocation5 + $0x5b8] sm:$0xff] }
 0x1d9   :  { %v1411_v18 = vld [vmem:[#allocation5 + $0x3e8] sm:$0xff]  ;;  %v1477_v19 = vld [vmem:[#allocation5 + $0x5f8] sm:$0xff]  ;;  %v1468_v56 = vld [vmem:[#allocation5 + $0x5b0] sm:$0xff] }
 0x1da   :  { %v1476_v54 = vld [vmem:[#allocation5 + $0x5f0] sm:$0xff]  ;;  %v1485_v60 = vld [vmem:[#allocation5 + $0x638] sm:$0xff] }
 0x1db   :  { %6291 = vmatpush1.bf16.msra.mxu0 %v6290_v13  ;;  %6355 = vmatpush1.bf16.msra.mxu1 %v6354_v7  ;;  %v6304_v13 = vpack.c.bf16 %v1411_v18, %v1403_v37  ;;  %v6368_v7 = vpack.c.bf16 %v1413_v22, %v1405_v40  ;;  %v6314_v37 = vpack.c.bf16 %v1442_v47, %v1434_v12  ;;  %v1450_v40 = vld [vmem:[#allocation5 + $0x520] sm:$0xff]  ;;  %v1493_v62 = vld [vmem:[#allocation5 + $0x678] sm:$0xff]  ;;  %v1484_v12 = vld [vmem:[#allocation5 + $0x630] sm:$0xff] }
 0x1dc   :  { %6293 = vmatprep.subr.bf16.mxu0 %v6292_v33  ;;  %6357 = vmatprep.subr.bf16.mxu1 %v6356_v14  ;;  %v1419_v33 = vld [vmem:[#allocation5 + $0x428] sm:$0xff]  ;;  %v6378_v18 = vpack.c.bf16 %v1444_v27, %v1436_v23  ;;  %v1458_v22 = vld [vmem:[#allocation5 + $0x560] sm:$0xff]  ;;  %v1492_v47 = vld [vmem:[#allocation5 + $0x670] sm:$0xff] }
 0x1dd   :  { %v1427_v14 = vld [vmem:[#allocation5 + $0x468] sm:$0xff]  ;;  %v1501_v23 = vld [vmem:[#allocation5 + $0x6b8] sm:$0xff] }
 0x1de   :  { %v1509_v27 = vld [vmem:[#allocation5 + $0x6f8] sm:$0xff] }
 0x1df   :  { %6295 = vmatpush1.bf16.msra.mxu0 %v6294_v25  ;;  %6359 = vmatpush1.bf16.msra.mxu1 %v6358_v58  ;;  %v6308_v25 = vpack.c.bf16 %v1427_v14, %v1419_v33  ;;  %v6372_v58 = vpack.c.bf16 %v1429_v41, %v1421_v38  ;;  %v6318_v33 = vpack.c.bf16 %v1458_v22, %v1450_v40  ;;  %v1466_v38 = vld [vmem:[#allocation5 + $0x5a0] sm:$0xff]  ;;  %v1500_v40 = vld [vmem:[#allocation5 + $0x6b0] sm:$0xff] }
 0x1e0   :  { %6297 = vmatprep.subr.bf16.mxu0 %v6296_v30  ;;  %6361 = vmatprep.subr.bf16.mxu1 %v6360_v3  ;;  %v1435_v30 = vld [vmem:[#allocation5 + $0x4a8] sm:$0xff]  ;;  %v6382_v14 = vpack.c.bf16 %v1460_v63, %v1452_v16  ;;  %v1474_v41 = vld [vmem:[#allocation5 + $0x5e0] sm:$0xff]  ;;  %v1508_v22 = vld [vmem:[#allocation5 + $0x6f0] sm:$0xff] }
 0x1e1   :  { %v1443_v3 = vld [vmem:[#allocation5 + $0x4e8] sm:$0xff]  ;;  %v1517_v16 = vld [vmem:[#allocation5 + $0x738] sm:$0xff] }
 0x1e2   :  { %v1525_v63 = vld [vmem:[#allocation5 + $0x778] sm:$0xff] }
 0x1e3   :  { %6299 = vmatpush1.bf16.msra.mxu0 %v6298_v9  ;;  %6363 = vmatpush1.bf16.msra.mxu1 %v6362_v26  ;;  %v6312_v9 = vpack.c.bf16 %v1443_v3, %v1435_v30  ;;  %v6376_v26 = vpack.c.bf16 %v1445_v34, %v1437_v4  ;;  %v6322_v30 = vpack.c.bf16 %v1474_v41, %v1466_v38  ;;  %v1482_v4 = vld [vmem:[#allocation5 + $0x620] sm:$0xff]  ;;  %v1516_v38 = vld [vmem:[#allocation5 + $0x730] sm:$0xff] }
 0x1e4   :  { %6301 = vmatprep.subr.bf16.mxu0 %v6300_v5  ;;  %6365 = vmatprep.subr.bf16.mxu1 %v6364_v2  ;;  %v1451_v5 = vld [vmem:[#allocation5 + $0x528] sm:$0xff]  ;;  %v6386_v3 = vpack.c.bf16 %v1476_v54, %v1468_v56  ;;  %v1490_v34 = vld [vmem:[#allocation5 + $0x660] sm:$0xff]  ;;  %v1524_v41 = vld [vmem:[#allocation5 + $0x770] sm:$0xff] }
 0x1e5   :  { %v1459_v2 = vld [vmem:[#allocation5 + $0x568] sm:$0xff]  ;;  %v1533_v56 = vld [vmem:[#allocation5 + $0x7b8] sm:$0xff] }
 0x1e6   :  { %v1541_v54 = vld [vmem:[#allocation5 + $0x7f8] sm:$0xff] }
 0x1e7   :  { %6303 = vmatpush1.bf16.msra.mxu0 %v6302_v42  ;;  %6367 = vmatpush1.bf16.msra.mxu1 %v6366_v55  ;;  %v6316_v42 = vpack.c.bf16 %v1459_v2, %v1451_v5  ;;  %v6380_v55 = vpack.c.bf16 %v1461_v21, %v1453_v17  ;;  %v6326_v5 = vpack.c.bf16 %v1490_v34, %v1482_v4  ;;  %v1498_v17 = vld [vmem:[#allocation5 + $0x6a0] sm:$0xff]  ;;  %v1532_v4 = vld [vmem:[#allocation5 + $0x7b0] sm:$0xff] }
 0x1e8   :  { %6305 = vmatprep.subr.bf16.mxu0 %v6304_v13  ;;  %6369 = vmatprep.subr.bf16.mxu1 %v6368_v7  ;;  %v1467_v13 = vld [vmem:[#allocation5 + $0x5a8] sm:$0xff]  ;;  %v6390_v2 = vpack.c.bf16 %v1492_v47, %v1484_v12  ;;  %v1506_v21 = vld [vmem:[#allocation5 + $0x6e0] sm:$0xff]  ;;  %v1540_v34 = vld [vmem:[#allocation5 + $0x7f0] sm:$0xff] }
 0x1e9   :  { %v1475_v7 = vld [vmem:[#allocation5 + $0x5e8] sm:$0xff] }
 0x1ea   :  { %v1899_v12 = vld [vmem:[#allocation5 + $0x8] sm:$0xff] }
 0x1eb   :  { %6307 = vmatpush1.bf16.msra.mxu0 %v6306_v8  ;;  %6371 = vmatpush1.bf16.msra.mxu1 %v6370_v11  ;;  %v6320_v8 = vpack.c.bf16 %v1475_v7, %v1467_v13  ;;  %v6384_v11 = vpack.c.bf16 %v1477_v19, %v1469_v29  ;;  %v6330_v13 = vpack.c.bf16 %v1506_v21, %v1498_v17  ;;  %v1514_v29 = vld [vmem:[#allocation5 + $0x720] sm:$0xff]  ;;  %v1907_v47 = vld [vmem:[#allocation5 + $0x48] sm:$0xff]  ;;  %v1900_v21 = vld [vmem:[#allocation5 + $0x10] sm:$0xff] }
 0x1ec   :  { %6309 = vmatprep.subr.bf16.mxu0 %v6308_v25  ;;  %6373 = vmatprep.subr.bf16.mxu1 %v6372_v58  ;;  %v1483_v25 = vld [vmem:[#allocation5 + $0x628] sm:$0xff]  ;;  %v6394_v7 = vpack.c.bf16 %v1508_v22, %v1500_v40  ;;  %v1522_v19 = vld [vmem:[#allocation5 + $0x760] sm:$0xff] }
 0x1ed   :  { %v1491_v58 = vld [vmem:[#allocation5 + $0x668] sm:$0xff] }
 0x1ee   :  { %v1923_v22 = vld [vmem:[#allocation5 + $0xc8] sm:$0xff] }
 0x1ef   :  { %6311 = vmatpush1.bf16.msra.mxu0 %v6310_v10  ;;  %6375 = vmatpush1.bf16.msra.mxu1 %v6374_v44  ;;  %v6324_v10 = vpack.c.bf16 %v1491_v58, %v1483_v25  ;;  %v6388_v44 = vpack.c.bf16 %v1493_v62, %v1485_v60  ;;  %v6334_v25 = vpack.c.bf16 %v1522_v19, %v1514_v29  ;;  %v1530_v60 = vld [vmem:[#allocation5 + $0x7a0] sm:$0xff]  ;;  %v1916_v29 = vld [vmem:[#allocation5 + $0x90] sm:$0xff] }
 0x1f0   :  { %6313 = vmatprep.subr.bf16.mxu0 %v6312_v9  ;;  %6377 = vmatprep.subr.bf16.mxu1 %v6376_v26  ;;  %v1499_v9 = vld [vmem:[#allocation5 + $0x6a8] sm:$0xff]  ;;  %v6398_v58 = vpack.c.bf16 %v1524_v41, %v1516_v38 }
 0x1f1   :  { %v1507_v26 = vld [vmem:[#allocation5 + $0x6e8] sm:$0xff] }
 0x1f2   :  { %v1939_v38 = vld [vmem:[#allocation5 + $0x148] sm:$0xff] }
 0x1f3   :  { %6315 = vmatpush1.bf16.msra.mxu0 %v6314_v37  ;;  %6379 = vmatpush1.bf16.msra.mxu1 %v6378_v18  ;;  %v6328_v37 = vpack.c.bf16 %v1507_v26, %v1499_v9  ;;  %v6392_v18 = vpack.c.bf16 %v1509_v27, %v1501_v23  ;;  %v1901_v9 = vld [vmem:[#allocation5 + $0x18] sm:$0xff]  ;;  %v6404_v26 = vpack.c.bf16 %v1907_v47, %v1899_v12  ;;  %v1898_v27 = vld [vmem:[#allocation5] sm:$0xff] }
 0x1f4   :  { %6317 = vmatprep.subr.bf16.mxu0 %v6316_v42  ;;  %6381 = vmatprep.subr.bf16.mxu1 %v6380_v55  ;;  %v1515_v42 = vld [vmem:[#allocation5 + $0x728] sm:$0xff]  ;;  %v1909_v23 = vld [vmem:[#allocation5 + $0x58] sm:$0xff]  ;;  %v1946_v47 = vld [vmem:[#allocation5 + $0x180] sm:$0xff] }
 0x1f5   :  { %v1523_v55 = vld [vmem:[#allocation5 + $0x768] sm:$0xff]  ;;  %v1957_v12 = vld [vmem:[#allocation5 + $0x1d8] sm:$0xff] }
 0x1f7   :  { %6319 = vmatpush1.bf16.msra.mxu0 %v6318_v33  ;;  %6383 = vmatpush1.bf16.msra.mxu1 %v6382_v14  ;;  %v6332_v33 = vpack.c.bf16 %v1523_v55, %v1515_v42  ;;  %v6396_v14 = vpack.c.bf16 %v1525_v63, %v1517_v16  ;;  %v1917_v42 = vld [vmem:[#allocation5 + $0x98] sm:$0xff] }
 0x1f8   :  { %6321 = vmatprep.subr.bf16.mxu0 %v6320_v8  ;;  %6385 = vmatprep.subr.bf16.mxu1 %v6384_v11  ;;  %v1531_v8 = vld [vmem:[#allocation5 + $0x7a8] sm:$0xff]  ;;  %v1925_v55 = vld [vmem:[#allocation5 + $0xd8] sm:$0xff] }
 0x1f9   :  { %v1539_v11 = vld [vmem:[#allocation5 + $0x7e8] sm:$0xff]  ;;  %v6472_v63 = vpack.c.bf16 %v1925_v55, %v1917_v42  ;;  %v1970_v42 = vld [vmem:[#allocation5 + $0x240] sm:$0xff]  ;;  %v1964_v55 = vld [vmem:[#allocation5 + $0x210] sm:$0xff] }
 0x1fa   :  { %v6336_v62 = vpack.c.bf16 %v1539_v11, %v1531_v8  ;;  %v1933_v11 = vld [vmem:[#allocation5 + $0x118] sm:$0xff] }
 0x1fb   :  { %6323 = vmatpush1.bf16.msra.mxu0 %v6322_v30  ;;  %6387 = vmatpush1.bf16.msra.mxu1 %v6386_v3  ;;  %v6400_v30 = vpack.c.bf16 %v1541_v54, %v1533_v56  ;;  %v1538_v3 = vld [vmem:[#allocation5 + $0x7e0] sm:$0xff]  ;;  %v1941_v56 = vld [vmem:[#allocation5 + $0x158] sm:$0xff] }
 0x1fc   :  { %6325 = vmatprep.subr.bf16.mxu0 %v6324_v10  ;;  %6389 = vmatprep.subr.bf16.mxu1 %v6388_v44  ;;  %v6338_v10 = vpack.c.bf16 %v1538_v3, %v1530_v60  ;;  %v6402_v44 = vpack.c.bf16 %v1540_v34, %v1532_v4  ;;  %v1930_v54 = vld [vmem:[#allocation5 + $0x100] sm:$0xff]  ;;  %v1932_v60 = vld [vmem:[#allocation5 + $0x110] sm:$0xff]  ;;  %v1947_v3 = vld [vmem:[#allocation5 + $0x188] sm:$0xff] }
 0x1fd   :  { %v1955_v4 = vld [vmem:[#allocation5 + $0x1c8] sm:$0xff]  ;;  %v1949_v34 = vld [vmem:[#allocation5 + $0x198] sm:$0xff] }
 0x1ff   :  { %6327 = vmatpush1.bf16.msra.mxu0 %v6326_v5  ;;  %6391 = vmatpush1.bf16.msra.mxu1 %v6390_v2  ;;  %v1906_v5 = vld [vmem:[#allocation5 + $0x40] sm:$0xff]  ;;  %v6468_v2 = vpack.c.bf16 %v1909_v23, %v1901_v9  ;;  %v1948_v23 = vld [vmem:[#allocation5 + $0x190] sm:$0xff] }
 0x200   :  { %6329 = vmatprep.subr.bf16.mxu0 %v6328_v37  ;;  %6393 = vmatprep.subr.bf16.mxu1 %v6392_v18  ;;  %v6406_v17 = vpack.c.bf16 %v1906_v5, %v1898_v27  ;;  %v1908_v37 = vld [vmem:[#allocation5 + $0x50] sm:$0xff]  ;;  %v1915_v18 = vld [vmem:[#allocation5 + $0x88] sm:$0xff]  ;;  %v1954_v9 = vld [vmem:[#allocation5 + $0x1c0] sm:$0xff] }
 0x201   :  { %v6470_v40 = vpack.c.bf16 %v1908_v37, %v1900_v21  ;;  %v6408_v16 = vpack.c.bf16 %v1923_v22, %v1915_v18  ;;  %v1956_v27 = vld [vmem:[#allocation5 + $0x1d0] sm:$0xff]  ;;  %v1963_v5 = vld [vmem:[#allocation5 + $0x208] sm:$0xff]  ;;  %v1973_v21 = vld [vmem:[#allocation5 + $0x258] sm:$0xff]  ;;  %v6418_v37 = vpack.c.bf16 %v1954_v9, %v1946_v47 }
 0x202   :  { %v6482_v18 = vpack.c.bf16 %v1956_v27, %v1948_v23  ;;  %v1962_v22 = vld [vmem:[#allocation5 + $0x200] sm:$0xff]  ;;  %v2004_v47 = vld [vmem:[#allocation5 + $0x350] sm:$0xff]  ;;  %v2011_v9 = vld [vmem:[#allocation5 + $0x388] sm:$0xff] }
 0x203   :  { %6331 = vmatpush1.bf16.msra.mxu0 %v6330_v13  ;;  %6395 = vmatpush1.bf16.msra.mxu1 %v6394_v7  ;;  %v1914_v13 = vld [vmem:[#allocation5 + $0x80] sm:$0xff]  ;;  %v2013_v23 = vld [vmem:[#allocation5 + $0x398] sm:$0xff] }
 0x204   :  { %6333 = vmatprep.subr.bf16.mxu0 %v6332_v33  ;;  %6397 = vmatprep.subr.bf16.mxu1 %v6396_v14  ;;  %v1922_v7 = vld [vmem:[#allocation5 + $0xc0] sm:$0xff]  ;;  %v1924_v33 = vld [vmem:[#allocation5 + $0xd0] sm:$0xff]  ;;  %v1931_v14 = vld [vmem:[#allocation5 + $0x108] sm:$0xff] }
 0x205   :  { %v6410_v19 = vpack.c.bf16 %v1922_v7, %v1914_v13  ;;  %v6474_v41 = vpack.c.bf16 %v1924_v33, %v1916_v29  ;;  %v6412_v8 = vpack.c.bf16 %v1939_v38, %v1931_v14  ;;  %v1979_v13 = vld [vmem:[#allocation5 + $0x288] sm:$0xff]  ;;  %v1981_v29 = vld [vmem:[#allocation5 + $0x298] sm:$0xff]  ;;  %v6422_v33 = vpack.c.bf16 %v1970_v42, %v1962_v22  ;;  %v2020_v22 = vld [vmem:[#allocation5 + $0x3d0] sm:$0xff] }
 0x206   :  { %v1987_v7 = vld [vmem:[#allocation5 + $0x2c8] sm:$0xff]  ;;  %v2021_v27 = vld [vmem:[#allocation5 + $0x3d8] sm:$0xff] }
 0x207   :  { %6335 = vmatpush1.bf16.msra.mxu0 %v6334_v25  ;;  %6399 = vmatpush1.bf16.msra.mxu1 %v6398_v58  ;;  %v6476_v25 = vpack.c.bf16 %v1941_v56, %v1933_v11  ;;  %v1938_v58 = vld [vmem:[#allocation5 + $0x140] sm:$0xff]  ;;  %v6424_v38 = vpack.c.bf16 %v1987_v7, %v1979_v13  ;;  %v1980_v11 = vld [vmem:[#allocation5 + $0x290] sm:$0xff]  ;;  %v2029_v13 = vld [vmem:[#allocation5 + $0x418] sm:$0xff] }
 0x208   :  { %6337 = vmatprep.subr.bf16.mxu0 %v6336_v62  ;;  %6401 = vmatprep.subr.bf16.mxu1 %v6400_v30  ;;  %v1940_v62 = vld [vmem:[#allocation5 + $0x150] sm:$0xff]  ;;  %v6414_v30 = vpack.c.bf16 %v1938_v58, %v1930_v54  ;;  %v2003_v58 = vld [vmem:[#allocation5 + $0x348] sm:$0xff] }
 0x209   :  { %v1988_v54 = vld [vmem:[#allocation5 + $0x2d0] sm:$0xff] }
 0x20b   :  { %6339 = vmatpush1.bf16.msra.mxu0 %v6338_v10  ;;  %6403 = vmatpush1.bf16.msra.mxu1 %v6402_v44  ;;  %v6478_v10 = vpack.c.bf16 %v1940_v62, %v1932_v60  ;;  %v6416_v44 = vpack.c.bf16 %v1955_v4, %v1947_v3  ;;  %v1997_v60 = vld [vmem:[#allocation5 + $0x318] sm:$0xff]  ;;  %v6490_v3 = vpack.c.bf16 %v1988_v54, %v1980_v11  ;;  %v2051_v54 = vld [vmem:[#allocation5 + $0x4c8] sm:$0xff] }
 0x20c   :  { %6405 = vmatprep.subr.bf16.mxu0 %v6404_v26  ;;  %6469 = vmatprep.subr.bf16.mxu1 %v6468_v2  ;;  %v6480_v26 = vpack.c.bf16 %v1957_v12, %v1949_v34  ;;  %v1971_v2 = vld [vmem:[#allocation5 + $0x248] sm:$0xff]  ;;  %v2005_v62 = vld [vmem:[#allocation5 + $0x358] sm:$0xff]  ;;  %v1994_v34 = vld [vmem:[#allocation5 + $0x300] sm:$0xff] }
 0x20d   :  { %v6492_v12 = vpack.c.bf16 %v2005_v62, %v1997_v60  ;;  %v2053_v60 = vld [vmem:[#allocation5 + $0x4d8] sm:$0xff]  ;;  %v2042_v62 = vld [vmem:[#allocation5 + $0x480] sm:$0xff] }
 0x20e   :  { %1749 = vmatmul.mubr.f32.vlgmr.msra.gmra.mrb[2].mxu0 %v8860_v51  ;;  %1820 = vmatmul.mubr.f32.vlgmr.msra.gmra.mrb[34].mxu1 %v8860_v51 }
 0x20f   :  { %6407 = vmatpush1.bf16.msra.mxu0 %v6406_v17  ;;  %6471 = vmatpush1.bf16.msra.mxu1 %v6470_v40  ;;  %v1965_v17 = vld [vmem:[#allocation5 + $0x218] sm:$0xff]  ;;  %v6420_v40 = vpack.c.bf16 %v1971_v2, %v1963_v5 }
 0x210   :  { %6409 = vmatprep.subr.bf16.mxu0 %v6408_v16  ;;  %6473 = vmatprep.subr.bf16.mxu1 %v6472_v63  ;;  %v6484_v16 = vpack.c.bf16 %v1973_v21, %v1965_v17  ;;  %v1972_v63 = vld [vmem:[#allocation5 + $0x250] sm:$0xff]  ;;  %v2010_v21 = vld [vmem:[#allocation5 + $0x380] sm:$0xff] }
 0x211   :  { %v6486_v14 = vpack.c.bf16 %v1972_v63, %v1964_v55  ;;  %v2035_v63 = vld [vmem:[#allocation5 + $0x448] sm:$0xff] }
 0x213   :  { %6411 = vmatpush1.bf16.msra.mxu0 %v6410_v19  ;;  %6475 = vmatpush1.bf16.msra.mxu1 %v6474_v41  ;;  %v1989_v19 = vld [vmem:[#allocation5 + $0x2d8] sm:$0xff]  ;;  %v1978_v41 = vld [vmem:[#allocation5 + $0x280] sm:$0xff] }
 0x214   :  { %6413 = vmatprep.subr.bf16.mxu0 %v6412_v8  ;;  %6477 = vmatprep.subr.bf16.mxu1 %v6476_v25  ;;  %v1986_v8 = vld [vmem:[#allocation5 + $0x2c0] sm:$0xff]  ;;  %v6488_v56 = vpack.c.bf16 %v1989_v19, %v1981_v29  ;;  %v1995_v25 = vld [vmem:[#allocation5 + $0x308] sm:$0xff]  ;;  %v2037_v29 = vld [vmem:[#allocation5 + $0x458] sm:$0xff] }
 0x215   :  { %v6428_v4 = vpack.c.bf16 %v2003_v58, %v1995_v25  ;;  %v2026_v19 = vld [vmem:[#allocation5 + $0x400] sm:$0xff]  ;;  %v2045_v25 = vld [vmem:[#allocation5 + $0x498] sm:$0xff] }
 0x217   :  { %6415 = vmatpush1.bf16.msra.mxu0 %v6414_v30  ;;  %6479 = vmatpush1.bf16.msra.mxu1 %v6478_v10  ;;  %v6426_v30 = vpack.c.bf16 %v1986_v8, %v1978_v41  ;;  %v2002_v10 = vld [vmem:[#allocation5 + $0x340] sm:$0xff]  ;;  %v2028_v41 = vld [vmem:[#allocation5 + $0x410] sm:$0xff] }
 0x218   :  { %6417 = vmatprep.subr.bf16.mxu0 %v6416_v44  ;;  %6481 = vmatprep.subr.bf16.mxu1 %v6480_v26  ;;  %v1996_v44 = vld [vmem:[#allocation5 + $0x310] sm:$0xff]  ;;  %v2019_v26 = vld [vmem:[#allocation5 + $0x3c8] sm:$0xff]  ;;  %v6430_v5 = vpack.c.bf16 %v2002_v10, %v1994_v34 }
 0x219   :  { %v6494_v2 = vpack.c.bf16 %v2004_v47, %v1996_v44  ;;  %v6432_v17 = vpack.c.bf16 %v2019_v26, %v2011_v9  ;;  %v2036_v8 = vld [vmem:[#allocation5 + $0x450] sm:$0xff]  ;;  %v2067_v47 = vld [vmem:[#allocation5 + $0x548] sm:$0xff]  ;;  %v2061_v9 = vld [vmem:[#allocation5 + $0x518] sm:$0xff] }
 0x21a   :  { %v6502_v11 = vpack.c.bf16 %v2036_v8, %v2028_v41  ;;  %v2044_v34 = vld [vmem:[#allocation5 + $0x490] sm:$0xff]  ;;  %v2099_v41 = vld [vmem:[#allocation5 + $0x648] sm:$0xff]  ;;  %v2093_v8 = vld [vmem:[#allocation5 + $0x618] sm:$0xff] }
 0x21b   :  { %6419 = vmatpush1.bf16.msra.mxu0 %v6418_v37  ;;  %6483 = vmatpush1.bf16.msra.mxu1 %v6482_v18  ;;  %v2018_v37 = vld [vmem:[#allocation5 + $0x3c0] sm:$0xff]  ;;  %v6496_v18 = vpack.c.bf16 %v2021_v27, %v2013_v23  ;;  %v2052_v10 = vld [vmem:[#allocation5 + $0x4d0] sm:$0xff]  ;;  %v2069_v23 = vld [vmem:[#allocation5 + $0x558] sm:$0xff] }
 0x21c   :  { %6421 = vmatprep.subr.bf16.mxu0 %v6420_v40  ;;  %6485 = vmatprep.subr.bf16.mxu1 %v6484_v16  ;;  %v2012_v40 = vld [vmem:[#allocation5 + $0x390] sm:$0xff]  ;;  %v6434_v42 = vpack.c.bf16 %v2018_v37, %v2010_v21  ;;  %v2027_v16 = vld [vmem:[#allocation5 + $0x408] sm:$0xff]  ;;  %v6506_v44 = vpack.c.bf16 %v2052_v10, %v2044_v34  ;;  %v2058_v27 = vld [vmem:[#allocation5 + $0x500] sm:$0xff] }
 0x21d   :  { %v6498_v55 = vpack.c.bf16 %v2020_v22, %v2012_v40  ;;  %v6436_v7 = vpack.c.bf16 %v2035_v63, %v2027_v16  ;;  %v2060_v21 = vld [vmem:[#allocation5 + $0x510] sm:$0xff]  ;;  %v2075_v40 = vld [vmem:[#allocation5 + $0x588] sm:$0xff]  ;;  %v2085_v16 = vld [vmem:[#allocation5 + $0x5d8] sm:$0xff] }
 0x21e   :  { %v2068_v37 = vld [vmem:[#allocation5 + $0x550] sm:$0xff]  ;;  %v2083_v22 = vld [vmem:[#allocation5 + $0x5c8] sm:$0xff]  ;;  %v2074_v63 = vld [vmem:[#allocation5 + $0x580] sm:$0xff] }
 0x21f   :  { %6423 = vmatpush1.bf16.msra.mxu0 %v6422_v33  ;;  %6487 = vmatpush1.bf16.msra.mxu1 %v6486_v14  ;;  %v2034_v33 = vld [vmem:[#allocation5 + $0x440] sm:$0xff]  ;;  %v6500_v14 = vpack.c.bf16 %v2037_v29, %v2029_v13  ;;  %v2115_v34 = vld [vmem:[#allocation5 + $0x6c8] sm:$0xff]  ;;  %v2109_v10 = vld [vmem:[#allocation5 + $0x698] sm:$0xff] }
 0x220   :  { %6425 = vmatprep.subr.bf16.mxu0 %v6424_v38  ;;  %6489 = vmatprep.subr.bf16.mxu1 %v6488_v56  ;;  %v6438_v38 = vpack.c.bf16 %v2034_v33, %v2026_v19  ;;  %v2043_v56 = vld [vmem:[#allocation5 + $0x488] sm:$0xff]  ;;  %v2082_v13 = vld [vmem:[#allocation5 + $0x5c0] sm:$0xff]  ;;  %v2076_v19 = vld [vmem:[#allocation5 + $0x590] sm:$0xff] }
 0x221   :  { %v6440_v58 = vpack.c.bf16 %v2051_v54, %v2043_v56  ;;  %v6450_v29 = vpack.c.bf16 %v2082_v13, %v2074_v63  ;;  %v2084_v33 = vld [vmem:[#allocation5 + $0x5d0] sm:$0xff]  ;;  %v2101_v56 = vld [vmem:[#allocation5 + $0x658] sm:$0xff]  ;;  %v2090_v54 = vld [vmem:[#allocation5 + $0x600] sm:$0xff] }
 0x222   :  { %v2132_v13 = vld [vmem:[#allocation5 + $0x750] sm:$0xff] }
 0x223   :  { %6427 = vmatpush1.bf16.msra.mxu0 %v6426_v30  ;;  %6491 = vmatpush1.bf16.msra.mxu1 %v6490_v3  ;;  %v2050_v30 = vld [vmem:[#allocation5 + $0x4c0] sm:$0xff]  ;;  %v6504_v3 = vpack.c.bf16 %v2053_v60, %v2045_v25 }
 0x224   :  { %6429 = vmatprep.subr.bf16.mxu0 %v6428_v4  ;;  %6493 = vmatprep.subr.bf16.mxu1 %v6492_v12  ;;  %v6442_v4 = vpack.c.bf16 %v2050_v30, %v2042_v62  ;;  %v2059_v12 = vld [vmem:[#allocation5 + $0x508] sm:$0xff]  ;;  %v2098_v25 = vld [vmem:[#allocation5 + $0x640] sm:$0xff]  ;;  %v2092_v62 = vld [vmem:[#allocation5 + $0x610] sm:$0xff] }
 0x225   :  { %v6444_v26 = vpack.c.bf16 %v2067_v47, %v2059_v12  ;;  %v6454_v60 = vpack.c.bf16 %v2098_v25, %v2090_v54  ;;  %v2100_v30 = vld [vmem:[#allocation5 + $0x650] sm:$0xff]  ;;  %v2117_v12 = vld [vmem:[#allocation5 + $0x6d8] sm:$0xff]  ;;  %v2106_v47 = vld [vmem:[#allocation5 + $0x680] sm:$0xff] }
 0x226   :  { %v2148_v54 = vld [vmem:[#allocation5 + $0x7d0] sm:$0xff] }
 0x227   :  { %6431 = vmatpush1.bf16.msra.mxu0 %v6430_v5  ;;  %6495 = vmatpush1.bf16.msra.mxu1 %v6494_v2  ;;  %v2066_v5 = vld [vmem:[#allocation5 + $0x540] sm:$0xff]  ;;  %v6508_v2 = vpack.c.bf16 %v2069_v23, %v2061_v9 }
 0x228   :  { %6433 = vmatprep.subr.bf16.mxu0 %v6432_v17  ;;  %6497 = vmatprep.subr.bf16.mxu1 %v6496_v18  ;;  %v6446_v17 = vpack.c.bf16 %v2066_v5, %v2058_v27  ;;  %v6510_v18 = vpack.c.bf16 %v2068_v37, %v2060_v21  ;;  %v2114_v9 = vld [vmem:[#allocation5 + $0x6c0] sm:$0xff]  ;;  %v2108_v27 = vld [vmem:[#allocation5 + $0x690] sm:$0xff]  ;;  %v2131_v21 = vld [vmem:[#allocation5 + $0x748] sm:$0xff] }
 0x229   :  { %v6458_v23 = vpack.c.bf16 %v2114_v9, %v2106_v47  ;;  %v2116_v5 = vld [vmem:[#allocation5 + $0x6d0] sm:$0xff]  ;;  %v2125_v37 = vld [vmem:[#allocation5 + $0x718] sm:$0xff] }
 0x22b   :  { %6435 = vmatpush1.bf16.msra.mxu0 %v6434_v42  ;;  %6499 = vmatpush1.bf16.msra.mxu1 %v6498_v55  ;;  %v2077_v42 = vld [vmem:[#allocation5 + $0x598] sm:$0xff]  ;;  %v6448_v55 = vpack.c.bf16 %v2083_v22, %v2075_v40 }
 0x22c   :  { %6437 = vmatprep.subr.bf16.mxu0 %v6436_v7  ;;  %6501 = vmatprep.subr.bf16.mxu1 %v6500_v14  ;;  %v6512_v7 = vpack.c.bf16 %v2085_v16, %v2077_v42  ;;  %v6514_v14 = vpack.c.bf16 %v2084_v33, %v2076_v19  ;;  %v2122_v42 = vld [vmem:[#allocation5 + $0x700] sm:$0xff]  ;;  %v2124_v16 = vld [vmem:[#allocation5 + $0x710] sm:$0xff] }
 0x22d   :  { %v6526_v19 = vpack.c.bf16 %v2132_v13, %v2124_v16 }
 0x22f   :  { %6439 = vmatpush1.bf16.msra.mxu0 %v6438_v38  ;;  %6503 = vmatpush1.bf16.msra.mxu1 %v6502_v11  ;;  %v2091_v38 = vld [vmem:[#allocation5 + $0x608] sm:$0xff] }
 0x230   :  { %6441 = vmatprep.subr.bf16.mxu0 %v6440_v58  ;;  %6505 = vmatprep.subr.bf16.mxu1 %v6504_v3  ;;  %v6452_v11 = vpack.c.bf16 %v2099_v41, %v2091_v38  ;;  %v6516_v58 = vpack.c.bf16 %v2101_v56, %v2093_v8  ;;  %v6518_v3 = vpack.c.bf16 %v2100_v30, %v2092_v62  ;;  %v2149_v38 = vld [vmem:[#allocation5 + $0x7d8] sm:$0xff]  ;;  %v2138_v41 = vld [vmem:[#allocation5 + $0x780] sm:$0xff]  ;;  %v2140_v56 = vld [vmem:[#allocation5 + $0x790] sm:$0xff] }
 0x231   :  { %v1911_v62 = vld [vmem:[#allocation5 + $0x68] sm:$0xff]  ;;  %v1905_v30 = vld [vmem:[#allocation5 + $0x38] sm:$0xff] }
 0x233   :  { %6443 = vmatpush1.bf16.msra.mxu0 %v6442_v4  ;;  %6507 = vmatpush1.bf16.msra.mxu1 %v6506_v44  ;;  %v2107_v4 = vld [vmem:[#allocation5 + $0x688] sm:$0xff] }
 0x234   :  { %6445 = vmatprep.subr.bf16.mxu0 %v6444_v26  ;;  %6509 = vmatprep.subr.bf16.mxu1 %v6508_v2  ;;  %v6456_v44 = vpack.c.bf16 %v2115_v34, %v2107_v4  ;;  %v6520_v26 = vpack.c.bf16 %v2117_v12, %v2109_v10  ;;  %v2123_v2 = vld [vmem:[#allocation5 + $0x708] sm:$0xff]  ;;  %v1913_v4 = vld [vmem:[#allocation5 + $0x78] sm:$0xff] }
 0x235   :  { %v6460_v40 = vpack.c.bf16 %v2131_v21, %v2123_v2  ;;  %v6596_v34 = vpack.c.bf16 %v1913_v4, %v1905_v30 }
 0x237   :  { %6447 = vmatpush1.bf16.msra.mxu0 %v6446_v17  ;;  %6511 = vmatpush1.bf16.msra.mxu1 %v6510_v18  ;;  %v6522_v17 = vpack.c.bf16 %v2116_v5, %v2108_v27  ;;  %v2133_v18 = vld [vmem:[#allocation5 + $0x758] sm:$0xff] }
 0x238   :  { %6449 = vmatprep.subr.bf16.mxu0 %v6448_v55  ;;  %6513 = vmatprep.subr.bf16.mxu1 %v6512_v7  ;;  %v6524_v22 = vpack.c.bf16 %v2133_v18, %v2125_v37  ;;  %v2130_v55 = vld [vmem:[#allocation5 + $0x740] sm:$0xff]  ;;  %v2139_v7 = vld [vmem:[#allocation5 + $0x788] sm:$0xff] }
 0x239   :  { %v6462_v63 = vpack.c.bf16 %v2130_v55, %v2122_v42 }
 0x23b   :  { %6451 = vmatpush1.bf16.msra.mxu0 %v6450_v29  ;;  %6515 = vmatpush1.bf16.msra.mxu1 %v6514_v14  ;;  %v2147_v29 = vld [vmem:[#allocation5 + $0x7c8] sm:$0xff]  ;;  %v2141_v14 = vld [vmem:[#allocation5 + $0x798] sm:$0xff] }
 0x23c   :  { %6453 = vmatprep.subr.bf16.mxu0 %v6452_v11  ;;  %6517 = vmatprep.subr.bf16.mxu1 %v6516_v58  ;;  %v6464_v33 = vpack.c.bf16 %v2147_v29, %v2139_v7  ;;  %v6528_v8 = vpack.c.bf16 %v2149_v38, %v2141_v14  ;;  %v2146_v11 = vld [vmem:[#allocation5 + $0x7c0] sm:$0xff]  ;;  %v6530_v58 = vpack.c.bf16 %v2148_v54, %v2140_v56 }
 0x23d   :  { %v6466_v25 = vpack.c.bf16 %v2146_v11, %v2138_v41 }
 0x23f   :  { %6455 = vmatpush1.bf16.msra.mxu0 %v6454_v60  ;;  %6519 = vmatpush1.bf16.msra.mxu1 %v6518_v3  ;;  %v1903_v60 = vld [vmem:[#allocation5 + $0x28] sm:$0xff] }
 0x240   :  { %6457 = vmatprep.subr.bf16.mxu0 %v6456_v44  ;;  %6521 = vmatprep.subr.bf16.mxu1 %v6520_v26  ;;  %v6532_v3 = vpack.c.bf16 %v1911_v62, %v1903_v60 }
 0x243   :  { %6459 = vmatpush1.bf16.msra.mxu0 %v6458_v23  ;;  %6523 = vmatpush1.bf16.msra.mxu1 %v6522_v17 }
 0x244   :  { %6461 = vmatprep.subr.bf16.mxu0 %v6460_v40  ;;  %6525 = vmatprep.subr.bf16.mxu1 %v6524_v22 }
 0x247   :  { %6463 = vmatpush1.bf16.msra.mxu0 %v6462_v63  ;;  %6527 = vmatpush1.bf16.msra.mxu1 %v6526_v19 }
 0x248   :  { %6465 = vmatprep.subr.bf16.mxu0 %v6464_v33  ;;  %6529 = vmatprep.subr.bf16.mxu1 %v6528_v8 }
 0x24b   :  { %6467 = vmatpush1.bf16.msra.mxu0 %v6466_v25  ;;  %6531 = vmatpush1.bf16.msra.mxu1 %v6530_v58 }
 0x24c   :  { %6533 = vmatprep.subr.bf16.mxu0 %v6532_v3  ;;  %6597 = vmatprep.subr.bf16.mxu1 %v6596_v34 }
 0x2a1   :  { %v1608_v10 = vpop.f32.mrb[18].mxu0  ;;  %v1679_v44 = vpop.f32.mrb[18].mxu1 }
 0x2a2   :  { %v1826_v12 = vadd.f32 %v1608_v10, %v8752_v48  ;;  %v1610_v47 = vpop.f32.mrb[19].mxu0  ;;  %v1681_v9 = vpop.f32.mrb[19].mxu1  ;;  %v8006_v23 = vadd.f32 %v1679_v44, %v8827_v31 }
 0x2a3   :  { %v1827_v26 = vadd.f32 %v1610_v47, %v8755_v61  ;;  %v8007_v27 = vadd.f32 %v1681_v9, %v8830_v57 }
 0x2a4   :  { %v5793_v5 = vmul.f32 -1.442695, %v1826_v12  ;;  %v5795_v2 = vmul.f32 -1.442695, %v8006_v23  ;;  %v1910_v23 = vld [vmem:[#allocation5 + $0x60] sm:$0xff] }
 0x2a5   :  { %v5794_v17 = vmul.f32 -1.442695, %v1827_v26  ;;  %v5796_v21 = vmul.f32 -1.442695, %v8007_v27  ;;  %v1904_v27 = vld [vmem:[#allocation5 + $0x30] sm:$0xff] }
 0x2a6   :  { %8136 = vpow2.f32 %v5793_v5 }
 0x2a7   :  { %8138 = vpow2.f32 %v5795_v2  ;;  %v1919_v2 = vld [vmem:[#allocation5 + $0xa8] sm:$0xff] }
 0x2a8   :  { %8140 = vpow2.f32 %v5794_v17 }
 0x2a9   :  { %8142 = vpow2.f32 %v5796_v21  ;;  %v1927_v21 = vld [vmem:[#allocation5 + $0xe8] sm:$0xff] }
 0x2b0   :  { %v8137_v37 = vpop.eup %8136 }
 0x2b1   :  { %v8139_v18 = vpop.eup %8138  ;;  %v1840_v22 = vadd.f32 1.0, %v8137_v37  ;;  %v1921_v37 = vld [vmem:[#allocation5 + $0xb8] sm:$0xff] }
 0x2b2   :  { %v8141_v40 = vpop.eup %8140  ;;  %v1852_v42 = vadd.f32 1.0, %v8139_v18  ;;  %v1929_v18 = vld [vmem:[#allocation5 + $0xf8] sm:$0xff] }
 0x2b3   :  { %v8143_v48 = vpop.eup %8142  ;;  %v1841_v55 = vadd.f32 1.0, %v8141_v40  ;;  %8144 = vrcp.f32 %v1840_v22 }
 0x2b4   :  { %v1853_v61 = vadd.f32 1.0, %v8143_v48  ;;  %8146 = vrcp.f32 %v1852_v42  ;;  %v1918_v42 = vld [vmem:[#allocation5 + $0xa0] sm:$0xff] }
 0x2b5   :  { %8148 = vrcp.f32 %v1841_v55  ;;  %v1926_v55 = vld [vmem:[#allocation5 + $0xe0] sm:$0xff] }
 0x2b6   :  { %8150 = vrcp.f32 %v1853_v61 }
 0x2bd   :  { %v8145_v8 = vpop.eup %8144 }
 0x2be   :  { %v8147_v11 = vpop.eup %8146 }
 0x2bf   :  { %v8149_v56 = vpop.eup %8148  ;;  %v1872_v60 = vmul.f32 %v8147_v11, %v8842_v39  ;;  %v1902_v39 = vld [vmem:[#allocation5 + $0x20] sm:$0xff] }
 0x2c0   :  { %v8151_v54 = vpop.eup %8150  ;;  %v6534_v48 = vpack.c.bf16 %v1910_v23, %v1902_v39  ;;  %v1942_v11 = vld [vmem:[#allocation5 + $0x160] sm:$0xff]  ;;  %v1960_v23 = vld [vmem:[#allocation5 + $0x1f0] sm:$0xff] }
 0x2c1   :  { %v1873_v3 = vmul.f32 %v8151_v54, %v8844_v52  ;;  %v1912_v52 = vld [vmem:[#allocation5 + $0x70] sm:$0xff] }
 0x2c2   :  { %v6598_v22 = vpack.c.bf16 %v1912_v52, %v1904_v27  ;;  %v1967_v27 = vld [vmem:[#allocation5 + $0x228] sm:$0xff] }
 0x2c3   :  { %v1975_v52 = vld [vmem:[#allocation5 + $0x268] sm:$0xff] }
 0x2e1   :  { %v1750_v16 = vpop.f32.mrb[2].mxu0  ;;  %v1821_v63 = vpop.f32.mrb[34].mxu1 }
 0x2e2   :  { %v8022_v13 = vadd.f32 %v1750_v16, %v8833_v1  ;;  %v8038_v7 = vadd.f32 %v1821_v63, %v8849_v0  ;;  %v1752_v29 = vpop.f32.mrb[3].mxu0  ;;  %v1823_v19 = vpop.f32.mrb[35].mxu1  ;;  %v1920_v16 = vld [vmem:[#allocation5 + $0xb0] sm:$0xff] }
 0x2e3   :  { %v8023_v33 = vadd.f32 %v1752_v29, %v8836_v59  ;;  %v8039_v14 = vadd.f32 %v1823_v19, %v8852_v36  ;;  %v1928_v63 = vld [vmem:[#allocation5 + $0xf0] sm:$0xff]  ;;  %v6600_v29 = vpack.c.bf16 %v1929_v18, %v1921_v37  ;;  %v1943_v19 = vld [vmem:[#allocation5 + $0x168] sm:$0xff]  ;;  %v1966_v37 = vld [vmem:[#allocation5 + $0x220] sm:$0xff] }
 0x2e4   :  { %8152 = vtanh.f32 %v8022_v13  ;;  %v5797_v38 = vmul.f32 -1.442695, %v8038_v7  ;;  %v1935_v13 = vld [vmem:[#allocation5 + $0x128] sm:$0xff]  ;;  %v6536_v7 = vpack.c.bf16 %v1927_v21, %v1919_v2  ;;  %v1977_v2 = vld [vmem:[#allocation5 + $0x278] sm:$0xff]  ;;  %v1974_v18 = vld [vmem:[#allocation5 + $0x260] sm:$0xff] }
 0x2e5   :  { %8154 = vtanh.f32 %v8023_v33  ;;  %v5798_v41 = vmul.f32 -1.442695, %v8039_v14  ;;  %v1937_v33 = vld [vmem:[#allocation5 + $0x138] sm:$0xff] }
 0x2e6   :  { %8156 = vpow2.f32 %v5797_v38  ;;  %v1945_v14 = vld [vmem:[#allocation5 + $0x178] sm:$0xff]  ;;  %v6538_v38 = vpack.c.bf16 %v1926_v55, %v1918_v42  ;;  %v1968_v42 = vld [vmem:[#allocation5 + $0x230] sm:$0xff] }
 0x2e7   :  { %8158 = vpow2.f32 %v5798_v41  ;;  %v6602_v41 = vpack.c.bf16 %v1928_v63, %v1920_v16  ;;  %v6604_v54 = vpack.c.bf16 %v1945_v14, %v1937_v33  ;;  %v1976_v55 = vld [vmem:[#allocation5 + $0x270] sm:$0xff]  ;;  %v1983_v16 = vld [vmem:[#allocation5 + $0x2a8] sm:$0xff]  ;;  %v1982_v33 = vld [vmem:[#allocation5 + $0x2a0] sm:$0xff] }
 0x2e8   :  { %v1991_v63 = vld [vmem:[#allocation5 + $0x2e8] sm:$0xff]  ;;  %v1990_v14 = vld [vmem:[#allocation5 + $0x2e0] sm:$0xff] }
 0x2ee   :  { %v8153_v25 = vpop.eup %8152 }
 0x2ef   :  { %v8155_v58 = vpop.eup %8154  ;;  %v1874_v62 = vmul.f32 %v8153_v25, %v8145_v8  ;;  %v1934_v8 = vld [vmem:[#allocation5 + $0x120] sm:$0xff]  ;;  %v1936_v25 = vld [vmem:[#allocation5 + $0x130] sm:$0xff] }
 0x2f0   :  { %v8157_v30 = vpop.eup %8156  ;;  %v1875_v4 = vmul.f32 %v8155_v58, %v8149_v56  ;;  %v6540_v56 = vpack.c.bf16 %v1943_v19, %v1935_v13  ;;  %v1944_v58 = vld [vmem:[#allocation5 + $0x170] sm:$0xff]  ;;  %v1985_v13 = vld [vmem:[#allocation5 + $0x2b8] sm:$0xff]  ;;  %v6614_v19 = vpack.c.bf16 %v1976_v55, %v1968_v42 }
 0x2f1   :  { %v8159_v34 = vpop.eup %8158  ;;  %v8883_v10 = vadd.f32 %v1874_v62, %v1872_v60  ;;  %v1866_v44 = vadd.f32 1.0, %v8157_v30  ;;  %v1951_v60 = vld [vmem:[#allocation5 + $0x1a8] sm:$0xff]  ;;  %v1953_v30 = vld [vmem:[#allocation5 + $0x1b8] sm:$0xff] }
 0x2f2   :  { %v8885_v12 = vadd.f32 %v1875_v4, %v1873_v3  ;;  %v1867_v47 = vadd.f32 1.0, %v8159_v34  ;;  %v1959_v62 = vld [vmem:[#allocation5 + $0x1e8] sm:$0xff]  ;;  %v1961_v3 = vld [vmem:[#allocation5 + $0x1f8] sm:$0xff]  ;;  %v6542_v4 = vpack.c.bf16 %v1942_v11, %v1934_v8  ;;  %v6606_v34 = vpack.c.bf16 %v1944_v58, %v1936_v25  ;;  %v1984_v8 = vld [vmem:[#allocation5 + $0x2b0] sm:$0xff] }
 0x2f3   :  { %8160 = vtanh.f32 %v8883_v10  ;;  %v6608_v39 = vpack.c.bf16 %v1961_v3, %v1953_v30  ;;  %v1992_v11 = vld [vmem:[#allocation5 + $0x2f0] sm:$0xff]  ;;  %v2001_v25 = vld [vmem:[#allocation5 + $0x338] sm:$0xff]  ;;  %v1998_v30 = vld [vmem:[#allocation5 + $0x320] sm:$0xff] }
 0x2f4   :  { %8162 = vrcp.f32 %v1866_v44  ;;  %v1950_v44 = vld [vmem:[#allocation5 + $0x1a0] sm:$0xff]  ;;  %v2009_v58 = vld [vmem:[#allocation5 + $0x378] sm:$0xff] }
 0x2f5   :  { %8164 = vtanh.f32 %v8885_v12  ;;  %v2006_v3 = vld [vmem:[#allocation5 + $0x360] sm:$0xff]  ;;  %v2033_v42 = vld [vmem:[#allocation5 + $0x438] sm:$0xff] }
 0x2f6   :  { %8166 = vrcp.f32 %v1867_v47  ;;  %v1958_v47 = vld [vmem:[#allocation5 + $0x1e0] sm:$0xff]  ;;  %v2041_v55 = vld [vmem:[#allocation5 + $0x478] sm:$0xff] }
 0x2fd   :  { %v8161_v9 = vpop.eup %8160 }
 0x2fe   :  { %v8163_v26 = vpop.eup %8162 }
 0x2ff   :  { %v8165_v5 = vpop.eup %8164  ;;  %v8891_v61 = vmul.f32 %v8163_v26, %v8161_v9  ;;  %v6544_v9 = vpack.c.bf16 %v1959_v62, %v1951_v60  ;;  %v1952_v26 = vld [vmem:[#allocation5 + $0x1b0] sm:$0xff]  ;;  %v6554_v60 = vpack.c.bf16 %v1990_v14, %v1982_v33  ;;  %v6618_v62 = vpack.c.bf16 %v1992_v11, %v1984_v8  ;;  %v2049_v8 = vld [vmem:[#allocation5 + $0x4b8] sm:$0xff] }
 0x300   :  { %v8167_v17 = vpop.eup %8166  ;;  %v6610_v21 = vpack.c.bf16 %v1960_v23, %v1952_v26  ;;  %v2017_v26 = vld [vmem:[#allocation5 + $0x3b8] sm:$0xff]  ;;  %v2032_v33 = vld [vmem:[#allocation5 + $0x430] sm:$0xff] }
 0x301   :  { %v8889_v40 = vmul.f32 %v8167_v17, %v8165_v5  ;;  %v1969_v5 = vld [vmem:[#allocation5 + $0x238] sm:$0xff]  ;;  %v6546_v17 = vpack.c.bf16 %v1958_v47, %v1950_v44  ;;  %v2000_v44 = vld [vmem:[#allocation5 + $0x330] sm:$0xff] }
 0x302   :  { %v2008_v47 = vld [vmem:[#allocation5 + $0x370] sm:$0xff]  ;;  %v2025_v23 = vld [vmem:[#allocation5 + $0x3f8] sm:$0xff] }
 0x303   :  { %2218 = vmatprep.mubr.f32.mxu0 %v8889_v40  ;;  %2289 = vmatprep.mubr.f32.mxu1 %v8889_v40  ;;  %v2040_v14 = vld [vmem:[#allocation5 + $0x470] sm:$0xff]  ;;  %v2057_v11 = vld [vmem:[#allocation5 + $0x4f8] sm:$0xff] }
 0x304   :  { %2219 = vmatmul.mubr.f32.vlgmr.msra.gmra.mrb[20].mxu0 %v8891_v61  ;;  %2290 = vmatmul.mubr.f32.vlgmr.msra.gmra.mrb[20].mxu1 %v8891_v61 }
 0x305   :  { %6535 = vmatpush1.bf16.msra.mxu0 %v6534_v48  ;;  %6599 = vmatpush1.bf16.msra.mxu1 %v6598_v22  ;;  %v6548_v48 = vpack.c.bf16 %v1975_v52, %v1967_v27  ;;  %v6612_v22 = vpack.c.bf16 %v1977_v2, %v1969_v5  ;;  %v6558_v27 = vpack.c.bf16 %v2006_v3, %v1998_v30  ;;  %v2014_v5 = vld [vmem:[#allocation5 + $0x3a0] sm:$0xff]  ;;  %v2048_v30 = vld [vmem:[#allocation5 + $0x4b0] sm:$0xff] }
 0x306   :  { %2360 = vmatprep.mubr.f32.mxu0 %v8889_v40  ;;  %2431 = vmatprep.mubr.f32.mxu1 %v8889_v40  ;;  %v6622_v52 = vpack.c.bf16 %v2008_v47, %v2000_v44  ;;  %v2022_v2 = vld [vmem:[#allocation5 + $0x3e0] sm:$0xff]  ;;  %v2056_v3 = vld [vmem:[#allocation5 + $0x4f0] sm:$0xff]  ;;  %v2065_v44 = vld [vmem:[#allocation5 + $0x538] sm:$0xff] }
 0x307   :  { %6537 = vmatprep.subr.bf16.mxu0 %v6536_v7  ;;  %6601 = vmatprep.subr.bf16.mxu1 %v6600_v29  ;;  %v1993_v7 = vld [vmem:[#allocation5 + $0x2f8] sm:$0xff]  ;;  %v6550_v29 = vpack.c.bf16 %v1974_v18, %v1966_v37  ;;  %v2016_v37 = vld [vmem:[#allocation5 + $0x3b0] sm:$0xff] }
 0x308   :  { %v2024_v18 = vld [vmem:[#allocation5 + $0x3f0] sm:$0xff]  ;;  %v2073_v47 = vld [vmem:[#allocation5 + $0x578] sm:$0xff] }
 0x309   :  { %6539 = vmatpush1.bf16.msra.mxu0 %v6538_v38  ;;  %6603 = vmatpush1.bf16.msra.mxu1 %v6602_v41  ;;  %v6552_v38 = vpack.c.bf16 %v1991_v63, %v1983_v16  ;;  %v6616_v41 = vpack.c.bf16 %v1993_v7, %v1985_v13  ;;  %v6562_v16 = vpack.c.bf16 %v2022_v2, %v2014_v5  ;;  %v2030_v13 = vld [vmem:[#allocation5 + $0x420] sm:$0xff]  ;;  %v2064_v5 = vld [vmem:[#allocation5 + $0x530] sm:$0xff] }
 0x30a   :  { %6541 = vmatprep.subr.bf16.mxu0 %v6540_v56  ;;  %6605 = vmatprep.subr.bf16.mxu1 %v6604_v54  ;;  %v1999_v56 = vld [vmem:[#allocation5 + $0x328] sm:$0xff]  ;;  %v6626_v63 = vpack.c.bf16 %v2024_v18, %v2016_v37  ;;  %v2038_v7 = vld [vmem:[#allocation5 + $0x460] sm:$0xff]  ;;  %v2072_v2 = vld [vmem:[#allocation5 + $0x570] sm:$0xff] }
 0x30b   :  { %v2007_v54 = vld [vmem:[#allocation5 + $0x368] sm:$0xff]  ;;  %v2081_v37 = vld [vmem:[#allocation5 + $0x5b8] sm:$0xff] }
 0x30c   :  { %v2089_v18 = vld [vmem:[#allocation5 + $0x5f8] sm:$0xff] }
 0x30d   :  { %6543 = vmatpush1.bf16.msra.mxu0 %v6542_v4  ;;  %6607 = vmatpush1.bf16.msra.mxu1 %v6606_v34  ;;  %v6556_v4 = vpack.c.bf16 %v2007_v54, %v1999_v56  ;;  %v6620_v34 = vpack.c.bf16 %v2009_v58, %v2001_v25  ;;  %v6566_v56 = vpack.c.bf16 %v2038_v7, %v2030_v13  ;;  %v2046_v25 = vld [vmem:[#allocation5 + $0x4a0] sm:$0xff]  ;;  %v2080_v13 = vld [vmem:[#allocation5 + $0x5b0] sm:$0xff] }
 0x30e   :  { %6545 = vmatprep.subr.bf16.mxu0 %v6544_v9  ;;  %6609 = vmatprep.subr.bf16.mxu1 %v6608_v39  ;;  %v2015_v9 = vld [vmem:[#allocation5 + $0x3a8] sm:$0xff]  ;;  %v6630_v54 = vpack.c.bf16 %v2040_v14, %v2032_v33  ;;  %v2054_v58 = vld [vmem:[#allocation5 + $0x4e0] sm:$0xff]  ;;  %v2088_v7 = vld [vmem:[#allocation5 + $0x5f0] sm:$0xff] }
 0x30f   :  { %v2023_v39 = vld [vmem:[#allocation5 + $0x3e8] sm:$0xff]  ;;  %v2097_v33 = vld [vmem:[#allocation5 + $0x638] sm:$0xff] }
 0x310   :  { %v2105_v14 = vld [vmem:[#allocation5 + $0x678] sm:$0xff] }
 0x311   :  { %6547 = vmatpush1.bf16.msra.mxu0 %v6546_v17  ;;  %6611 = vmatpush1.bf16.msra.mxu1 %v6610_v21  ;;  %v6560_v17 = vpack.c.bf16 %v2023_v39, %v2015_v9  ;;  %v6624_v21 = vpack.c.bf16 %v2025_v23, %v2017_v26  ;;  %v6570_v9 = vpack.c.bf16 %v2054_v58, %v2046_v25  ;;  %v2062_v26 = vld [vmem:[#allocation5 + $0x520] sm:$0xff]  ;;  %v2096_v25 = vld [vmem:[#allocation5 + $0x630] sm:$0xff] }
 0x312   :  { %6549 = vmatprep.subr.bf16.mxu0 %v6548_v48  ;;  %6613 = vmatprep.subr.bf16.mxu1 %v6612_v22  ;;  %v2031_v48 = vld [vmem:[#allocation5 + $0x428] sm:$0xff]  ;;  %v6634_v39 = vpack.c.bf16 %v2056_v3, %v2048_v30  ;;  %v2070_v23 = vld [vmem:[#allocation5 + $0x560] sm:$0xff]  ;;  %v2104_v58 = vld [vmem:[#allocation5 + $0x670] sm:$0xff] }
 0x313   :  { %v2039_v22 = vld [vmem:[#allocation5 + $0x468] sm:$0xff]  ;;  %v2113_v30 = vld [vmem:[#allocation5 + $0x6b8] sm:$0xff] }
 0x314   :  { %v2121_v3 = vld [vmem:[#allocation5 + $0x6f8] sm:$0xff] }
 0x315   :  { %6551 = vmatpush1.bf16.msra.mxu0 %v6550_v29  ;;  %6615 = vmatpush1.bf16.msra.mxu1 %v6614_v19  ;;  %v6564_v29 = vpack.c.bf16 %v2039_v22, %v2031_v48  ;;  %v6628_v19 = vpack.c.bf16 %v2041_v55, %v2033_v42  ;;  %v6574_v48 = vpack.c.bf16 %v2070_v23, %v2062_v26  ;;  %v2078_v42 = vld [vmem:[#allocation5 + $0x5a0] sm:$0xff]  ;;  %v2112_v26 = vld [vmem:[#allocation5 + $0x6b0] sm:$0xff] }
 0x316   :  { %6553 = vmatprep.subr.bf16.mxu0 %v6552_v38  ;;  %6617 = vmatprep.subr.bf16.mxu1 %v6616_v41  ;;  %v2047_v38 = vld [vmem:[#allocation5 + $0x4a8] sm:$0xff]  ;;  %v6638_v22 = vpack.c.bf16 %v2072_v2, %v2064_v5  ;;  %v2086_v55 = vld [vmem:[#allocation5 + $0x5e0] sm:$0xff]  ;;  %v2120_v23 = vld [vmem:[#allocation5 + $0x6f0] sm:$0xff] }
 0x317   :  { %v2055_v41 = vld [vmem:[#allocation5 + $0x4e8] sm:$0xff]  ;;  %v2129_v5 = vld [vmem:[#allocation5 + $0x738] sm:$0xff] }
 0x318   :  { %v2137_v2 = vld [vmem:[#allocation5 + $0x778] sm:$0xff] }
 0x319   :  { %6555 = vmatpush1.bf16.msra.mxu0 %v6554_v60  ;;  %6619 = vmatpush1.bf16.msra.mxu1 %v6618_v62  ;;  %v6568_v60 = vpack.c.bf16 %v2055_v41, %v2047_v38  ;;  %v6632_v62 = vpack.c.bf16 %v2057_v11, %v2049_v8  ;;  %v6578_v38 = vpack.c.bf16 %v2086_v55, %v2078_v42  ;;  %v2094_v8 = vld [vmem:[#allocation5 + $0x620] sm:$0xff]  ;;  %v2128_v42 = vld [vmem:[#allocation5 + $0x730] sm:$0xff] }
 0x31a   :  { %6557 = vmatprep.subr.bf16.mxu0 %v6556_v4  ;;  %6621 = vmatprep.subr.bf16.mxu1 %v6620_v34  ;;  %v2063_v4 = vld [vmem:[#allocation5 + $0x528] sm:$0xff]  ;;  %v6642_v41 = vpack.c.bf16 %v2088_v7, %v2080_v13  ;;  %v2102_v11 = vld [vmem:[#allocation5 + $0x660] sm:$0xff]  ;;  %v2136_v55 = vld [vmem:[#allocation5 + $0x770] sm:$0xff] }
 0x31b   :  { %v2071_v34 = vld [vmem:[#allocation5 + $0x568] sm:$0xff]  ;;  %v2145_v13 = vld [vmem:[#allocation5 + $0x7b8] sm:$0xff] }
 0x31c   :  { %v2153_v7 = vld [vmem:[#allocation5 + $0x7f8] sm:$0xff] }
 0x31d   :  { %6559 = vmatpush1.bf16.msra.mxu0 %v6558_v27  ;;  %6623 = vmatpush1.bf16.msra.mxu1 %v6622_v52  ;;  %v6572_v27 = vpack.c.bf16 %v2071_v34, %v2063_v4  ;;  %v6636_v52 = vpack.c.bf16 %v2073_v47, %v2065_v44  ;;  %v6582_v4 = vpack.c.bf16 %v2102_v11, %v2094_v8  ;;  %v2110_v44 = vld [vmem:[#allocation5 + $0x6a0] sm:$0xff]  ;;  %v2144_v8 = vld [vmem:[#allocation5 + $0x7b0] sm:$0xff] }
 0x31e   :  { %6561 = vmatprep.subr.bf16.mxu0 %v6560_v17  ;;  %6625 = vmatprep.subr.bf16.mxu1 %v6624_v21  ;;  %v2079_v17 = vld [vmem:[#allocation5 + $0x5a8] sm:$0xff]  ;;  %v6646_v34 = vpack.c.bf16 %v2104_v58, %v2096_v25  ;;  %v2118_v47 = vld [vmem:[#allocation5 + $0x6e0] sm:$0xff]  ;;  %v2152_v11 = vld [vmem:[#allocation5 + $0x7f0] sm:$0xff] }
 0x31f   :  { %v2087_v21 = vld [vmem:[#allocation5 + $0x5e8] sm:$0xff] }
 0x320   :  { %v2511_v25 = vld [vmem:[#allocation5 + $0x8] sm:$0xff] }
 0x321   :  { %6563 = vmatpush1.bf16.msra.mxu0 %v6562_v16  ;;  %6627 = vmatpush1.bf16.msra.mxu1 %v6626_v63  ;;  %v6576_v16 = vpack.c.bf16 %v2087_v21, %v2079_v17  ;;  %v6640_v63 = vpack.c.bf16 %v2089_v18, %v2081_v37  ;;  %v6586_v17 = vpack.c.bf16 %v2118_v47, %v2110_v44  ;;  %v2126_v37 = vld [vmem:[#allocation5 + $0x720] sm:$0xff]  ;;  %v2519_v58 = vld [vmem:[#allocation5 + $0x48] sm:$0xff]  ;;  %v2512_v47 = vld [vmem:[#allocation5 + $0x10] sm:$0xff] }
 0x322   :  { %6565 = vmatprep.subr.bf16.mxu0 %v6564_v29  ;;  %6629 = vmatprep.subr.bf16.mxu1 %v6628_v19  ;;  %v2095_v29 = vld [vmem:[#allocation5 + $0x628] sm:$0xff]  ;;  %v6650_v21 = vpack.c.bf16 %v2120_v23, %v2112_v26  ;;  %v2134_v18 = vld [vmem:[#allocation5 + $0x760] sm:$0xff] }
 0x323   :  { %v2103_v19 = vld [vmem:[#allocation5 + $0x668] sm:$0xff] }
 0x324   :  { %v2535_v23 = vld [vmem:[#allocation5 + $0xc8] sm:$0xff] }
 0x325   :  { %6567 = vmatpush1.bf16.msra.mxu0 %v6566_v56  ;;  %6631 = vmatpush1.bf16.msra.mxu1 %v6630_v54  ;;  %v6580_v56 = vpack.c.bf16 %v2103_v19, %v2095_v29  ;;  %v6644_v54 = vpack.c.bf16 %v2105_v14, %v2097_v33  ;;  %v6590_v29 = vpack.c.bf16 %v2134_v18, %v2126_v37  ;;  %v2142_v33 = vld [vmem:[#allocation5 + $0x7a0] sm:$0xff]  ;;  %v2528_v37 = vld [vmem:[#allocation5 + $0x90] sm:$0xff] }
 0x326   :  { %6569 = vmatprep.subr.bf16.mxu0 %v6568_v60  ;;  %6633 = vmatprep.subr.bf16.mxu1 %v6632_v62  ;;  %v2111_v60 = vld [vmem:[#allocation5 + $0x6a8] sm:$0xff]  ;;  %v6654_v19 = vpack.c.bf16 %v2136_v55, %v2128_v42 }
 0x327   :  { %v2119_v62 = vld [vmem:[#allocation5 + $0x6e8] sm:$0xff] }
 0x328   :  { %v2551_v42 = vld [vmem:[#allocation5 + $0x148] sm:$0xff] }
 0x329   :  { %6571 = vmatpush1.bf16.msra.mxu0 %v6570_v9  ;;  %6635 = vmatpush1.bf16.msra.mxu1 %v6634_v39  ;;  %v6584_v9 = vpack.c.bf16 %v2119_v62, %v2111_v60  ;;  %v6648_v39 = vpack.c.bf16 %v2121_v3, %v2113_v30  ;;  %v2513_v60 = vld [vmem:[#allocation5 + $0x18] sm:$0xff]  ;;  %v6660_v62 = vpack.c.bf16 %v2519_v58, %v2511_v25  ;;  %v2510_v3 = vld [vmem:[#allocation5] sm:$0xff] }
 0x32a   :  { %6573 = vmatprep.subr.bf16.mxu0 %v6572_v27  ;;  %6637 = vmatprep.subr.bf16.mxu1 %v6636_v52  ;;  %v2127_v27 = vld [vmem:[#allocation5 + $0x728] sm:$0xff]  ;;  %v2521_v30 = vld [vmem:[#allocation5 + $0x58] sm:$0xff]  ;;  %v2558_v58 = vld [vmem:[#allocation5 + $0x180] sm:$0xff] }
 0x32b   :  { %v2135_v52 = vld [vmem:[#allocation5 + $0x768] sm:$0xff]  ;;  %v2569_v25 = vld [vmem:[#allocation5 + $0x1d8] sm:$0xff] }
 0x32d   :  { %6575 = vmatpush1.bf16.msra.mxu0 %v6574_v48  ;;  %6639 = vmatpush1.bf16.msra.mxu1 %v6638_v22  ;;  %v6588_v48 = vpack.c.bf16 %v2135_v52, %v2127_v27  ;;  %v6652_v22 = vpack.c.bf16 %v2137_v2, %v2129_v5  ;;  %v2529_v27 = vld [vmem:[#allocation5 + $0x98] sm:$0xff] }
 0x32e   :  { %6577 = vmatprep.subr.bf16.mxu0 %v6576_v16  ;;  %6641 = vmatprep.subr.bf16.mxu1 %v6640_v63  ;;  %v2143_v16 = vld [vmem:[#allocation5 + $0x7a8] sm:$0xff]  ;;  %v2537_v52 = vld [vmem:[#allocation5 + $0xd8] sm:$0xff] }
 0x32f   :  { %v2151_v63 = vld [vmem:[#allocation5 + $0x7e8] sm:$0xff]  ;;  %v6728_v2 = vpack.c.bf16 %v2537_v52, %v2529_v27  ;;  %v2582_v27 = vld [vmem:[#allocation5 + $0x240] sm:$0xff]  ;;  %v2576_v52 = vld [vmem:[#allocation5 + $0x210] sm:$0xff] }
 0x330   :  { %v6592_v14 = vpack.c.bf16 %v2151_v63, %v2143_v16  ;;  %v2545_v63 = vld [vmem:[#allocation5 + $0x118] sm:$0xff] }
 0x331   :  { %6579 = vmatpush1.bf16.msra.mxu0 %v6578_v38  ;;  %6643 = vmatpush1.bf16.msra.mxu1 %v6642_v41  ;;  %v6656_v38 = vpack.c.bf16 %v2153_v7, %v2145_v13  ;;  %v2150_v41 = vld [vmem:[#allocation5 + $0x7e0] sm:$0xff]  ;;  %v2553_v13 = vld [vmem:[#allocation5 + $0x158] sm:$0xff] }
 0x332   :  { %6581 = vmatprep.subr.bf16.mxu0 %v6580_v56  ;;  %6645 = vmatprep.subr.bf16.mxu1 %v6644_v54  ;;  %v6594_v56 = vpack.c.bf16 %v2150_v41, %v2142_v33  ;;  %v6658_v54 = vpack.c.bf16 %v2152_v11, %v2144_v8  ;;  %v2542_v7 = vld [vmem:[#allocation5 + $0x100] sm:$0xff]  ;;  %v2544_v33 = vld [vmem:[#allocation5 + $0x110] sm:$0xff]  ;;  %v2559_v41 = vld [vmem:[#allocation5 + $0x188] sm:$0xff] }
 0x333   :  { %v2567_v8 = vld [vmem:[#allocation5 + $0x1c8] sm:$0xff]  ;;  %v2561_v11 = vld [vmem:[#allocation5 + $0x198] sm:$0xff] }
 0x335   :  { %6583 = vmatpush1.bf16.msra.mxu0 %v6582_v4  ;;  %6647 = vmatpush1.bf16.msra.mxu1 %v6646_v34  ;;  %v2518_v4 = vld [vmem:[#allocation5 + $0x40] sm:$0xff]  ;;  %v6724_v34 = vpack.c.bf16 %v2521_v30, %v2513_v60  ;;  %v2560_v30 = vld [vmem:[#allocation5 + $0x190] sm:$0xff] }
 0x336   :  { %6585 = vmatprep.subr.bf16.mxu0 %v6584_v9  ;;  %6649 = vmatprep.subr.bf16.mxu1 %v6648_v39  ;;  %v6662_v44 = vpack.c.bf16 %v2518_v4, %v2510_v3  ;;  %v2520_v9 = vld [vmem:[#allocation5 + $0x50] sm:$0xff]  ;;  %v2527_v39 = vld [vmem:[#allocation5 + $0x88] sm:$0xff]  ;;  %v2566_v60 = vld [vmem:[#allocation5 + $0x1c0] sm:$0xff] }
 0x337   :  { %v6726_v26 = vpack.c.bf16 %v2520_v9, %v2512_v47  ;;  %v6664_v5 = vpack.c.bf16 %v2535_v23, %v2527_v39  ;;  %v2568_v3 = vld [vmem:[#allocation5 + $0x1d0] sm:$0xff]  ;;  %v2575_v4 = vld [vmem:[#allocation5 + $0x208] sm:$0xff]  ;;  %v2585_v47 = vld [vmem:[#allocation5 + $0x258] sm:$0xff]  ;;  %v6674_v9 = vpack.c.bf16 %v2566_v60, %v2558_v58 }
 0x338   :  { %v6738_v39 = vpack.c.bf16 %v2568_v3, %v2560_v30  ;;  %v2574_v23 = vld [vmem:[#allocation5 + $0x200] sm:$0xff]  ;;  %v2616_v58 = vld [vmem:[#allocation5 + $0x350] sm:$0xff]  ;;  %v2623_v60 = vld [vmem:[#allocation5 + $0x388] sm:$0xff] }
 0x339   :  { %6587 = vmatpush1.bf16.msra.mxu0 %v6586_v17  ;;  %6651 = vmatpush1.bf16.msra.mxu1 %v6650_v21  ;;  %v2526_v17 = vld [vmem:[#allocation5 + $0x80] sm:$0xff]  ;;  %v2625_v30 = vld [vmem:[#allocation5 + $0x398] sm:$0xff] }
 0x33a   :  { %6589 = vmatprep.subr.bf16.mxu0 %v6588_v48  ;;  %6653 = vmatprep.subr.bf16.mxu1 %v6652_v22  ;;  %v2534_v21 = vld [vmem:[#allocation5 + $0xc0] sm:$0xff]  ;;  %v2536_v48 = vld [vmem:[#allocation5 + $0xd0] sm:$0xff]  ;;  %v2543_v22 = vld [vmem:[#allocation5 + $0x108] sm:$0xff] }
 0x33b   :  { %v6666_v18 = vpack.c.bf16 %v2534_v21, %v2526_v17  ;;  %v6730_v55 = vpack.c.bf16 %v2536_v48, %v2528_v37  ;;  %v6668_v16 = vpack.c.bf16 %v2551_v42, %v2543_v22  ;;  %v2591_v17 = vld [vmem:[#allocation5 + $0x288] sm:$0xff]  ;;  %v2593_v37 = vld [vmem:[#allocation5 + $0x298] sm:$0xff]  ;;  %v6678_v48 = vpack.c.bf16 %v2582_v27, %v2574_v23  ;;  %v2632_v23 = vld [vmem:[#allocation5 + $0x3d0] sm:$0xff] }
 0x33c   :  { %v2599_v21 = vld [vmem:[#allocation5 + $0x2c8] sm:$0xff]  ;;  %v2633_v3 = vld [vmem:[#allocation5 + $0x3d8] sm:$0xff] }
 0x33d   :  { %6591 = vmatpush1.bf16.msra.mxu0 %v6590_v29  ;;  %6655 = vmatpush1.bf16.msra.mxu1 %v6654_v19  ;;  %v6732_v29 = vpack.c.bf16 %v2553_v13, %v2545_v63  ;;  %v2550_v19 = vld [vmem:[#allocation5 + $0x140] sm:$0xff]  ;;  %v6680_v42 = vpack.c.bf16 %v2599_v21, %v2591_v17  ;;  %v2592_v63 = vld [vmem:[#allocation5 + $0x290] sm:$0xff]  ;;  %v2641_v17 = vld [vmem:[#allocation5 + $0x418] sm:$0xff] }
 0x33e   :  { %6593 = vmatprep.subr.bf16.mxu0 %v6592_v14  ;;  %6657 = vmatprep.subr.bf16.mxu1 %v6656_v38  ;;  %v2552_v14 = vld [vmem:[#allocation5 + $0x150] sm:$0xff]  ;;  %v6670_v38 = vpack.c.bf16 %v2550_v19, %v2542_v7  ;;  %v2615_v19 = vld [vmem:[#allocation5 + $0x348] sm:$0xff] }
 0x33f   :  { %v2600_v7 = vld [vmem:[#allocation5 + $0x2d0] sm:$0xff] }
 0x341   :  { %6595 = vmatpush1.bf16.msra.mxu0 %v6594_v56  ;;  %6659 = vmatpush1.bf16.msra.mxu1 %v6658_v54  ;;  %v6734_v56 = vpack.c.bf16 %v2552_v14, %v2544_v33  ;;  %v6672_v54 = vpack.c.bf16 %v2567_v8, %v2559_v41  ;;  %v2609_v33 = vld [vmem:[#allocation5 + $0x318] sm:$0xff]  ;;  %v6746_v41 = vpack.c.bf16 %v2600_v7, %v2592_v63  ;;  %v2663_v7 = vld [vmem:[#allocation5 + $0x4c8] sm:$0xff] }
 0x342   :  { %6661 = vmatprep.subr.bf16.mxu0 %v6660_v62  ;;  %6725 = vmatprep.subr.bf16.mxu1 %v6724_v34  ;;  %v6736_v62 = vpack.c.bf16 %v2569_v25, %v2561_v11  ;;  %v2583_v34 = vld [vmem:[#allocation5 + $0x248] sm:$0xff]  ;;  %v2617_v14 = vld [vmem:[#allocation5 + $0x358] sm:$0xff]  ;;  %v2606_v11 = vld [vmem:[#allocation5 + $0x300] sm:$0xff] }
 0x343   :  { %v6748_v25 = vpack.c.bf16 %v2617_v14, %v2609_v33  ;;  %v2665_v33 = vld [vmem:[#allocation5 + $0x4d8] sm:$0xff]  ;;  %v2654_v14 = vld [vmem:[#allocation5 + $0x480] sm:$0xff] }
 0x344   :  { %2361 = vmatmul.mubr.f32.vlgmr.msra.gmra.mrb[4].mxu0 %v8891_v61  ;;  %2432 = vmatmul.mubr.f32.vlgmr.msra.gmra.mrb[36].mxu1 %v8891_v61 }
 0x345   :  { %6663 = vmatpush1.bf16.msra.mxu0 %v6662_v44  ;;  %6727 = vmatpush1.bf16.msra.mxu1 %v6726_v26  ;;  %v2577_v44 = vld [vmem:[#allocation5 + $0x218] sm:$0xff]  ;;  %v6676_v26 = vpack.c.bf16 %v2583_v34, %v2575_v4 }
 0x346   :  { %6665 = vmatprep.subr.bf16.mxu0 %v6664_v5  ;;  %6729 = vmatprep.subr.bf16.mxu1 %v6728_v2  ;;  %v6740_v5 = vpack.c.bf16 %v2585_v47, %v2577_v44  ;;  %v2584_v2 = vld [vmem:[#allocation5 + $0x250] sm:$0xff]  ;;  %v2622_v47 = vld [vmem:[#allocation5 + $0x380] sm:$0xff] }
 0x347   :  { %v6742_v22 = vpack.c.bf16 %v2584_v2, %v2576_v52  ;;  %v2647_v2 = vld [vmem:[#allocation5 + $0x448] sm:$0xff] }
 0x349   :  { %6667 = vmatpush1.bf16.msra.mxu0 %v6666_v18  ;;  %6731 = vmatpush1.bf16.msra.mxu1 %v6730_v55  ;;  %v2601_v18 = vld [vmem:[#allocation5 + $0x2d8] sm:$0xff]  ;;  %v2590_v55 = vld [vmem:[#allocation5 + $0x280] sm:$0xff] }
 0x34a   :  { %6669 = vmatprep.subr.bf16.mxu0 %v6668_v16  ;;  %6733 = vmatprep.subr.bf16.mxu1 %v6732_v29  ;;  %v2598_v16 = vld [vmem:[#allocation5 + $0x2c0] sm:$0xff]  ;;  %v6744_v13 = vpack.c.bf16 %v2601_v18, %v2593_v37  ;;  %v2607_v29 = vld [vmem:[#allocation5 + $0x308] sm:$0xff]  ;;  %v2649_v37 = vld [vmem:[#allocation5 + $0x458] sm:$0xff] }
 0x34b   :  { %v6684_v8 = vpack.c.bf16 %v2615_v19, %v2607_v29  ;;  %v6756_v18 = vpack.c.bf16 %v2649_v37, %v2641_v17  ;;  %v2657_v29 = vld [vmem:[#allocation5 + $0x498] sm:$0xff]  ;;  %v2694_v17 = vld [vmem:[#allocation5 + $0x5c0] sm:$0xff] }
 0x34d   :  { %6671 = vmatpush1.bf16.msra.mxu0 %v6670_v38  ;;  %6735 = vmatpush1.bf16.msra.mxu1 %v6734_v56  ;;  %v6682_v38 = vpack.c.bf16 %v2598_v16, %v2590_v55  ;;  %v2614_v56 = vld [vmem:[#allocation5 + $0x340] sm:$0xff]  ;;  %v2648_v16 = vld [vmem:[#allocation5 + $0x450] sm:$0xff] }
 0x34e   :  { %6673 = vmatprep.subr.bf16.mxu0 %v6672_v54  ;;  %6737 = vmatprep.subr.bf16.mxu1 %v6736_v62  ;;  %v2608_v54 = vld [vmem:[#allocation5 + $0x310] sm:$0xff]  ;;  %v2631_v62 = vld [vmem:[#allocation5 + $0x3c8] sm:$0xff]  ;;  %v6686_v4 = vpack.c.bf16 %v2614_v56, %v2606_v11 }
 0x34f   :  { %v6750_v34 = vpack.c.bf16 %v2616_v58, %v2608_v54  ;;  %v6688_v44 = vpack.c.bf16 %v2631_v62, %v2623_v60  ;;  %v2656_v11 = vld [vmem:[#allocation5 + $0x490] sm:$0xff]  ;;  %v2679_v58 = vld [vmem:[#allocation5 + $0x548] sm:$0xff]  ;;  %v2673_v60 = vld [vmem:[#allocation5 + $0x518] sm:$0xff] }
 0x350   :  { %v2664_v56 = vld [vmem:[#allocation5 + $0x4d0] sm:$0xff] }
 0x351   :  { %6675 = vmatpush1.bf16.msra.mxu0 %v6674_v9  ;;  %6739 = vmatpush1.bf16.msra.mxu1 %v6738_v39  ;;  %v2630_v9 = vld [vmem:[#allocation5 + $0x3c0] sm:$0xff]  ;;  %v6752_v39 = vpack.c.bf16 %v2633_v3, %v2625_v30  ;;  %v6762_v54 = vpack.c.bf16 %v2664_v56, %v2656_v11  ;;  %v2681_v30 = vld [vmem:[#allocation5 + $0x558] sm:$0xff]  ;;  %v2727_v11 = vld [vmem:[#allocation5 + $0x6c8] sm:$0xff] }
 0x352   :  { %6677 = vmatprep.subr.bf16.mxu0 %v6676_v26  ;;  %6741 = vmatprep.subr.bf16.mxu1 %v6740_v5  ;;  %v2624_v26 = vld [vmem:[#allocation5 + $0x390] sm:$0xff]  ;;  %v6690_v27 = vpack.c.bf16 %v2630_v9, %v2622_v47  ;;  %v2639_v5 = vld [vmem:[#allocation5 + $0x408] sm:$0xff]  ;;  %v2670_v3 = vld [vmem:[#allocation5 + $0x500] sm:$0xff] }
 0x353   :  { %v6754_v52 = vpack.c.bf16 %v2632_v23, %v2624_v26  ;;  %v6692_v21 = vpack.c.bf16 %v2647_v2, %v2639_v5  ;;  %v2672_v47 = vld [vmem:[#allocation5 + $0x510] sm:$0xff]  ;;  %v2687_v26 = vld [vmem:[#allocation5 + $0x588] sm:$0xff]  ;;  %v2697_v5 = vld [vmem:[#allocation5 + $0x5d8] sm:$0xff] }
 0x354   :  { %v2680_v9 = vld [vmem:[#allocation5 + $0x550] sm:$0xff]  ;;  %v2695_v23 = vld [vmem:[#allocation5 + $0x5c8] sm:$0xff]  ;;  %v2686_v2 = vld [vmem:[#allocation5 + $0x580] sm:$0xff] }
 0x355   :  { %6679 = vmatpush1.bf16.msra.mxu0 %v6678_v48  ;;  %6743 = vmatpush1.bf16.msra.mxu1 %v6742_v22  ;;  %v2638_v48 = vld [vmem:[#allocation5 + $0x400] sm:$0xff]  ;;  %v6706_v37 = vpack.c.bf16 %v2694_v17, %v2686_v2  ;;  %v2721_v56 = vld [vmem:[#allocation5 + $0x698] sm:$0xff]  ;;  %v2744_v17 = vld [vmem:[#allocation5 + $0x750] sm:$0xff] }
 0x356   :  { %6681 = vmatprep.subr.bf16.mxu0 %v6680_v42  ;;  %6745 = vmatprep.subr.bf16.mxu1 %v6744_v13  ;;  %v2646_v22 = vld [vmem:[#allocation5 + $0x440] sm:$0xff]  ;;  %v2640_v42 = vld [vmem:[#allocation5 + $0x410] sm:$0xff]  ;;  %v2655_v13 = vld [vmem:[#allocation5 + $0x488] sm:$0xff] }
 0x357   :  { %v6694_v55 = vpack.c.bf16 %v2646_v22, %v2638_v48  ;;  %v6758_v63 = vpack.c.bf16 %v2648_v16, %v2640_v42  ;;  %v6696_v19 = vpack.c.bf16 %v2663_v7, %v2655_v13  ;;  %v2696_v48 = vld [vmem:[#allocation5 + $0x5d0] sm:$0xff]  ;;  %v2703_v42 = vld [vmem:[#allocation5 + $0x608] sm:$0xff]  ;;  %v2705_v16 = vld [vmem:[#allocation5 + $0x618] sm:$0xff] }
 0x358   :  { %v2713_v13 = vld [vmem:[#allocation5 + $0x658] sm:$0xff]  ;;  %v2702_v7 = vld [vmem:[#allocation5 + $0x600] sm:$0xff] }
 0x359   :  { %6683 = vmatpush1.bf16.msra.mxu0 %v6682_v38  ;;  %6747 = vmatpush1.bf16.msra.mxu1 %v6746_v41  ;;  %v2662_v38 = vld [vmem:[#allocation5 + $0x4c0] sm:$0xff]  ;;  %v6760_v41 = vpack.c.bf16 %v2665_v33, %v2657_v29 }
 0x35a   :  { %6685 = vmatprep.subr.bf16.mxu0 %v6684_v8  ;;  %6749 = vmatprep.subr.bf16.mxu1 %v6748_v25  ;;  %v6698_v8 = vpack.c.bf16 %v2662_v38, %v2654_v14  ;;  %v2671_v25 = vld [vmem:[#allocation5 + $0x508] sm:$0xff]  ;;  %v2710_v29 = vld [vmem:[#allocation5 + $0x640] sm:$0xff]  ;;  %v2704_v14 = vld [vmem:[#allocation5 + $0x610] sm:$0xff] }
 0x35b   :  { %v6700_v62 = vpack.c.bf16 %v2679_v58, %v2671_v25  ;;  %v6710_v33 = vpack.c.bf16 %v2710_v29, %v2702_v7  ;;  %v2712_v38 = vld [vmem:[#allocation5 + $0x650] sm:$0xff]  ;;  %v2729_v25 = vld [vmem:[#allocation5 + $0x6d8] sm:$0xff]  ;;  %v2718_v58 = vld [vmem:[#allocation5 + $0x680] sm:$0xff] }
 0x35c   :  { %v2760_v7 = vld [vmem:[#allocation5 + $0x7d0] sm:$0xff] }
 0x35d   :  { %6687 = vmatpush1.bf16.msra.mxu0 %v6686_v4  ;;  %6751 = vmatpush1.bf16.msra.mxu1 %v6750_v34  ;;  %v2678_v4 = vld [vmem:[#allocation5 + $0x540] sm:$0xff]  ;;  %v6764_v34 = vpack.c.bf16 %v2681_v30, %v2673_v60 }
 0x35e   :  { %6689 = vmatprep.subr.bf16.mxu0 %v6688_v44  ;;  %6753 = vmatprep.subr.bf16.mxu1 %v6752_v39  ;;  %v6702_v44 = vpack.c.bf16 %v2678_v4, %v2670_v3  ;;  %v6766_v39 = vpack.c.bf16 %v2680_v9, %v2672_v47  ;;  %v2726_v60 = vld [vmem:[#allocation5 + $0x6c0] sm:$0xff]  ;;  %v2720_v3 = vld [vmem:[#allocation5 + $0x690] sm:$0xff]  ;;  %v2743_v47 = vld [vmem:[#allocation5 + $0x748] sm:$0xff] }
 0x35f   :  { %v6714_v30 = vpack.c.bf16 %v2726_v60, %v2718_v58  ;;  %v2728_v4 = vld [vmem:[#allocation5 + $0x6d0] sm:$0xff]  ;;  %v2737_v9 = vld [vmem:[#allocation5 + $0x718] sm:$0xff] }
 0x361   :  { %6691 = vmatpush1.bf16.msra.mxu0 %v6690_v27  ;;  %6755 = vmatpush1.bf16.msra.mxu1 %v6754_v52  ;;  %v2689_v27 = vld [vmem:[#allocation5 + $0x598] sm:$0xff]  ;;  %v6704_v52 = vpack.c.bf16 %v2695_v23, %v2687_v26 }
 0x362   :  { %6693 = vmatprep.subr.bf16.mxu0 %v6692_v21  ;;  %6757 = vmatprep.subr.bf16.mxu1 %v6756_v18  ;;  %v6768_v21 = vpack.c.bf16 %v2697_v5, %v2689_v27  ;;  %v2688_v18 = vld [vmem:[#allocation5 + $0x590] sm:$0xff]  ;;  %v2734_v27 = vld [vmem:[#allocation5 + $0x700] sm:$0xff] }
 0x363   :  { %v6770_v22 = vpack.c.bf16 %v2696_v48, %v2688_v18  ;;  %v2736_v5 = vld [vmem:[#allocation5 + $0x710] sm:$0xff] }
 0x364   :  { %v6782_v18 = vpack.c.bf16 %v2744_v17, %v2736_v5 }
 0x365   :  { %6695 = vmatpush1.bf16.msra.mxu0 %v6694_v55  ;;  %6759 = vmatpush1.bf16.msra.mxu1 %v6758_v63  ;;  %v2711_v55 = vld [vmem:[#allocation5 + $0x648] sm:$0xff] }
 0x366   :  { %6697 = vmatprep.subr.bf16.mxu0 %v6696_v19  ;;  %6761 = vmatprep.subr.bf16.mxu1 %v6760_v41  ;;  %v6708_v63 = vpack.c.bf16 %v2711_v55, %v2703_v42  ;;  %v6772_v19 = vpack.c.bf16 %v2713_v13, %v2705_v16  ;;  %v6774_v41 = vpack.c.bf16 %v2712_v38, %v2704_v14  ;;  %v2761_v42 = vld [vmem:[#allocation5 + $0x7d8] sm:$0xff]  ;;  %v2750_v55 = vld [vmem:[#allocation5 + $0x780] sm:$0xff]  ;;  %v2752_v13 = vld [vmem:[#allocation5 + $0x790] sm:$0xff] }
 0x367   :  { %v2523_v14 = vld [vmem:[#allocation5 + $0x68] sm:$0xff]  ;;  %v2517_v38 = vld [vmem:[#allocation5 + $0x38] sm:$0xff] }
 0x369   :  { %6699 = vmatpush1.bf16.msra.mxu0 %v6698_v8  ;;  %6763 = vmatpush1.bf16.msra.mxu1 %v6762_v54  ;;  %v2719_v8 = vld [vmem:[#allocation5 + $0x688] sm:$0xff] }
 0x36a   :  { %6701 = vmatprep.subr.bf16.mxu0 %v6700_v62  ;;  %6765 = vmatprep.subr.bf16.mxu1 %v6764_v34  ;;  %v6712_v54 = vpack.c.bf16 %v2727_v11, %v2719_v8  ;;  %v6776_v62 = vpack.c.bf16 %v2729_v25, %v2721_v56  ;;  %v2735_v34 = vld [vmem:[#allocation5 + $0x708] sm:$0xff]  ;;  %v2525_v8 = vld [vmem:[#allocation5 + $0x78] sm:$0xff] }
 0x36b   :  { %v6716_v26 = vpack.c.bf16 %v2743_v47, %v2735_v34  ;;  %v6852_v11 = vpack.c.bf16 %v2525_v8, %v2517_v38 }
 0x36d   :  { %6703 = vmatpush1.bf16.msra.mxu0 %v6702_v44  ;;  %6767 = vmatpush1.bf16.msra.mxu1 %v6766_v39  ;;  %v6778_v44 = vpack.c.bf16 %v2728_v4, %v2720_v3  ;;  %v2745_v39 = vld [vmem:[#allocation5 + $0x758] sm:$0xff] }
 0x36e   :  { %6705 = vmatprep.subr.bf16.mxu0 %v6704_v52  ;;  %6769 = vmatprep.subr.bf16.mxu1 %v6768_v21  ;;  %v6780_v23 = vpack.c.bf16 %v2745_v39, %v2737_v9  ;;  %v2742_v52 = vld [vmem:[#allocation5 + $0x740] sm:$0xff]  ;;  %v2751_v21 = vld [vmem:[#allocation5 + $0x788] sm:$0xff] }
 0x36f   :  { %v6718_v2 = vpack.c.bf16 %v2742_v52, %v2734_v27 }
 0x371   :  { %6707 = vmatpush1.bf16.msra.mxu0 %v6706_v37  ;;  %6771 = vmatpush1.bf16.msra.mxu1 %v6770_v22  ;;  %v2759_v37 = vld [vmem:[#allocation5 + $0x7c8] sm:$0xff]  ;;  %v2753_v22 = vld [vmem:[#allocation5 + $0x798] sm:$0xff] }
 0x372   :  { %6709 = vmatprep.subr.bf16.mxu0 %v6708_v63  ;;  %6773 = vmatprep.subr.bf16.mxu1 %v6772_v19  ;;  %v6720_v48 = vpack.c.bf16 %v2759_v37, %v2751_v21  ;;  %v6784_v16 = vpack.c.bf16 %v2761_v42, %v2753_v22  ;;  %v2758_v63 = vld [vmem:[#allocation5 + $0x7c0] sm:$0xff]  ;;  %v6786_v19 = vpack.c.bf16 %v2760_v7, %v2752_v13 }
 0x373   :  { %v6722_v29 = vpack.c.bf16 %v2758_v63, %v2750_v55 }
 0x375   :  { %6711 = vmatpush1.bf16.msra.mxu0 %v6710_v33  ;;  %6775 = vmatpush1.bf16.msra.mxu1 %v6774_v41  ;;  %v2515_v33 = vld [vmem:[#allocation5 + $0x28] sm:$0xff] }
 0x376   :  { %6713 = vmatprep.subr.bf16.mxu0 %v6712_v54  ;;  %6777 = vmatprep.subr.bf16.mxu1 %v6776_v62  ;;  %v6788_v41 = vpack.c.bf16 %v2523_v14, %v2515_v33 }
 0x379   :  { %6715 = vmatpush1.bf16.msra.mxu0 %v6714_v30  ;;  %6779 = vmatpush1.bf16.msra.mxu1 %v6778_v44 }
 0x37a   :  { %6717 = vmatprep.subr.bf16.mxu0 %v6716_v26  ;;  %6781 = vmatprep.subr.bf16.mxu1 %v6780_v23 }
 0x37d   :  { %6719 = vmatpush1.bf16.msra.mxu0 %v6718_v2  ;;  %6783 = vmatpush1.bf16.msra.mxu1 %v6782_v18 }
 0x37e   :  { %6721 = vmatprep.subr.bf16.mxu0 %v6720_v48  ;;  %6785 = vmatprep.subr.bf16.mxu1 %v6784_v16 }
 0x381   :  { %6723 = vmatpush1.bf16.msra.mxu0 %v6722_v29  ;;  %6787 = vmatpush1.bf16.msra.mxu1 %v6786_v19 }
 0x382   :  { %6789 = vmatprep.subr.bf16.mxu0 %v6788_v41  ;;  %6853 = vmatprep.subr.bf16.mxu1 %v6852_v11 }
 0x3d7   :  { %v2220_v56 = vpop.f32.mrb[20].mxu0  ;;  %v2291_v54 = vpop.f32.mrb[20].mxu1 }
 0x3d8   :  { %v2438_v25 = vadd.f32 %v2220_v56, %v8760_v15  ;;  %v2222_v58 = vpop.f32.mrb[21].mxu0  ;;  %v2293_v60 = vpop.f32.mrb[21].mxu1  ;;  %v8008_v30 = vadd.f32 %v2291_v54, %v8827_v31 }
 0x3d9   :  { %v2439_v62 = vadd.f32 %v2222_v58, %v8763_v20  ;;  %v8009_v3 = vadd.f32 %v2293_v60, %v8830_v57 }
 0x3da   :  { %v5799_v4 = vmul.f32 -1.442695, %v2438_v25  ;;  %v5801_v34 = vmul.f32 -1.442695, %v8008_v30  ;;  %v2522_v30 = vld [vmem:[#allocation5 + $0x60] sm:$0xff] }
 0x3db   :  { %v5800_v44 = vmul.f32 -1.442695, %v2439_v62  ;;  %v5802_v47 = vmul.f32 -1.442695, %v8009_v3  ;;  %v2516_v3 = vld [vmem:[#allocation5 + $0x30] sm:$0xff] }
 0x3dc   :  { %8168 = vpow2.f32 %v5799_v4 }
 0x3dd   :  { %8170 = vpow2.f32 %v5801_v34  ;;  %v2531_v34 = vld [vmem:[#allocation5 + $0xa8] sm:$0xff] }
 0x3de   :  { %8172 = vpow2.f32 %v5800_v44 }
 0x3df   :  { %8174 = vpow2.f32 %v5802_v47  ;;  %v2539_v47 = vld [vmem:[#allocation5 + $0xe8] sm:$0xff] }
 0x3e6   :  { %v8169_v9 = vpop.eup %8168 }
 0x3e7   :  { %v8171_v39 = vpop.eup %8170  ;;  %v2452_v23 = vadd.f32 1.0, %v8169_v9  ;;  %v2533_v9 = vld [vmem:[#allocation5 + $0xb8] sm:$0xff] }
 0x3e8   :  { %v8173_v26 = vpop.eup %8172  ;;  %v2464_v27 = vadd.f32 1.0, %v8171_v39  ;;  %v2541_v39 = vld [vmem:[#allocation5 + $0xf8] sm:$0xff] }
 0x3e9   :  { %v8175_v15 = vpop.eup %8174  ;;  %v2453_v52 = vadd.f32 1.0, %v8173_v26  ;;  %8176 = vrcp.f32 %v2452_v23 }
 0x3ea   :  { %v2465_v20 = vadd.f32 1.0, %v8175_v15  ;;  %8178 = vrcp.f32 %v2464_v27  ;;  %v2530_v27 = vld [vmem:[#allocation5 + $0xa0] sm:$0xff] }
 0x3eb   :  { %8180 = vrcp.f32 %v2453_v52  ;;  %v2538_v52 = vld [vmem:[#allocation5 + $0xe0] sm:$0xff] }
 0x3ec   :  { %8182 = vrcp.f32 %v2465_v20 }
 0x3f3   :  { %v8177_v16 = vpop.eup %8176 }
 0x3f4   :  { %v8179_v63 = vpop.eup %8178 }
 0x3f5   :  { %v8181_v13 = vpop.eup %8180  ;;  %v2484_v33 = vmul.f32 %v8179_v63, %v8883_v10  ;;  %v2514_v10 = vld [vmem:[#allocation5 + $0x20] sm:$0xff] }
 0x3f6   :  { %v8183_v7 = vpop.eup %8182  ;;  %v6790_v15 = vpack.c.bf16 %v2522_v30, %v2514_v10  ;;  %v2554_v63 = vld [vmem:[#allocation5 + $0x160] sm:$0xff]  ;;  %v2572_v30 = vld [vmem:[#allocation5 + $0x1f0] sm:$0xff] }
 0x3f7   :  { %v2485_v41 = vmul.f32 %v8183_v7, %v8885_v12  ;;  %v2524_v12 = vld [vmem:[#allocation5 + $0x70] sm:$0xff] }
 0x3f8   :  { %v6854_v23 = vpack.c.bf16 %v2524_v12, %v2516_v3  ;;  %v2579_v3 = vld [vmem:[#allocation5 + $0x228] sm:$0xff] }
 0x3f9   :  { %v2587_v12 = vld [vmem:[#allocation5 + $0x268] sm:$0xff] }
 0x417   :  { %v2362_v5 = vpop.f32.mrb[4].mxu0  ;;  %v2433_v2 = vpop.f32.mrb[36].mxu1 }
 0x418   :  { %v8024_v17 = vadd.f32 %v2362_v5, %v8833_v1  ;;  %v8040_v21 = vadd.f32 %v2433_v2, %v8849_v0  ;;  %v2364_v37 = vpop.f32.mrb[5].mxu0  ;;  %v2435_v18 = vpop.f32.mrb[37].mxu1  ;;  %v2532_v5 = vld [vmem:[#allocation5 + $0xb0] sm:$0xff] }
 0x419   :  { %v8025_v48 = vadd.f32 %v2364_v37, %v8836_v59  ;;  %v8041_v22 = vadd.f32 %v2435_v18, %v8852_v36  ;;  %v2540_v2 = vld [vmem:[#allocation5 + $0xf0] sm:$0xff]  ;;  %v6856_v37 = vpack.c.bf16 %v2541_v39, %v2533_v9  ;;  %v2555_v18 = vld [vmem:[#allocation5 + $0x168] sm:$0xff]  ;;  %v2578_v9 = vld [vmem:[#allocation5 + $0x220] sm:$0xff] }
 0x41a   :  { %8184 = vtanh.f32 %v8024_v17  ;;  %v5803_v42 = vmul.f32 -1.442695, %v8040_v21  ;;  %v2547_v17 = vld [vmem:[#allocation5 + $0x128] sm:$0xff]  ;;  %v6792_v21 = vpack.c.bf16 %v2539_v47, %v2531_v34  ;;  %v2589_v34 = vld [vmem:[#allocation5 + $0x278] sm:$0xff]  ;;  %v2586_v39 = vld [vmem:[#allocation5 + $0x260] sm:$0xff] }
 0x41b   :  { %8186 = vtanh.f32 %v8025_v48  ;;  %v5804_v55 = vmul.f32 -1.442695, %v8041_v22  ;;  %v2549_v48 = vld [vmem:[#allocation5 + $0x138] sm:$0xff] }
 0x41c   :  { %8188 = vpow2.f32 %v5803_v42  ;;  %v2557_v22 = vld [vmem:[#allocation5 + $0x178] sm:$0xff]  ;;  %v6794_v42 = vpack.c.bf16 %v2538_v52, %v2530_v27  ;;  %v2580_v27 = vld [vmem:[#allocation5 + $0x230] sm:$0xff] }
 0x41d   :  { %8190 = vpow2.f32 %v5804_v55  ;;  %v6858_v55 = vpack.c.bf16 %v2540_v2, %v2532_v5  ;;  %v6860_v7 = vpack.c.bf16 %v2557_v22, %v2549_v48  ;;  %v2588_v52 = vld [vmem:[#allocation5 + $0x270] sm:$0xff]  ;;  %v2595_v5 = vld [vmem:[#allocation5 + $0x2a8] sm:$0xff]  ;;  %v2594_v48 = vld [vmem:[#allocation5 + $0x2a0] sm:$0xff] }
 0x41e   :  { %v2603_v2 = vld [vmem:[#allocation5 + $0x2e8] sm:$0xff]  ;;  %v2602_v22 = vld [vmem:[#allocation5 + $0x2e0] sm:$0xff] }
 0x424   :  { %v8185_v29 = vpop.eup %8184 }
 0x425   :  { %v8187_v19 = vpop.eup %8186  ;;  %v2486_v14 = vmul.f32 %v8185_v29, %v8177_v16  ;;  %v2546_v16 = vld [vmem:[#allocation5 + $0x120] sm:$0xff]  ;;  %v2548_v29 = vld [vmem:[#allocation5 + $0x130] sm:$0xff] }
 0x426   :  { %v8189_v38 = vpop.eup %8188  ;;  %v2487_v8 = vmul.f32 %v8187_v19, %v8181_v13  ;;  %v6796_v13 = vpack.c.bf16 %v2555_v18, %v2547_v17  ;;  %v2556_v19 = vld [vmem:[#allocation5 + $0x170] sm:$0xff]  ;;  %v2597_v17 = vld [vmem:[#allocation5 + $0x2b8] sm:$0xff]  ;;  %v6870_v18 = vpack.c.bf16 %v2588_v52, %v2580_v27 }
 0x427   :  { %v8191_v11 = vpop.eup %8190  ;;  %v8911_v56 = vadd.f32 %v2486_v14, %v2484_v33  ;;  %v2478_v54 = vadd.f32 1.0, %v8189_v38  ;;  %v2563_v33 = vld [vmem:[#allocation5 + $0x1a8] sm:$0xff]  ;;  %v2565_v38 = vld [vmem:[#allocation5 + $0x1b8] sm:$0xff] }
 0x428   :  { %v8913_v25 = vadd.f32 %v2487_v8, %v2485_v41  ;;  %v2479_v58 = vadd.f32 1.0, %v8191_v11  ;;  %v2571_v14 = vld [vmem:[#allocation5 + $0x1e8] sm:$0xff]  ;;  %v2573_v41 = vld [vmem:[#allocation5 + $0x1f8] sm:$0xff]  ;;  %v6798_v8 = vpack.c.bf16 %v2554_v63, %v2546_v16  ;;  %v6862_v11 = vpack.c.bf16 %v2556_v19, %v2548_v29  ;;  %v2596_v16 = vld [vmem:[#allocation5 + $0x2b0] sm:$0xff] }
 0x429   :  { %8192 = vtanh.f32 %v8911_v56  ;;  %v6864_v10 = vpack.c.bf16 %v2573_v41, %v2565_v38  ;;  %v2604_v63 = vld [vmem:[#allocation5 + $0x2f0] sm:$0xff]  ;;  %v2613_v29 = vld [vmem:[#allocation5 + $0x338] sm:$0xff]  ;;  %v2610_v38 = vld [vmem:[#allocation5 + $0x320] sm:$0xff] }
 0x42a   :  { %8194 = vrcp.f32 %v2478_v54  ;;  %v2562_v54 = vld [vmem:[#allocation5 + $0x1a0] sm:$0xff]  ;;  %v2621_v19 = vld [vmem:[#allocation5 + $0x378] sm:$0xff] }
 0x42b   :  { %8196 = vtanh.f32 %v8913_v25  ;;  %v2618_v41 = vld [vmem:[#allocation5 + $0x360] sm:$0xff]  ;;  %v2645_v27 = vld [vmem:[#allocation5 + $0x438] sm:$0xff] }
 0x42c   :  { %8198 = vrcp.f32 %v2479_v58  ;;  %v2570_v58 = vld [vmem:[#allocation5 + $0x1e0] sm:$0xff]  ;;  %v2653_v52 = vld [vmem:[#allocation5 + $0x478] sm:$0xff] }
 0x433   :  { %v8193_v60 = vpop.eup %8192 }
 0x434   :  { %v8195_v62 = vpop.eup %8194 }
 0x435   :  { %v8197_v4 = vpop.eup %8196  ;;  %v8919_v20 = vmul.f32 %v8195_v62, %v8193_v60  ;;  %v6800_v60 = vpack.c.bf16 %v2571_v14, %v2563_v33  ;;  %v2564_v62 = vld [vmem:[#allocation5 + $0x1b0] sm:$0xff]  ;;  %v6810_v33 = vpack.c.bf16 %v2602_v22, %v2594_v48  ;;  %v6874_v14 = vpack.c.bf16 %v2604_v63, %v2596_v16  ;;  %v2661_v16 = vld [vmem:[#allocation5 + $0x4b8] sm:$0xff] }
 0x436   :  { %v8199_v44 = vpop.eup %8198  ;;  %v6866_v47 = vpack.c.bf16 %v2572_v30, %v2564_v62  ;;  %v2629_v62 = vld [vmem:[#allocation5 + $0x3b8] sm:$0xff]  ;;  %v2644_v48 = vld [vmem:[#allocation5 + $0x430] sm:$0xff] }
 0x437   :  { %v8917_v26 = vmul.f32 %v8199_v44, %v8197_v4  ;;  %v2581_v4 = vld [vmem:[#allocation5 + $0x238] sm:$0xff]  ;;  %v6802_v44 = vpack.c.bf16 %v2570_v58, %v2562_v54  ;;  %v2612_v54 = vld [vmem:[#allocation5 + $0x330] sm:$0xff] }
 0x438   :  { %v2620_v58 = vld [vmem:[#allocation5 + $0x370] sm:$0xff]  ;;  %v2637_v30 = vld [vmem:[#allocation5 + $0x3f8] sm:$0xff] }
 0x439   :  { %2830 = vmatprep.mubr.f32.mxu0 %v8917_v26  ;;  %2901 = vmatprep.mubr.f32.mxu1 %v8917_v26  ;;  %v2652_v22 = vld [vmem:[#allocation5 + $0x470] sm:$0xff]  ;;  %v2669_v63 = vld [vmem:[#allocation5 + $0x4f8] sm:$0xff] }
 0x43a   :  { %2831 = vmatmul.mubr.f32.vlgmr.msra.gmra.mrb[22].mxu0 %v8919_v20  ;;  %2902 = vmatmul.mubr.f32.vlgmr.msra.gmra.mrb[22].mxu1 %v8919_v20 }
 0x43b   :  { %6791 = vmatpush1.bf16.msra.mxu0 %v6790_v15  ;;  %6855 = vmatpush1.bf16.msra.mxu1 %v6854_v23  ;;  %v6804_v15 = vpack.c.bf16 %v2587_v12, %v2579_v3  ;;  %v6868_v23 = vpack.c.bf16 %v2589_v34, %v2581_v4  ;;  %v6814_v3 = vpack.c.bf16 %v2618_v41, %v2610_v38  ;;  %v2626_v4 = vld [vmem:[#allocation5 + $0x3a0] sm:$0xff]  ;;  %v2660_v38 = vld [vmem:[#allocation5 + $0x4b0] sm:$0xff] }
 0x43c   :  { %2972 = vmatprep.mubr.f32.mxu0 %v8917_v26  ;;  %3043 = vmatprep.mubr.f32.mxu1 %v8917_v26  ;;  %v6878_v12 = vpack.c.bf16 %v2620_v58, %v2612_v54  ;;  %v2634_v34 = vld [vmem:[#allocation5 + $0x3e0] sm:$0xff]  ;;  %v2668_v41 = vld [vmem:[#allocation5 + $0x4f0] sm:$0xff]  ;;  %v2677_v54 = vld [vmem:[#allocation5 + $0x538] sm:$0xff] }
 0x43d   :  { %6793 = vmatprep.subr.bf16.mxu0 %v6792_v21  ;;  %6857 = vmatprep.subr.bf16.mxu1 %v6856_v37  ;;  %v2605_v21 = vld [vmem:[#allocation5 + $0x2f8] sm:$0xff]  ;;  %v6806_v37 = vpack.c.bf16 %v2586_v39, %v2578_v9  ;;  %v2628_v9 = vld [vmem:[#allocation5 + $0x3b0] sm:$0xff] }
 0x43e   :  { %v2636_v39 = vld [vmem:[#allocation5 + $0x3f0] sm:$0xff]  ;;  %v2685_v58 = vld [vmem:[#allocation5 + $0x578] sm:$0xff] }
 0x43f   :  { %6795 = vmatpush1.bf16.msra.mxu0 %v6794_v42  ;;  %6859 = vmatpush1.bf16.msra.mxu1 %v6858_v55  ;;  %v6808_v42 = vpack.c.bf16 %v2603_v2, %v2595_v5  ;;  %v6872_v55 = vpack.c.bf16 %v2605_v21, %v2597_v17  ;;  %v6818_v5 = vpack.c.bf16 %v2634_v34, %v2626_v4  ;;  %v2642_v17 = vld [vmem:[#allocation5 + $0x420] sm:$0xff]  ;;  %v2676_v4 = vld [vmem:[#allocation5 + $0x530] sm:$0xff] }
 0x440   :  { %6797 = vmatprep.subr.bf16.mxu0 %v6796_v13  ;;  %6861 = vmatprep.subr.bf16.mxu1 %v6860_v7  ;;  %v2611_v13 = vld [vmem:[#allocation5 + $0x328] sm:$0xff]  ;;  %v6882_v2 = vpack.c.bf16 %v2636_v39, %v2628_v9  ;;  %v2650_v21 = vld [vmem:[#allocation5 + $0x460] sm:$0xff]  ;;  %v2684_v34 = vld [vmem:[#allocation5 + $0x570] sm:$0xff] }
 0x441   :  { %v2619_v7 = vld [vmem:[#allocation5 + $0x368] sm:$0xff]  ;;  %v2693_v9 = vld [vmem:[#allocation5 + $0x5b8] sm:$0xff] }
 0x442   :  { %v2701_v39 = vld [vmem:[#allocation5 + $0x5f8] sm:$0xff] }
 0x443   :  { %6799 = vmatpush1.bf16.msra.mxu0 %v6798_v8  ;;  %6863 = vmatpush1.bf16.msra.mxu1 %v6862_v11  ;;  %v6812_v8 = vpack.c.bf16 %v2619_v7, %v2611_v13  ;;  %v6876_v11 = vpack.c.bf16 %v2621_v19, %v2613_v29  ;;  %v6822_v13 = vpack.c.bf16 %v2650_v21, %v2642_v17  ;;  %v2658_v29 = vld [vmem:[#allocation5 + $0x4a0] sm:$0xff]  ;;  %v2692_v17 = vld [vmem:[#allocation5 + $0x5b0] sm:$0xff] }
 0x444   :  { %6801 = vmatprep.subr.bf16.mxu0 %v6800_v60  ;;  %6865 = vmatprep.subr.bf16.mxu1 %v6864_v10  ;;  %v2627_v60 = vld [vmem:[#allocation5 + $0x3a8] sm:$0xff]  ;;  %v6886_v7 = vpack.c.bf16 %v2652_v22, %v2644_v48  ;;  %v2666_v19 = vld [vmem:[#allocation5 + $0x4e0] sm:$0xff]  ;;  %v2700_v21 = vld [vmem:[#allocation5 + $0x5f0] sm:$0xff] }
 0x445   :  { %v2635_v10 = vld [vmem:[#allocation5 + $0x3e8] sm:$0xff]  ;;  %v2709_v48 = vld [vmem:[#allocation5 + $0x638] sm:$0xff] }
 0x446   :  { %v2717_v22 = vld [vmem:[#allocation5 + $0x678] sm:$0xff] }
 0x447   :  { %6803 = vmatpush1.bf16.msra.mxu0 %v6802_v44  ;;  %6867 = vmatpush1.bf16.msra.mxu1 %v6866_v47  ;;  %v6816_v44 = vpack.c.bf16 %v2635_v10, %v2627_v60  ;;  %v6880_v47 = vpack.c.bf16 %v2637_v30, %v2629_v62  ;;  %v6826_v60 = vpack.c.bf16 %v2666_v19, %v2658_v29  ;;  %v2674_v62 = vld [vmem:[#allocation5 + $0x520] sm:$0xff]  ;;  %v2708_v29 = vld [vmem:[#allocation5 + $0x630] sm:$0xff] }
 0x448   :  { %6805 = vmatprep.subr.bf16.mxu0 %v6804_v15  ;;  %6869 = vmatprep.subr.bf16.mxu1 %v6868_v23  ;;  %v2643_v15 = vld [vmem:[#allocation5 + $0x428] sm:$0xff]  ;;  %v6890_v10 = vpack.c.bf16 %v2668_v41, %v2660_v38  ;;  %v2682_v30 = vld [vmem:[#allocation5 + $0x560] sm:$0xff]  ;;  %v2716_v19 = vld [vmem:[#allocation5 + $0x670] sm:$0xff] }
 0x449   :  { %v2651_v23 = vld [vmem:[#allocation5 + $0x468] sm:$0xff]  ;;  %v2725_v38 = vld [vmem:[#allocation5 + $0x6b8] sm:$0xff] }
 0x44a   :  { %v2733_v41 = vld [vmem:[#allocation5 + $0x6f8] sm:$0xff] }
 0x44b   :  { %6807 = vmatpush1.bf16.msra.mxu0 %v6806_v37  ;;  %6871 = vmatpush1.bf16.msra.mxu1 %v6870_v18  ;;  %v6820_v37 = vpack.c.bf16 %v2651_v23, %v2643_v15  ;;  %v6884_v18 = vpack.c.bf16 %v2653_v52, %v2645_v27  ;;  %v6830_v15 = vpack.c.bf16 %v2682_v30, %v2674_v62  ;;  %v2690_v27 = vld [vmem:[#allocation5 + $0x5a0] sm:$0xff]  ;;  %v2724_v62 = vld [vmem:[#allocation5 + $0x6b0] sm:$0xff] }
 0x44c   :  { %6809 = vmatprep.subr.bf16.mxu0 %v6808_v42  ;;  %6873 = vmatprep.subr.bf16.mxu1 %v6872_v55  ;;  %v2659_v42 = vld [vmem:[#allocation5 + $0x4a8] sm:$0xff]  ;;  %v6894_v23 = vpack.c.bf16 %v2684_v34, %v2676_v4  ;;  %v2698_v52 = vld [vmem:[#allocation5 + $0x5e0] sm:$0xff]  ;;  %v2732_v30 = vld [vmem:[#allocation5 + $0x6f0] sm:$0xff] }
 0x44d   :  { %v2667_v55 = vld [vmem:[#allocation5 + $0x4e8] sm:$0xff]  ;;  %v2741_v4 = vld [vmem:[#allocation5 + $0x738] sm:$0xff] }
 0x44e   :  { %v2749_v34 = vld [vmem:[#allocation5 + $0x778] sm:$0xff] }
 0x44f   :  { %6811 = vmatpush1.bf16.msra.mxu0 %v6810_v33  ;;  %6875 = vmatpush1.bf16.msra.mxu1 %v6874_v14  ;;  %v6824_v33 = vpack.c.bf16 %v2667_v55, %v2659_v42  ;;  %v6888_v14 = vpack.c.bf16 %v2669_v63, %v2661_v16  ;;  %v6834_v42 = vpack.c.bf16 %v2698_v52, %v2690_v27  ;;  %v2706_v16 = vld [vmem:[#allocation5 + $0x620] sm:$0xff]  ;;  %v2740_v27 = vld [vmem:[#allocation5 + $0x730] sm:$0xff] }
 0x450   :  { %6813 = vmatprep.subr.bf16.mxu0 %v6812_v8  ;;  %6877 = vmatprep.subr.bf16.mxu1 %v6876_v11  ;;  %v2675_v8 = vld [vmem:[#allocation5 + $0x528] sm:$0xff]  ;;  %v6898_v55 = vpack.c.bf16 %v2700_v21, %v2692_v17  ;;  %v2714_v63 = vld [vmem:[#allocation5 + $0x660] sm:$0xff]  ;;  %v2748_v52 = vld [vmem:[#allocation5 + $0x770] sm:$0xff] }
 0x451   :  { %v2683_v11 = vld [vmem:[#allocation5 + $0x568] sm:$0xff]  ;;  %v2757_v17 = vld [vmem:[#allocation5 + $0x7b8] sm:$0xff] }
 0x452   :  { %v2765_v21 = vld [vmem:[#allocation5 + $0x7f8] sm:$0xff] }
 0x453   :  { %6815 = vmatpush1.bf16.msra.mxu0 %v6814_v3  ;;  %6879 = vmatpush1.bf16.msra.mxu1 %v6878_v12  ;;  %v6828_v3 = vpack.c.bf16 %v2683_v11, %v2675_v8  ;;  %v6892_v12 = vpack.c.bf16 %v2685_v58, %v2677_v54  ;;  %v6838_v8 = vpack.c.bf16 %v2714_v63, %v2706_v16  ;;  %v2722_v54 = vld [vmem:[#allocation5 + $0x6a0] sm:$0xff]  ;;  %v2756_v16 = vld [vmem:[#allocation5 + $0x7b0] sm:$0xff] }
 0x454   :  { %6817 = vmatprep.subr.bf16.mxu0 %v6816_v44  ;;  %6881 = vmatprep.subr.bf16.mxu1 %v6880_v47  ;;  %v2691_v44 = vld [vmem:[#allocation5 + $0x5a8] sm:$0xff]  ;;  %v6902_v11 = vpack.c.bf16 %v2716_v19, %v2708_v29  ;;  %v2730_v58 = vld [vmem:[#allocation5 + $0x6e0] sm:$0xff]  ;;  %v2764_v63 = vld [vmem:[#allocation5 + $0x7f0] sm:$0xff] }
 0x455   :  { %v2699_v47 = vld [vmem:[#allocation5 + $0x5e8] sm:$0xff] }
 0x456   :  { %v3123_v29 = vld [vmem:[#allocation5 + $0x8] sm:$0xff] }
 0x457   :  { %6819 = vmatpush1.bf16.msra.mxu0 %v6818_v5  ;;  %6883 = vmatpush1.bf16.msra.mxu1 %v6882_v2  ;;  %v6832_v5 = vpack.c.bf16 %v2699_v47, %v2691_v44  ;;  %v6896_v2 = vpack.c.bf16 %v2701_v39, %v2693_v9  ;;  %v6842_v44 = vpack.c.bf16 %v2730_v58, %v2722_v54  ;;  %v2738_v9 = vld [vmem:[#allocation5 + $0x720] sm:$0xff]  ;;  %v3131_v19 = vld [vmem:[#allocation5 + $0x48] sm:$0xff]  ;;  %v3124_v58 = vld [vmem:[#allocation5 + $0x10] sm:$0xff] }
 0x458   :  { %6821 = vmatprep.subr.bf16.mxu0 %v6820_v37  ;;  %6885 = vmatprep.subr.bf16.mxu1 %v6884_v18  ;;  %v2707_v37 = vld [vmem:[#allocation5 + $0x628] sm:$0xff]  ;;  %v6906_v47 = vpack.c.bf16 %v2732_v30, %v2724_v62  ;;  %v2746_v39 = vld [vmem:[#allocation5 + $0x760] sm:$0xff] }
 0x459   :  { %v2715_v18 = vld [vmem:[#allocation5 + $0x668] sm:$0xff] }
 0x45a   :  { %v3147_v30 = vld [vmem:[#allocation5 + $0xc8] sm:$0xff] }
 0x45b   :  { %6823 = vmatpush1.bf16.msra.mxu0 %v6822_v13  ;;  %6887 = vmatpush1.bf16.msra.mxu1 %v6886_v7  ;;  %v6836_v13 = vpack.c.bf16 %v2715_v18, %v2707_v37  ;;  %v6900_v7 = vpack.c.bf16 %v2717_v22, %v2709_v48  ;;  %v6846_v37 = vpack.c.bf16 %v2746_v39, %v2738_v9  ;;  %v2754_v48 = vld [vmem:[#allocation5 + $0x7a0] sm:$0xff]  ;;  %v3140_v9 = vld [vmem:[#allocation5 + $0x90] sm:$0xff] }
 0x45c   :  { %6825 = vmatprep.subr.bf16.mxu0 %v6824_v33  ;;  %6889 = vmatprep.subr.bf16.mxu1 %v6888_v14  ;;  %v2723_v33 = vld [vmem:[#allocation5 + $0x6a8] sm:$0xff]  ;;  %v6910_v18 = vpack.c.bf16 %v2748_v52, %v2740_v27 }
 0x45d   :  { %v2731_v14 = vld [vmem:[#allocation5 + $0x6e8] sm:$0xff] }
 0x45e   :  { %v3163_v27 = vld [vmem:[#allocation5 + $0x148] sm:$0xff] }
 0x45f   :  { %6827 = vmatpush1.bf16.msra.mxu0 %v6826_v60  ;;  %6891 = vmatpush1.bf16.msra.mxu1 %v6890_v10  ;;  %v6840_v60 = vpack.c.bf16 %v2731_v14, %v2723_v33  ;;  %v6904_v10 = vpack.c.bf16 %v2733_v41, %v2725_v38  ;;  %v3125_v33 = vld [vmem:[#allocation5 + $0x18] sm:$0xff]  ;;  %v6916_v14 = vpack.c.bf16 %v3131_v19, %v3123_v29  ;;  %v3122_v41 = vld [vmem:[#allocation5] sm:$0xff] }
 0x460   :  { %6829 = vmatprep.subr.bf16.mxu0 %v6828_v3  ;;  %6893 = vmatprep.subr.bf16.mxu1 %v6892_v12  ;;  %v2739_v3 = vld [vmem:[#allocation5 + $0x728] sm:$0xff]  ;;  %v3133_v38 = vld [vmem:[#allocation5 + $0x58] sm:$0xff]  ;;  %v3170_v19 = vld [vmem:[#allocation5 + $0x180] sm:$0xff] }
 0x461   :  { %v2747_v12 = vld [vmem:[#allocation5 + $0x768] sm:$0xff]  ;;  %v3181_v29 = vld [vmem:[#allocation5 + $0x1d8] sm:$0xff] }
 0x463   :  { %6831 = vmatpush1.bf16.msra.mxu0 %v6830_v15  ;;  %6895 = vmatpush1.bf16.msra.mxu1 %v6894_v23  ;;  %v6844_v15 = vpack.c.bf16 %v2747_v12, %v2739_v3  ;;  %v6908_v23 = vpack.c.bf16 %v2749_v34, %v2741_v4  ;;  %v3141_v3 = vld [vmem:[#allocation5 + $0x98] sm:$0xff] }
 0x464   :  { %6833 = vmatprep.subr.bf16.mxu0 %v6832_v5  ;;  %6897 = vmatprep.subr.bf16.mxu1 %v6896_v2  ;;  %v2755_v5 = vld [vmem:[#allocation5 + $0x7a8] sm:$0xff]  ;;  %v3149_v12 = vld [vmem:[#allocation5 + $0xd8] sm:$0xff] }
 0x465   :  { %v2763_v2 = vld [vmem:[#allocation5 + $0x7e8] sm:$0xff]  ;;  %v6984_v34 = vpack.c.bf16 %v3149_v12, %v3141_v3  ;;  %v3194_v3 = vld [vmem:[#allocation5 + $0x240] sm:$0xff]  ;;  %v3188_v12 = vld [vmem:[#allocation5 + $0x210] sm:$0xff] }
 0x466   :  { %v6848_v22 = vpack.c.bf16 %v2763_v2, %v2755_v5  ;;  %v3157_v2 = vld [vmem:[#allocation5 + $0x118] sm:$0xff] }
 0x467   :  { %6835 = vmatpush1.bf16.msra.mxu0 %v6834_v42  ;;  %6899 = vmatpush1.bf16.msra.mxu1 %v6898_v55  ;;  %v6912_v42 = vpack.c.bf16 %v2765_v21, %v2757_v17  ;;  %v2762_v55 = vld [vmem:[#allocation5 + $0x7e0] sm:$0xff]  ;;  %v3165_v17 = vld [vmem:[#allocation5 + $0x158] sm:$0xff] }
 0x468   :  { %6837 = vmatprep.subr.bf16.mxu0 %v6836_v13  ;;  %6901 = vmatprep.subr.bf16.mxu1 %v6900_v7  ;;  %v6850_v13 = vpack.c.bf16 %v2762_v55, %v2754_v48  ;;  %v6914_v7 = vpack.c.bf16 %v2764_v63, %v2756_v16  ;;  %v3154_v21 = vld [vmem:[#allocation5 + $0x100] sm:$0xff]  ;;  %v3156_v48 = vld [vmem:[#allocation5 + $0x110] sm:$0xff]  ;;  %v3171_v55 = vld [vmem:[#allocation5 + $0x188] sm:$0xff] }
 0x469   :  { %v3179_v16 = vld [vmem:[#allocation5 + $0x1c8] sm:$0xff]  ;;  %v3173_v63 = vld [vmem:[#allocation5 + $0x198] sm:$0xff] }
 0x46b   :  { %6839 = vmatpush1.bf16.msra.mxu0 %v6838_v8  ;;  %6903 = vmatpush1.bf16.msra.mxu1 %v6902_v11  ;;  %v3130_v8 = vld [vmem:[#allocation5 + $0x40] sm:$0xff]  ;;  %v6980_v11 = vpack.c.bf16 %v3133_v38, %v3125_v33  ;;  %v3172_v38 = vld [vmem:[#allocation5 + $0x190] sm:$0xff] }
 0x46c   :  { %6841 = vmatprep.subr.bf16.mxu0 %v6840_v60  ;;  %6905 = vmatprep.subr.bf16.mxu1 %v6904_v10  ;;  %v6918_v54 = vpack.c.bf16 %v3130_v8, %v3122_v41  ;;  %v3132_v60 = vld [vmem:[#allocation5 + $0x50] sm:$0xff]  ;;  %v3139_v10 = vld [vmem:[#allocation5 + $0x88] sm:$0xff]  ;;  %v3178_v33 = vld [vmem:[#allocation5 + $0x1c0] sm:$0xff] }
 0x46d   :  { %v6982_v62 = vpack.c.bf16 %v3132_v60, %v3124_v58  ;;  %v6920_v4 = vpack.c.bf16 %v3147_v30, %v3139_v10  ;;  %v3180_v41 = vld [vmem:[#allocation5 + $0x1d0] sm:$0xff]  ;;  %v3187_v8 = vld [vmem:[#allocation5 + $0x208] sm:$0xff]  ;;  %v3197_v58 = vld [vmem:[#allocation5 + $0x258] sm:$0xff]  ;;  %v6930_v60 = vpack.c.bf16 %v3178_v33, %v3170_v19 }
 0x46e   :  { %v6994_v10 = vpack.c.bf16 %v3180_v41, %v3172_v38  ;;  %v3186_v30 = vld [vmem:[#allocation5 + $0x200] sm:$0xff]  ;;  %v3228_v19 = vld [vmem:[#allocation5 + $0x350] sm:$0xff]  ;;  %v3235_v33 = vld [vmem:[#allocation5 + $0x388] sm:$0xff] }
 0x46f   :  { %6843 = vmatpush1.bf16.msra.mxu0 %v6842_v44  ;;  %6907 = vmatpush1.bf16.msra.mxu1 %v6906_v47  ;;  %v3138_v44 = vld [vmem:[#allocation5 + $0x80] sm:$0xff]  ;;  %v3237_v38 = vld [vmem:[#allocation5 + $0x398] sm:$0xff] }
 0x470   :  { %6845 = vmatprep.subr.bf16.mxu0 %v6844_v15  ;;  %6909 = vmatprep.subr.bf16.mxu1 %v6908_v23  ;;  %v3146_v47 = vld [vmem:[#allocation5 + $0xc0] sm:$0xff]  ;;  %v3148_v15 = vld [vmem:[#allocation5 + $0xd0] sm:$0xff]  ;;  %v3155_v23 = vld [vmem:[#allocation5 + $0x108] sm:$0xff] }
 0x471   :  { %v6922_v39 = vpack.c.bf16 %v3146_v47, %v3138_v44  ;;  %v6986_v52 = vpack.c.bf16 %v3148_v15, %v3140_v9  ;;  %v6924_v5 = vpack.c.bf16 %v3163_v27, %v3155_v23  ;;  %v3203_v44 = vld [vmem:[#allocation5 + $0x288] sm:$0xff]  ;;  %v3205_v9 = vld [vmem:[#allocation5 + $0x298] sm:$0xff]  ;;  %v6934_v15 = vpack.c.bf16 %v3194_v3, %v3186_v30  ;;  %v3244_v30 = vld [vmem:[#allocation5 + $0x3d0] sm:$0xff] }
 0x472   :  { %v3211_v47 = vld [vmem:[#allocation5 + $0x2c8] sm:$0xff]  ;;  %v3245_v41 = vld [vmem:[#allocation5 + $0x3d8] sm:$0xff] }
 0x473   :  { %6847 = vmatpush1.bf16.msra.mxu0 %v6846_v37  ;;  %6911 = vmatpush1.bf16.msra.mxu1 %v6910_v18  ;;  %v6988_v37 = vpack.c.bf16 %v3165_v17, %v3157_v2  ;;  %v3162_v18 = vld [vmem:[#allocation5 + $0x140] sm:$0xff]  ;;  %v6936_v27 = vpack.c.bf16 %v3211_v47, %v3203_v44  ;;  %v3204_v2 = vld [vmem:[#allocation5 + $0x290] sm:$0xff]  ;;  %v3253_v44 = vld [vmem:[#allocation5 + $0x418] sm:$0xff] }
 0x474   :  { %6849 = vmatprep.subr.bf16.mxu0 %v6848_v22  ;;  %6913 = vmatprep.subr.bf16.mxu1 %v6912_v42  ;;  %v3164_v22 = vld [vmem:[#allocation5 + $0x150] sm:$0xff]  ;;  %v6926_v42 = vpack.c.bf16 %v3162_v18, %v3154_v21  ;;  %v3227_v18 = vld [vmem:[#allocation5 + $0x348] sm:$0xff] }
 0x475   :  { %v3212_v21 = vld [vmem:[#allocation5 + $0x2d0] sm:$0xff] }
 0x477   :  { %6851 = vmatpush1.bf16.msra.mxu0 %v6850_v13  ;;  %6915 = vmatpush1.bf16.msra.mxu1 %v6914_v7  ;;  %v6990_v13 = vpack.c.bf16 %v3164_v22, %v3156_v48  ;;  %v6928_v7 = vpack.c.bf16 %v3179_v16, %v3171_v55  ;;  %v3221_v48 = vld [vmem:[#allocation5 + $0x318] sm:$0xff]  ;;  %v7002_v55 = vpack.c.bf16 %v3212_v21, %v3204_v2  ;;  %v3275_v21 = vld [vmem:[#allocation5 + $0x4c8] sm:$0xff] }
 0x478   :  { %6917 = vmatprep.subr.bf16.mxu0 %v6916_v14  ;;  %6981 = vmatprep.subr.bf16.mxu1 %v6980_v11  ;;  %v6992_v14 = vpack.c.bf16 %v3181_v29, %v3173_v63  ;;  %v3195_v11 = vld [vmem:[#allocation5 + $0x248] sm:$0xff]  ;;  %v3229_v22 = vld [vmem:[#allocation5 + $0x358] sm:$0xff]  ;;  %v3218_v63 = vld [vmem:[#allocation5 + $0x300] sm:$0xff] }
 0x479   :  { %v7004_v29 = vpack.c.bf16 %v3229_v22, %v3221_v48  ;;  %v3277_v48 = vld [vmem:[#allocation5 + $0x4d8] sm:$0xff]  ;;  %v3266_v22 = vld [vmem:[#allocation5 + $0x480] sm:$0xff] }
 0x47a   :  { %2973 = vmatmul.mubr.f32.vlgmr.msra.gmra.mrb[6].mxu0 %v8919_v20  ;;  %3044 = vmatmul.mubr.f32.vlgmr.msra.gmra.mrb[38].mxu1 %v8919_v20 }
 0x47b   :  { %6919 = vmatpush1.bf16.msra.mxu0 %v6918_v54  ;;  %6983 = vmatpush1.bf16.msra.mxu1 %v6982_v62  ;;  %v3189_v54 = vld [vmem:[#allocation5 + $0x218] sm:$0xff]  ;;  %v6932_v62 = vpack.c.bf16 %v3195_v11, %v3187_v8 }
 0x47c   :  { %6921 = vmatprep.subr.bf16.mxu0 %v6920_v4  ;;  %6985 = vmatprep.subr.bf16.mxu1 %v6984_v34  ;;  %v6996_v4 = vpack.c.bf16 %v3197_v58, %v3189_v54  ;;  %v3196_v34 = vld [vmem:[#allocation5 + $0x250] sm:$0xff]  ;;  %v3234_v58 = vld [vmem:[#allocation5 + $0x380] sm:$0xff] }
 0x47d   :  { %v6998_v23 = vpack.c.bf16 %v3196_v34, %v3188_v12  ;;  %v3259_v34 = vld [vmem:[#allocation5 + $0x448] sm:$0xff] }
 0x47f   :  { %6923 = vmatpush1.bf16.msra.mxu0 %v6922_v39  ;;  %6987 = vmatpush1.bf16.msra.mxu1 %v6986_v52  ;;  %v3213_v39 = vld [vmem:[#allocation5 + $0x2d8] sm:$0xff]  ;;  %v3202_v52 = vld [vmem:[#allocation5 + $0x280] sm:$0xff] }
 0x480   :  { %6925 = vmatprep.subr.bf16.mxu0 %v6924_v5  ;;  %6989 = vmatprep.subr.bf16.mxu1 %v6988_v37  ;;  %v3210_v5 = vld [vmem:[#allocation5 + $0x2c0] sm:$0xff]  ;;  %v7000_v17 = vpack.c.bf16 %v3213_v39, %v3205_v9  ;;  %v3219_v37 = vld [vmem:[#allocation5 + $0x308] sm:$0xff]  ;;  %v3261_v9 = vld [vmem:[#allocation5 + $0x458] sm:$0xff] }
 0x481   :  { %v6940_v16 = vpack.c.bf16 %v3227_v18, %v3219_v37  ;;  %v7012_v39 = vpack.c.bf16 %v3261_v9, %v3253_v44  ;;  %v3269_v37 = vld [vmem:[#allocation5 + $0x498] sm:$0xff]  ;;  %v3306_v44 = vld [vmem:[#allocation5 + $0x5c0] sm:$0xff] }
 0x483   :  { %6927 = vmatpush1.bf16.msra.mxu0 %v6926_v42  ;;  %6991 = vmatpush1.bf16.msra.mxu1 %v6990_v13  ;;  %v6938_v42 = vpack.c.bf16 %v3210_v5, %v3202_v52  ;;  %v3226_v13 = vld [vmem:[#allocation5 + $0x340] sm:$0xff]  ;;  %v3260_v5 = vld [vmem:[#allocation5 + $0x450] sm:$0xff] }
 0x484   :  { %6929 = vmatprep.subr.bf16.mxu0 %v6928_v7  ;;  %6993 = vmatprep.subr.bf16.mxu1 %v6992_v14  ;;  %v3220_v7 = vld [vmem:[#allocation5 + $0x310] sm:$0xff]  ;;  %v3243_v14 = vld [vmem:[#allocation5 + $0x3c8] sm:$0xff]  ;;  %v6942_v8 = vpack.c.bf16 %v3226_v13, %v3218_v63 }
 0x485   :  { %v7006_v11 = vpack.c.bf16 %v3228_v19, %v3220_v7  ;;  %v6944_v54 = vpack.c.bf16 %v3243_v14, %v3235_v33  ;;  %v3268_v63 = vld [vmem:[#allocation5 + $0x490] sm:$0xff]  ;;  %v3291_v19 = vld [vmem:[#allocation5 + $0x548] sm:$0xff]  ;;  %v3285_v33 = vld [vmem:[#allocation5 + $0x518] sm:$0xff] }
 0x486   :  { %v3276_v13 = vld [vmem:[#allocation5 + $0x4d0] sm:$0xff] }
 0x487   :  { %6931 = vmatpush1.bf16.msra.mxu0 %v6930_v60  ;;  %6995 = vmatpush1.bf16.msra.mxu1 %v6994_v10  ;;  %v3242_v60 = vld [vmem:[#allocation5 + $0x3c0] sm:$0xff]  ;;  %v7008_v10 = vpack.c.bf16 %v3245_v41, %v3237_v38  ;;  %v7018_v7 = vpack.c.bf16 %v3276_v13, %v3268_v63  ;;  %v3293_v38 = vld [vmem:[#allocation5 + $0x558] sm:$0xff]  ;;  %v3339_v63 = vld [vmem:[#allocation5 + $0x6c8] sm:$0xff] }
 0x488   :  { %6933 = vmatprep.subr.bf16.mxu0 %v6932_v62  ;;  %6997 = vmatprep.subr.bf16.mxu1 %v6996_v4  ;;  %v3236_v62 = vld [vmem:[#allocation5 + $0x390] sm:$0xff]  ;;  %v6946_v3 = vpack.c.bf16 %v3242_v60, %v3234_v58  ;;  %v3251_v4 = vld [vmem:[#allocation5 + $0x408] sm:$0xff]  ;;  %v3282_v41 = vld [vmem:[#allocation5 + $0x500] sm:$0xff] }
 0x489   :  { %v7010_v12 = vpack.c.bf16 %v3244_v30, %v3236_v62  ;;  %v6948_v47 = vpack.c.bf16 %v3259_v34, %v3251_v4  ;;  %v3284_v58 = vld [vmem:[#allocation5 + $0x510] sm:$0xff]  ;;  %v3299_v62 = vld [vmem:[#allocation5 + $0x588] sm:$0xff]  ;;  %v3309_v4 = vld [vmem:[#allocation5 + $0x5d8] sm:$0xff] }
 0x48a   :  { %v3292_v60 = vld [vmem:[#allocation5 + $0x550] sm:$0xff]  ;;  %v3307_v30 = vld [vmem:[#allocation5 + $0x5c8] sm:$0xff]  ;;  %v3298_v34 = vld [vmem:[#allocation5 + $0x580] sm:$0xff] }
 0x48b   :  { %6935 = vmatpush1.bf16.msra.mxu0 %v6934_v15  ;;  %6999 = vmatpush1.bf16.msra.mxu1 %v6998_v23  ;;  %v3250_v15 = vld [vmem:[#allocation5 + $0x400] sm:$0xff]  ;;  %v6962_v9 = vpack.c.bf16 %v3306_v44, %v3298_v34  ;;  %v3333_v13 = vld [vmem:[#allocation5 + $0x698] sm:$0xff]  ;;  %v3356_v44 = vld [vmem:[#allocation5 + $0x750] sm:$0xff] }
 0x48c   :  { %6937 = vmatprep.subr.bf16.mxu0 %v6936_v27  ;;  %7001 = vmatprep.subr.bf16.mxu1 %v7000_v17  ;;  %v3258_v23 = vld [vmem:[#allocation5 + $0x440] sm:$0xff]  ;;  %v3252_v27 = vld [vmem:[#allocation5 + $0x410] sm:$0xff]  ;;  %v3267_v17 = vld [vmem:[#allocation5 + $0x488] sm:$0xff] }
 0x48d   :  { %v6950_v52 = vpack.c.bf16 %v3258_v23, %v3250_v15  ;;  %v7014_v2 = vpack.c.bf16 %v3260_v5, %v3252_v27  ;;  %v6952_v18 = vpack.c.bf16 %v3275_v21, %v3267_v17  ;;  %v3308_v15 = vld [vmem:[#allocation5 + $0x5d0] sm:$0xff]  ;;  %v3315_v27 = vld [vmem:[#allocation5 + $0x608] sm:$0xff]  ;;  %v3317_v5 = vld [vmem:[#allocation5 + $0x618] sm:$0xff] }
 0x48e   :  { %v3325_v17 = vld [vmem:[#allocation5 + $0x658] sm:$0xff]  ;;  %v3314_v21 = vld [vmem:[#allocation5 + $0x600] sm:$0xff] }
 0x48f   :  { %6939 = vmatpush1.bf16.msra.mxu0 %v6938_v42  ;;  %7003 = vmatpush1.bf16.msra.mxu1 %v7002_v55  ;;  %v3274_v42 = vld [vmem:[#allocation5 + $0x4c0] sm:$0xff]  ;;  %v7016_v55 = vpack.c.bf16 %v3277_v48, %v3269_v37 }
 0x490   :  { %6941 = vmatprep.subr.bf16.mxu0 %v6940_v16  ;;  %7005 = vmatprep.subr.bf16.mxu1 %v7004_v29  ;;  %v6954_v16 = vpack.c.bf16 %v3274_v42, %v3266_v22  ;;  %v3283_v29 = vld [vmem:[#allocation5 + $0x508] sm:$0xff]  ;;  %v3322_v37 = vld [vmem:[#allocation5 + $0x640] sm:$0xff]  ;;  %v3316_v22 = vld [vmem:[#allocation5 + $0x610] sm:$0xff] }
 0x491   :  { %v6956_v14 = vpack.c.bf16 %v3291_v19, %v3283_v29  ;;  %v6966_v48 = vpack.c.bf16 %v3322_v37, %v3314_v21  ;;  %v3324_v42 = vld [vmem:[#allocation5 + $0x650] sm:$0xff]  ;;  %v3341_v29 = vld [vmem:[#allocation5 + $0x6d8] sm:$0xff]  ;;  %v3330_v19 = vld [vmem:[#allocation5 + $0x680] sm:$0xff] }
 0x492   :  { %v3372_v21 = vld [vmem:[#allocation5 + $0x7d0] sm:$0xff] }
 0x493   :  { %6943 = vmatpush1.bf16.msra.mxu0 %v6942_v8  ;;  %7007 = vmatpush1.bf16.msra.mxu1 %v7006_v11  ;;  %v3290_v8 = vld [vmem:[#allocation5 + $0x540] sm:$0xff]  ;;  %v7020_v11 = vpack.c.bf16 %v3293_v38, %v3285_v33 }
 0x494   :  { %6945 = vmatprep.subr.bf16.mxu0 %v6944_v54  ;;  %7009 = vmatprep.subr.bf16.mxu1 %v7008_v10  ;;  %v6958_v54 = vpack.c.bf16 %v3290_v8, %v3282_v41  ;;  %v7022_v10 = vpack.c.bf16 %v3292_v60, %v3284_v58  ;;  %v3338_v33 = vld [vmem:[#allocation5 + $0x6c0] sm:$0xff]  ;;  %v3332_v41 = vld [vmem:[#allocation5 + $0x690] sm:$0xff]  ;;  %v3355_v58 = vld [vmem:[#allocation5 + $0x748] sm:$0xff] }
 0x495   :  { %v6970_v38 = vpack.c.bf16 %v3338_v33, %v3330_v19  ;;  %v3340_v8 = vld [vmem:[#allocation5 + $0x6d0] sm:$0xff]  ;;  %v3349_v60 = vld [vmem:[#allocation5 + $0x718] sm:$0xff] }
 0x497   :  { %6947 = vmatpush1.bf16.msra.mxu0 %v6946_v3  ;;  %7011 = vmatpush1.bf16.msra.mxu1 %v7010_v12  ;;  %v3301_v3 = vld [vmem:[#allocation5 + $0x598] sm:$0xff]  ;;  %v6960_v12 = vpack.c.bf16 %v3307_v30, %v3299_v62 }
 0x498   :  { %6949 = vmatprep.subr.bf16.mxu0 %v6948_v47  ;;  %7013 = vmatprep.subr.bf16.mxu1 %v7012_v39  ;;  %v7024_v47 = vpack.c.bf16 %v3309_v4, %v3301_v3  ;;  %v3300_v39 = vld [vmem:[#allocation5 + $0x590] sm:$0xff]  ;;  %v3346_v3 = vld [vmem:[#allocation5 + $0x700] sm:$0xff] }
 0x499   :  { %v7026_v23 = vpack.c.bf16 %v3308_v15, %v3300_v39  ;;  %v3348_v4 = vld [vmem:[#allocation5 + $0x710] sm:$0xff] }
 0x49a   :  { %v7038_v39 = vpack.c.bf16 %v3356_v44, %v3348_v4 }
 0x49b   :  { %6951 = vmatpush1.bf16.msra.mxu0 %v6950_v52  ;;  %7015 = vmatpush1.bf16.msra.mxu1 %v7014_v2  ;;  %v3323_v52 = vld [vmem:[#allocation5 + $0x648] sm:$0xff] }
 0x49c   :  { %6953 = vmatprep.subr.bf16.mxu0 %v6952_v18  ;;  %7017 = vmatprep.subr.bf16.mxu1 %v7016_v55  ;;  %v6964_v2 = vpack.c.bf16 %v3323_v52, %v3315_v27  ;;  %v7028_v18 = vpack.c.bf16 %v3325_v17, %v3317_v5  ;;  %v7030_v55 = vpack.c.bf16 %v3324_v42, %v3316_v22  ;;  %v3373_v27 = vld [vmem:[#allocation5 + $0x7d8] sm:$0xff]  ;;  %v3362_v52 = vld [vmem:[#allocation5 + $0x780] sm:$0xff]  ;;  %v3364_v17 = vld [vmem:[#allocation5 + $0x790] sm:$0xff] }
 0x49d   :  { %v3135_v22 = vld [vmem:[#allocation5 + $0x68] sm:$0xff]  ;;  %v3129_v42 = vld [vmem:[#allocation5 + $0x38] sm:$0xff] }
 0x49f   :  { %6955 = vmatpush1.bf16.msra.mxu0 %v6954_v16  ;;  %7019 = vmatpush1.bf16.msra.mxu1 %v7018_v7  ;;  %v3331_v16 = vld [vmem:[#allocation5 + $0x688] sm:$0xff] }
 0x4a0   :  { %6957 = vmatprep.subr.bf16.mxu0 %v6956_v14  ;;  %7021 = vmatprep.subr.bf16.mxu1 %v7020_v11  ;;  %v6968_v7 = vpack.c.bf16 %v3339_v63, %v3331_v16  ;;  %v7032_v14 = vpack.c.bf16 %v3341_v29, %v3333_v13  ;;  %v3347_v11 = vld [vmem:[#allocation5 + $0x708] sm:$0xff]  ;;  %v3137_v16 = vld [vmem:[#allocation5 + $0x78] sm:$0xff] }
 0x4a1   :  { %v6972_v62 = vpack.c.bf16 %v3355_v58, %v3347_v11  ;;  %v7108_v63 = vpack.c.bf16 %v3137_v16, %v3129_v42 }
 0x4a3   :  { %6959 = vmatpush1.bf16.msra.mxu0 %v6958_v54  ;;  %7023 = vmatpush1.bf16.msra.mxu1 %v7022_v10  ;;  %v7034_v54 = vpack.c.bf16 %v3340_v8, %v3332_v41  ;;  %v3357_v10 = vld [vmem:[#allocation5 + $0x758] sm:$0xff] }
 0x4a4   :  { %6961 = vmatprep.subr.bf16.mxu0 %v6960_v12  ;;  %7025 = vmatprep.subr.bf16.mxu1 %v7024_v47  ;;  %v7036_v30 = vpack.c.bf16 %v3357_v10, %v3349_v60  ;;  %v3354_v12 = vld [vmem:[#allocation5 + $0x740] sm:$0xff]  ;;  %v3363_v47 = vld [vmem:[#allocation5 + $0x788] sm:$0xff] }
 0x4a5   :  { %v6974_v34 = vpack.c.bf16 %v3354_v12, %v3346_v3 }
 0x4a7   :  { %6963 = vmatpush1.bf16.msra.mxu0 %v6962_v9  ;;  %7027 = vmatpush1.bf16.msra.mxu1 %v7026_v23  ;;  %v3371_v9 = vld [vmem:[#allocation5 + $0x7c8] sm:$0xff]  ;;  %v3365_v23 = vld [vmem:[#allocation5 + $0x798] sm:$0xff] }
 0x4a8   :  { %6965 = vmatprep.subr.bf16.mxu0 %v6964_v2  ;;  %7029 = vmatprep.subr.bf16.mxu1 %v7028_v18  ;;  %v6976_v15 = vpack.c.bf16 %v3371_v9, %v3363_v47  ;;  %v7040_v5 = vpack.c.bf16 %v3373_v27, %v3365_v23  ;;  %v3370_v2 = vld [vmem:[#allocation5 + $0x7c0] sm:$0xff]  ;;  %v7042_v18 = vpack.c.bf16 %v3372_v21, %v3364_v17 }
 0x4a9   :  { %v6978_v37 = vpack.c.bf16 %v3370_v2, %v3362_v52 }
 0x4ab   :  { %6967 = vmatpush1.bf16.msra.mxu0 %v6966_v48  ;;  %7031 = vmatpush1.bf16.msra.mxu1 %v7030_v55  ;;  %v3127_v48 = vld [vmem:[#allocation5 + $0x28] sm:$0xff] }
 0x4ac   :  { %6969 = vmatprep.subr.bf16.mxu0 %v6968_v7  ;;  %7033 = vmatprep.subr.bf16.mxu1 %v7032_v14  ;;  %v7044_v55 = vpack.c.bf16 %v3135_v22, %v3127_v48 }
 0x4af   :  { %6971 = vmatpush1.bf16.msra.mxu0 %v6970_v38  ;;  %7035 = vmatpush1.bf16.msra.mxu1 %v7034_v54 }
 0x4b0   :  { %6973 = vmatprep.subr.bf16.mxu0 %v6972_v62  ;;  %7037 = vmatprep.subr.bf16.mxu1 %v7036_v30 }
 0x4b3   :  { %6975 = vmatpush1.bf16.msra.mxu0 %v6974_v34  ;;  %7039 = vmatpush1.bf16.msra.mxu1 %v7038_v39 }
 0x4b4   :  { %6977 = vmatprep.subr.bf16.mxu0 %v6976_v15  ;;  %7041 = vmatprep.subr.bf16.mxu1 %v7040_v5 }
 0x4b7   :  { %6979 = vmatpush1.bf16.msra.mxu0 %v6978_v37  ;;  %7043 = vmatpush1.bf16.msra.mxu1 %v7042_v18 }
 0x4b8   :  { %7045 = vmatprep.subr.bf16.mxu0 %v7044_v55  ;;  %7109 = vmatprep.subr.bf16.mxu1 %v7108_v63 }
 0x50d   :  { %v2832_v13 = vpop.f32.mrb[22].mxu0  ;;  %v2903_v7 = vpop.f32.mrb[22].mxu1 }
 0x50e   :  { %v3050_v29 = vadd.f32 %v2832_v13, %v8768_v24  ;;  %v2834_v19 = vpop.f32.mrb[23].mxu0  ;;  %v2905_v33 = vpop.f32.mrb[23].mxu1  ;;  %v8010_v38 = vadd.f32 %v2903_v7, %v8827_v31 }
 0x50f   :  { %v3051_v14 = vadd.f32 %v2834_v19, %v8771_v6  ;;  %v8011_v41 = vadd.f32 %v2905_v33, %v8830_v57 }
 0x510   :  { %v5805_v8 = vmul.f32 -1.442695, %v3050_v29  ;;  %v5807_v11 = vmul.f32 -1.442695, %v8010_v38  ;;  %v3134_v38 = vld [vmem:[#allocation5 + $0x60] sm:$0xff] }
 0x511   :  { %v5806_v54 = vmul.f32 -1.442695, %v3051_v14  ;;  %v5808_v58 = vmul.f32 -1.442695, %v8011_v41  ;;  %v3128_v41 = vld [vmem:[#allocation5 + $0x30] sm:$0xff] }
 0x512   :  { %8200 = vpow2.f32 %v5805_v8 }
 0x513   :  { %8202 = vpow2.f32 %v5807_v11  ;;  %v3143_v11 = vld [vmem:[#allocation5 + $0xa8] sm:$0xff] }
 0x514   :  { %8204 = vpow2.f32 %v5806_v54 }
 0x515   :  { %8206 = vpow2.f32 %v5808_v58  ;;  %v3151_v58 = vld [vmem:[#allocation5 + $0xe8] sm:$0xff] }
 0x51c   :  { %v8201_v60 = vpop.eup %8200 }
 0x51d   :  { %v8203_v10 = vpop.eup %8202  ;;  %v3064_v30 = vadd.f32 1.0, %v8201_v60  ;;  %v3145_v60 = vld [vmem:[#allocation5 + $0xb8] sm:$0xff] }
 0x51e   :  { %v8205_v62 = vpop.eup %8204  ;;  %v3076_v3 = vadd.f32 1.0, %v8203_v10  ;;  %v3153_v10 = vld [vmem:[#allocation5 + $0xf8] sm:$0xff] }
 0x51f   :  { %v8207_v24 = vpop.eup %8206  ;;  %v3065_v12 = vadd.f32 1.0, %v8205_v62  ;;  %8208 = vrcp.f32 %v3064_v30 }
 0x520   :  { %v3077_v6 = vadd.f32 1.0, %v8207_v24  ;;  %8210 = vrcp.f32 %v3076_v3  ;;  %v3142_v3 = vld [vmem:[#allocation5 + $0xa0] sm:$0xff] }
 0x521   :  { %8212 = vrcp.f32 %v3065_v12  ;;  %v3150_v12 = vld [vmem:[#allocation5 + $0xe0] sm:$0xff] }
 0x522   :  { %8214 = vrcp.f32 %v3077_v6 }
 0x529   :  { %v8209_v5 = vpop.eup %8208 }
 0x52a   :  { %v8211_v2 = vpop.eup %8210 }
 0x52b   :  { %v8213_v17 = vpop.eup %8212  ;;  %v3096_v48 = vmul.f32 %v8211_v2, %v8911_v56  ;;  %v3126_v56 = vld [vmem:[#allocation5 + $0x20] sm:$0xff] }
 0x52c   :  { %v8215_v21 = vpop.eup %8214  ;;  %v7046_v24 = vpack.c.bf16 %v3134_v38, %v3126_v56  ;;  %v3166_v2 = vld [vmem:[#allocation5 + $0x160] sm:$0xff]  ;;  %v3184_v38 = vld [vmem:[#allocation5 + $0x1f0] sm:$0xff] }
 0x52d   :  { %v3097_v55 = vmul.f32 %v8215_v21, %v8913_v25  ;;  %v3136_v25 = vld [vmem:[#allocation5 + $0x70] sm:$0xff] }
 0x52e   :  { %v7110_v30 = vpack.c.bf16 %v3136_v25, %v3128_v41  ;;  %v3191_v41 = vld [vmem:[#allocation5 + $0x228] sm:$0xff] }
 0x52f   :  { %v3199_v25 = vld [vmem:[#allocation5 + $0x268] sm:$0xff] }
 0x54d   :  { %v2974_v4 = vpop.f32.mrb[6].mxu0  ;;  %v3045_v34 = vpop.f32.mrb[38].mxu1 }
 0x54e   :  { %v8026_v44 = vadd.f32 %v2974_v4, %v8833_v1  ;;  %v8042_v47 = vadd.f32 %v3045_v34, %v8849_v0  ;;  %v2976_v9 = vpop.f32.mrb[7].mxu0  ;;  %v3047_v39 = vpop.f32.mrb[39].mxu1  ;;  %v3144_v4 = vld [vmem:[#allocation5 + $0xb0] sm:$0xff] }
 0x54f   :  { %v8027_v15 = vadd.f32 %v2976_v9, %v8836_v59  ;;  %v8043_v23 = vadd.f32 %v3047_v39, %v8852_v36  ;;  %v3152_v34 = vld [vmem:[#allocation5 + $0xf0] sm:$0xff]  ;;  %v7112_v9 = vpack.c.bf16 %v3153_v10, %v3145_v60  ;;  %v3167_v39 = vld [vmem:[#allocation5 + $0x168] sm:$0xff]  ;;  %v3190_v60 = vld [vmem:[#allocation5 + $0x220] sm:$0xff] }
 0x550   :  { %8216 = vtanh.f32 %v8026_v44  ;;  %v5809_v27 = vmul.f32 -1.442695, %v8042_v47  ;;  %v3159_v44 = vld [vmem:[#allocation5 + $0x128] sm:$0xff]  ;;  %v7048_v47 = vpack.c.bf16 %v3151_v58, %v3143_v11  ;;  %v3201_v11 = vld [vmem:[#allocation5 + $0x278] sm:$0xff]  ;;  %v3198_v10 = vld [vmem:[#allocation5 + $0x260] sm:$0xff] }
 0x551   :  { %8218 = vtanh.f32 %v8027_v15  ;;  %v5810_v52 = vmul.f32 -1.442695, %v8043_v23  ;;  %v3161_v15 = vld [vmem:[#allocation5 + $0x138] sm:$0xff] }
 0x552   :  { %8220 = vpow2.f32 %v5809_v27  ;;  %v3169_v23 = vld [vmem:[#allocation5 + $0x178] sm:$0xff]  ;;  %v7050_v27 = vpack.c.bf16 %v3150_v12, %v3142_v3  ;;  %v3192_v3 = vld [vmem:[#allocation5 + $0x230] sm:$0xff] }
 0x553   :  { %8222 = vpow2.f32 %v5810_v52  ;;  %v7114_v52 = vpack.c.bf16 %v3152_v34, %v3144_v4  ;;  %v7116_v21 = vpack.c.bf16 %v3169_v23, %v3161_v15  ;;  %v3200_v12 = vld [vmem:[#allocation5 + $0x270] sm:$0xff]  ;;  %v3207_v4 = vld [vmem:[#allocation5 + $0x2a8] sm:$0xff]  ;;  %v3206_v15 = vld [vmem:[#allocation5 + $0x2a0] sm:$0xff] }
 0x554   :  { %v3215_v34 = vld [vmem:[#allocation5 + $0x2e8] sm:$0xff]  ;;  %v3214_v23 = vld [vmem:[#allocation5 + $0x2e0] sm:$0xff] }
 0x55a   :  { %v8217_v37 = vpop.eup %8216 }
 0x55b   :  { %v8219_v18 = vpop.eup %8218  ;;  %v3098_v22 = vmul.f32 %v8217_v37, %v8209_v5  ;;  %v3158_v5 = vld [vmem:[#allocation5 + $0x120] sm:$0xff]  ;;  %v3160_v37 = vld [vmem:[#allocation5 + $0x130] sm:$0xff] }
 0x55c   :  { %v8221_v42 = vpop.eup %8220  ;;  %v3099_v16 = vmul.f32 %v8219_v18, %v8213_v17  ;;  %v7052_v17 = vpack.c.bf16 %v3167_v39, %v3159_v44  ;;  %v3168_v18 = vld [vmem:[#allocation5 + $0x170] sm:$0xff]  ;;  %v3209_v44 = vld [vmem:[#allocation5 + $0x2b8] sm:$0xff]  ;;  %v7126_v39 = vpack.c.bf16 %v3200_v12, %v3192_v3 }
 0x55d   :  { %v8223_v63 = vpop.eup %8222  ;;  %v8939_v13 = vadd.f32 %v3098_v22, %v3096_v48  ;;  %v3090_v7 = vadd.f32 1.0, %v8221_v42  ;;  %v3175_v48 = vld [vmem:[#allocation5 + $0x1a8] sm:$0xff]  ;;  %v3177_v42 = vld [vmem:[#allocation5 + $0x1b8] sm:$0xff] }
 0x55e   :  { %v8941_v29 = vadd.f32 %v3099_v16, %v3097_v55  ;;  %v3091_v19 = vadd.f32 1.0, %v8223_v63  ;;  %v3183_v22 = vld [vmem:[#allocation5 + $0x1e8] sm:$0xff]  ;;  %v3185_v55 = vld [vmem:[#allocation5 + $0x1f8] sm:$0xff]  ;;  %v7054_v16 = vpack.c.bf16 %v3166_v2, %v3158_v5  ;;  %v7118_v63 = vpack.c.bf16 %v3168_v18, %v3160_v37  ;;  %v3208_v5 = vld [vmem:[#allocation5 + $0x2b0] sm:$0xff] }
 0x55f   :  { %8224 = vtanh.f32 %v8939_v13  ;;  %v7120_v56 = vpack.c.bf16 %v3185_v55, %v3177_v42  ;;  %v3216_v2 = vld [vmem:[#allocation5 + $0x2f0] sm:$0xff]  ;;  %v3225_v37 = vld [vmem:[#allocation5 + $0x338] sm:$0xff]  ;;  %v3222_v42 = vld [vmem:[#allocation5 + $0x320] sm:$0xff] }
 0x560   :  { %8226 = vrcp.f32 %v3090_v7  ;;  %v3174_v7 = vld [vmem:[#allocation5 + $0x1a0] sm:$0xff]  ;;  %v3233_v18 = vld [vmem:[#allocation5 + $0x378] sm:$0xff] }
 0x561   :  { %8228 = vtanh.f32 %v8941_v29  ;;  %v3230_v55 = vld [vmem:[#allocation5 + $0x360] sm:$0xff]  ;;  %v3257_v3 = vld [vmem:[#allocation5 + $0x438] sm:$0xff] }
 0x562   :  { %8230 = vrcp.f32 %v3091_v19  ;;  %v3182_v19 = vld [vmem:[#allocation5 + $0x1e0] sm:$0xff]  ;;  %v3265_v12 = vld [vmem:[#allocation5 + $0x478] sm:$0xff] }
 0x569   :  { %v8225_v33 = vpop.eup %8224 }
 0x56a   :  { %v8227_v14 = vpop.eup %8226 }
 0x56b   :  { %v8229_v8 = vpop.eup %8228  ;;  %v8947_v6 = vmul.f32 %v8227_v14, %v8225_v33  ;;  %v7056_v33 = vpack.c.bf16 %v3183_v22, %v3175_v48  ;;  %v3176_v14 = vld [vmem:[#allocation5 + $0x1b0] sm:$0xff]  ;;  %v7066_v48 = vpack.c.bf16 %v3214_v23, %v3206_v15  ;;  %v7130_v22 = vpack.c.bf16 %v3216_v2, %v3208_v5  ;;  %v3273_v5 = vld [vmem:[#allocation5 + $0x4b8] sm:$0xff] }
 0x56c   :  { %v8231_v54 = vpop.eup %8230  ;;  %v7122_v58 = vpack.c.bf16 %v3184_v38, %v3176_v14  ;;  %v3241_v14 = vld [vmem:[#allocation5 + $0x3b8] sm:$0xff]  ;;  %v3256_v15 = vld [vmem:[#allocation5 + $0x430] sm:$0xff] }
 0x56d   :  { %v8945_v62 = vmul.f32 %v8231_v54, %v8229_v8  ;;  %v3193_v8 = vld [vmem:[#allocation5 + $0x238] sm:$0xff]  ;;  %v7058_v54 = vpack.c.bf16 %v3182_v19, %v3174_v7  ;;  %v3224_v7 = vld [vmem:[#allocation5 + $0x330] sm:$0xff] }
 0x56e   :  { %v3232_v19 = vld [vmem:[#allocation5 + $0x370] sm:$0xff]  ;;  %v3249_v38 = vld [vmem:[#allocation5 + $0x3f8] sm:$0xff] }
 0x56f   :  { %3442 = vmatprep.mubr.f32.mxu0 %v8945_v62  ;;  %3513 = vmatprep.mubr.f32.mxu1 %v8945_v62  ;;  %v3264_v23 = vld [vmem:[#allocation5 + $0x470] sm:$0xff]  ;;  %v3281_v2 = vld [vmem:[#allocation5 + $0x4f8] sm:$0xff] }
 0x570   :  { %3443 = vmatmul.mubr.f32.vlgmr.msra.gmra.mrb[24].mxu0 %v8947_v6  ;;  %3514 = vmatmul.mubr.f32.vlgmr.msra.gmra.mrb[24].mxu1 %v8947_v6 }
 0x571   :  { %7047 = vmatpush1.bf16.msra.mxu0 %v7046_v24  ;;  %7111 = vmatpush1.bf16.msra.mxu1 %v7110_v30  ;;  %v7060_v24 = vpack.c.bf16 %v3199_v25, %v3191_v41  ;;  %v7124_v30 = vpack.c.bf16 %v3201_v11, %v3193_v8  ;;  %v7070_v41 = vpack.c.bf16 %v3230_v55, %v3222_v42  ;;  %v3238_v8 = vld [vmem:[#allocation5 + $0x3a0] sm:$0xff]  ;;  %v3272_v42 = vld [vmem:[#allocation5 + $0x4b0] sm:$0xff] }
 0x572   :  { %3584 = vmatprep.mubr.f32.mxu0 %v8945_v62  ;;  %3655 = vmatprep.mubr.f32.mxu1 %v8945_v62  ;;  %v7134_v25 = vpack.c.bf16 %v3232_v19, %v3224_v7  ;;  %v3246_v11 = vld [vmem:[#allocation5 + $0x3e0] sm:$0xff]  ;;  %v3280_v55 = vld [vmem:[#allocation5 + $0x4f0] sm:$0xff]  ;;  %v3289_v7 = vld [vmem:[#allocation5 + $0x538] sm:$0xff] }
 0x573   :  { %7049 = vmatprep.subr.bf16.mxu0 %v7048_v47  ;;  %7113 = vmatprep.subr.bf16.mxu1 %v7112_v9  ;;  %v3217_v47 = vld [vmem:[#allocation5 + $0x2f8] sm:$0xff]  ;;  %v7062_v9 = vpack.c.bf16 %v3198_v10, %v3190_v60  ;;  %v3240_v60 = vld [vmem:[#allocation5 + $0x3b0] sm:$0xff] }
 0x574   :  { %v3248_v10 = vld [vmem:[#allocation5 + $0x3f0] sm:$0xff]  ;;  %v3297_v19 = vld [vmem:[#allocation5 + $0x578] sm:$0xff] }
 0x575   :  { %7051 = vmatpush1.bf16.msra.mxu0 %v7050_v27  ;;  %7115 = vmatpush1.bf16.msra.mxu1 %v7114_v52  ;;  %v7064_v27 = vpack.c.bf16 %v3215_v34, %v3207_v4  ;;  %v7128_v52 = vpack.c.bf16 %v3217_v47, %v3209_v44  ;;  %v7074_v4 = vpack.c.bf16 %v3246_v11, %v3238_v8  ;;  %v3254_v44 = vld [vmem:[#allocation5 + $0x420] sm:$0xff]  ;;  %v3288_v8 = vld [vmem:[#allocation5 + $0x530] sm:$0xff] }
 0x576   :  { %7053 = vmatprep.subr.bf16.mxu0 %v7052_v17  ;;  %7117 = vmatprep.subr.bf16.mxu1 %v7116_v21  ;;  %v3223_v17 = vld [vmem:[#allocation5 + $0x328] sm:$0xff]  ;;  %v7138_v34 = vpack.c.bf16 %v3248_v10, %v3240_v60  ;;  %v3262_v47 = vld [vmem:[#allocation5 + $0x460] sm:$0xff]  ;;  %v3296_v11 = vld [vmem:[#allocation5 + $0x570] sm:$0xff] }
 0x577   :  { %v3231_v21 = vld [vmem:[#allocation5 + $0x368] sm:$0xff]  ;;  %v3305_v60 = vld [vmem:[#allocation5 + $0x5b8] sm:$0xff] }
 0x578   :  { %v3313_v10 = vld [vmem:[#allocation5 + $0x5f8] sm:$0xff] }
 0x579   :  { %7055 = vmatpush1.bf16.msra.mxu0 %v7054_v16  ;;  %7119 = vmatpush1.bf16.msra.mxu1 %v7118_v63  ;;  %v7068_v16 = vpack.c.bf16 %v3231_v21, %v3223_v17  ;;  %v7132_v63 = vpack.c.bf16 %v3233_v18, %v3225_v37  ;;  %v7078_v17 = vpack.c.bf16 %v3262_v47, %v3254_v44  ;;  %v3270_v37 = vld [vmem:[#allocation5 + $0x4a0] sm:$0xff]  ;;  %v3304_v44 = vld [vmem:[#allocation5 + $0x5b0] sm:$0xff] }
 0x57a   :  { %7057 = vmatprep.subr.bf16.mxu0 %v7056_v33  ;;  %7121 = vmatprep.subr.bf16.mxu1 %v7120_v56  ;;  %v3239_v33 = vld [vmem:[#allocation5 + $0x3a8] sm:$0xff]  ;;  %v7142_v21 = vpack.c.bf16 %v3264_v23, %v3256_v15  ;;  %v3278_v18 = vld [vmem:[#allocation5 + $0x4e0] sm:$0xff]  ;;  %v3312_v47 = vld [vmem:[#allocation5 + $0x5f0] sm:$0xff] }
 0x57b   :  { %v3247_v56 = vld [vmem:[#allocation5 + $0x3e8] sm:$0xff]  ;;  %v3321_v15 = vld [vmem:[#allocation5 + $0x638] sm:$0xff] }
 0x57c   :  { %v3329_v23 = vld [vmem:[#allocation5 + $0x678] sm:$0xff] }
 0x57d   :  { %7059 = vmatpush1.bf16.msra.mxu0 %v7058_v54  ;;  %7123 = vmatpush1.bf16.msra.mxu1 %v7122_v58  ;;  %v7072_v54 = vpack.c.bf16 %v3247_v56, %v3239_v33  ;;  %v7136_v58 = vpack.c.bf16 %v3249_v38, %v3241_v14  ;;  %v7082_v33 = vpack.c.bf16 %v3278_v18, %v3270_v37  ;;  %v3286_v14 = vld [vmem:[#allocation5 + $0x520] sm:$0xff]  ;;  %v3320_v37 = vld [vmem:[#allocation5 + $0x630] sm:$0xff] }
 0x57e   :  { %7061 = vmatprep.subr.bf16.mxu0 %v7060_v24  ;;  %7125 = vmatprep.subr.bf16.mxu1 %v7124_v30  ;;  %v3255_v24 = vld [vmem:[#allocation5 + $0x428] sm:$0xff]  ;;  %v7146_v56 = vpack.c.bf16 %v3280_v55, %v3272_v42  ;;  %v3294_v38 = vld [vmem:[#allocation5 + $0x560] sm:$0xff]  ;;  %v3328_v18 = vld [vmem:[#allocation5 + $0x670] sm:$0xff] }
 0x57f   :  { %v3263_v30 = vld [vmem:[#allocation5 + $0x468] sm:$0xff]  ;;  %v3337_v42 = vld [vmem:[#allocation5 + $0x6b8] sm:$0xff] }
 0x580   :  { %v3345_v55 = vld [vmem:[#allocation5 + $0x6f8] sm:$0xff] }
 0x581   :  { %7063 = vmatpush1.bf16.msra.mxu0 %v7062_v9  ;;  %7127 = vmatpush1.bf16.msra.mxu1 %v7126_v39  ;;  %v7076_v9 = vpack.c.bf16 %v3263_v30, %v3255_v24  ;;  %v7140_v39 = vpack.c.bf16 %v3265_v12, %v3257_v3  ;;  %v7086_v24 = vpack.c.bf16 %v3294_v38, %v3286_v14  ;;  %v3302_v3 = vld [vmem:[#allocation5 + $0x5a0] sm:$0xff]  ;;  %v3336_v14 = vld [vmem:[#allocation5 + $0x6b0] sm:$0xff] }
 0x582   :  { %7065 = vmatprep.subr.bf16.mxu0 %v7064_v27  ;;  %7129 = vmatprep.subr.bf16.mxu1 %v7128_v52  ;;  %v3271_v27 = vld [vmem:[#allocation5 + $0x4a8] sm:$0xff]  ;;  %v7150_v30 = vpack.c.bf16 %v3296_v11, %v3288_v8  ;;  %v3310_v12 = vld [vmem:[#allocation5 + $0x5e0] sm:$0xff]  ;;  %v3344_v38 = vld [vmem:[#allocation5 + $0x6f0] sm:$0xff] }
 0x583   :  { %v3279_v52 = vld [vmem:[#allocation5 + $0x4e8] sm:$0xff]  ;;  %v3353_v8 = vld [vmem:[#allocation5 + $0x738] sm:$0xff] }
 0x584   :  { %v3361_v11 = vld [vmem:[#allocation5 + $0x778] sm:$0xff] }
 0x585   :  { %7067 = vmatpush1.bf16.msra.mxu0 %v7066_v48  ;;  %7131 = vmatpush1.bf16.msra.mxu1 %v7130_v22  ;;  %v7080_v48 = vpack.c.bf16 %v3279_v52, %v3271_v27  ;;  %v7144_v22 = vpack.c.bf16 %v3281_v2, %v3273_v5  ;;  %v7090_v27 = vpack.c.bf16 %v3310_v12, %v3302_v3  ;;  %v3318_v5 = vld [vmem:[#allocation5 + $0x620] sm:$0xff]  ;;  %v3352_v3 = vld [vmem:[#allocation5 + $0x730] sm:$0xff] }
 0x586   :  { %7069 = vmatprep.subr.bf16.mxu0 %v7068_v16  ;;  %7133 = vmatprep.subr.bf16.mxu1 %v7132_v63  ;;  %v3287_v16 = vld [vmem:[#allocation5 + $0x528] sm:$0xff]  ;;  %v7154_v52 = vpack.c.bf16 %v3312_v47, %v3304_v44  ;;  %v3326_v2 = vld [vmem:[#allocation5 + $0x660] sm:$0xff]  ;;  %v3360_v12 = vld [vmem:[#allocation5 + $0x770] sm:$0xff] }
 0x587   :  { %v3295_v63 = vld [vmem:[#allocation5 + $0x568] sm:$0xff]  ;;  %v3369_v44 = vld [vmem:[#allocation5 + $0x7b8] sm:$0xff] }
 0x588   :  { %v3377_v47 = vld [vmem:[#allocation5 + $0x7f8] sm:$0xff] }
 0x589   :  { %7071 = vmatpush1.bf16.msra.mxu0 %v7070_v41  ;;  %7135 = vmatpush1.bf16.msra.mxu1 %v7134_v25  ;;  %v7084_v41 = vpack.c.bf16 %v3295_v63, %v3287_v16  ;;  %v7148_v25 = vpack.c.bf16 %v3297_v19, %v3289_v7  ;;  %v7094_v16 = vpack.c.bf16 %v3326_v2, %v3318_v5  ;;  %v3334_v7 = vld [vmem:[#allocation5 + $0x6a0] sm:$0xff]  ;;  %v3368_v5 = vld [vmem:[#allocation5 + $0x7b0] sm:$0xff] }
 0x58a   :  { %7073 = vmatprep.subr.bf16.mxu0 %v7072_v54  ;;  %7137 = vmatprep.subr.bf16.mxu1 %v7136_v58  ;;  %v3303_v54 = vld [vmem:[#allocation5 + $0x5a8] sm:$0xff]  ;;  %v7158_v63 = vpack.c.bf16 %v3328_v18, %v3320_v37  ;;  %v3342_v19 = vld [vmem:[#allocation5 + $0x6e0] sm:$0xff]  ;;  %v3376_v2 = vld [vmem:[#allocation5 + $0x7f0] sm:$0xff] }
 0x58b   :  { %v3311_v58 = vld [vmem:[#allocation5 + $0x5e8] sm:$0xff] }
 0x58c   :  { %v3735_v37 = vld [vmem:[#allocation5 + $0x8] sm:$0xff] }
 0x58d   :  { %7075 = vmatpush1.bf16.msra.mxu0 %v7074_v4  ;;  %7139 = vmatpush1.bf16.msra.mxu1 %v7138_v34  ;;  %v7088_v4 = vpack.c.bf16 %v3311_v58, %v3303_v54  ;;  %v7152_v34 = vpack.c.bf16 %v3313_v10, %v3305_v60  ;;  %v7098_v54 = vpack.c.bf16 %v3342_v19, %v3334_v7  ;;  %v3350_v60 = vld [vmem:[#allocation5 + $0x720] sm:$0xff]  ;;  %v3743_v18 = vld [vmem:[#allocation5 + $0x48] sm:$0xff]  ;;  %v3736_v19 = vld [vmem:[#allocation5 + $0x10] sm:$0xff] }
 0x58e   :  { %7077 = vmatprep.subr.bf16.mxu0 %v7076_v9  ;;  %7141 = vmatprep.subr.bf16.mxu1 %v7140_v39  ;;  %v3319_v9 = vld [vmem:[#allocation5 + $0x628] sm:$0xff]  ;;  %v7162_v58 = vpack.c.bf16 %v3344_v38, %v3336_v14  ;;  %v3358_v10 = vld [vmem:[#allocation5 + $0x760] sm:$0xff] }
 0x58f   :  { %v3327_v39 = vld [vmem:[#allocation5 + $0x668] sm:$0xff] }
 0x590   :  { %v3759_v38 = vld [vmem:[#allocation5 + $0xc8] sm:$0xff] }
 0x591   :  { %7079 = vmatpush1.bf16.msra.mxu0 %v7078_v17  ;;  %7143 = vmatpush1.bf16.msra.mxu1 %v7142_v21  ;;  %v7092_v17 = vpack.c.bf16 %v3327_v39, %v3319_v9  ;;  %v7156_v21 = vpack.c.bf16 %v3329_v23, %v3321_v15  ;;  %v7102_v9 = vpack.c.bf16 %v3358_v10, %v3350_v60  ;;  %v3366_v15 = vld [vmem:[#allocation5 + $0x7a0] sm:$0xff]  ;;  %v3752_v60 = vld [vmem:[#allocation5 + $0x90] sm:$0xff] }
 0x592   :  { %7081 = vmatprep.subr.bf16.mxu0 %v7080_v48  ;;  %7145 = vmatprep.subr.bf16.mxu1 %v7144_v22  ;;  %v3335_v48 = vld [vmem:[#allocation5 + $0x6a8] sm:$0xff]  ;;  %v7166_v39 = vpack.c.bf16 %v3360_v12, %v3352_v3 }
 0x593   :  { %v3343_v22 = vld [vmem:[#allocation5 + $0x6e8] sm:$0xff] }
 0x594   :  { %v3775_v3 = vld [vmem:[#allocation5 + $0x148] sm:$0xff] }
 0x595   :  { %7083 = vmatpush1.bf16.msra.mxu0 %v7082_v33  ;;  %7147 = vmatpush1.bf16.msra.mxu1 %v7146_v56  ;;  %v7096_v33 = vpack.c.bf16 %v3343_v22, %v3335_v48  ;;  %v7160_v56 = vpack.c.bf16 %v3345_v55, %v3337_v42  ;;  %v3737_v48 = vld [vmem:[#allocation5 + $0x18] sm:$0xff]  ;;  %v7172_v22 = vpack.c.bf16 %v3743_v18, %v3735_v37  ;;  %v3734_v55 = vld [vmem:[#allocation5] sm:$0xff] }
 0x596   :  { %7085 = vmatprep.subr.bf16.mxu0 %v7084_v41  ;;  %7149 = vmatprep.subr.bf16.mxu1 %v7148_v25  ;;  %v3351_v41 = vld [vmem:[#allocation5 + $0x728] sm:$0xff]  ;;  %v3745_v42 = vld [vmem:[#allocation5 + $0x58] sm:$0xff]  ;;  %v3782_v18 = vld [vmem:[#allocation5 + $0x180] sm:$0xff] }
 0x597   :  { %v3359_v25 = vld [vmem:[#allocation5 + $0x768] sm:$0xff]  ;;  %v3793_v37 = vld [vmem:[#allocation5 + $0x1d8] sm:$0xff] }
 0x599   :  { %7087 = vmatpush1.bf16.msra.mxu0 %v7086_v24  ;;  %7151 = vmatpush1.bf16.msra.mxu1 %v7150_v30  ;;  %v7100_v24 = vpack.c.bf16 %v3359_v25, %v3351_v41  ;;  %v7164_v30 = vpack.c.bf16 %v3361_v11, %v3353_v8  ;;  %v3753_v41 = vld [vmem:[#allocation5 + $0x98] sm:$0xff] }
 0x59a   :  { %7089 = vmatprep.subr.bf16.mxu0 %v7088_v4  ;;  %7153 = vmatprep.subr.bf16.mxu1 %v7152_v34  ;;  %v3367_v4 = vld [vmem:[#allocation5 + $0x7a8] sm:$0xff]  ;;  %v3761_v25 = vld [vmem:[#allocation5 + $0xd8] sm:$0xff] }
 0x59b   :  { %v3375_v34 = vld [vmem:[#allocation5 + $0x7e8] sm:$0xff]  ;;  %v7240_v11 = vpack.c.bf16 %v3761_v25, %v3753_v41  ;;  %v3806_v41 = vld [vmem:[#allocation5 + $0x240] sm:$0xff]  ;;  %v3800_v25 = vld [vmem:[#allocation5 + $0x210] sm:$0xff] }
 0x59c   :  { %v7104_v23 = vpack.c.bf16 %v3375_v34, %v3367_v4  ;;  %v3769_v34 = vld [vmem:[#allocation5 + $0x118] sm:$0xff] }
 0x59d   :  { %7091 = vmatpush1.bf16.msra.mxu0 %v7090_v27  ;;  %7155 = vmatpush1.bf16.msra.mxu1 %v7154_v52  ;;  %v7168_v27 = vpack.c.bf16 %v3377_v47, %v3369_v44  ;;  %v3374_v52 = vld [vmem:[#allocation5 + $0x7e0] sm:$0xff]  ;;  %v3777_v44 = vld [vmem:[#allocation5 + $0x158] sm:$0xff] }
 0x59e   :  { %7093 = vmatprep.subr.bf16.mxu0 %v7092_v17  ;;  %7157 = vmatprep.subr.bf16.mxu1 %v7156_v21  ;;  %v7106_v17 = vpack.c.bf16 %v3374_v52, %v3366_v15  ;;  %v7170_v21 = vpack.c.bf16 %v3376_v2, %v3368_v5  ;;  %v3766_v47 = vld [vmem:[#allocation5 + $0x100] sm:$0xff]  ;;  %v3768_v15 = vld [vmem:[#allocation5 + $0x110] sm:$0xff]  ;;  %v3783_v52 = vld [vmem:[#allocation5 + $0x188] sm:$0xff] }
 0x59f   :  { %v3791_v5 = vld [vmem:[#allocation5 + $0x1c8] sm:$0xff]  ;;  %v3785_v2 = vld [vmem:[#allocation5 + $0x198] sm:$0xff] }
 0x5a1   :  { %7095 = vmatpush1.bf16.msra.mxu0 %v7094_v16  ;;  %7159 = vmatpush1.bf16.msra.mxu1 %v7158_v63  ;;  %v3742_v16 = vld [vmem:[#allocation5 + $0x40] sm:$0xff]  ;;  %v7236_v63 = vpack.c.bf16 %v3745_v42, %v3737_v48  ;;  %v3784_v42 = vld [vmem:[#allocation5 + $0x190] sm:$0xff] }
 0x5a2   :  { %7097 = vmatprep.subr.bf16.mxu0 %v7096_v33  ;;  %7161 = vmatprep.subr.bf16.mxu1 %v7160_v56  ;;  %v7174_v7 = vpack.c.bf16 %v3742_v16, %v3734_v55  ;;  %v3744_v33 = vld [vmem:[#allocation5 + $0x50] sm:$0xff]  ;;  %v3751_v56 = vld [vmem:[#allocation5 + $0x88] sm:$0xff]  ;;  %v3790_v48 = vld [vmem:[#allocation5 + $0x1c0] sm:$0xff] }
 0x5a3   :  { %v7238_v14 = vpack.c.bf16 %v3744_v33, %v3736_v19  ;;  %v7176_v8 = vpack.c.bf16 %v3759_v38, %v3751_v56  ;;  %v3792_v55 = vld [vmem:[#allocation5 + $0x1d0] sm:$0xff]  ;;  %v3799_v16 = vld [vmem:[#allocation5 + $0x208] sm:$0xff]  ;;  %v3809_v19 = vld [vmem:[#allocation5 + $0x258] sm:$0xff]  ;;  %v7186_v33 = vpack.c.bf16 %v3790_v48, %v3782_v18 }
 0x5a4   :  { %v7250_v56 = vpack.c.bf16 %v3792_v55, %v3784_v42  ;;  %v3798_v38 = vld [vmem:[#allocation5 + $0x200] sm:$0xff]  ;;  %v3840_v18 = vld [vmem:[#allocation5 + $0x350] sm:$0xff]  ;;  %v3847_v48 = vld [vmem:[#allocation5 + $0x388] sm:$0xff] }
 0x5a5   :  { %7099 = vmatpush1.bf16.msra.mxu0 %v7098_v54  ;;  %7163 = vmatpush1.bf16.msra.mxu1 %v7162_v58  ;;  %v3750_v54 = vld [vmem:[#allocation5 + $0x80] sm:$0xff]  ;;  %v3849_v42 = vld [vmem:[#allocation5 + $0x398] sm:$0xff] }
 0x5a6   :  { %7101 = vmatprep.subr.bf16.mxu0 %v7100_v24  ;;  %7165 = vmatprep.subr.bf16.mxu1 %v7164_v30  ;;  %v3758_v58 = vld [vmem:[#allocation5 + $0xc0] sm:$0xff]  ;;  %v3760_v24 = vld [vmem:[#allocation5 + $0xd0] sm:$0xff]  ;;  %v3767_v30 = vld [vmem:[#allocation5 + $0x108] sm:$0xff] }
 0x5a7   :  { %v7178_v10 = vpack.c.bf16 %v3758_v58, %v3750_v54  ;;  %v7242_v12 = vpack.c.bf16 %v3760_v24, %v3752_v60  ;;  %v7180_v4 = vpack.c.bf16 %v3775_v3, %v3767_v30  ;;  %v3815_v54 = vld [vmem:[#allocation5 + $0x288] sm:$0xff]  ;;  %v3817_v60 = vld [vmem:[#allocation5 + $0x298] sm:$0xff]  ;;  %v7190_v24 = vpack.c.bf16 %v3806_v41, %v3798_v38  ;;  %v3856_v38 = vld [vmem:[#allocation5 + $0x3d0] sm:$0xff] }
 0x5a8   :  { %v3823_v58 = vld [vmem:[#allocation5 + $0x2c8] sm:$0xff]  ;;  %v3857_v55 = vld [vmem:[#allocation5 + $0x3d8] sm:$0xff] }
 0x5a9   :  { %7103 = vmatpush1.bf16.msra.mxu0 %v7102_v9  ;;  %7167 = vmatpush1.bf16.msra.mxu1 %v7166_v39  ;;  %v7244_v9 = vpack.c.bf16 %v3777_v44, %v3769_v34  ;;  %v3774_v39 = vld [vmem:[#allocation5 + $0x140] sm:$0xff]  ;;  %v7192_v3 = vpack.c.bf16 %v3823_v58, %v3815_v54  ;;  %v3816_v34 = vld [vmem:[#allocation5 + $0x290] sm:$0xff]  ;;  %v3865_v54 = vld [vmem:[#allocation5 + $0x418] sm:$0xff] }
 0x5aa   :  { %7105 = vmatprep.subr.bf16.mxu0 %v7104_v23  ;;  %7169 = vmatprep.subr.bf16.mxu1 %v7168_v27  ;;  %v3776_v23 = vld [vmem:[#allocation5 + $0x150] sm:$0xff]  ;;  %v7182_v27 = vpack.c.bf16 %v3774_v39, %v3766_v47  ;;  %v3839_v39 = vld [vmem:[#allocation5 + $0x348] sm:$0xff] }
 0x5ab   :  { %v3824_v47 = vld [vmem:[#allocation5 + $0x2d0] sm:$0xff] }
 0x5ad   :  { %7107 = vmatpush1.bf16.msra.mxu0 %v7106_v17  ;;  %7171 = vmatpush1.bf16.msra.mxu1 %v7170_v21  ;;  %v7246_v17 = vpack.c.bf16 %v3776_v23, %v3768_v15  ;;  %v7184_v21 = vpack.c.bf16 %v3791_v5, %v3783_v52  ;;  %v3833_v15 = vld [vmem:[#allocation5 + $0x318] sm:$0xff]  ;;  %v7258_v52 = vpack.c.bf16 %v3824_v47, %v3816_v34  ;;  %v3887_v47 = vld [vmem:[#allocation5 + $0x4c8] sm:$0xff] }
 0x5ae   :  { %7173 = vmatprep.subr.bf16.mxu0 %v7172_v22  ;;  %7237 = vmatprep.subr.bf16.mxu1 %v7236_v63  ;;  %v7248_v22 = vpack.c.bf16 %v3793_v37, %v3785_v2  ;;  %v3807_v63 = vld [vmem:[#allocation5 + $0x248] sm:$0xff]  ;;  %v3841_v23 = vld [vmem:[#allocation5 + $0x358] sm:$0xff]  ;;  %v3830_v2 = vld [vmem:[#allocation5 + $0x300] sm:$0xff] }
 0x5af   :  { %v7260_v37 = vpack.c.bf16 %v3841_v23, %v3833_v15  ;;  %v3889_v15 = vld [vmem:[#allocation5 + $0x4d8] sm:$0xff]  ;;  %v3878_v23 = vld [vmem:[#allocation5 + $0x480] sm:$0xff] }
 0x5b0   :  { %3585 = vmatmul.mubr.f32.vlgmr.msra.gmra.mrb[8].mxu0 %v8947_v6  ;;  %3656 = vmatmul.mubr.f32.vlgmr.msra.gmra.mrb[40].mxu1 %v8947_v6 }
 0x5b1   :  { %7175 = vmatpush1.bf16.msra.mxu0 %v7174_v7  ;;  %7239 = vmatpush1.bf16.msra.mxu1 %v7238_v14  ;;  %v3801_v7 = vld [vmem:[#allocation5 + $0x218] sm:$0xff]  ;;  %v7188_v14 = vpack.c.bf16 %v3807_v63, %v3799_v16 }
 0x5b2   :  { %7177 = vmatprep.subr.bf16.mxu0 %v7176_v8  ;;  %7241 = vmatprep.subr.bf16.mxu1 %v7240_v11  ;;  %v7252_v8 = vpack.c.bf16 %v3809_v19, %v3801_v7  ;;  %v3808_v11 = vld [vmem:[#allocation5 + $0x250] sm:$0xff]  ;;  %v3846_v19 = vld [vmem:[#allocation5 + $0x380] sm:$0xff] }
 0x5b3   :  { %v7254_v30 = vpack.c.bf16 %v3808_v11, %v3800_v25  ;;  %v3871_v11 = vld [vmem:[#allocation5 + $0x448] sm:$0xff] }
 0x5b5   :  { %7179 = vmatpush1.bf16.msra.mxu0 %v7178_v10  ;;  %7243 = vmatpush1.bf16.msra.mxu1 %v7242_v12  ;;  %v3825_v10 = vld [vmem:[#allocation5 + $0x2d8] sm:$0xff]  ;;  %v3814_v12 = vld [vmem:[#allocation5 + $0x280] sm:$0xff] }
 0x5b6   :  { %7181 = vmatprep.subr.bf16.mxu0 %v7180_v4  ;;  %7245 = vmatprep.subr.bf16.mxu1 %v7244_v9  ;;  %v3822_v4 = vld [vmem:[#allocation5 + $0x2c0] sm:$0xff]  ;;  %v7256_v44 = vpack.c.bf16 %v3825_v10, %v3817_v60  ;;  %v3831_v9 = vld [vmem:[#allocation5 + $0x308] sm:$0xff]  ;;  %v3873_v60 = vld [vmem:[#allocation5 + $0x458] sm:$0xff] }
 0x5b7   :  { %v7196_v5 = vpack.c.bf16 %v3839_v39, %v3831_v9  ;;  %v7268_v10 = vpack.c.bf16 %v3873_v60, %v3865_v54  ;;  %v3881_v9 = vld [vmem:[#allocation5 + $0x498] sm:$0xff]  ;;  %v3918_v54 = vld [vmem:[#allocation5 + $0x5c0] sm:$0xff] }
 0x5b9   :  { %7183 = vmatpush1.bf16.msra.mxu0 %v7182_v27  ;;  %7247 = vmatpush1.bf16.msra.mxu1 %v7246_v17  ;;  %v7194_v27 = vpack.c.bf16 %v3822_v4, %v3814_v12  ;;  %v3838_v17 = vld [vmem:[#allocation5 + $0x340] sm:$0xff]  ;;  %v3872_v4 = vld [vmem:[#allocation5 + $0x450] sm:$0xff] }
 0x5ba   :  { %7185 = vmatprep.subr.bf16.mxu0 %v7184_v21  ;;  %7249 = vmatprep.subr.bf16.mxu1 %v7248_v22  ;;  %v3832_v21 = vld [vmem:[#allocation5 + $0x310] sm:$0xff]  ;;  %v3855_v22 = vld [vmem:[#allocation5 + $0x3c8] sm:$0xff]  ;;  %v7198_v16 = vpack.c.bf16 %v3838_v17, %v3830_v2 }
 0x5bb   :  { %v7262_v63 = vpack.c.bf16 %v3840_v18, %v3832_v21  ;;  %v7200_v7 = vpack.c.bf16 %v3855_v22, %v3847_v48  ;;  %v3880_v2 = vld [vmem:[#allocation5 + $0x490] sm:$0xff]  ;;  %v3903_v18 = vld [vmem:[#allocation5 + $0x548] sm:$0xff]  ;;  %v3897_v48 = vld [vmem:[#allocation5 + $0x518] sm:$0xff] }
 0x5bc   :  { %v3888_v17 = vld [vmem:[#allocation5 + $0x4d0] sm:$0xff] }
 0x5bd   :  { %7187 = vmatpush1.bf16.msra.mxu0 %v7186_v33  ;;  %7251 = vmatpush1.bf16.msra.mxu1 %v7250_v56  ;;  %v3854_v33 = vld [vmem:[#allocation5 + $0x3c0] sm:$0xff]  ;;  %v7264_v56 = vpack.c.bf16 %v3857_v55, %v3849_v42  ;;  %v7274_v21 = vpack.c.bf16 %v3888_v17, %v3880_v2  ;;  %v3905_v42 = vld [vmem:[#allocation5 + $0x558] sm:$0xff]  ;;  %v3951_v2 = vld [vmem:[#allocation5 + $0x6c8] sm:$0xff] }
 0x5be   :  { %7189 = vmatprep.subr.bf16.mxu0 %v7188_v14  ;;  %7253 = vmatprep.subr.bf16.mxu1 %v7252_v8  ;;  %v3848_v14 = vld [vmem:[#allocation5 + $0x390] sm:$0xff]  ;;  %v7202_v41 = vpack.c.bf16 %v3854_v33, %v3846_v19  ;;  %v3863_v8 = vld [vmem:[#allocation5 + $0x408] sm:$0xff]  ;;  %v3894_v55 = vld [vmem:[#allocation5 + $0x500] sm:$0xff] }
 0x5bf   :  { %v7266_v25 = vpack.c.bf16 %v3856_v38, %v3848_v14  ;;  %v7204_v58 = vpack.c.bf16 %v3871_v11, %v3863_v8  ;;  %v3896_v19 = vld [vmem:[#allocation5 + $0x510] sm:$0xff]  ;;  %v3911_v14 = vld [vmem:[#allocation5 + $0x588] sm:$0xff]  ;;  %v3921_v8 = vld [vmem:[#allocation5 + $0x5d8] sm:$0xff] }
 0x5c0   :  { %v3904_v33 = vld [vmem:[#allocation5 + $0x550] sm:$0xff]  ;;  %v3919_v38 = vld [vmem:[#allocation5 + $0x5c8] sm:$0xff]  ;;  %v3910_v11 = vld [vmem:[#allocation5 + $0x580] sm:$0xff] }
 0x5c1   :  { %7191 = vmatpush1.bf16.msra.mxu0 %v7190_v24  ;;  %7255 = vmatpush1.bf16.msra.mxu1 %v7254_v30  ;;  %v3862_v24 = vld [vmem:[#allocation5 + $0x400] sm:$0xff]  ;;  %v7218_v60 = vpack.c.bf16 %v3918_v54, %v3910_v11  ;;  %v3945_v17 = vld [vmem:[#allocation5 + $0x698] sm:$0xff]  ;;  %v3968_v54 = vld [vmem:[#allocation5 + $0x750] sm:$0xff] }
 0x5c2   :  { %7193 = vmatprep.subr.bf16.mxu0 %v7192_v3  ;;  %7257 = vmatprep.subr.bf16.mxu1 %v7256_v44  ;;  %v3870_v30 = vld [vmem:[#allocation5 + $0x440] sm:$0xff]  ;;  %v3864_v3 = vld [vmem:[#allocation5 + $0x410] sm:$0xff]  ;;  %v3879_v44 = vld [vmem:[#allocation5 + $0x488] sm:$0xff] }
 0x5c3   :  { %v7206_v12 = vpack.c.bf16 %v3870_v30, %v3862_v24  ;;  %v7270_v34 = vpack.c.bf16 %v3872_v4, %v3864_v3  ;;  %v7208_v39 = vpack.c.bf16 %v3887_v47, %v3879_v44  ;;  %v3920_v24 = vld [vmem:[#allocation5 + $0x5d0] sm:$0xff]  ;;  %v3927_v3 = vld [vmem:[#allocation5 + $0x608] sm:$0xff]  ;;  %v3929_v4 = vld [vmem:[#allocation5 + $0x618] sm:$0xff] }
 0x5c4   :  { %v3937_v44 = vld [vmem:[#allocation5 + $0x658] sm:$0xff]  ;;  %v3926_v47 = vld [vmem:[#allocation5 + $0x600] sm:$0xff] }
 0x5c5   :  { %7195 = vmatpush1.bf16.msra.mxu0 %v7194_v27  ;;  %7259 = vmatpush1.bf16.msra.mxu1 %v7258_v52  ;;  %v3886_v27 = vld [vmem:[#allocation5 + $0x4c0] sm:$0xff]  ;;  %v7272_v52 = vpack.c.bf16 %v3889_v15, %v3881_v9 }
 0x5c6   :  { %7197 = vmatprep.subr.bf16.mxu0 %v7196_v5  ;;  %7261 = vmatprep.subr.bf16.mxu1 %v7260_v37  ;;  %v7210_v5 = vpack.c.bf16 %v3886_v27, %v3878_v23  ;;  %v3895_v37 = vld [vmem:[#allocation5 + $0x508] sm:$0xff]  ;;  %v3934_v9 = vld [vmem:[#allocation5 + $0x640] sm:$0xff]  ;;  %v3928_v23 = vld [vmem:[#allocation5 + $0x610] sm:$0xff] }
 0x5c7   :  { %v7212_v22 = vpack.c.bf16 %v3903_v18, %v3895_v37  ;;  %v7222_v15 = vpack.c.bf16 %v3934_v9, %v3926_v47  ;;  %v3936_v27 = vld [vmem:[#allocation5 + $0x650] sm:$0xff]  ;;  %v3953_v37 = vld [vmem:[#allocation5 + $0x6d8] sm:$0xff]  ;;  %v3942_v18 = vld [vmem:[#allocation5 + $0x680] sm:$0xff] }
 0x5c8   :  { %v3984_v47 = vld [vmem:[#allocation5 + $0x7d0] sm:$0xff] }
 0x5c9   :  { %7199 = vmatpush1.bf16.msra.mxu0 %v7198_v16  ;;  %7263 = vmatpush1.bf16.msra.mxu1 %v7262_v63  ;;  %v3902_v16 = vld [vmem:[#allocation5 + $0x540] sm:$0xff]  ;;  %v7276_v63 = vpack.c.bf16 %v3905_v42, %v3897_v48 }
 0x5ca   :  { %7201 = vmatprep.subr.bf16.mxu0 %v7200_v7  ;;  %7265 = vmatprep.subr.bf16.mxu1 %v7264_v56  ;;  %v7214_v7 = vpack.c.bf16 %v3902_v16, %v3894_v55  ;;  %v7278_v56 = vpack.c.bf16 %v3904_v33, %v3896_v19  ;;  %v3950_v48 = vld [vmem:[#allocation5 + $0x6c0] sm:$0xff]  ;;  %v3944_v55 = vld [vmem:[#allocation5 + $0x690] sm:$0xff]  ;;  %v3967_v19 = vld [vmem:[#allocation5 + $0x748] sm:$0xff] }
 0x5cb   :  { %v7226_v42 = vpack.c.bf16 %v3950_v48, %v3942_v18  ;;  %v3952_v16 = vld [vmem:[#allocation5 + $0x6d0] sm:$0xff]  ;;  %v3961_v33 = vld [vmem:[#allocation5 + $0x718] sm:$0xff] }
 0x5cd   :  { %7203 = vmatpush1.bf16.msra.mxu0 %v7202_v41  ;;  %7267 = vmatpush1.bf16.msra.mxu1 %v7266_v25  ;;  %v3913_v41 = vld [vmem:[#allocation5 + $0x598] sm:$0xff]  ;;  %v7216_v25 = vpack.c.bf16 %v3919_v38, %v3911_v14 }
 0x5ce   :  { %7205 = vmatprep.subr.bf16.mxu0 %v7204_v58  ;;  %7269 = vmatprep.subr.bf16.mxu1 %v7268_v10  ;;  %v7280_v58 = vpack.c.bf16 %v3921_v8, %v3913_v41  ;;  %v3912_v10 = vld [vmem:[#allocation5 + $0x590] sm:$0xff]  ;;  %v3958_v41 = vld [vmem:[#allocation5 + $0x700] sm:$0xff] }
 0x5cf   :  { %v7282_v30 = vpack.c.bf16 %v3920_v24, %v3912_v10  ;;  %v3960_v8 = vld [vmem:[#allocation5 + $0x710] sm:$0xff] }
 0x5d0   :  { %v7294_v10 = vpack.c.bf16 %v3968_v54, %v3960_v8 }
 0x5d1   :  { %7207 = vmatpush1.bf16.msra.mxu0 %v7206_v12  ;;  %7271 = vmatpush1.bf16.msra.mxu1 %v7270_v34  ;;  %v3935_v12 = vld [vmem:[#allocation5 + $0x648] sm:$0xff] }
 0x5d2   :  { %7209 = vmatprep.subr.bf16.mxu0 %v7208_v39  ;;  %7273 = vmatprep.subr.bf16.mxu1 %v7272_v52  ;;  %v7220_v34 = vpack.c.bf16 %v3935_v12, %v3927_v3  ;;  %v7284_v39 = vpack.c.bf16 %v3937_v44, %v3929_v4  ;;  %v7286_v52 = vpack.c.bf16 %v3936_v27, %v3928_v23  ;;  %v3985_v3 = vld [vmem:[#allocation5 + $0x7d8] sm:$0xff]  ;;  %v3974_v12 = vld [vmem:[#allocation5 + $0x780] sm:$0xff]  ;;  %v3976_v44 = vld [vmem:[#allocation5 + $0x790] sm:$0xff] }
 0x5d3   :  { %v3747_v23 = vld [vmem:[#allocation5 + $0x68] sm:$0xff]  ;;  %v3741_v27 = vld [vmem:[#allocation5 + $0x38] sm:$0xff] }
 0x5d5   :  { %7211 = vmatpush1.bf16.msra.mxu0 %v7210_v5  ;;  %7275 = vmatpush1.bf16.msra.mxu1 %v7274_v21  ;;  %v3943_v5 = vld [vmem:[#allocation5 + $0x688] sm:$0xff] }
 0x5d6   :  { %7213 = vmatprep.subr.bf16.mxu0 %v7212_v22  ;;  %7277 = vmatprep.subr.bf16.mxu1 %v7276_v63  ;;  %v7224_v21 = vpack.c.bf16 %v3951_v2, %v3943_v5  ;;  %v7288_v22 = vpack.c.bf16 %v3953_v37, %v3945_v17  ;;  %v3959_v63 = vld [vmem:[#allocation5 + $0x708] sm:$0xff]  ;;  %v3749_v5 = vld [vmem:[#allocation5 + $0x78] sm:$0xff] }
 0x5d7   :  { %v7228_v14 = vpack.c.bf16 %v3967_v19, %v3959_v63  ;;  %v7364_v2 = vpack.c.bf16 %v3749_v5, %v3741_v27 }
 0x5d9   :  { %7215 = vmatpush1.bf16.msra.mxu0 %v7214_v7  ;;  %7279 = vmatpush1.bf16.msra.mxu1 %v7278_v56  ;;  %v7290_v7 = vpack.c.bf16 %v3952_v16, %v3944_v55  ;;  %v3969_v56 = vld [vmem:[#allocation5 + $0x758] sm:$0xff] }
 0x5da   :  { %7217 = vmatprep.subr.bf16.mxu0 %v7216_v25  ;;  %7281 = vmatprep.subr.bf16.mxu1 %v7280_v58  ;;  %v7292_v38 = vpack.c.bf16 %v3969_v56, %v3961_v33  ;;  %v3966_v25 = vld [vmem:[#allocation5 + $0x740] sm:$0xff]  ;;  %v3975_v58 = vld [vmem:[#allocation5 + $0x788] sm:$0xff] }
 0x5db   :  { %v7230_v11 = vpack.c.bf16 %v3966_v25, %v3958_v41 }
 0x5dd   :  { %7219 = vmatpush1.bf16.msra.mxu0 %v7218_v60  ;;  %7283 = vmatpush1.bf16.msra.mxu1 %v7282_v30  ;;  %v3983_v60 = vld [vmem:[#allocation5 + $0x7c8] sm:$0xff]  ;;  %v3977_v30 = vld [vmem:[#allocation5 + $0x798] sm:$0xff] }
 0x5de   :  { %7221 = vmatprep.subr.bf16.mxu0 %v7220_v34  ;;  %7285 = vmatprep.subr.bf16.mxu1 %v7284_v39  ;;  %v7232_v24 = vpack.c.bf16 %v3983_v60, %v3975_v58  ;;  %v7296_v4 = vpack.c.bf16 %v3985_v3, %v3977_v30  ;;  %v3982_v34 = vld [vmem:[#allocation5 + $0x7c0] sm:$0xff]  ;;  %v7298_v39 = vpack.c.bf16 %v3984_v47, %v3976_v44 }
 0x5df   :  { %v7234_v9 = vpack.c.bf16 %v3982_v34, %v3974_v12 }
 0x5e1   :  { %7223 = vmatpush1.bf16.msra.mxu0 %v7222_v15  ;;  %7287 = vmatpush1.bf16.msra.mxu1 %v7286_v52  ;;  %v3739_v15 = vld [vmem:[#allocation5 + $0x28] sm:$0xff] }
 0x5e2   :  { %7225 = vmatprep.subr.bf16.mxu0 %v7224_v21  ;;  %7289 = vmatprep.subr.bf16.mxu1 %v7288_v22  ;;  %v7300_v52 = vpack.c.bf16 %v3747_v23, %v3739_v15 }
 0x5e5   :  { %7227 = vmatpush1.bf16.msra.mxu0 %v7226_v42  ;;  %7291 = vmatpush1.bf16.msra.mxu1 %v7290_v7 }
 0x5e6   :  { %7229 = vmatprep.subr.bf16.mxu0 %v7228_v14  ;;  %7293 = vmatprep.subr.bf16.mxu1 %v7292_v38 }
 0x5e9   :  { %7231 = vmatpush1.bf16.msra.mxu0 %v7230_v11  ;;  %7295 = vmatpush1.bf16.msra.mxu1 %v7294_v10 }
 0x5ea   :  { %7233 = vmatprep.subr.bf16.mxu0 %v7232_v24  ;;  %7297 = vmatprep.subr.bf16.mxu1 %v7296_v4 }
 0x5ed   :  { %7235 = vmatpush1.bf16.msra.mxu0 %v7234_v9  ;;  %7299 = vmatpush1.bf16.msra.mxu1 %v7298_v39 }
 0x5ee   :  { %7301 = vmatprep.subr.bf16.mxu0 %v7300_v52  ;;  %7365 = vmatprep.subr.bf16.mxu1 %v7364_v2 }
 0x643   :  { %v3444_v17 = vpop.f32.mrb[24].mxu0  ;;  %v3515_v21 = vpop.f32.mrb[24].mxu1 }
 0x644   :  { %v3662_v37 = vadd.f32 %v3444_v17, %v8774_v28  ;;  %v3446_v18 = vpop.f32.mrb[25].mxu0  ;;  %v3517_v48 = vpop.f32.mrb[25].mxu1  ;;  %v8012_v42 = vadd.f32 %v3515_v21, %v8827_v31 }
 0x645   :  { %v3663_v22 = vadd.f32 %v3446_v18, %v8777_v32  ;;  %v8013_v55 = vadd.f32 %v3517_v48, %v8830_v57 }
 0x646   :  { %v5811_v16 = vmul.f32 -1.442695, %v3662_v37  ;;  %v5813_v63 = vmul.f32 -1.442695, %v8012_v42  ;;  %v3746_v42 = vld [vmem:[#allocation5 + $0x60] sm:$0xff] }
 0x647   :  { %v5812_v7 = vmul.f32 -1.442695, %v3663_v22  ;;  %v5814_v19 = vmul.f32 -1.442695, %v8013_v55  ;;  %v3740_v55 = vld [vmem:[#allocation5 + $0x30] sm:$0xff] }
 0x648   :  { %8232 = vpow2.f32 %v5811_v16 }
 0x649   :  { %8234 = vpow2.f32 %v5813_v63  ;;  %v3755_v63 = vld [vmem:[#allocation5 + $0xa8] sm:$0xff] }
 0x64a   :  { %8236 = vpow2.f32 %v5812_v7 }
 0x64b   :  { %8238 = vpow2.f32 %v5814_v19  ;;  %v3763_v19 = vld [vmem:[#allocation5 + $0xe8] sm:$0xff] }
 0x652   :  { %v8233_v33 = vpop.eup %8232 }
 0x653   :  { %v8235_v56 = vpop.eup %8234  ;;  %v3676_v38 = vadd.f32 1.0, %v8233_v33  ;;  %v3757_v33 = vld [vmem:[#allocation5 + $0xb8] sm:$0xff] }
 0x654   :  { %v8237_v14 = vpop.eup %8236  ;;  %v3688_v41 = vadd.f32 1.0, %v8235_v56  ;;  %v3765_v56 = vld [vmem:[#allocation5 + $0xf8] sm:$0xff] }
 0x655   :  { %v8239_v28 = vpop.eup %8238  ;;  %v3677_v25 = vadd.f32 1.0, %v8237_v14  ;;  %8240 = vrcp.f32 %v3676_v38 }
 0x656   :  { %v3689_v32 = vadd.f32 1.0, %v8239_v28  ;;  %8242 = vrcp.f32 %v3688_v41  ;;  %v3754_v41 = vld [vmem:[#allocation5 + $0xa0] sm:$0xff] }
 0x657   :  { %8244 = vrcp.f32 %v3677_v25  ;;  %v3762_v25 = vld [vmem:[#allocation5 + $0xe0] sm:$0xff] }
 0x658   :  { %8246 = vrcp.f32 %v3689_v32 }
 0x65f   :  { %v8241_v4 = vpop.eup %8240 }
 0x660   :  { %v8243_v34 = vpop.eup %8242 }
 0x661   :  { %v8245_v44 = vpop.eup %8244  ;;  %v3708_v15 = vmul.f32 %v8243_v34, %v8939_v13  ;;  %v3738_v13 = vld [vmem:[#allocation5 + $0x20] sm:$0xff] }
 0x662   :  { %v8247_v47 = vpop.eup %8246  ;;  %v7302_v28 = vpack.c.bf16 %v3746_v42, %v3738_v13  ;;  %v3778_v34 = vld [vmem:[#allocation5 + $0x160] sm:$0xff]  ;;  %v3796_v42 = vld [vmem:[#allocation5 + $0x1f0] sm:$0xff] }
 0x663   :  { %v3709_v52 = vmul.f32 %v8247_v47, %v8941_v29  ;;  %v3748_v29 = vld [vmem:[#allocation5 + $0x70] sm:$0xff] }
 0x664   :  { %v7366_v38 = vpack.c.bf16 %v3748_v29, %v3740_v55  ;;  %v3803_v55 = vld [vmem:[#allocation5 + $0x228] sm:$0xff] }
 0x665   :  { %v3811_v29 = vld [vmem:[#allocation5 + $0x268] sm:$0xff] }
 0x683   :  { %v3586_v8 = vpop.f32.mrb[8].mxu0  ;;  %v3657_v11 = vpop.f32.mrb[40].mxu1 }
 0x684   :  { %v8028_v54 = vadd.f32 %v3586_v8, %v8833_v1  ;;  %v8044_v58 = vadd.f32 %v3657_v11, %v8849_v0  ;;  %v3588_v60 = vpop.f32.mrb[9].mxu0  ;;  %v3659_v10 = vpop.f32.mrb[41].mxu1  ;;  %v3756_v8 = vld [vmem:[#allocation5 + $0xb0] sm:$0xff] }
 0x685   :  { %v8029_v24 = vadd.f32 %v3588_v60, %v8836_v59  ;;  %v8045_v30 = vadd.f32 %v3659_v10, %v8852_v36  ;;  %v3764_v11 = vld [vmem:[#allocation5 + $0xf0] sm:$0xff]  ;;  %v7368_v60 = vpack.c.bf16 %v3765_v56, %v3757_v33  ;;  %v3779_v10 = vld [vmem:[#allocation5 + $0x168] sm:$0xff]  ;;  %v3802_v33 = vld [vmem:[#allocation5 + $0x220] sm:$0xff] }
 0x686   :  { %8248 = vtanh.f32 %v8028_v54  ;;  %v5815_v3 = vmul.f32 -1.442695, %v8044_v58  ;;  %v3771_v54 = vld [vmem:[#allocation5 + $0x128] sm:$0xff]  ;;  %v7304_v58 = vpack.c.bf16 %v3763_v19, %v3755_v63  ;;  %v3813_v63 = vld [vmem:[#allocation5 + $0x278] sm:$0xff]  ;;  %v3810_v56 = vld [vmem:[#allocation5 + $0x260] sm:$0xff] }
 0x687   :  { %8250 = vtanh.f32 %v8029_v24  ;;  %v5816_v12 = vmul.f32 -1.442695, %v8045_v30  ;;  %v3773_v24 = vld [vmem:[#allocation5 + $0x138] sm:$0xff] }
 0x688   :  { %8252 = vpow2.f32 %v5815_v3  ;;  %v3781_v30 = vld [vmem:[#allocation5 + $0x178] sm:$0xff]  ;;  %v7306_v3 = vpack.c.bf16 %v3762_v25, %v3754_v41  ;;  %v3804_v41 = vld [vmem:[#allocation5 + $0x230] sm:$0xff] }
 0x689   :  { %8254 = vpow2.f32 %v5816_v12  ;;  %v7370_v12 = vpack.c.bf16 %v3764_v11, %v3756_v8  ;;  %v7372_v47 = vpack.c.bf16 %v3781_v30, %v3773_v24  ;;  %v3812_v25 = vld [vmem:[#allocation5 + $0x270] sm:$0xff]  ;;  %v3819_v8 = vld [vmem:[#allocation5 + $0x2a8] sm:$0xff]  ;;  %v3818_v24 = vld [vmem:[#allocation5 + $0x2a0] sm:$0xff] }
 0x68a   :  { %v3827_v11 = vld [vmem:[#allocation5 + $0x2e8] sm:$0xff]  ;;  %v3826_v30 = vld [vmem:[#allocation5 + $0x2e0] sm:$0xff] }
 0x690   :  { %v8249_v9 = vpop.eup %8248 }
 0x691   :  { %v8251_v39 = vpop.eup %8250  ;;  %v3710_v23 = vmul.f32 %v8249_v9, %v8241_v4  ;;  %v3770_v4 = vld [vmem:[#allocation5 + $0x120] sm:$0xff]  ;;  %v3772_v9 = vld [vmem:[#allocation5 + $0x130] sm:$0xff] }
 0x692   :  { %v8253_v27 = vpop.eup %8252  ;;  %v3711_v5 = vmul.f32 %v8251_v39, %v8245_v44  ;;  %v7308_v44 = vpack.c.bf16 %v3779_v10, %v3771_v54  ;;  %v3780_v39 = vld [vmem:[#allocation5 + $0x170] sm:$0xff]  ;;  %v3821_v54 = vld [vmem:[#allocation5 + $0x2b8] sm:$0xff]  ;;  %v7382_v10 = vpack.c.bf16 %v3812_v25, %v3804_v41 }
 0x693   :  { %v8255_v2 = vpop.eup %8254  ;;  %v8967_v17 = vadd.f32 %v3710_v23, %v3708_v15  ;;  %v3702_v21 = vadd.f32 1.0, %v8253_v27  ;;  %v3787_v15 = vld [vmem:[#allocation5 + $0x1a8] sm:$0xff]  ;;  %v3789_v27 = vld [vmem:[#allocation5 + $0x1b8] sm:$0xff] }
 0x694   :  { %v8969_v37 = vadd.f32 %v3711_v5, %v3709_v52  ;;  %v3703_v18 = vadd.f32 1.0, %v8255_v2  ;;  %v3795_v23 = vld [vmem:[#allocation5 + $0x1e8] sm:$0xff]  ;;  %v3797_v52 = vld [vmem:[#allocation5 + $0x1f8] sm:$0xff]  ;;  %v7310_v5 = vpack.c.bf16 %v3778_v34, %v3770_v4  ;;  %v7374_v2 = vpack.c.bf16 %v3780_v39, %v3772_v9  ;;  %v3820_v4 = vld [vmem:[#allocation5 + $0x2b0] sm:$0xff] }
 0x695   :  { %8256 = vtanh.f32 %v8967_v17  ;;  %v7376_v13 = vpack.c.bf16 %v3797_v52, %v3789_v27  ;;  %v3828_v34 = vld [vmem:[#allocation5 + $0x2f0] sm:$0xff]  ;;  %v3837_v9 = vld [vmem:[#allocation5 + $0x338] sm:$0xff]  ;;  %v3834_v27 = vld [vmem:[#allocation5 + $0x320] sm:$0xff] }
 0x696   :  { %8258 = vrcp.f32 %v3702_v21  ;;  %v3786_v21 = vld [vmem:[#allocation5 + $0x1a0] sm:$0xff]  ;;  %v3845_v39 = vld [vmem:[#allocation5 + $0x378] sm:$0xff] }
 0x697   :  { %8260 = vtanh.f32 %v8969_v37  ;;  %v3842_v52 = vld [vmem:[#allocation5 + $0x360] sm:$0xff]  ;;  %v3869_v41 = vld [vmem:[#allocation5 + $0x438] sm:$0xff] }
 0x698   :  { %8262 = vrcp.f32 %v3703_v18  ;;  %v3794_v18 = vld [vmem:[#allocation5 + $0x1e0] sm:$0xff]  ;;  %v3877_v25 = vld [vmem:[#allocation5 + $0x478] sm:$0xff] }
 0x69f   :  { %v8257_v48 = vpop.eup %8256 }
 0x6a0   :  { %v8259_v22 = vpop.eup %8258 }
 0x6a1   :  { %v8261_v16 = vpop.eup %8260  ;;  %v8975_v32 = vmul.f32 %v8259_v22, %v8257_v48  ;;  %v7312_v48 = vpack.c.bf16 %v3795_v23, %v3787_v15  ;;  %v3788_v22 = vld [vmem:[#allocation5 + $0x1b0] sm:$0xff]  ;;  %v7322_v15 = vpack.c.bf16 %v3826_v30, %v3818_v24  ;;  %v7386_v23 = vpack.c.bf16 %v3828_v34, %v3820_v4  ;;  %v3885_v4 = vld [vmem:[#allocation5 + $0x4b8] sm:$0xff] }
 0x6a2   :  { %v8263_v7 = vpop.eup %8262  ;;  %v7378_v19 = vpack.c.bf16 %v3796_v42, %v3788_v22  ;;  %v3853_v22 = vld [vmem:[#allocation5 + $0x3b8] sm:$0xff]  ;;  %v3868_v24 = vld [vmem:[#allocation5 + $0x430] sm:$0xff] }
 0x6a3   :  { %v8973_v14 = vmul.f32 %v8263_v7, %v8261_v16  ;;  %v3805_v16 = vld [vmem:[#allocation5 + $0x238] sm:$0xff]  ;;  %v7314_v7 = vpack.c.bf16 %v3794_v18, %v3786_v21  ;;  %v3836_v21 = vld [vmem:[#allocation5 + $0x330] sm:$0xff] }
 0x6a4   :  { %v3844_v18 = vld [vmem:[#allocation5 + $0x370] sm:$0xff]  ;;  %v3861_v42 = vld [vmem:[#allocation5 + $0x3f8] sm:$0xff] }
 0x6a5   :  { %4054 = vmatprep.mubr.f32.mxu0 %v8973_v14  ;;  %4125 = vmatprep.mubr.f32.mxu1 %v8973_v14  ;;  %v3876_v30 = vld [vmem:[#allocation5 + $0x470] sm:$0xff]  ;;  %v3893_v34 = vld [vmem:[#allocation5 + $0x4f8] sm:$0xff] }
 0x6a6   :  { %4055 = vmatmul.mubr.f32.vlgmr.msra.gmra.mrb[26].mxu0 %v8975_v32  ;;  %4126 = vmatmul.mubr.f32.vlgmr.msra.gmra.mrb[26].mxu1 %v8975_v32 }
 0x6a7   :  { %7303 = vmatpush1.bf16.msra.mxu0 %v7302_v28  ;;  %7367 = vmatpush1.bf16.msra.mxu1 %v7366_v38  ;;  %v7316_v28 = vpack.c.bf16 %v3811_v29, %v3803_v55  ;;  %v7380_v38 = vpack.c.bf16 %v3813_v63, %v3805_v16  ;;  %v7326_v55 = vpack.c.bf16 %v3842_v52, %v3834_v27  ;;  %v3850_v16 = vld [vmem:[#allocation5 + $0x3a0] sm:$0xff]  ;;  %v3884_v27 = vld [vmem:[#allocation5 + $0x4b0] sm:$0xff] }
 0x6a8   :  { %4196 = vmatprep.mubr.f32.mxu0 %v8973_v14  ;;  %4267 = vmatprep.mubr.f32.mxu1 %v8973_v14  ;;  %v7390_v29 = vpack.c.bf16 %v3844_v18, %v3836_v21  ;;  %v3858_v63 = vld [vmem:[#allocation5 + $0x3e0] sm:$0xff]  ;;  %v3892_v52 = vld [vmem:[#allocation5 + $0x4f0] sm:$0xff]  ;;  %v3901_v21 = vld [vmem:[#allocation5 + $0x538] sm:$0xff] }
 0x6a9   :  { %7305 = vmatprep.subr.bf16.mxu0 %v7304_v58  ;;  %7369 = vmatprep.subr.bf16.mxu1 %v7368_v60  ;;  %v3829_v58 = vld [vmem:[#allocation5 + $0x2f8] sm:$0xff]  ;;  %v7318_v60 = vpack.c.bf16 %v3810_v56, %v3802_v33  ;;  %v3852_v33 = vld [vmem:[#allocation5 + $0x3b0] sm:$0xff] }
 0x6aa   :  { %v3860_v56 = vld [vmem:[#allocation5 + $0x3f0] sm:$0xff]  ;;  %v3909_v18 = vld [vmem:[#allocation5 + $0x578] sm:$0xff] }
 0x6ab   :  { %7307 = vmatpush1.bf16.msra.mxu0 %v7306_v3  ;;  %7371 = vmatpush1.bf16.msra.mxu1 %v7370_v12  ;;  %v7320_v3 = vpack.c.bf16 %v3827_v11, %v3819_v8  ;;  %v7384_v12 = vpack.c.bf16 %v3829_v58, %v3821_v54  ;;  %v7330_v8 = vpack.c.bf16 %v3858_v63, %v3850_v16  ;;  %v3866_v54 = vld [vmem:[#allocation5 + $0x420] sm:$0xff]  ;;  %v3900_v16 = vld [vmem:[#allocation5 + $0x530] sm:$0xff] }
 0x6ac   :  { %7309 = vmatprep.subr.bf16.mxu0 %v7308_v44  ;;  %7373 = vmatprep.subr.bf16.mxu1 %v7372_v47  ;;  %v3835_v44 = vld [vmem:[#allocation5 + $0x328] sm:$0xff]  ;;  %v7394_v11 = vpack.c.bf16 %v3860_v56, %v3852_v33  ;;  %v3874_v58 = vld [vmem:[#allocation5 + $0x460] sm:$0xff]  ;;  %v3908_v63 = vld [vmem:[#allocation5 + $0x570] sm:$0xff] }
 0x6ad   :  { %v3843_v47 = vld [vmem:[#allocation5 + $0x368] sm:$0xff]  ;;  %v3917_v33 = vld [vmem:[#allocation5 + $0x5b8] sm:$0xff] }
 0x6ae   :  { %v3925_v56 = vld [vmem:[#allocation5 + $0x5f8] sm:$0xff] }
 0x6af   :  { %7311 = vmatpush1.bf16.msra.mxu0 %v7310_v5  ;;  %7375 = vmatpush1.bf16.msra.mxu1 %v7374_v2  ;;  %v7324_v5 = vpack.c.bf16 %v3843_v47, %v3835_v44  ;;  %v7388_v2 = vpack.c.bf16 %v3845_v39, %v3837_v9  ;;  %v7334_v44 = vpack.c.bf16 %v3874_v58, %v3866_v54  ;;  %v3882_v9 = vld [vmem:[#allocation5 + $0x4a0] sm:$0xff]  ;;  %v3916_v54 = vld [vmem:[#allocation5 + $0x5b0] sm:$0xff] }
 0x6b0   :  { %7313 = vmatprep.subr.bf16.mxu0 %v7312_v48  ;;  %7377 = vmatprep.subr.bf16.mxu1 %v7376_v13  ;;  %v3851_v48 = vld [vmem:[#allocation5 + $0x3a8] sm:$0xff]  ;;  %v7398_v47 = vpack.c.bf16 %v3876_v30, %v3868_v24  ;;  %v3890_v39 = vld [vmem:[#allocation5 + $0x4e0] sm:$0xff]  ;;  %v3924_v58 = vld [vmem:[#allocation5 + $0x5f0] sm:$0xff] }
 0x6b1   :  { %v3859_v13 = vld [vmem:[#allocation5 + $0x3e8] sm:$0xff]  ;;  %v3933_v24 = vld [vmem:[#allocation5 + $0x638] sm:$0xff] }
 0x6b2   :  { %v3941_v30 = vld [vmem:[#allocation5 + $0x678] sm:$0xff] }
 0x6b3   :  { %7315 = vmatpush1.bf16.msra.mxu0 %v7314_v7  ;;  %7379 = vmatpush1.bf16.msra.mxu1 %v7378_v19  ;;  %v7328_v7 = vpack.c.bf16 %v3859_v13, %v3851_v48  ;;  %v7392_v19 = vpack.c.bf16 %v3861_v42, %v3853_v22  ;;  %v7338_v48 = vpack.c.bf16 %v3890_v39, %v3882_v9  ;;  %v3898_v22 = vld [vmem:[#allocation5 + $0x520] sm:$0xff]  ;;  %v3932_v9 = vld [vmem:[#allocation5 + $0x630] sm:$0xff] }
 0x6b4   :  { %7317 = vmatprep.subr.bf16.mxu0 %v7316_v28  ;;  %7381 = vmatprep.subr.bf16.mxu1 %v7380_v38  ;;  %v3867_v28 = vld [vmem:[#allocation5 + $0x428] sm:$0xff]  ;;  %v7402_v13 = vpack.c.bf16 %v3892_v52, %v3884_v27  ;;  %v3906_v42 = vld [vmem:[#allocation5 + $0x560] sm:$0xff]  ;;  %v3940_v39 = vld [vmem:[#allocation5 + $0x670] sm:$0xff] }
 0x6b5   :  { %v3875_v38 = vld [vmem:[#allocation5 + $0x468] sm:$0xff]  ;;  %v3949_v27 = vld [vmem:[#allocation5 + $0x6b8] sm:$0xff] }
 0x6b6   :  { %v3957_v52 = vld [vmem:[#allocation5 + $0x6f8] sm:$0xff] }
 0x6b7   :  { %7319 = vmatpush1.bf16.msra.mxu0 %v7318_v60  ;;  %7383 = vmatpush1.bf16.msra.mxu1 %v7382_v10  ;;  %v7332_v60 = vpack.c.bf16 %v3875_v38, %v3867_v28  ;;  %v7396_v10 = vpack.c.bf16 %v3877_v25, %v3869_v41  ;;  %v7342_v28 = vpack.c.bf16 %v3906_v42, %v3898_v22  ;;  %v3914_v41 = vld [vmem:[#allocation5 + $0x5a0] sm:$0xff]  ;;  %v3948_v22 = vld [vmem:[#allocation5 + $0x6b0] sm:$0xff] }
 0x6b8   :  { %7321 = vmatprep.subr.bf16.mxu0 %v7320_v3  ;;  %7385 = vmatprep.subr.bf16.mxu1 %v7384_v12  ;;  %v3883_v3 = vld [vmem:[#allocation5 + $0x4a8] sm:$0xff]  ;;  %v7406_v38 = vpack.c.bf16 %v3908_v63, %v3900_v16  ;;  %v3922_v25 = vld [vmem:[#allocation5 + $0x5e0] sm:$0xff]  ;;  %v3956_v42 = vld [vmem:[#allocation5 + $0x6f0] sm:$0xff] }
 0x6b9   :  { %v3891_v12 = vld [vmem:[#allocation5 + $0x4e8] sm:$0xff]  ;;  %v3965_v16 = vld [vmem:[#allocation5 + $0x738] sm:$0xff] }
 0x6ba   :  { %v3973_v63 = vld [vmem:[#allocation5 + $0x778] sm:$0xff] }
 0x6bb   :  { %7323 = vmatpush1.bf16.msra.mxu0 %v7322_v15  ;;  %7387 = vmatpush1.bf16.msra.mxu1 %v7386_v23  ;;  %v7336_v15 = vpack.c.bf16 %v3891_v12, %v3883_v3  ;;  %v7400_v23 = vpack.c.bf16 %v3893_v34, %v3885_v4  ;;  %v7346_v3 = vpack.c.bf16 %v3922_v25, %v3914_v41  ;;  %v3930_v4 = vld [vmem:[#allocation5 + $0x620] sm:$0xff]  ;;  %v3964_v41 = vld [vmem:[#allocation5 + $0x730] sm:$0xff] }
 0x6bc   :  { %7325 = vmatprep.subr.bf16.mxu0 %v7324_v5  ;;  %7389 = vmatprep.subr.bf16.mxu1 %v7388_v2  ;;  %v3899_v5 = vld [vmem:[#allocation5 + $0x528] sm:$0xff]  ;;  %v7410_v12 = vpack.c.bf16 %v3924_v58, %v3916_v54  ;;  %v3938_v34 = vld [vmem:[#allocation5 + $0x660] sm:$0xff]  ;;  %v3972_v25 = vld [vmem:[#allocation5 + $0x770] sm:$0xff] }
 0x6bd   :  { %v3907_v2 = vld [vmem:[#allocation5 + $0x568] sm:$0xff]  ;;  %v3981_v54 = vld [vmem:[#allocation5 + $0x7b8] sm:$0xff] }
 0x6be   :  { %v3989_v58 = vld [vmem:[#allocation5 + $0x7f8] sm:$0xff] }
 0x6bf   :  { %7327 = vmatpush1.bf16.msra.mxu0 %v7326_v55  ;;  %7391 = vmatpush1.bf16.msra.mxu1 %v7390_v29  ;;  %v7340_v55 = vpack.c.bf16 %v3907_v2, %v3899_v5  ;;  %v7404_v29 = vpack.c.bf16 %v3909_v18, %v3901_v21  ;;  %v7350_v5 = vpack.c.bf16 %v3938_v34, %v3930_v4  ;;  %v3946_v21 = vld [vmem:[#allocation5 + $0x6a0] sm:$0xff]  ;;  %v3980_v4 = vld [vmem:[#allocation5 + $0x7b0] sm:$0xff] }
 0x6c0   :  { %7329 = vmatprep.subr.bf16.mxu0 %v7328_v7  ;;  %7393 = vmatprep.subr.bf16.mxu1 %v7392_v19  ;;  %v3915_v7 = vld [vmem:[#allocation5 + $0x5a8] sm:$0xff]  ;;  %v7414_v2 = vpack.c.bf16 %v3940_v39, %v3932_v9  ;;  %v3954_v18 = vld [vmem:[#allocation5 + $0x6e0] sm:$0xff]  ;;  %v3988_v34 = vld [vmem:[#allocation5 + $0x7f0] sm:$0xff] }
 0x6c1   :  { %v3923_v19 = vld [vmem:[#allocation5 + $0x5e8] sm:$0xff] }
 0x6c2   :  { %v4347_v9 = vld [vmem:[#allocation5 + $0x8] sm:$0xff] }
 0x6c3   :  { %7331 = vmatpush1.bf16.msra.mxu0 %v7330_v8  ;;  %7395 = vmatpush1.bf16.msra.mxu1 %v7394_v11  ;;  %v7344_v8 = vpack.c.bf16 %v3923_v19, %v3915_v7  ;;  %v7408_v11 = vpack.c.bf16 %v3925_v56, %v3917_v33  ;;  %v7354_v7 = vpack.c.bf16 %v3954_v18, %v3946_v21  ;;  %v3962_v33 = vld [vmem:[#allocation5 + $0x720] sm:$0xff]  ;;  %v4355_v39 = vld [vmem:[#allocation5 + $0x48] sm:$0xff]  ;;  %v4348_v18 = vld [vmem:[#allocation5 + $0x10] sm:$0xff] }
 0x6c4   :  { %7333 = vmatprep.subr.bf16.mxu0 %v7332_v60  ;;  %7397 = vmatprep.subr.bf16.mxu1 %v7396_v10  ;;  %v3931_v60 = vld [vmem:[#allocation5 + $0x628] sm:$0xff]  ;;  %v7418_v19 = vpack.c.bf16 %v3956_v42, %v3948_v22  ;;  %v3970_v56 = vld [vmem:[#allocation5 + $0x760] sm:$0xff] }
 0x6c5   :  { %v3939_v10 = vld [vmem:[#allocation5 + $0x668] sm:$0xff] }
 0x6c6   :  { %v4371_v42 = vld [vmem:[#allocation5 + $0xc8] sm:$0xff] }
 0x6c7   :  { %7335 = vmatpush1.bf16.msra.mxu0 %v7334_v44  ;;  %7399 = vmatpush1.bf16.msra.mxu1 %v7398_v47  ;;  %v7348_v44 = vpack.c.bf16 %v3939_v10, %v3931_v60  ;;  %v7412_v47 = vpack.c.bf16 %v3941_v30, %v3933_v24  ;;  %v7358_v60 = vpack.c.bf16 %v3970_v56, %v3962_v33  ;;  %v3978_v24 = vld [vmem:[#allocation5 + $0x7a0] sm:$0xff]  ;;  %v4364_v33 = vld [vmem:[#allocation5 + $0x90] sm:$0xff] }
 0x6c8   :  { %7337 = vmatprep.subr.bf16.mxu0 %v7336_v15  ;;  %7401 = vmatprep.subr.bf16.mxu1 %v7400_v23  ;;  %v3947_v15 = vld [vmem:[#allocation5 + $0x6a8] sm:$0xff]  ;;  %v7422_v10 = vpack.c.bf16 %v3972_v25, %v3964_v41 }
 0x6c9   :  { %v3955_v23 = vld [vmem:[#allocation5 + $0x6e8] sm:$0xff] }
 0x6ca   :  { %v4387_v41 = vld [vmem:[#allocation5 + $0x148] sm:$0xff] }
 0x6cb   :  { %7339 = vmatpush1.bf16.msra.mxu0 %v7338_v48  ;;  %7403 = vmatpush1.bf16.msra.mxu1 %v7402_v13  ;;  %v7352_v48 = vpack.c.bf16 %v3955_v23, %v3947_v15  ;;  %v7416_v13 = vpack.c.bf16 %v3957_v52, %v3949_v27  ;;  %v4349_v15 = vld [vmem:[#allocation5 + $0x18] sm:$0xff]  ;;  %v7428_v23 = vpack.c.bf16 %v4355_v39, %v4347_v9  ;;  %v4346_v52 = vld [vmem:[#allocation5] sm:$0xff] }
 0x6cc   :  { %7341 = vmatprep.subr.bf16.mxu0 %v7340_v55  ;;  %7405 = vmatprep.subr.bf16.mxu1 %v7404_v29  ;;  %v3963_v55 = vld [vmem:[#allocation5 + $0x728] sm:$0xff]  ;;  %v4357_v27 = vld [vmem:[#allocation5 + $0x58] sm:$0xff]  ;;  %v4394_v39 = vld [vmem:[#allocation5 + $0x180] sm:$0xff] }
 0x6cd   :  { %v3971_v29 = vld [vmem:[#allocation5 + $0x768] sm:$0xff]  ;;  %v4405_v9 = vld [vmem:[#allocation5 + $0x1d8] sm:$0xff] }
 0x6cf   :  { %7343 = vmatpush1.bf16.msra.mxu0 %v7342_v28  ;;  %7407 = vmatpush1.bf16.msra.mxu1 %v7406_v38  ;;  %v7356_v28 = vpack.c.bf16 %v3971_v29, %v3963_v55  ;;  %v7420_v38 = vpack.c.bf16 %v3973_v63, %v3965_v16  ;;  %v4365_v55 = vld [vmem:[#allocation5 + $0x98] sm:$0xff] }
 0x6d0   :  { %7345 = vmatprep.subr.bf16.mxu0 %v7344_v8  ;;  %7409 = vmatprep.subr.bf16.mxu1 %v7408_v11  ;;  %v3979_v8 = vld [vmem:[#allocation5 + $0x7a8] sm:$0xff]  ;;  %v4373_v29 = vld [vmem:[#allocation5 + $0xd8] sm:$0xff] }
 0x6d1   :  { %v3987_v11 = vld [vmem:[#allocation5 + $0x7e8] sm:$0xff]  ;;  %v7496_v63 = vpack.c.bf16 %v4373_v29, %v4365_v55  ;;  %v4418_v55 = vld [vmem:[#allocation5 + $0x240] sm:$0xff]  ;;  %v4412_v29 = vld [vmem:[#allocation5 + $0x210] sm:$0xff] }
 0x6d2   :  { %v7360_v30 = vpack.c.bf16 %v3987_v11, %v3979_v8  ;;  %v4381_v11 = vld [vmem:[#allocation5 + $0x118] sm:$0xff] }
 0x6d3   :  { %7347 = vmatpush1.bf16.msra.mxu0 %v7346_v3  ;;  %7411 = vmatpush1.bf16.msra.mxu1 %v7410_v12  ;;  %v7424_v3 = vpack.c.bf16 %v3989_v58, %v3981_v54  ;;  %v3986_v12 = vld [vmem:[#allocation5 + $0x7e0] sm:$0xff]  ;;  %v4389_v54 = vld [vmem:[#allocation5 + $0x158] sm:$0xff] }
 0x6d4   :  { %7349 = vmatprep.subr.bf16.mxu0 %v7348_v44  ;;  %7413 = vmatprep.subr.bf16.mxu1 %v7412_v47  ;;  %v7362_v44 = vpack.c.bf16 %v3986_v12, %v3978_v24  ;;  %v7426_v47 = vpack.c.bf16 %v3988_v34, %v3980_v4  ;;  %v4378_v58 = vld [vmem:[#allocation5 + $0x100] sm:$0xff]  ;;  %v4380_v24 = vld [vmem:[#allocation5 + $0x110] sm:$0xff]  ;;  %v4395_v12 = vld [vmem:[#allocation5 + $0x188] sm:$0xff] }
 0x6d5   :  { %v4403_v4 = vld [vmem:[#allocation5 + $0x1c8] sm:$0xff]  ;;  %v4397_v34 = vld [vmem:[#allocation5 + $0x198] sm:$0xff] }
 0x6d7   :  { %7351 = vmatpush1.bf16.msra.mxu0 %v7350_v5  ;;  %7415 = vmatpush1.bf16.msra.mxu1 %v7414_v2  ;;  %v4354_v5 = vld [vmem:[#allocation5 + $0x40] sm:$0xff]  ;;  %v7492_v2 = vpack.c.bf16 %v4357_v27, %v4349_v15  ;;  %v4396_v27 = vld [vmem:[#allocation5 + $0x190] sm:$0xff] }
 0x6d8   :  { %7353 = vmatprep.subr.bf16.mxu0 %v7352_v48  ;;  %7417 = vmatprep.subr.bf16.mxu1 %v7416_v13  ;;  %v7430_v21 = vpack.c.bf16 %v4354_v5, %v4346_v52  ;;  %v4356_v48 = vld [vmem:[#allocation5 + $0x50] sm:$0xff]  ;;  %v4363_v13 = vld [vmem:[#allocation5 + $0x88] sm:$0xff]  ;;  %v4402_v15 = vld [vmem:[#allocation5 + $0x1c0] sm:$0xff] }
 0x6d9   :  { %v7494_v22 = vpack.c.bf16 %v4356_v48, %v4348_v18  ;;  %v7432_v16 = vpack.c.bf16 %v4371_v42, %v4363_v13  ;;  %v4404_v52 = vld [vmem:[#allocation5 + $0x1d0] sm:$0xff]  ;;  %v4411_v5 = vld [vmem:[#allocation5 + $0x208] sm:$0xff]  ;;  %v4421_v18 = vld [vmem:[#allocation5 + $0x258] sm:$0xff]  ;;  %v7442_v48 = vpack.c.bf16 %v4402_v15, %v4394_v39 }
 0x6da   :  { %v7506_v13 = vpack.c.bf16 %v4404_v52, %v4396_v27  ;;  %v4410_v42 = vld [vmem:[#allocation5 + $0x200] sm:$0xff]  ;;  %v4452_v39 = vld [vmem:[#allocation5 + $0x350] sm:$0xff]  ;;  %v4459_v15 = vld [vmem:[#allocation5 + $0x388] sm:$0xff] }
 0x6db   :  { %7355 = vmatpush1.bf16.msra.mxu0 %v7354_v7  ;;  %7419 = vmatpush1.bf16.msra.mxu1 %v7418_v19  ;;  %v4362_v7 = vld [vmem:[#allocation5 + $0x80] sm:$0xff]  ;;  %v4461_v27 = vld [vmem:[#allocation5 + $0x398] sm:$0xff] }
 0x6dc   :  { %7357 = vmatprep.subr.bf16.mxu0 %v7356_v28  ;;  %7421 = vmatprep.subr.bf16.mxu1 %v7420_v38  ;;  %v4370_v19 = vld [vmem:[#allocation5 + $0xc0] sm:$0xff]  ;;  %v4372_v28 = vld [vmem:[#allocation5 + $0xd0] sm:$0xff]  ;;  %v4379_v38 = vld [vmem:[#allocation5 + $0x108] sm:$0xff] }
 0x6dd   :  { %v7434_v56 = vpack.c.bf16 %v4370_v19, %v4362_v7  ;;  %v7498_v25 = vpack.c.bf16 %v4372_v28, %v4364_v33  ;;  %v7436_v8 = vpack.c.bf16 %v4387_v41, %v4379_v38  ;;  %v4427_v7 = vld [vmem:[#allocation5 + $0x288] sm:$0xff]  ;;  %v4429_v33 = vld [vmem:[#allocation5 + $0x298] sm:$0xff]  ;;  %v7446_v28 = vpack.c.bf16 %v4418_v55, %v4410_v42  ;;  %v4468_v42 = vld [vmem:[#allocation5 + $0x3d0] sm:$0xff] }
 0x6de   :  { %v4435_v19 = vld [vmem:[#allocation5 + $0x2c8] sm:$0xff]  ;;  %v4469_v52 = vld [vmem:[#allocation5 + $0x3d8] sm:$0xff] }
 0x6df   :  { %7359 = vmatpush1.bf16.msra.mxu0 %v7358_v60  ;;  %7423 = vmatpush1.bf16.msra.mxu1 %v7422_v10  ;;  %v7500_v60 = vpack.c.bf16 %v4389_v54, %v4381_v11  ;;  %v4386_v10 = vld [vmem:[#allocation5 + $0x140] sm:$0xff]  ;;  %v7448_v41 = vpack.c.bf16 %v4435_v19, %v4427_v7  ;;  %v4428_v11 = vld [vmem:[#allocation5 + $0x290] sm:$0xff]  ;;  %v4477_v7 = vld [vmem:[#allocation5 + $0x418] sm:$0xff] }
 0x6e0   :  { %7361 = vmatprep.subr.bf16.mxu0 %v7360_v30  ;;  %7425 = vmatprep.subr.bf16.mxu1 %v7424_v3  ;;  %v4388_v30 = vld [vmem:[#allocation5 + $0x150] sm:$0xff]  ;;  %v7438_v3 = vpack.c.bf16 %v4386_v10, %v4378_v58  ;;  %v4451_v10 = vld [vmem:[#allocation5 + $0x348] sm:$0xff] }
 0x6e1   :  { %v4436_v58 = vld [vmem:[#allocation5 + $0x2d0] sm:$0xff] }
 0x6e3   :  { %7363 = vmatpush1.bf16.msra.mxu0 %v7362_v44  ;;  %7427 = vmatpush1.bf16.msra.mxu1 %v7426_v47  ;;  %v7502_v44 = vpack.c.bf16 %v4388_v30, %v4380_v24  ;;  %v7440_v47 = vpack.c.bf16 %v4403_v4, %v4395_v12  ;;  %v4445_v24 = vld [vmem:[#allocation5 + $0x318] sm:$0xff]  ;;  %v7514_v12 = vpack.c.bf16 %v4436_v58, %v4428_v11  ;;  %v4499_v58 = vld [vmem:[#allocation5 + $0x4c8] sm:$0xff] }
 0x6e4   :  { %7429 = vmatprep.subr.bf16.mxu0 %v7428_v23  ;;  %7493 = vmatprep.subr.bf16.mxu1 %v7492_v2  ;;  %v7504_v23 = vpack.c.bf16 %v4405_v9, %v4397_v34  ;;  %v4419_v2 = vld [vmem:[#allocation5 + $0x248] sm:$0xff]  ;;  %v4453_v30 = vld [vmem:[#allocation5 + $0x358] sm:$0xff]  ;;  %v4442_v34 = vld [vmem:[#allocation5 + $0x300] sm:$0xff] }
 0x6e5   :  { %v7516_v9 = vpack.c.bf16 %v4453_v30, %v4445_v24  ;;  %v4501_v24 = vld [vmem:[#allocation5 + $0x4d8] sm:$0xff]  ;;  %v4490_v30 = vld [vmem:[#allocation5 + $0x480] sm:$0xff] }
 0x6e6   :  { %4197 = vmatmul.mubr.f32.vlgmr.msra.gmra.mrb[10].mxu0 %v8975_v32  ;;  %4268 = vmatmul.mubr.f32.vlgmr.msra.gmra.mrb[42].mxu1 %v8975_v32 }
 0x6e7   :  { %7431 = vmatpush1.bf16.msra.mxu0 %v7430_v21  ;;  %7495 = vmatpush1.bf16.msra.mxu1 %v7494_v22  ;;  %v4413_v21 = vld [vmem:[#allocation5 + $0x218] sm:$0xff]  ;;  %v7444_v22 = vpack.c.bf16 %v4419_v2, %v4411_v5 }
 0x6e8   :  { %7433 = vmatprep.subr.bf16.mxu0 %v7432_v16  ;;  %7497 = vmatprep.subr.bf16.mxu1 %v7496_v63  ;;  %v7508_v16 = vpack.c.bf16 %v4421_v18, %v4413_v21  ;;  %v4420_v63 = vld [vmem:[#allocation5 + $0x250] sm:$0xff]  ;;  %v4458_v18 = vld [vmem:[#allocation5 + $0x380] sm:$0xff] }
 0x6e9   :  { %v7510_v38 = vpack.c.bf16 %v4420_v63, %v4412_v29  ;;  %v4483_v63 = vld [vmem:[#allocation5 + $0x448] sm:$0xff] }
 0x6eb   :  { %7435 = vmatpush1.bf16.msra.mxu0 %v7434_v56  ;;  %7499 = vmatpush1.bf16.msra.mxu1 %v7498_v25  ;;  %v4437_v56 = vld [vmem:[#allocation5 + $0x2d8] sm:$0xff]  ;;  %v4426_v25 = vld [vmem:[#allocation5 + $0x280] sm:$0xff] }
 0x6ec   :  { %7437 = vmatprep.subr.bf16.mxu0 %v7436_v8  ;;  %7501 = vmatprep.subr.bf16.mxu1 %v7500_v60  ;;  %v4434_v8 = vld [vmem:[#allocation5 + $0x2c0] sm:$0xff]  ;;  %v7512_v54 = vpack.c.bf16 %v4437_v56, %v4429_v33  ;;  %v4443_v60 = vld [vmem:[#allocation5 + $0x308] sm:$0xff]  ;;  %v4485_v33 = vld [vmem:[#allocation5 + $0x458] sm:$0xff] }
 0x6ed   :  { %v7452_v4 = vpack.c.bf16 %v4451_v10, %v4443_v60  ;;  %v7524_v56 = vpack.c.bf16 %v4485_v33, %v4477_v7  ;;  %v4493_v60 = vld [vmem:[#allocation5 + $0x498] sm:$0xff]  ;;  %v4530_v7 = vld [vmem:[#allocation5 + $0x5c0] sm:$0xff] }
 0x6ef   :  { %7439 = vmatpush1.bf16.msra.mxu0 %v7438_v3  ;;  %7503 = vmatpush1.bf16.msra.mxu1 %v7502_v44  ;;  %v7450_v3 = vpack.c.bf16 %v4434_v8, %v4426_v25  ;;  %v4450_v44 = vld [vmem:[#allocation5 + $0x340] sm:$0xff]  ;;  %v4484_v8 = vld [vmem:[#allocation5 + $0x450] sm:$0xff] }
 0x6f0   :  { %7441 = vmatprep.subr.bf16.mxu0 %v7440_v47  ;;  %7505 = vmatprep.subr.bf16.mxu1 %v7504_v23  ;;  %v4444_v47 = vld [vmem:[#allocation5 + $0x310] sm:$0xff]  ;;  %v4467_v23 = vld [vmem:[#allocation5 + $0x3c8] sm:$0xff]  ;;  %v7454_v5 = vpack.c.bf16 %v4450_v44, %v4442_v34 }
 0x6f1   :  { %v7518_v2 = vpack.c.bf16 %v4452_v39, %v4444_v47  ;;  %v7456_v21 = vpack.c.bf16 %v4467_v23, %v4459_v15  ;;  %v4492_v34 = vld [vmem:[#allocation5 + $0x490] sm:$0xff]  ;;  %v4515_v39 = vld [vmem:[#allocation5 + $0x548] sm:$0xff]  ;;  %v4509_v15 = vld [vmem:[#allocation5 + $0x518] sm:$0xff] }
 0x6f2   :  { %v4500_v44 = vld [vmem:[#allocation5 + $0x4d0] sm:$0xff] }
 0x6f3   :  { %7443 = vmatpush1.bf16.msra.mxu0 %v7442_v48  ;;  %7507 = vmatpush1.bf16.msra.mxu1 %v7506_v13  ;;  %v4466_v48 = vld [vmem:[#allocation5 + $0x3c0] sm:$0xff]  ;;  %v7520_v13 = vpack.c.bf16 %v4469_v52, %v4461_v27  ;;  %v7530_v47 = vpack.c.bf16 %v4500_v44, %v4492_v34  ;;  %v4517_v27 = vld [vmem:[#allocation5 + $0x558] sm:$0xff]  ;;  %v4563_v34 = vld [vmem:[#allocation5 + $0x6c8] sm:$0xff] }
 0x6f4   :  { %7445 = vmatprep.subr.bf16.mxu0 %v7444_v22  ;;  %7509 = vmatprep.subr.bf16.mxu1 %v7508_v16  ;;  %v4460_v22 = vld [vmem:[#allocation5 + $0x390] sm:$0xff]  ;;  %v7458_v55 = vpack.c.bf16 %v4466_v48, %v4458_v18  ;;  %v4475_v16 = vld [vmem:[#allocation5 + $0x408] sm:$0xff]  ;;  %v4506_v52 = vld [vmem:[#allocation5 + $0x500] sm:$0xff] }
 0x6f5   :  { %v7522_v29 = vpack.c.bf16 %v4468_v42, %v4460_v22  ;;  %v7460_v19 = vpack.c.bf16 %v4483_v63, %v4475_v16  ;;  %v4508_v18 = vld [vmem:[#allocation5 + $0x510] sm:$0xff]  ;;  %v4523_v22 = vld [vmem:[#allocation5 + $0x588] sm:$0xff]  ;;  %v4533_v16 = vld [vmem:[#allocation5 + $0x5d8] sm:$0xff] }
 0x6f6   :  { %v4516_v48 = vld [vmem:[#allocation5 + $0x550] sm:$0xff]  ;;  %v4531_v42 = vld [vmem:[#allocation5 + $0x5c8] sm:$0xff]  ;;  %v4522_v63 = vld [vmem:[#allocation5 + $0x580] sm:$0xff] }
 0x6f7   :  { %7447 = vmatpush1.bf16.msra.mxu0 %v7446_v28  ;;  %7511 = vmatpush1.bf16.msra.mxu1 %v7510_v38  ;;  %v4474_v28 = vld [vmem:[#allocation5 + $0x400] sm:$0xff]  ;;  %v7474_v33 = vpack.c.bf16 %v4530_v7, %v4522_v63  ;;  %v4557_v44 = vld [vmem:[#allocation5 + $0x698] sm:$0xff]  ;;  %v4580_v7 = vld [vmem:[#allocation5 + $0x750] sm:$0xff] }
 0x6f8   :  { %7449 = vmatprep.subr.bf16.mxu0 %v7448_v41  ;;  %7513 = vmatprep.subr.bf16.mxu1 %v7512_v54  ;;  %v4482_v38 = vld [vmem:[#allocation5 + $0x440] sm:$0xff]  ;;  %v4476_v41 = vld [vmem:[#allocation5 + $0x410] sm:$0xff]  ;;  %v4491_v54 = vld [vmem:[#allocation5 + $0x488] sm:$0xff] }
 0x6f9   :  { %v7462_v25 = vpack.c.bf16 %v4482_v38, %v4474_v28  ;;  %v7526_v11 = vpack.c.bf16 %v4484_v8, %v4476_v41  ;;  %v7464_v10 = vpack.c.bf16 %v4499_v58, %v4491_v54  ;;  %v4532_v28 = vld [vmem:[#allocation5 + $0x5d0] sm:$0xff]  ;;  %v4539_v41 = vld [vmem:[#allocation5 + $0x608] sm:$0xff]  ;;  %v4541_v8 = vld [vmem:[#allocation5 + $0x618] sm:$0xff] }
 0x6fa   :  { %v4549_v54 = vld [vmem:[#allocation5 + $0x658] sm:$0xff]  ;;  %v4538_v58 = vld [vmem:[#allocation5 + $0x600] sm:$0xff] }
 0x6fb   :  { %7451 = vmatpush1.bf16.msra.mxu0 %v7450_v3  ;;  %7515 = vmatpush1.bf16.msra.mxu1 %v7514_v12  ;;  %v4498_v3 = vld [vmem:[#allocation5 + $0x4c0] sm:$0xff]  ;;  %v7528_v12 = vpack.c.bf16 %v4501_v24, %v4493_v60 }
 0x6fc   :  { %7453 = vmatprep.subr.bf16.mxu0 %v7452_v4  ;;  %7517 = vmatprep.subr.bf16.mxu1 %v7516_v9  ;;  %v7466_v4 = vpack.c.bf16 %v4498_v3, %v4490_v30  ;;  %v4507_v9 = vld [vmem:[#allocation5 + $0x508] sm:$0xff]  ;;  %v4546_v60 = vld [vmem:[#allocation5 + $0x640] sm:$0xff]  ;;  %v4540_v30 = vld [vmem:[#allocation5 + $0x610] sm:$0xff] }
 0x6fd   :  { %v7468_v23 = vpack.c.bf16 %v4515_v39, %v4507_v9  ;;  %v7478_v24 = vpack.c.bf16 %v4546_v60, %v4538_v58  ;;  %v4548_v3 = vld [vmem:[#allocation5 + $0x650] sm:$0xff]  ;;  %v4565_v9 = vld [vmem:[#allocation5 + $0x6d8] sm:$0xff]  ;;  %v4554_v39 = vld [vmem:[#allocation5 + $0x680] sm:$0xff] }
 0x6fe   :  { %v4596_v58 = vld [vmem:[#allocation5 + $0x7d0] sm:$0xff] }
 0x6ff   :  { %7455 = vmatpush1.bf16.msra.mxu0 %v7454_v5  ;;  %7519 = vmatpush1.bf16.msra.mxu1 %v7518_v2  ;;  %v4514_v5 = vld [vmem:[#allocation5 + $0x540] sm:$0xff]  ;;  %v7532_v2 = vpack.c.bf16 %v4517_v27, %v4509_v15 }
 0x700   :  { %7457 = vmatprep.subr.bf16.mxu0 %v7456_v21  ;;  %7521 = vmatprep.subr.bf16.mxu1 %v7520_v13  ;;  %v7470_v21 = vpack.c.bf16 %v4514_v5, %v4506_v52  ;;  %v7534_v13 = vpack.c.bf16 %v4516_v48, %v4508_v18  ;;  %v4562_v15 = vld [vmem:[#allocation5 + $0x6c0] sm:$0xff]  ;;  %v4556_v52 = vld [vmem:[#allocation5 + $0x690] sm:$0xff]  ;;  %v4579_v18 = vld [vmem:[#allocation5 + $0x748] sm:$0xff] }
 0x701   :  { %v7482_v27 = vpack.c.bf16 %v4562_v15, %v4554_v39  ;;  %v4564_v5 = vld [vmem:[#allocation5 + $0x6d0] sm:$0xff]  ;;  %v4573_v48 = vld [vmem:[#allocation5 + $0x718] sm:$0xff] }
 0x703   :  { %7459 = vmatpush1.bf16.msra.mxu0 %v7458_v55  ;;  %7523 = vmatpush1.bf16.msra.mxu1 %v7522_v29  ;;  %v4525_v55 = vld [vmem:[#allocation5 + $0x598] sm:$0xff]  ;;  %v7472_v29 = vpack.c.bf16 %v4531_v42, %v4523_v22 }
 0x704   :  { %7461 = vmatprep.subr.bf16.mxu0 %v7460_v19  ;;  %7525 = vmatprep.subr.bf16.mxu1 %v7524_v56  ;;  %v7536_v19 = vpack.c.bf16 %v4533_v16, %v4525_v55  ;;  %v4524_v56 = vld [vmem:[#allocation5 + $0x590] sm:$0xff]  ;;  %v4570_v55 = vld [vmem:[#allocation5 + $0x700] sm:$0xff] }
 0x705   :  { %v7538_v38 = vpack.c.bf16 %v4532_v28, %v4524_v56  ;;  %v4572_v16 = vld [vmem:[#allocation5 + $0x710] sm:$0xff] }
 0x706   :  { %v7550_v56 = vpack.c.bf16 %v4580_v7, %v4572_v16 }
 0x707   :  { %7463 = vmatpush1.bf16.msra.mxu0 %v7462_v25  ;;  %7527 = vmatpush1.bf16.msra.mxu1 %v7526_v11  ;;  %v4547_v25 = vld [vmem:[#allocation5 + $0x648] sm:$0xff] }
 0x708   :  { %7465 = vmatprep.subr.bf16.mxu0 %v7464_v10  ;;  %7529 = vmatprep.subr.bf16.mxu1 %v7528_v12  ;;  %v7476_v11 = vpack.c.bf16 %v4547_v25, %v4539_v41  ;;  %v7540_v10 = vpack.c.bf16 %v4549_v54, %v4541_v8  ;;  %v7542_v12 = vpack.c.bf16 %v4548_v3, %v4540_v30  ;;  %v4597_v41 = vld [vmem:[#allocation5 + $0x7d8] sm:$0xff]  ;;  %v4586_v25 = vld [vmem:[#allocation5 + $0x780] sm:$0xff]  ;;  %v4588_v54 = vld [vmem:[#allocation5 + $0x790] sm:$0xff] }
 0x709   :  { %v4359_v30 = vld [vmem:[#allocation5 + $0x68] sm:$0xff]  ;;  %v4353_v3 = vld [vmem:[#allocation5 + $0x38] sm:$0xff] }
 0x70b   :  { %7467 = vmatpush1.bf16.msra.mxu0 %v7466_v4  ;;  %7531 = vmatpush1.bf16.msra.mxu1 %v7530_v47  ;;  %v4555_v4 = vld [vmem:[#allocation5 + $0x688] sm:$0xff] }
 0x70c   :  { %7469 = vmatprep.subr.bf16.mxu0 %v7468_v23  ;;  %7533 = vmatprep.subr.bf16.mxu1 %v7532_v2  ;;  %v7480_v47 = vpack.c.bf16 %v4563_v34, %v4555_v4  ;;  %v7544_v23 = vpack.c.bf16 %v4565_v9, %v4557_v44  ;;  %v4571_v2 = vld [vmem:[#allocation5 + $0x708] sm:$0xff]  ;;  %v4361_v4 = vld [vmem:[#allocation5 + $0x78] sm:$0xff] }
 0x70d   :  { %v7484_v22 = vpack.c.bf16 %v4579_v18, %v4571_v2  ;;  %v7620_v34 = vpack.c.bf16 %v4361_v4, %v4353_v3 }
 0x70f   :  { %7471 = vmatpush1.bf16.msra.mxu0 %v7470_v21  ;;  %7535 = vmatpush1.bf16.msra.mxu1 %v7534_v13  ;;  %v7546_v21 = vpack.c.bf16 %v4564_v5, %v4556_v52  ;;  %v4581_v13 = vld [vmem:[#allocation5 + $0x758] sm:$0xff] }
 0x710   :  { %7473 = vmatprep.subr.bf16.mxu0 %v7472_v29  ;;  %7537 = vmatprep.subr.bf16.mxu1 %v7536_v19  ;;  %v7548_v42 = vpack.c.bf16 %v4581_v13, %v4573_v48  ;;  %v4578_v29 = vld [vmem:[#allocation5 + $0x740] sm:$0xff]  ;;  %v4587_v19 = vld [vmem:[#allocation5 + $0x788] sm:$0xff] }
 0x711   :  { %v7486_v63 = vpack.c.bf16 %v4578_v29, %v4570_v55 }
 0x713   :  { %7475 = vmatpush1.bf16.msra.mxu0 %v7474_v33  ;;  %7539 = vmatpush1.bf16.msra.mxu1 %v7538_v38  ;;  %v4595_v33 = vld [vmem:[#allocation5 + $0x7c8] sm:$0xff]  ;;  %v4589_v38 = vld [vmem:[#allocation5 + $0x798] sm:$0xff] }
 0x714   :  { %7477 = vmatprep.subr.bf16.mxu0 %v7476_v11  ;;  %7541 = vmatprep.subr.bf16.mxu1 %v7540_v10  ;;  %v7488_v28 = vpack.c.bf16 %v4595_v33, %v4587_v19  ;;  %v7552_v8 = vpack.c.bf16 %v4597_v41, %v4589_v38  ;;  %v4594_v11 = vld [vmem:[#allocation5 + $0x7c0] sm:$0xff]  ;;  %v7554_v10 = vpack.c.bf16 %v4596_v58, %v4588_v54 }
 0x715   :  { %v7490_v60 = vpack.c.bf16 %v4594_v11, %v4586_v25 }
 0x717   :  { %7479 = vmatpush1.bf16.msra.mxu0 %v7478_v24  ;;  %7543 = vmatpush1.bf16.msra.mxu1 %v7542_v12  ;;  %v4351_v24 = vld [vmem:[#allocation5 + $0x28] sm:$0xff] }
 0x718   :  { %7481 = vmatprep.subr.bf16.mxu0 %v7480_v47  ;;  %7545 = vmatprep.subr.bf16.mxu1 %v7544_v23  ;;  %v7556_v12 = vpack.c.bf16 %v4359_v30, %v4351_v24 }
 0x71b   :  { %7483 = vmatpush1.bf16.msra.mxu0 %v7482_v27  ;;  %7547 = vmatpush1.bf16.msra.mxu1 %v7546_v21 }
 0x71c   :  { %7485 = vmatprep.subr.bf16.mxu0 %v7484_v22  ;;  %7549 = vmatprep.subr.bf16.mxu1 %v7548_v42 }
 0x71f   :  { %7487 = vmatpush1.bf16.msra.mxu0 %v7486_v63  ;;  %7551 = vmatpush1.bf16.msra.mxu1 %v7550_v56 }
 0x720   :  { %7489 = vmatprep.subr.bf16.mxu0 %v7488_v28  ;;  %7553 = vmatprep.subr.bf16.mxu1 %v7552_v8 }
 0x723   :  { %7491 = vmatpush1.bf16.msra.mxu0 %v7490_v60  ;;  %7555 = vmatpush1.bf16.msra.mxu1 %v7554_v10 }
 0x724   :  { %7557 = vmatprep.subr.bf16.mxu0 %v7556_v12  ;;  %7621 = vmatprep.subr.bf16.mxu1 %v7620_v34 }
 0x779   :  { %v4056_v44 = vpop.f32.mrb[26].mxu0  ;;  %v4127_v47 = vpop.f32.mrb[26].mxu1 }
 0x77a   :  { %v4274_v9 = vadd.f32 %v4056_v44, %v8780_v43  ;;  %v4058_v39 = vpop.f32.mrb[27].mxu0  ;;  %v4129_v15 = vpop.f32.mrb[27].mxu1  ;;  %v8014_v27 = vadd.f32 %v4127_v47, %v8827_v31 }
 0x77b   :  { %v4275_v23 = vadd.f32 %v4058_v39, %v8783_v35  ;;  %v8015_v52 = vadd.f32 %v4129_v15, %v8830_v57 }
 0x77c   :  { %v5817_v5 = vmul.f32 -1.442695, %v4274_v9  ;;  %v5819_v2 = vmul.f32 -1.442695, %v8014_v27  ;;  %v4358_v27 = vld [vmem:[#allocation5 + $0x60] sm:$0xff] }
 0x77d   :  { %v5818_v21 = vmul.f32 -1.442695, %v4275_v23  ;;  %v5820_v18 = vmul.f32 -1.442695, %v8015_v52  ;;  %v4352_v52 = vld [vmem:[#allocation5 + $0x30] sm:$0xff] }
 0x77e   :  { %8264 = vpow2.f32 %v5817_v5 }
 0x77f   :  { %8266 = vpow2.f32 %v5819_v2  ;;  %v4367_v2 = vld [vmem:[#allocation5 + $0xa8] sm:$0xff] }
 0x780   :  { %8268 = vpow2.f32 %v5818_v21 }
 0x781   :  { %8270 = vpow2.f32 %v5820_v18  ;;  %v4375_v18 = vld [vmem:[#allocation5 + $0xe8] sm:$0xff] }
 0x788   :  { %v8265_v48 = vpop.eup %8264 }
 0x789   :  { %v8267_v13 = vpop.eup %8266  ;;  %v4288_v42 = vadd.f32 1.0, %v8265_v48  ;;  %v4369_v48 = vld [vmem:[#allocation5 + $0xb8] sm:$0xff] }
 0x78a   :  { %v8269_v22 = vpop.eup %8268  ;;  %v4300_v55 = vadd.f32 1.0, %v8267_v13  ;;  %v4377_v13 = vld [vmem:[#allocation5 + $0xf8] sm:$0xff] }
 0x78b   :  { %v8271_v43 = vpop.eup %8270  ;;  %v4289_v29 = vadd.f32 1.0, %v8269_v22  ;;  %8272 = vrcp.f32 %v4288_v42 }
 0x78c   :  { %v4301_v35 = vadd.f32 1.0, %v8271_v43  ;;  %8274 = vrcp.f32 %v4300_v55  ;;  %v4366_v55 = vld [vmem:[#allocation5 + $0xa0] sm:$0xff] }
 0x78d   :  { %8276 = vrcp.f32 %v4289_v29  ;;  %v4374_v29 = vld [vmem:[#allocation5 + $0xe0] sm:$0xff] }
 0x78e   :  { %8278 = vrcp.f32 %v4301_v35 }
 0x795   :  { %v8273_v8 = vpop.eup %8272 }
 0x796   :  { %v8275_v11 = vpop.eup %8274 }
 0x797   :  { %v8277_v54 = vpop.eup %8276  ;;  %v4320_v24 = vmul.f32 %v8275_v11, %v8967_v17  ;;  %v4350_v17 = vld [vmem:[#allocation5 + $0x20] sm:$0xff] }
 0x798   :  { %v8279_v58 = vpop.eup %8278  ;;  %v7558_v43 = vpack.c.bf16 %v4358_v27, %v4350_v17  ;;  %v4390_v11 = vld [vmem:[#allocation5 + $0x160] sm:$0xff]  ;;  %v4408_v27 = vld [vmem:[#allocation5 + $0x1f0] sm:$0xff] }
 0x799   :  { %v4321_v12 = vmul.f32 %v8279_v58, %v8969_v37  ;;  %v4360_v37 = vld [vmem:[#allocation5 + $0x70] sm:$0xff] }
 0x79a   :  { %v7622_v42 = vpack.c.bf16 %v4360_v37, %v4352_v52  ;;  %v4415_v52 = vld [vmem:[#allocation5 + $0x228] sm:$0xff] }
 0x79b   :  { %v4423_v37 = vld [vmem:[#allocation5 + $0x268] sm:$0xff] }
 0x7b9   :  { %v4198_v16 = vpop.f32.mrb[10].mxu0  ;;  %v4269_v63 = vpop.f32.mrb[42].mxu1 }
 0x7ba   :  { %v8030_v7 = vadd.f32 %v4198_v16, %v8833_v1  ;;  %v8046_v19 = vadd.f32 %v4269_v63, %v8849_v0  ;;  %v4200_v33 = vpop.f32.mrb[11].mxu0  ;;  %v4271_v56 = vpop.f32.mrb[43].mxu1  ;;  %v4368_v16 = vld [vmem:[#allocation5 + $0xb0] sm:$0xff] }
 0x7bb   :  { %v8031_v28 = vadd.f32 %v4200_v33, %v8836_v59  ;;  %v8047_v38 = vadd.f32 %v4271_v56, %v8852_v36  ;;  %v4376_v63 = vld [vmem:[#allocation5 + $0xf0] sm:$0xff]  ;;  %v7624_v33 = vpack.c.bf16 %v4377_v13, %v4369_v48  ;;  %v4391_v56 = vld [vmem:[#allocation5 + $0x168] sm:$0xff]  ;;  %v4414_v48 = vld [vmem:[#allocation5 + $0x220] sm:$0xff] }
 0x7bc   :  { %8280 = vtanh.f32 %v8030_v7  ;;  %v5821_v41 = vmul.f32 -1.442695, %v8046_v19  ;;  %v4383_v7 = vld [vmem:[#allocation5 + $0x128] sm:$0xff]  ;;  %v7560_v19 = vpack.c.bf16 %v4375_v18, %v4367_v2  ;;  %v4425_v2 = vld [vmem:[#allocation5 + $0x278] sm:$0xff]  ;;  %v4422_v13 = vld [vmem:[#allocation5 + $0x260] sm:$0xff] }
 0x7bd   :  { %8282 = vtanh.f32 %v8031_v28  ;;  %v5822_v25 = vmul.f32 -1.442695, %v8047_v38  ;;  %v4385_v28 = vld [vmem:[#allocation5 + $0x138] sm:$0xff] }
 0x7be   :  { %8284 = vpow2.f32 %v5821_v41  ;;  %v4393_v38 = vld [vmem:[#allocation5 + $0x178] sm:$0xff]  ;;  %v7562_v41 = vpack.c.bf16 %v4374_v29, %v4366_v55  ;;  %v4416_v55 = vld [vmem:[#allocation5 + $0x230] sm:$0xff] }
 0x7bf   :  { %8286 = vpow2.f32 %v5822_v25  ;;  %v7626_v25 = vpack.c.bf16 %v4376_v63, %v4368_v16  ;;  %v7628_v58 = vpack.c.bf16 %v4393_v38, %v4385_v28  ;;  %v4424_v29 = vld [vmem:[#allocation5 + $0x270] sm:$0xff]  ;;  %v4431_v16 = vld [vmem:[#allocation5 + $0x2a8] sm:$0xff]  ;;  %v4430_v28 = vld [vmem:[#allocation5 + $0x2a0] sm:$0xff] }
 0x7c0   :  { %v4439_v63 = vld [vmem:[#allocation5 + $0x2e8] sm:$0xff]  ;;  %v4438_v38 = vld [vmem:[#allocation5 + $0x2e0] sm:$0xff] }
 0x7c6   :  { %v8281_v60 = vpop.eup %8280 }
 0x7c7   :  { %v8283_v10 = vpop.eup %8282  ;;  %v4322_v30 = vmul.f32 %v8281_v60, %v8273_v8  ;;  %v4382_v8 = vld [vmem:[#allocation5 + $0x120] sm:$0xff]  ;;  %v4384_v60 = vld [vmem:[#allocation5 + $0x130] sm:$0xff] }
 0x7c8   :  { %v8285_v3 = vpop.eup %8284  ;;  %v4323_v4 = vmul.f32 %v8283_v10, %v8277_v54  ;;  %v7564_v54 = vpack.c.bf16 %v4391_v56, %v4383_v7  ;;  %v4392_v10 = vld [vmem:[#allocation5 + $0x170] sm:$0xff]  ;;  %v4433_v7 = vld [vmem:[#allocation5 + $0x2b8] sm:$0xff]  ;;  %v7638_v56 = vpack.c.bf16 %v4424_v29, %v4416_v55 }
 0x7c9   :  { %v8287_v34 = vpop.eup %8286  ;;  %v8995_v44 = vadd.f32 %v4322_v30, %v4320_v24  ;;  %v4314_v47 = vadd.f32 1.0, %v8285_v3  ;;  %v4399_v24 = vld [vmem:[#allocation5 + $0x1a8] sm:$0xff]  ;;  %v4401_v3 = vld [vmem:[#allocation5 + $0x1b8] sm:$0xff] }
 0x7ca   :  { %v8997_v9 = vadd.f32 %v4323_v4, %v4321_v12  ;;  %v4315_v39 = vadd.f32 1.0, %v8287_v34  ;;  %v4407_v30 = vld [vmem:[#allocation5 + $0x1e8] sm:$0xff]  ;;  %v4409_v12 = vld [vmem:[#allocation5 + $0x1f8] sm:$0xff]  ;;  %v7566_v4 = vpack.c.bf16 %v4390_v11, %v4382_v8  ;;  %v7630_v34 = vpack.c.bf16 %v4392_v10, %v4384_v60  ;;  %v4432_v8 = vld [vmem:[#allocation5 + $0x2b0] sm:$0xff] }
 0x7cb   :  { %8288 = vtanh.f32 %v8995_v44  ;;  %v7632_v17 = vpack.c.bf16 %v4409_v12, %v4401_v3  ;;  %v4440_v11 = vld [vmem:[#allocation5 + $0x2f0] sm:$0xff]  ;;  %v4449_v60 = vld [vmem:[#allocation5 + $0x338] sm:$0xff]  ;;  %v4446_v3 = vld [vmem:[#allocation5 + $0x320] sm:$0xff] }
 0x7cc   :  { %8290 = vrcp.f32 %v4314_v47  ;;  %v4398_v47 = vld [vmem:[#allocation5 + $0x1a0] sm:$0xff]  ;;  %v4457_v10 = vld [vmem:[#allocation5 + $0x378] sm:$0xff] }
 0x7cd   :  { %8292 = vtanh.f32 %v8997_v9  ;;  %v4454_v12 = vld [vmem:[#allocation5 + $0x360] sm:$0xff]  ;;  %v4481_v55 = vld [vmem:[#allocation5 + $0x438] sm:$0xff] }
 0x7ce   :  { %8294 = vrcp.f32 %v4315_v39  ;;  %v4406_v39 = vld [vmem:[#allocation5 + $0x1e0] sm:$0xff]  ;;  %v4489_v29 = vld [vmem:[#allocation5 + $0x478] sm:$0xff] }
 0x7d5   :  { %v8289_v15 = vpop.eup %8288 }
 0x7d6   :  { %v8291_v23 = vpop.eup %8290 }
 0x7d7   :  { %v8293_v5 = vpop.eup %8292  ;;  %v9003_v35 = vmul.f32 %v8291_v23, %v8289_v15  ;;  %v7568_v15 = vpack.c.bf16 %v4407_v30, %v4399_v24  ;;  %v4400_v23 = vld [vmem:[#allocation5 + $0x1b0] sm:$0xff]  ;;  %v7578_v24 = vpack.c.bf16 %v4438_v38, %v4430_v28  ;;  %v7642_v30 = vpack.c.bf16 %v4440_v11, %v4432_v8  ;;  %v4497_v8 = vld [vmem:[#allocation5 + $0x4b8] sm:$0xff] }
 0x7d8   :  { %v8295_v21 = vpop.eup %8294  ;;  %v7634_v18 = vpack.c.bf16 %v4408_v27, %v4400_v23  ;;  %v4465_v23 = vld [vmem:[#allocation5 + $0x3b8] sm:$0xff]  ;;  %v4480_v28 = vld [vmem:[#allocation5 + $0x430] sm:$0xff] }
 0x7d9   :  { %v9001_v22 = vmul.f32 %v8295_v21, %v8293_v5  ;;  %v4417_v5 = vld [vmem:[#allocation5 + $0x238] sm:$0xff]  ;;  %v7570_v21 = vpack.c.bf16 %v4406_v39, %v4398_v47  ;;  %v4448_v47 = vld [vmem:[#allocation5 + $0x330] sm:$0xff] }
 0x7da   :  { %v4456_v39 = vld [vmem:[#allocation5 + $0x370] sm:$0xff]  ;;  %v4473_v27 = vld [vmem:[#allocation5 + $0x3f8] sm:$0xff] }
 0x7db   :  { %4666 = vmatprep.mubr.f32.mxu0 %v9001_v22  ;;  %4737 = vmatprep.mubr.f32.mxu1 %v9001_v22  ;;  %v4488_v38 = vld [vmem:[#allocation5 + $0x470] sm:$0xff]  ;;  %v4505_v11 = vld [vmem:[#allocation5 + $0x4f8] sm:$0xff] }
 0x7dc   :  { %4667 = vmatmul.mubr.f32.vlgmr.msra.gmra.mrb[28].mxu0 %v9003_v35  ;;  %4738 = vmatmul.mubr.f32.vlgmr.msra.gmra.mrb[28].mxu1 %v9003_v35 }
 0x7dd   :  { %7559 = vmatpush1.bf16.msra.mxu0 %v7558_v43  ;;  %7623 = vmatpush1.bf16.msra.mxu1 %v7622_v42  ;;  %v7572_v43 = vpack.c.bf16 %v4423_v37, %v4415_v52  ;;  %v7636_v42 = vpack.c.bf16 %v4425_v2, %v4417_v5  ;;  %v7582_v52 = vpack.c.bf16 %v4454_v12, %v4446_v3  ;;  %v4462_v5 = vld [vmem:[#allocation5 + $0x3a0] sm:$0xff]  ;;  %v4496_v3 = vld [vmem:[#allocation5 + $0x4b0] sm:$0xff] }
 0x7de   :  { %4808 = vmatprep.mubr.f32.mxu0 %v9001_v22  ;;  %4879 = vmatprep.mubr.f32.mxu1 %v9001_v22  ;;  %v7646_v37 = vpack.c.bf16 %v4456_v39, %v4448_v47  ;;  %v4470_v2 = vld [vmem:[#allocation5 + $0x3e0] sm:$0xff]  ;;  %v4504_v12 = vld [vmem:[#allocation5 + $0x4f0] sm:$0xff]  ;;  %v4513_v47 = vld [vmem:[#allocation5 + $0x538] sm:$0xff] }
 0x7df   :  { %7561 = vmatprep.subr.bf16.mxu0 %v7560_v19  ;;  %7625 = vmatprep.subr.bf16.mxu1 %v7624_v33  ;;  %v4441_v19 = vld [vmem:[#allocation5 + $0x2f8] sm:$0xff]  ;;  %v7574_v33 = vpack.c.bf16 %v4422_v13, %v4414_v48  ;;  %v4464_v48 = vld [vmem:[#allocation5 + $0x3b0] sm:$0xff] }
 0x7e0   :  { %v4472_v13 = vld [vmem:[#allocation5 + $0x3f0] sm:$0xff]  ;;  %v4521_v39 = vld [vmem:[#allocation5 + $0x578] sm:$0xff] }
 0x7e1   :  { %7563 = vmatpush1.bf16.msra.mxu0 %v7562_v41  ;;  %7627 = vmatpush1.bf16.msra.mxu1 %v7626_v25  ;;  %v7576_v41 = vpack.c.bf16 %v4439_v63, %v4431_v16  ;;  %v7640_v25 = vpack.c.bf16 %v4441_v19, %v4433_v7  ;;  %v7586_v16 = vpack.c.bf16 %v4470_v2, %v4462_v5  ;;  %v4478_v7 = vld [vmem:[#allocation5 + $0x420] sm:$0xff]  ;;  %v4512_v5 = vld [vmem:[#allocation5 + $0x530] sm:$0xff] }
 0x7e2   :  { %7565 = vmatprep.subr.bf16.mxu0 %v7564_v54  ;;  %7629 = vmatprep.subr.bf16.mxu1 %v7628_v58  ;;  %v4447_v54 = vld [vmem:[#allocation5 + $0x328] sm:$0xff]  ;;  %v7650_v63 = vpack.c.bf16 %v4472_v13, %v4464_v48  ;;  %v4486_v19 = vld [vmem:[#allocation5 + $0x460] sm:$0xff]  ;;  %v4520_v2 = vld [vmem:[#allocation5 + $0x570] sm:$0xff] }
 0x7e3   :  { %v4455_v58 = vld [vmem:[#allocation5 + $0x368] sm:$0xff]  ;;  %v4529_v48 = vld [vmem:[#allocation5 + $0x5b8] sm:$0xff] }
 0x7e4   :  { %v4537_v13 = vld [vmem:[#allocation5 + $0x5f8] sm:$0xff] }
 0x7e5   :  { %7567 = vmatpush1.bf16.msra.mxu0 %v7566_v4  ;;  %7631 = vmatpush1.bf16.msra.mxu1 %v7630_v34  ;;  %v7580_v4 = vpack.c.bf16 %v4455_v58, %v4447_v54  ;;  %v7644_v34 = vpack.c.bf16 %v4457_v10, %v4449_v60  ;;  %v7590_v54 = vpack.c.bf16 %v4486_v19, %v4478_v7  ;;  %v4494_v60 = vld [vmem:[#allocation5 + $0x4a0] sm:$0xff]  ;;  %v4528_v7 = vld [vmem:[#allocation5 + $0x5b0] sm:$0xff] }
 0x7e6   :  { %7569 = vmatprep.subr.bf16.mxu0 %v7568_v15  ;;  %7633 = vmatprep.subr.bf16.mxu1 %v7632_v17  ;;  %v4463_v15 = vld [vmem:[#allocation5 + $0x3a8] sm:$0xff]  ;;  %v7654_v58 = vpack.c.bf16 %v4488_v38, %v4480_v28  ;;  %v4502_v10 = vld [vmem:[#allocation5 + $0x4e0] sm:$0xff]  ;;  %v4536_v19 = vld [vmem:[#allocation5 + $0x5f0] sm:$0xff] }
 0x7e7   :  { %v4471_v17 = vld [vmem:[#allocation5 + $0x3e8] sm:$0xff]  ;;  %v4545_v28 = vld [vmem:[#allocation5 + $0x638] sm:$0xff] }
 0x7e8   :  { %v4553_v38 = vld [vmem:[#allocation5 + $0x678] sm:$0xff] }
 0x7e9   :  { %7571 = vmatpush1.bf16.msra.mxu0 %v7570_v21  ;;  %7635 = vmatpush1.bf16.msra.mxu1 %v7634_v18  ;;  %v7584_v21 = vpack.c.bf16 %v4471_v17, %v4463_v15  ;;  %v7648_v18 = vpack.c.bf16 %v4473_v27, %v4465_v23  ;;  %v7594_v15 = vpack.c.bf16 %v4502_v10, %v4494_v60  ;;  %v4510_v23 = vld [vmem:[#allocation5 + $0x520] sm:$0xff]  ;;  %v4544_v60 = vld [vmem:[#allocation5 + $0x630] sm:$0xff] }
 0x7ea   :  { %7573 = vmatprep.subr.bf16.mxu0 %v7572_v43  ;;  %7637 = vmatprep.subr.bf16.mxu1 %v7636_v42  ;;  %v4479_v43 = vld [vmem:[#allocation5 + $0x428] sm:$0xff]  ;;  %v7658_v17 = vpack.c.bf16 %v4504_v12, %v4496_v3  ;;  %v4518_v27 = vld [vmem:[#allocation5 + $0x560] sm:$0xff]  ;;  %v4552_v10 = vld [vmem:[#allocation5 + $0x670] sm:$0xff] }
 0x7eb   :  { %v4487_v42 = vld [vmem:[#allocation5 + $0x468] sm:$0xff]  ;;  %v4561_v3 = vld [vmem:[#allocation5 + $0x6b8] sm:$0xff] }
 0x7ec   :  { %v4569_v12 = vld [vmem:[#allocation5 + $0x6f8] sm:$0xff] }
 0x7ed   :  { %7575 = vmatpush1.bf16.msra.mxu0 %v7574_v33  ;;  %7639 = vmatpush1.bf16.msra.mxu1 %v7638_v56  ;;  %v7588_v33 = vpack.c.bf16 %v4487_v42, %v4479_v43  ;;  %v7652_v56 = vpack.c.bf16 %v4489_v29, %v4481_v55  ;;  %v7598_v43 = vpack.c.bf16 %v4518_v27, %v4510_v23  ;;  %v4526_v55 = vld [vmem:[#allocation5 + $0x5a0] sm:$0xff]  ;;  %v4560_v23 = vld [vmem:[#allocation5 + $0x6b0] sm:$0xff] }
 0x7ee   :  { %7577 = vmatprep.subr.bf16.mxu0 %v7576_v41  ;;  %7641 = vmatprep.subr.bf16.mxu1 %v7640_v25  ;;  %v4495_v41 = vld [vmem:[#allocation5 + $0x4a8] sm:$0xff]  ;;  %v7662_v42 = vpack.c.bf16 %v4520_v2, %v4512_v5  ;;  %v4534_v29 = vld [vmem:[#allocation5 + $0x5e0] sm:$0xff]  ;;  %v4568_v27 = vld [vmem:[#allocation5 + $0x6f0] sm:$0xff] }
 0x7ef   :  { %v4503_v25 = vld [vmem:[#allocation5 + $0x4e8] sm:$0xff]  ;;  %v4577_v5 = vld [vmem:[#allocation5 + $0x738] sm:$0xff] }
 0x7f0   :  { %v4585_v2 = vld [vmem:[#allocation5 + $0x778] sm:$0xff] }
 0x7f1   :  { %7579 = vmatpush1.bf16.msra.mxu0 %v7578_v24  ;;  %7643 = vmatpush1.bf16.msra.mxu1 %v7642_v30  ;;  %v7592_v24 = vpack.c.bf16 %v4503_v25, %v4495_v41  ;;  %v7656_v30 = vpack.c.bf16 %v4505_v11, %v4497_v8  ;;  %v7602_v41 = vpack.c.bf16 %v4534_v29, %v4526_v55  ;;  %v4542_v8 = vld [vmem:[#allocation5 + $0x620] sm:$0xff]  ;;  %v4576_v55 = vld [vmem:[#allocation5 + $0x730] sm:$0xff] }
 0x7f2   :  { %7581 = vmatprep.subr.bf16.mxu0 %v7580_v4  ;;  %7645 = vmatprep.subr.bf16.mxu1 %v7644_v34  ;;  %v4511_v4 = vld [vmem:[#allocation5 + $0x528] sm:$0xff]  ;;  %v7666_v25 = vpack.c.bf16 %v4536_v19, %v4528_v7  ;;  %v4550_v11 = vld [vmem:[#allocation5 + $0x660] sm:$0xff]  ;;  %v4584_v29 = vld [vmem:[#allocation5 + $0x770] sm:$0xff] }
 0x7f3   :  { %v4519_v34 = vld [vmem:[#allocation5 + $0x568] sm:$0xff]  ;;  %v4593_v7 = vld [vmem:[#allocation5 + $0x7b8] sm:$0xff] }
 0x7f4   :  { %v4601_v19 = vld [vmem:[#allocation5 + $0x7f8] sm:$0xff] }
 0x7f5   :  { %7583 = vmatpush1.bf16.msra.mxu0 %v7582_v52  ;;  %7647 = vmatpush1.bf16.msra.mxu1 %v7646_v37  ;;  %v7596_v52 = vpack.c.bf16 %v4519_v34, %v4511_v4  ;;  %v7660_v37 = vpack.c.bf16 %v4521_v39, %v4513_v47  ;;  %v7606_v4 = vpack.c.bf16 %v4550_v11, %v4542_v8  ;;  %v4558_v47 = vld [vmem:[#allocation5 + $0x6a0] sm:$0xff]  ;;  %v4592_v8 = vld [vmem:[#allocation5 + $0x7b0] sm:$0xff] }
 0x7f6   :  { %7585 = vmatprep.subr.bf16.mxu0 %v7584_v21  ;;  %7649 = vmatprep.subr.bf16.mxu1 %v7648_v18  ;;  %v4527_v21 = vld [vmem:[#allocation5 + $0x5a8] sm:$0xff]  ;;  %v7670_v34 = vpack.c.bf16 %v4552_v10, %v4544_v60  ;;  %v4566_v39 = vld [vmem:[#allocation5 + $0x6e0] sm:$0xff]  ;;  %v4600_v11 = vld [vmem:[#allocation5 + $0x7f0] sm:$0xff] }
 0x7f7   :  { %v4535_v18 = vld [vmem:[#allocation5 + $0x5e8] sm:$0xff] }
 0x7f8   :  { %v4959_v60 = vld [vmem:[#allocation5 + $0x8] sm:$0xff] }
 0x7f9   :  { %7587 = vmatpush1.bf16.msra.mxu0 %v7586_v16  ;;  %7651 = vmatpush1.bf16.msra.mxu1 %v7650_v63  ;;  %v7600_v16 = vpack.c.bf16 %v4535_v18, %v4527_v21  ;;  %v7664_v63 = vpack.c.bf16 %v4537_v13, %v4529_v48  ;;  %v7610_v21 = vpack.c.bf16 %v4566_v39, %v4558_v47  ;;  %v4574_v48 = vld [vmem:[#allocation5 + $0x720] sm:$0xff]  ;;  %v4967_v10 = vld [vmem:[#allocation5 + $0x48] sm:$0xff]  ;;  %v4960_v39 = vld [vmem:[#allocation5 + $0x10] sm:$0xff] }
 0x7fa   :  { %7589 = vmatprep.subr.bf16.mxu0 %v7588_v33  ;;  %7653 = vmatprep.subr.bf16.mxu1 %v7652_v56  ;;  %v4543_v33 = vld [vmem:[#allocation5 + $0x628] sm:$0xff]  ;;  %v7674_v18 = vpack.c.bf16 %v4568_v27, %v4560_v23  ;;  %v4582_v13 = vld [vmem:[#allocation5 + $0x760] sm:$0xff] }
 0x7fb   :  { %v4551_v56 = vld [vmem:[#allocation5 + $0x668] sm:$0xff] }
 0x7fc   :  { %v4983_v27 = vld [vmem:[#allocation5 + $0xc8] sm:$0xff] }
 0x7fd   :  { %7591 = vmatpush1.bf16.msra.mxu0 %v7590_v54  ;;  %7655 = vmatpush1.bf16.msra.mxu1 %v7654_v58  ;;  %v7604_v54 = vpack.c.bf16 %v4551_v56, %v4543_v33  ;;  %v7668_v58 = vpack.c.bf16 %v4553_v38, %v4545_v28  ;;  %v7614_v33 = vpack.c.bf16 %v4582_v13, %v4574_v48  ;;  %v4590_v28 = vld [vmem:[#allocation5 + $0x7a0] sm:$0xff]  ;;  %v4976_v48 = vld [vmem:[#allocation5 + $0x90] sm:$0xff] }
 0x7fe   :  { %7593 = vmatprep.subr.bf16.mxu0 %v7592_v24  ;;  %7657 = vmatprep.subr.bf16.mxu1 %v7656_v30  ;;  %v4559_v24 = vld [vmem:[#allocation5 + $0x6a8] sm:$0xff]  ;;  %v7678_v56 = vpack.c.bf16 %v4584_v29, %v4576_v55 }
 0x7ff   :  { %v4567_v30 = vld [vmem:[#allocation5 + $0x6e8] sm:$0xff] }
 0x800   :  { %v4999_v55 = vld [vmem:[#allocation5 + $0x148] sm:$0xff] }
 0x801   :  { %7595 = vmatpush1.bf16.msra.mxu0 %v7594_v15  ;;  %7659 = vmatpush1.bf16.msra.mxu1 %v7658_v17  ;;  %v7608_v15 = vpack.c.bf16 %v4567_v30, %v4559_v24  ;;  %v7672_v17 = vpack.c.bf16 %v4569_v12, %v4561_v3  ;;  %v4961_v24 = vld [vmem:[#allocation5 + $0x18] sm:$0xff]  ;;  %v7684_v30 = vpack.c.bf16 %v4967_v10, %v4959_v60  ;;  %v4958_v12 = vld [vmem:[#allocation5] sm:$0xff] }
 0x802   :  { %7597 = vmatprep.subr.bf16.mxu0 %v7596_v52  ;;  %7661 = vmatprep.subr.bf16.mxu1 %v7660_v37  ;;  %v4575_v52 = vld [vmem:[#allocation5 + $0x728] sm:$0xff]  ;;  %v4969_v3 = vld [vmem:[#allocation5 + $0x58] sm:$0xff]  ;;  %v5006_v10 = vld [vmem:[#allocation5 + $0x180] sm:$0xff] }
 0x803   :  { %v4583_v37 = vld [vmem:[#allocation5 + $0x768] sm:$0xff]  ;;  %v5017_v60 = vld [vmem:[#allocation5 + $0x1d8] sm:$0xff] }
 0x805   :  { %7599 = vmatpush1.bf16.msra.mxu0 %v7598_v43  ;;  %7663 = vmatpush1.bf16.msra.mxu1 %v7662_v42  ;;  %v7612_v43 = vpack.c.bf16 %v4583_v37, %v4575_v52  ;;  %v7676_v42 = vpack.c.bf16 %v4585_v2, %v4577_v5  ;;  %v4977_v52 = vld [vmem:[#allocation5 + $0x98] sm:$0xff] }
 0x806   :  { %7601 = vmatprep.subr.bf16.mxu0 %v7600_v16  ;;  %7665 = vmatprep.subr.bf16.mxu1 %v7664_v63  ;;  %v4591_v16 = vld [vmem:[#allocation5 + $0x7a8] sm:$0xff]  ;;  %v4985_v37 = vld [vmem:[#allocation5 + $0xd8] sm:$0xff] }
 0x807   :  { %v4599_v63 = vld [vmem:[#allocation5 + $0x7e8] sm:$0xff]  ;;  %v7752_v2 = vpack.c.bf16 %v4985_v37, %v4977_v52  ;;  %v5030_v52 = vld [vmem:[#allocation5 + $0x240] sm:$0xff]  ;;  %v5024_v37 = vld [vmem:[#allocation5 + $0x210] sm:$0xff] }
 0x808   :  { %v7616_v38 = vpack.c.bf16 %v4599_v63, %v4591_v16  ;;  %v4993_v63 = vld [vmem:[#allocation5 + $0x118] sm:$0xff] }
 0x809   :  { %7603 = vmatpush1.bf16.msra.mxu0 %v7602_v41  ;;  %7667 = vmatpush1.bf16.msra.mxu1 %v7666_v25  ;;  %v7680_v41 = vpack.c.bf16 %v4601_v19, %v4593_v7  ;;  %v4598_v25 = vld [vmem:[#allocation5 + $0x7e0] sm:$0xff]  ;;  %v5001_v7 = vld [vmem:[#allocation5 + $0x158] sm:$0xff] }
 0x80a   :  { %7605 = vmatprep.subr.bf16.mxu0 %v7604_v54  ;;  %7669 = vmatprep.subr.bf16.mxu1 %v7668_v58  ;;  %v7618_v54 = vpack.c.bf16 %v4598_v25, %v4590_v28  ;;  %v7682_v58 = vpack.c.bf16 %v4600_v11, %v4592_v8  ;;  %v4990_v19 = vld [vmem:[#allocation5 + $0x100] sm:$0xff]  ;;  %v4992_v28 = vld [vmem:[#allocation5 + $0x110] sm:$0xff]  ;;  %v5007_v25 = vld [vmem:[#allocation5 + $0x188] sm:$0xff] }
 0x80b   :  { %v5015_v8 = vld [vmem:[#allocation5 + $0x1c8] sm:$0xff]  ;;  %v5009_v11 = vld [vmem:[#allocation5 + $0x198] sm:$0xff] }
 0x80d   :  { %7607 = vmatpush1.bf16.msra.mxu0 %v7606_v4  ;;  %7671 = vmatpush1.bf16.msra.mxu1 %v7670_v34  ;;  %v4966_v4 = vld [vmem:[#allocation5 + $0x40] sm:$0xff]  ;;  %v7748_v34 = vpack.c.bf16 %v4969_v3, %v4961_v24  ;;  %v5008_v3 = vld [vmem:[#allocation5 + $0x190] sm:$0xff] }
 0x80e   :  { %7609 = vmatprep.subr.bf16.mxu0 %v7608_v15  ;;  %7673 = vmatprep.subr.bf16.mxu1 %v7672_v17  ;;  %v7686_v47 = vpack.c.bf16 %v4966_v4, %v4958_v12  ;;  %v4968_v15 = vld [vmem:[#allocation5 + $0x50] sm:$0xff]  ;;  %v4975_v17 = vld [vmem:[#allocation5 + $0x88] sm:$0xff]  ;;  %v5014_v24 = vld [vmem:[#allocation5 + $0x1c0] sm:$0xff] }
 0x80f   :  { %v7750_v23 = vpack.c.bf16 %v4968_v15, %v4960_v39  ;;  %v7688_v5 = vpack.c.bf16 %v4983_v27, %v4975_v17  ;;  %v5016_v12 = vld [vmem:[#allocation5 + $0x1d0] sm:$0xff]  ;;  %v5023_v4 = vld [vmem:[#allocation5 + $0x208] sm:$0xff]  ;;  %v5033_v39 = vld [vmem:[#allocation5 + $0x258] sm:$0xff]  ;;  %v7698_v15 = vpack.c.bf16 %v5014_v24, %v5006_v10 }
 0x810   :  { %v7762_v17 = vpack.c.bf16 %v5016_v12, %v5008_v3  ;;  %v5022_v27 = vld [vmem:[#allocation5 + $0x200] sm:$0xff]  ;;  %v5064_v10 = vld [vmem:[#allocation5 + $0x350] sm:$0xff]  ;;  %v5071_v24 = vld [vmem:[#allocation5 + $0x388] sm:$0xff] }
 0x811   :  { %7611 = vmatpush1.bf16.msra.mxu0 %v7610_v21  ;;  %7675 = vmatpush1.bf16.msra.mxu1 %v7674_v18  ;;  %v4974_v21 = vld [vmem:[#allocation5 + $0x80] sm:$0xff]  ;;  %v5073_v3 = vld [vmem:[#allocation5 + $0x398] sm:$0xff] }
 0x812   :  { %7613 = vmatprep.subr.bf16.mxu0 %v7612_v43  ;;  %7677 = vmatprep.subr.bf16.mxu1 %v7676_v42  ;;  %v4982_v18 = vld [vmem:[#allocation5 + $0xc0] sm:$0xff]  ;;  %v4984_v43 = vld [vmem:[#allocation5 + $0xd0] sm:$0xff]  ;;  %v4991_v42 = vld [vmem:[#allocation5 + $0x108] sm:$0xff] }
 0x813   :  { %v7690_v13 = vpack.c.bf16 %v4982_v18, %v4974_v21  ;;  %v7754_v29 = vpack.c.bf16 %v4984_v43, %v4976_v48  ;;  %v7692_v16 = vpack.c.bf16 %v4999_v55, %v4991_v42  ;;  %v5039_v21 = vld [vmem:[#allocation5 + $0x288] sm:$0xff]  ;;  %v5041_v48 = vld [vmem:[#allocation5 + $0x298] sm:$0xff]  ;;  %v7702_v43 = vpack.c.bf16 %v5030_v52, %v5022_v27  ;;  %v5080_v27 = vld [vmem:[#allocation5 + $0x3d0] sm:$0xff] }
 0x814   :  { %v5047_v18 = vld [vmem:[#allocation5 + $0x2c8] sm:$0xff]  ;;  %v5081_v12 = vld [vmem:[#allocation5 + $0x3d8] sm:$0xff] }
 0x815   :  { %7615 = vmatpush1.bf16.msra.mxu0 %v7614_v33  ;;  %7679 = vmatpush1.bf16.msra.mxu1 %v7678_v56  ;;  %v7756_v33 = vpack.c.bf16 %v5001_v7, %v4993_v63  ;;  %v4998_v56 = vld [vmem:[#allocation5 + $0x140] sm:$0xff]  ;;  %v7704_v55 = vpack.c.bf16 %v5047_v18, %v5039_v21  ;;  %v5040_v63 = vld [vmem:[#allocation5 + $0x290] sm:$0xff]  ;;  %v5089_v21 = vld [vmem:[#allocation5 + $0x418] sm:$0xff] }
 0x816   :  { %7617 = vmatprep.subr.bf16.mxu0 %v7616_v38  ;;  %7681 = vmatprep.subr.bf16.mxu1 %v7680_v41  ;;  %v5000_v38 = vld [vmem:[#allocation5 + $0x150] sm:$0xff]  ;;  %v7694_v41 = vpack.c.bf16 %v4998_v56, %v4990_v19  ;;  %v5063_v56 = vld [vmem:[#allocation5 + $0x348] sm:$0xff] }
 0x817   :  { %v5048_v19 = vld [vmem:[#allocation5 + $0x2d0] sm:$0xff] }
 0x819   :  { %7619 = vmatpush1.bf16.msra.mxu0 %v7618_v54  ;;  %7683 = vmatpush1.bf16.msra.mxu1 %v7682_v58  ;;  %v7758_v54 = vpack.c.bf16 %v5000_v38, %v4992_v28  ;;  %v7696_v58 = vpack.c.bf16 %v5015_v8, %v5007_v25  ;;  %v5057_v28 = vld [vmem:[#allocation5 + $0x318] sm:$0xff]  ;;  %v7770_v25 = vpack.c.bf16 %v5048_v19, %v5040_v63  ;;  %v5111_v19 = vld [vmem:[#allocation5 + $0x4c8] sm:$0xff] }
 0x81a   :  { %7685 = vmatprep.subr.bf16.mxu0 %v7684_v30  ;;  %7749 = vmatprep.subr.bf16.mxu1 %v7748_v34  ;;  %v7760_v30 = vpack.c.bf16 %v5017_v60, %v5009_v11  ;;  %v5031_v34 = vld [vmem:[#allocation5 + $0x248] sm:$0xff]  ;;  %v5065_v38 = vld [vmem:[#allocation5 + $0x358] sm:$0xff]  ;;  %v5054_v11 = vld [vmem:[#allocation5 + $0x300] sm:$0xff] }
 0x81b   :  { %v7772_v60 = vpack.c.bf16 %v5065_v38, %v5057_v28  ;;  %v5113_v28 = vld [vmem:[#allocation5 + $0x4d8] sm:$0xff]  ;;  %v5102_v38 = vld [vmem:[#allocation5 + $0x480] sm:$0xff] }
 0x81c   :  { %4809 = vmatmul.mubr.f32.vlgmr.msra.gmra.mrb[12].mxu0 %v9003_v35  ;;  %4880 = vmatmul.mubr.f32.vlgmr.msra.gmra.mrb[44].mxu1 %v9003_v35 }
 0x81d   :  { %7687 = vmatpush1.bf16.msra.mxu0 %v7686_v47  ;;  %7751 = vmatpush1.bf16.msra.mxu1 %v7750_v23  ;;  %v5025_v47 = vld [vmem:[#allocation5 + $0x218] sm:$0xff]  ;;  %v7700_v23 = vpack.c.bf16 %v5031_v34, %v5023_v4 }
 0x81e   :  { %7689 = vmatprep.subr.bf16.mxu0 %v7688_v5  ;;  %7753 = vmatprep.subr.bf16.mxu1 %v7752_v2  ;;  %v7764_v5 = vpack.c.bf16 %v5033_v39, %v5025_v47  ;;  %v5032_v2 = vld [vmem:[#allocation5 + $0x250] sm:$0xff]  ;;  %v5070_v39 = vld [vmem:[#allocation5 + $0x380] sm:$0xff] }
 0x81f   :  { %v7766_v42 = vpack.c.bf16 %v5032_v2, %v5024_v37  ;;  %v5095_v2 = vld [vmem:[#allocation5 + $0x448] sm:$0xff] }
 0x821   :  { %7691 = vmatpush1.bf16.msra.mxu0 %v7690_v13  ;;  %7755 = vmatpush1.bf16.msra.mxu1 %v7754_v29  ;;  %v5049_v13 = vld [vmem:[#allocation5 + $0x2d8] sm:$0xff]  ;;  %v5038_v29 = vld [vmem:[#allocation5 + $0x280] sm:$0xff] }
 0x822   :  { %7693 = vmatprep.subr.bf16.mxu0 %v7692_v16  ;;  %7757 = vmatprep.subr.bf16.mxu1 %v7756_v33  ;;  %v5046_v16 = vld [vmem:[#allocation5 + $0x2c0] sm:$0xff]  ;;  %v7768_v7 = vpack.c.bf16 %v5049_v13, %v5041_v48  ;;  %v5055_v33 = vld [vmem:[#allocation5 + $0x308] sm:$0xff]  ;;  %v5097_v48 = vld [vmem:[#allocation5 + $0x458] sm:$0xff] }
 0x823   :  { %v7708_v8 = vpack.c.bf16 %v5063_v56, %v5055_v33  ;;  %v7780_v13 = vpack.c.bf16 %v5097_v48, %v5089_v21  ;;  %v5105_v33 = vld [vmem:[#allocation5 + $0x498] sm:$0xff]  ;;  %v5142_v21 = vld [vmem:[#allocation5 + $0x5c0] sm:$0xff] }
 0x825   :  { %7695 = vmatpush1.bf16.msra.mxu0 %v7694_v41  ;;  %7759 = vmatpush1.bf16.msra.mxu1 %v7758_v54  ;;  %v7706_v41 = vpack.c.bf16 %v5046_v16, %v5038_v29  ;;  %v5062_v54 = vld [vmem:[#allocation5 + $0x340] sm:$0xff]  ;;  %v5096_v16 = vld [vmem:[#allocation5 + $0x450] sm:$0xff] }
 0x826   :  { %7697 = vmatprep.subr.bf16.mxu0 %v7696_v58  ;;  %7761 = vmatprep.subr.bf16.mxu1 %v7760_v30  ;;  %v5056_v58 = vld [vmem:[#allocation5 + $0x310] sm:$0xff]  ;;  %v5079_v30 = vld [vmem:[#allocation5 + $0x3c8] sm:$0xff]  ;;  %v7710_v4 = vpack.c.bf16 %v5062_v54, %v5054_v11 }
 0x827   :  { %v7774_v34 = vpack.c.bf16 %v5064_v10, %v5056_v58  ;;  %v7712_v47 = vpack.c.bf16 %v5079_v30, %v5071_v24  ;;  %v5104_v11 = vld [vmem:[#allocation5 + $0x490] sm:$0xff]  ;;  %v5127_v10 = vld [vmem:[#allocation5 + $0x548] sm:$0xff]  ;;  %v5121_v24 = vld [vmem:[#allocation5 + $0x518] sm:$0xff] }
 0x828   :  { %v5112_v54 = vld [vmem:[#allocation5 + $0x4d0] sm:$0xff] }
 0x829   :  { %7699 = vmatpush1.bf16.msra.mxu0 %v7698_v15  ;;  %7763 = vmatpush1.bf16.msra.mxu1 %v7762_v17  ;;  %v5078_v15 = vld [vmem:[#allocation5 + $0x3c0] sm:$0xff]  ;;  %v7776_v17 = vpack.c.bf16 %v5081_v12, %v5073_v3  ;;  %v7786_v58 = vpack.c.bf16 %v5112_v54, %v5104_v11  ;;  %v5129_v3 = vld [vmem:[#allocation5 + $0x558] sm:$0xff]  ;;  %v5175_v11 = vld [vmem:[#allocation5 + $0x6c8] sm:$0xff] }
 0x82a   :  { %7701 = vmatprep.subr.bf16.mxu0 %v7700_v23  ;;  %7765 = vmatprep.subr.bf16.mxu1 %v7764_v5  ;;  %v5072_v23 = vld [vmem:[#allocation5 + $0x390] sm:$0xff]  ;;  %v7714_v52 = vpack.c.bf16 %v5078_v15, %v5070_v39  ;;  %v5087_v5 = vld [vmem:[#allocation5 + $0x408] sm:$0xff]  ;;  %v5118_v12 = vld [vmem:[#allocation5 + $0x500] sm:$0xff] }
 0x82b   :  { %v7778_v37 = vpack.c.bf16 %v5080_v27, %v5072_v23  ;;  %v7716_v18 = vpack.c.bf16 %v5095_v2, %v5087_v5  ;;  %v5120_v39 = vld [vmem:[#allocation5 + $0x510] sm:$0xff]  ;;  %v5135_v23 = vld [vmem:[#allocation5 + $0x588] sm:$0xff]  ;;  %v5145_v5 = vld [vmem:[#allocation5 + $0x5d8] sm:$0xff] }
 0x82c   :  { %v5128_v15 = vld [vmem:[#allocation5 + $0x550] sm:$0xff]  ;;  %v5143_v27 = vld [vmem:[#allocation5 + $0x5c8] sm:$0xff]  ;;  %v5134_v2 = vld [vmem:[#allocation5 + $0x580] sm:$0xff] }
 0x82d   :  { %7703 = vmatpush1.bf16.msra.mxu0 %v7702_v43  ;;  %7767 = vmatpush1.bf16.msra.mxu1 %v7766_v42  ;;  %v5086_v43 = vld [vmem:[#allocation5 + $0x400] sm:$0xff]  ;;  %v7730_v48 = vpack.c.bf16 %v5142_v21, %v5134_v2  ;;  %v5169_v54 = vld [vmem:[#allocation5 + $0x698] sm:$0xff]  ;;  %v5192_v21 = vld [vmem:[#allocation5 + $0x750] sm:$0xff] }
 0x82e   :  { %7705 = vmatprep.subr.bf16.mxu0 %v7704_v55  ;;  %7769 = vmatprep.subr.bf16.mxu1 %v7768_v7  ;;  %v5094_v42 = vld [vmem:[#allocation5 + $0x440] sm:$0xff]  ;;  %v5088_v55 = vld [vmem:[#allocation5 + $0x410] sm:$0xff]  ;;  %v5103_v7 = vld [vmem:[#allocation5 + $0x488] sm:$0xff] }
 0x82f   :  { %v7718_v29 = vpack.c.bf16 %v5094_v42, %v5086_v43  ;;  %v7782_v63 = vpack.c.bf16 %v5096_v16, %v5088_v55  ;;  %v7720_v56 = vpack.c.bf16 %v5111_v19, %v5103_v7  ;;  %v5144_v43 = vld [vmem:[#allocation5 + $0x5d0] sm:$0xff]  ;;  %v5151_v55 = vld [vmem:[#allocation5 + $0x608] sm:$0xff]  ;;  %v5153_v16 = vld [vmem:[#allocation5 + $0x618] sm:$0xff] }
 0x830   :  { %v5161_v7 = vld [vmem:[#allocation5 + $0x658] sm:$0xff]  ;;  %v5150_v19 = vld [vmem:[#allocation5 + $0x600] sm:$0xff] }
 0x831   :  { %7707 = vmatpush1.bf16.msra.mxu0 %v7706_v41  ;;  %7771 = vmatpush1.bf16.msra.mxu1 %v7770_v25  ;;  %v5110_v41 = vld [vmem:[#allocation5 + $0x4c0] sm:$0xff]  ;;  %v7784_v25 = vpack.c.bf16 %v5113_v28, %v5105_v33 }
 0x832   :  { %7709 = vmatprep.subr.bf16.mxu0 %v7708_v8  ;;  %7773 = vmatprep.subr.bf16.mxu1 %v7772_v60  ;;  %v7722_v8 = vpack.c.bf16 %v5110_v41, %v5102_v38  ;;  %v5119_v60 = vld [vmem:[#allocation5 + $0x508] sm:$0xff]  ;;  %v5158_v33 = vld [vmem:[#allocation5 + $0x640] sm:$0xff]  ;;  %v5152_v38 = vld [vmem:[#allocation5 + $0x610] sm:$0xff] }
 0x833   :  { %v7724_v30 = vpack.c.bf16 %v5127_v10, %v5119_v60  ;;  %v7734_v28 = vpack.c.bf16 %v5158_v33, %v5150_v19  ;;  %v5160_v41 = vld [vmem:[#allocation5 + $0x650] sm:$0xff]  ;;  %v5177_v60 = vld [vmem:[#allocation5 + $0x6d8] sm:$0xff]  ;;  %v5166_v10 = vld [vmem:[#allocation5 + $0x680] sm:$0xff] }
 0x834   :  { %v5208_v19 = vld [vmem:[#allocation5 + $0x7d0] sm:$0xff] }
 0x835   :  { %7711 = vmatpush1.bf16.msra.mxu0 %v7710_v4  ;;  %7775 = vmatpush1.bf16.msra.mxu1 %v7774_v34  ;;  %v5126_v4 = vld [vmem:[#allocation5 + $0x540] sm:$0xff]  ;;  %v7788_v34 = vpack.c.bf16 %v5129_v3, %v5121_v24 }
 0x836   :  { %7713 = vmatprep.subr.bf16.mxu0 %v7712_v47  ;;  %7777 = vmatprep.subr.bf16.mxu1 %v7776_v17  ;;  %v7726_v47 = vpack.c.bf16 %v5126_v4, %v5118_v12  ;;  %v7790_v17 = vpack.c.bf16 %v5128_v15, %v5120_v39  ;;  %v5174_v24 = vld [vmem:[#allocation5 + $0x6c0] sm:$0xff]  ;;  %v5168_v12 = vld [vmem:[#allocation5 + $0x690] sm:$0xff]  ;;  %v5191_v39 = vld [vmem:[#allocation5 + $0x748] sm:$0xff] }
 0x837   :  { %v7738_v3 = vpack.c.bf16 %v5174_v24, %v5166_v10  ;;  %v5176_v4 = vld [vmem:[#allocation5 + $0x6d0] sm:$0xff]  ;;  %v5185_v15 = vld [vmem:[#allocation5 + $0x718] sm:$0xff] }
 0x839   :  { %7715 = vmatpush1.bf16.msra.mxu0 %v7714_v52  ;;  %7779 = vmatpush1.bf16.msra.mxu1 %v7778_v37  ;;  %v5137_v52 = vld [vmem:[#allocation5 + $0x598] sm:$0xff]  ;;  %v7728_v37 = vpack.c.bf16 %v5143_v27, %v5135_v23 }
 0x83a   :  { %7717 = vmatprep.subr.bf16.mxu0 %v7716_v18  ;;  %7781 = vmatprep.subr.bf16.mxu1 %v7780_v13  ;;  %v7792_v18 = vpack.c.bf16 %v5145_v5, %v5137_v52  ;;  %v5136_v13 = vld [vmem:[#allocation5 + $0x590] sm:$0xff]  ;;  %v5182_v52 = vld [vmem:[#allocation5 + $0x700] sm:$0xff] }
 0x83b   :  { %v7794_v42 = vpack.c.bf16 %v5144_v43, %v5136_v13  ;;  %v5184_v5 = vld [vmem:[#allocation5 + $0x710] sm:$0xff] }
 0x83c   :  { %v7806_v13 = vpack.c.bf16 %v5192_v21, %v5184_v5 }
 0x83d   :  { %7719 = vmatpush1.bf16.msra.mxu0 %v7718_v29  ;;  %7783 = vmatpush1.bf16.msra.mxu1 %v7782_v63  ;;  %v5159_v29 = vld [vmem:[#allocation5 + $0x648] sm:$0xff] }
 0x83e   :  { %7721 = vmatprep.subr.bf16.mxu0 %v7720_v56  ;;  %7785 = vmatprep.subr.bf16.mxu1 %v7784_v25  ;;  %v7732_v63 = vpack.c.bf16 %v5159_v29, %v5151_v55  ;;  %v7796_v56 = vpack.c.bf16 %v5161_v7, %v5153_v16  ;;  %v7798_v25 = vpack.c.bf16 %v5160_v41, %v5152_v38  ;;  %v5209_v55 = vld [vmem:[#allocation5 + $0x7d8] sm:$0xff]  ;;  %v5198_v29 = vld [vmem:[#allocation5 + $0x780] sm:$0xff]  ;;  %v5200_v7 = vld [vmem:[#allocation5 + $0x790] sm:$0xff] }
 0x83f   :  { %v4971_v38 = vld [vmem:[#allocation5 + $0x68] sm:$0xff]  ;;  %v4965_v41 = vld [vmem:[#allocation5 + $0x38] sm:$0xff] }
 0x841   :  { %7723 = vmatpush1.bf16.msra.mxu0 %v7722_v8  ;;  %7787 = vmatpush1.bf16.msra.mxu1 %v7786_v58  ;;  %v5167_v8 = vld [vmem:[#allocation5 + $0x688] sm:$0xff] }
 0x842   :  { %7725 = vmatprep.subr.bf16.mxu0 %v7724_v30  ;;  %7789 = vmatprep.subr.bf16.mxu1 %v7788_v34  ;;  %v7736_v58 = vpack.c.bf16 %v5175_v11, %v5167_v8  ;;  %v7800_v30 = vpack.c.bf16 %v5177_v60, %v5169_v54  ;;  %v5183_v34 = vld [vmem:[#allocation5 + $0x708] sm:$0xff]  ;;  %v4973_v8 = vld [vmem:[#allocation5 + $0x78] sm:$0xff] }
 0x843   :  { %v7740_v23 = vpack.c.bf16 %v5191_v39, %v5183_v34  ;;  %v7876_v11 = vpack.c.bf16 %v4973_v8, %v4965_v41 }
 0x845   :  { %7727 = vmatpush1.bf16.msra.mxu0 %v7726_v47  ;;  %7791 = vmatpush1.bf16.msra.mxu1 %v7790_v17  ;;  %v7802_v47 = vpack.c.bf16 %v5176_v4, %v5168_v12  ;;  %v5193_v17 = vld [vmem:[#allocation5 + $0x758] sm:$0xff] }
 0x846   :  { %7729 = vmatprep.subr.bf16.mxu0 %v7728_v37  ;;  %7793 = vmatprep.subr.bf16.mxu1 %v7792_v18  ;;  %v7804_v27 = vpack.c.bf16 %v5193_v17, %v5185_v15  ;;  %v5190_v37 = vld [vmem:[#allocation5 + $0x740] sm:$0xff]  ;;  %v5199_v18 = vld [vmem:[#allocation5 + $0x788] sm:$0xff] }
 0x847   :  { %v7742_v2 = vpack.c.bf16 %v5190_v37, %v5182_v52 }
 0x849   :  { %7731 = vmatpush1.bf16.msra.mxu0 %v7730_v48  ;;  %7795 = vmatpush1.bf16.msra.mxu1 %v7794_v42  ;;  %v5207_v48 = vld [vmem:[#allocation5 + $0x7c8] sm:$0xff]  ;;  %v5201_v42 = vld [vmem:[#allocation5 + $0x798] sm:$0xff] }
 0x84a   :  { %7733 = vmatprep.subr.bf16.mxu0 %v7732_v63  ;;  %7797 = vmatprep.subr.bf16.mxu1 %v7796_v56  ;;  %v7744_v43 = vpack.c.bf16 %v5207_v48, %v5199_v18  ;;  %v7808_v16 = vpack.c.bf16 %v5209_v55, %v5201_v42  ;;  %v5206_v63 = vld [vmem:[#allocation5 + $0x7c0] sm:$0xff]  ;;  %v7810_v56 = vpack.c.bf16 %v5208_v19, %v5200_v7 }
 0x84b   :  { %v7746_v33 = vpack.c.bf16 %v5206_v63, %v5198_v29 }
 0x84d   :  { %7735 = vmatpush1.bf16.msra.mxu0 %v7734_v28  ;;  %7799 = vmatpush1.bf16.msra.mxu1 %v7798_v25  ;;  %v4963_v28 = vld [vmem:[#allocation5 + $0x28] sm:$0xff] }
 0x84e   :  { %7737 = vmatprep.subr.bf16.mxu0 %v7736_v58  ;;  %7801 = vmatprep.subr.bf16.mxu1 %v7800_v30  ;;  %v7812_v25 = vpack.c.bf16 %v4971_v38, %v4963_v28 }
 0x851   :  { %7739 = vmatpush1.bf16.msra.mxu0 %v7738_v3  ;;  %7803 = vmatpush1.bf16.msra.mxu1 %v7802_v47 }
 0x852   :  { %7741 = vmatprep.subr.bf16.mxu0 %v7740_v23  ;;  %7805 = vmatprep.subr.bf16.mxu1 %v7804_v27 }
 0x855   :  { %7743 = vmatpush1.bf16.msra.mxu0 %v7742_v2  ;;  %7807 = vmatpush1.bf16.msra.mxu1 %v7806_v13 }
 0x856   :  { %7745 = vmatprep.subr.bf16.mxu0 %v7744_v43  ;;  %7809 = vmatprep.subr.bf16.mxu1 %v7808_v16 }
 0x859   :  { %7747 = vmatpush1.bf16.msra.mxu0 %v7746_v33  ;;  %7811 = vmatpush1.bf16.msra.mxu1 %v7810_v56 }
 0x85a   :  { %7813 = vmatprep.subr.bf16.mxu0 %v7812_v25  ;;  %7877 = vmatprep.subr.bf16.mxu1 %v7876_v11 }
 0x8af   :  { %v4668_v54 = vpop.f32.mrb[28].mxu0  ;;  %v4739_v58 = vpop.f32.mrb[28].mxu1 }
 0x8b0   :  { %v4886_v60 = vadd.f32 %v4668_v54, %v8786_v49  ;;  %v4670_v10 = vpop.f32.mrb[29].mxu0  ;;  %v4741_v24 = vpop.f32.mrb[29].mxu1  ;;  %v8016_v3 = vadd.f32 %v4739_v58, %v8827_v31 }
 0x8b1   :  { %v4887_v30 = vadd.f32 %v4670_v10, %v8789_v45  ;;  %v8017_v12 = vadd.f32 %v4741_v24, %v8830_v57 }
 0x8b2   :  { %v5823_v4 = vmul.f32 -1.442695, %v4886_v60  ;;  %v5825_v34 = vmul.f32 -1.442695, %v8016_v3  ;;  %v4970_v3 = vld [vmem:[#allocation5 + $0x60] sm:$0xff] }
 0x8b3   :  { %v5824_v47 = vmul.f32 -1.442695, %v4887_v30  ;;  %v5826_v39 = vmul.f32 -1.442695, %v8017_v12  ;;  %v4964_v12 = vld [vmem:[#allocation5 + $0x30] sm:$0xff] }
 0x8b4   :  { %8296 = vpow2.f32 %v5823_v4 }
 0x8b5   :  { %8298 = vpow2.f32 %v5825_v34  ;;  %v4979_v34 = vld [vmem:[#allocation5 + $0xa8] sm:$0xff] }
 0x8b6   :  { %8300 = vpow2.f32 %v5824_v47 }
 0x8b7   :  { %8302 = vpow2.f32 %v5826_v39  ;;  %v4987_v39 = vld [vmem:[#allocation5 + $0xe8] sm:$0xff] }
 0x8be   :  { %v8297_v15 = vpop.eup %8296 }
 0x8bf   :  { %v8299_v17 = vpop.eup %8298  ;;  %v4900_v27 = vadd.f32 1.0, %v8297_v15  ;;  %v4981_v15 = vld [vmem:[#allocation5 + $0xb8] sm:$0xff] }
 0x8c0   :  { %v8301_v23 = vpop.eup %8300  ;;  %v4912_v52 = vadd.f32 1.0, %v8299_v17  ;;  %v4989_v17 = vld [vmem:[#allocation5 + $0xf8] sm:$0xff] }
 0x8c1   :  { %v8303_v49 = vpop.eup %8302  ;;  %v4901_v37 = vadd.f32 1.0, %v8301_v23  ;;  %8304 = vrcp.f32 %v4900_v27 }
 0x8c2   :  { %v4913_v45 = vadd.f32 1.0, %v8303_v49  ;;  %8306 = vrcp.f32 %v4912_v52  ;;  %v4978_v52 = vld [vmem:[#allocation5 + $0xa0] sm:$0xff] }
 0x8c3   :  { %8308 = vrcp.f32 %v4901_v37  ;;  %v4986_v37 = vld [vmem:[#allocation5 + $0xe0] sm:$0xff] }
 0x8c4   :  { %8310 = vrcp.f32 %v4913_v45 }
 0x8cb   :  { %v8305_v16 = vpop.eup %8304 }
 0x8cc   :  { %v8307_v63 = vpop.eup %8306 }
 0x8cd   :  { %v8309_v7 = vpop.eup %8308  ;;  %v4932_v28 = vmul.f32 %v8307_v63, %v8995_v44  ;;  %v4962_v44 = vld [vmem:[#allocation5 + $0x20] sm:$0xff] }
 0x8ce   :  { %v8311_v19 = vpop.eup %8310  ;;  %v7814_v49 = vpack.c.bf16 %v4970_v3, %v4962_v44  ;;  %v5002_v63 = vld [vmem:[#allocation5 + $0x160] sm:$0xff]  ;;  %v5020_v3 = vld [vmem:[#allocation5 + $0x1f0] sm:$0xff] }
 0x8cf   :  { %v4933_v25 = vmul.f32 %v8311_v19, %v8997_v9  ;;  %v4972_v9 = vld [vmem:[#allocation5 + $0x70] sm:$0xff] }
 0x8d0   :  { %v7878_v27 = vpack.c.bf16 %v4972_v9, %v4964_v12  ;;  %v5027_v12 = vld [vmem:[#allocation5 + $0x228] sm:$0xff] }
 0x8d1   :  { %v5035_v9 = vld [vmem:[#allocation5 + $0x268] sm:$0xff] }
 0x8ef   :  { %v4810_v5 = vpop.f32.mrb[12].mxu0  ;;  %v4881_v2 = vpop.f32.mrb[44].mxu1 }
 0x8f0   :  { %v8032_v21 = vadd.f32 %v4810_v5, %v8833_v1  ;;  %v8048_v18 = vadd.f32 %v4881_v2, %v8849_v0  ;;  %v4812_v48 = vpop.f32.mrb[13].mxu0  ;;  %v4883_v13 = vpop.f32.mrb[45].mxu1  ;;  %v4980_v5 = vld [vmem:[#allocation5 + $0xb0] sm:$0xff] }
 0x8f1   :  { %v8033_v43 = vadd.f32 %v4812_v48, %v8836_v59  ;;  %v8049_v42 = vadd.f32 %v4883_v13, %v8852_v36  ;;  %v4988_v2 = vld [vmem:[#allocation5 + $0xf0] sm:$0xff]  ;;  %v7880_v48 = vpack.c.bf16 %v4989_v17, %v4981_v15  ;;  %v5003_v13 = vld [vmem:[#allocation5 + $0x168] sm:$0xff]  ;;  %v5026_v15 = vld [vmem:[#allocation5 + $0x220] sm:$0xff] }
 0x8f2   :  { %8312 = vtanh.f32 %v8032_v21  ;;  %v5827_v55 = vmul.f32 -1.442695, %v8048_v18  ;;  %v4995_v21 = vld [vmem:[#allocation5 + $0x128] sm:$0xff]  ;;  %v7816_v18 = vpack.c.bf16 %v4987_v39, %v4979_v34  ;;  %v5037_v34 = vld [vmem:[#allocation5 + $0x278] sm:$0xff]  ;;  %v5034_v17 = vld [vmem:[#allocation5 + $0x260] sm:$0xff] }
 0x8f3   :  { %8314 = vtanh.f32 %v8033_v43  ;;  %v5828_v29 = vmul.f32 -1.442695, %v8049_v42  ;;  %v4997_v43 = vld [vmem:[#allocation5 + $0x138] sm:$0xff] }
 0x8f4   :  { %8316 = vpow2.f32 %v5827_v55  ;;  %v5005_v42 = vld [vmem:[#allocation5 + $0x178] sm:$0xff]  ;;  %v7818_v55 = vpack.c.bf16 %v4986_v37, %v4978_v52  ;;  %v5028_v52 = vld [vmem:[#allocation5 + $0x230] sm:$0xff] }
 0x8f5   :  { %8318 = vpow2.f32 %v5828_v29  ;;  %v7882_v29 = vpack.c.bf16 %v4988_v2, %v4980_v5  ;;  %v7884_v19 = vpack.c.bf16 %v5005_v42, %v4997_v43  ;;  %v5036_v37 = vld [vmem:[#allocation5 + $0x270] sm:$0xff]  ;;  %v5043_v5 = vld [vmem:[#allocation5 + $0x2a8] sm:$0xff]  ;;  %v5042_v43 = vld [vmem:[#allocation5 + $0x2a0] sm:$0xff] }
 0x8f6   :  { %v5051_v2 = vld [vmem:[#allocation5 + $0x2e8] sm:$0xff]  ;;  %v5050_v42 = vld [vmem:[#allocation5 + $0x2e0] sm:$0xff] }
 0x8fc   :  { %v8313_v33 = vpop.eup %8312 }
 0x8fd   :  { %v8315_v56 = vpop.eup %8314  ;;  %v4934_v38 = vmul.f32 %v8313_v33, %v8305_v16  ;;  %v4994_v16 = vld [vmem:[#allocation5 + $0x120] sm:$0xff]  ;;  %v4996_v33 = vld [vmem:[#allocation5 + $0x130] sm:$0xff] }
 0x8fe   :  { %v8317_v41 = vpop.eup %8316  ;;  %v4935_v8 = vmul.f32 %v8315_v56, %v8309_v7  ;;  %v7820_v7 = vpack.c.bf16 %v5003_v13, %v4995_v21  ;;  %v5004_v56 = vld [vmem:[#allocation5 + $0x170] sm:$0xff]  ;;  %v5045_v21 = vld [vmem:[#allocation5 + $0x2b8] sm:$0xff]  ;;  %v7894_v13 = vpack.c.bf16 %v5036_v37, %v5028_v52 }
 0x8ff   :  { %v8319_v11 = vpop.eup %8318  ;;  %v9023_v54 = vadd.f32 %v4934_v38, %v4932_v28  ;;  %v4926_v58 = vadd.f32 1.0, %v8317_v41  ;;  %v5011_v28 = vld [vmem:[#allocation5 + $0x1a8] sm:$0xff]  ;;  %v5013_v41 = vld [vmem:[#allocation5 + $0x1b8] sm:$0xff] }
 0x900   :  { %v9025_v60 = vadd.f32 %v4935_v8, %v4933_v25  ;;  %v4927_v10 = vadd.f32 1.0, %v8319_v11  ;;  %v5019_v38 = vld [vmem:[#allocation5 + $0x1e8] sm:$0xff]  ;;  %v5021_v25 = vld [vmem:[#allocation5 + $0x1f8] sm:$0xff]  ;;  %v7822_v8 = vpack.c.bf16 %v5002_v63, %v4994_v16  ;;  %v7886_v11 = vpack.c.bf16 %v5004_v56, %v4996_v33  ;;  %v5044_v16 = vld [vmem:[#allocation5 + $0x2b0] sm:$0xff] }
 0x901   :  { %8320 = vtanh.f32 %v9023_v54  ;;  %v7888_v44 = vpack.c.bf16 %v5021_v25, %v5013_v41  ;;  %v5052_v63 = vld [vmem:[#allocation5 + $0x2f0] sm:$0xff]  ;;  %v5061_v33 = vld [vmem:[#allocation5 + $0x338] sm:$0xff]  ;;  %v5058_v41 = vld [vmem:[#allocation5 + $0x320] sm:$0xff] }
 0x902   :  { %8322 = vrcp.f32 %v4926_v58  ;;  %v5010_v58 = vld [vmem:[#allocation5 + $0x1a0] sm:$0xff]  ;;  %v5069_v56 = vld [vmem:[#allocation5 + $0x378] sm:$0xff] }
 0x903   :  { %8324 = vtanh.f32 %v9025_v60  ;;  %v5066_v25 = vld [vmem:[#allocation5 + $0x360] sm:$0xff]  ;;  %v5093_v52 = vld [vmem:[#allocation5 + $0x438] sm:$0xff] }
 0x904   :  { %8326 = vrcp.f32 %v4927_v10  ;;  %v5018_v10 = vld [vmem:[#allocation5 + $0x1e0] sm:$0xff]  ;;  %v5101_v37 = vld [vmem:[#allocation5 + $0x478] sm:$0xff] }
 0x90b   :  { %v8321_v24 = vpop.eup %8320 }
 0x90c   :  { %v8323_v30 = vpop.eup %8322 }
 0x90d   :  { %v8325_v4 = vpop.eup %8324  ;;  %v9031_v45 = vmul.f32 %v8323_v30, %v8321_v24  ;;  %v7824_v24 = vpack.c.bf16 %v5019_v38, %v5011_v28  ;;  %v5012_v30 = vld [vmem:[#allocation5 + $0x1b0] sm:$0xff]  ;;  %v7834_v28 = vpack.c.bf16 %v5050_v42, %v5042_v43  ;;  %v7898_v38 = vpack.c.bf16 %v5052_v63, %v5044_v16  ;;  %v5109_v16 = vld [vmem:[#allocation5 + $0x4b8] sm:$0xff] }
 0x90e   :  { %v8327_v47 = vpop.eup %8326  ;;  %v7890_v39 = vpack.c.bf16 %v5020_v3, %v5012_v30  ;;  %v5077_v30 = vld [vmem:[#allocation5 + $0x3b8] sm:$0xff]  ;;  %v5092_v43 = vld [vmem:[#allocation5 + $0x430] sm:$0xff] }
 0x90f   :  { %v9029_v23 = vmul.f32 %v8327_v47, %v8325_v4  ;;  %v5029_v4 = vld [vmem:[#allocation5 + $0x238] sm:$0xff]  ;;  %v7826_v47 = vpack.c.bf16 %v5018_v10, %v5010_v58  ;;  %v5060_v58 = vld [vmem:[#allocation5 + $0x330] sm:$0xff] }
 0x910   :  { %v5068_v10 = vld [vmem:[#allocation5 + $0x370] sm:$0xff]  ;;  %v5085_v3 = vld [vmem:[#allocation5 + $0x3f8] sm:$0xff] }
 0x911   :  { %5278 = vmatprep.mubr.f32.mxu0 %v9029_v23  ;;  %5349 = vmatprep.mubr.f32.mxu1 %v9029_v23  ;;  %v5100_v42 = vld [vmem:[#allocation5 + $0x470] sm:$0xff]  ;;  %v5117_v63 = vld [vmem:[#allocation5 + $0x4f8] sm:$0xff] }
 0x912   :  { %5279 = vmatmul.mubr.f32.vlgmr.msra.gmra.mrb[30].mxu0 %v9031_v45  ;;  %5350 = vmatmul.mubr.f32.vlgmr.msra.gmra.mrb[30].mxu1 %v9031_v45 }
 0x913   :  { %7815 = vmatpush1.bf16.msra.mxu0 %v7814_v49  ;;  %7879 = vmatpush1.bf16.msra.mxu1 %v7878_v27  ;;  %v7828_v49 = vpack.c.bf16 %v5035_v9, %v5027_v12  ;;  %v7892_v27 = vpack.c.bf16 %v5037_v34, %v5029_v4  ;;  %v7838_v12 = vpack.c.bf16 %v5066_v25, %v5058_v41  ;;  %v5074_v4 = vld [vmem:[#allocation5 + $0x3a0] sm:$0xff]  ;;  %v5108_v41 = vld [vmem:[#allocation5 + $0x4b0] sm:$0xff] }
 0x914   :  { %5420 = vmatprep.mubr.f32.mxu0 %v9029_v23  ;;  %5491 = vmatprep.mubr.f32.mxu1 %v9029_v23  ;;  %v7902_v9 = vpack.c.bf16 %v5068_v10, %v5060_v58  ;;  %v5082_v34 = vld [vmem:[#allocation5 + $0x3e0] sm:$0xff]  ;;  %v5116_v25 = vld [vmem:[#allocation5 + $0x4f0] sm:$0xff]  ;;  %v5125_v58 = vld [vmem:[#allocation5 + $0x538] sm:$0xff] }
 0x915   :  { %7817 = vmatprep.subr.bf16.mxu0 %v7816_v18  ;;  %7881 = vmatprep.subr.bf16.mxu1 %v7880_v48  ;;  %v5053_v18 = vld [vmem:[#allocation5 + $0x2f8] sm:$0xff]  ;;  %v7830_v48 = vpack.c.bf16 %v5034_v17, %v5026_v15  ;;  %v5076_v15 = vld [vmem:[#allocation5 + $0x3b0] sm:$0xff] }
 0x916   :  { %v5084_v17 = vld [vmem:[#allocation5 + $0x3f0] sm:$0xff]  ;;  %v5133_v10 = vld [vmem:[#allocation5 + $0x578] sm:$0xff] }
 0x917   :  { %7819 = vmatpush1.bf16.msra.mxu0 %v7818_v55  ;;  %7883 = vmatpush1.bf16.msra.mxu1 %v7882_v29  ;;  %v7832_v55 = vpack.c.bf16 %v5051_v2, %v5043_v5  ;;  %v7896_v29 = vpack.c.bf16 %v5053_v18, %v5045_v21  ;;  %v7842_v5 = vpack.c.bf16 %v5082_v34, %v5074_v4  ;;  %v5090_v21 = vld [vmem:[#allocation5 + $0x420] sm:$0xff]  ;;  %v5124_v4 = vld [vmem:[#allocation5 + $0x530] sm:$0xff] }
 0x918   :  { %7821 = vmatprep.subr.bf16.mxu0 %v7820_v7  ;;  %7885 = vmatprep.subr.bf16.mxu1 %v7884_v19  ;;  %v5059_v7 = vld [vmem:[#allocation5 + $0x328] sm:$0xff]  ;;  %v7906_v2 = vpack.c.bf16 %v5084_v17, %v5076_v15  ;;  %v5098_v18 = vld [vmem:[#allocation5 + $0x460] sm:$0xff]  ;;  %v5132_v34 = vld [vmem:[#allocation5 + $0x570] sm:$0xff] }
 0x919   :  { %v5067_v19 = vld [vmem:[#allocation5 + $0x368] sm:$0xff]  ;;  %v5141_v15 = vld [vmem:[#allocation5 + $0x5b8] sm:$0xff] }
 0x91a   :  { %v5149_v17 = vld [vmem:[#allocation5 + $0x5f8] sm:$0xff] }
 0x91b   :  { %7823 = vmatpush1.bf16.msra.mxu0 %v7822_v8  ;;  %7887 = vmatpush1.bf16.msra.mxu1 %v7886_v11  ;;  %v7836_v8 = vpack.c.bf16 %v5067_v19, %v5059_v7  ;;  %v7900_v11 = vpack.c.bf16 %v5069_v56, %v5061_v33  ;;  %v7846_v7 = vpack.c.bf16 %v5098_v18, %v5090_v21  ;;  %v5106_v33 = vld [vmem:[#allocation5 + $0x4a0] sm:$0xff]  ;;  %v5140_v21 = vld [vmem:[#allocation5 + $0x5b0] sm:$0xff] }
 0x91c   :  { %7825 = vmatprep.subr.bf16.mxu0 %v7824_v24  ;;  %7889 = vmatprep.subr.bf16.mxu1 %v7888_v44  ;;  %v5075_v24 = vld [vmem:[#allocation5 + $0x3a8] sm:$0xff]  ;;  %v7910_v19 = vpack.c.bf16 %v5100_v42, %v5092_v43  ;;  %v5114_v56 = vld [vmem:[#allocation5 + $0x4e0] sm:$0xff]  ;;  %v5148_v18 = vld [vmem:[#allocation5 + $0x5f0] sm:$0xff] }
 0x91d   :  { %v5083_v44 = vld [vmem:[#allocation5 + $0x3e8] sm:$0xff]  ;;  %v5157_v43 = vld [vmem:[#allocation5 + $0x638] sm:$0xff] }
 0x91e   :  { %v5165_v42 = vld [vmem:[#allocation5 + $0x678] sm:$0xff] }
 0x91f   :  { %7827 = vmatpush1.bf16.msra.mxu0 %v7826_v47  ;;  %7891 = vmatpush1.bf16.msra.mxu1 %v7890_v39  ;;  %v7840_v47 = vpack.c.bf16 %v5083_v44, %v5075_v24  ;;  %v7904_v39 = vpack.c.bf16 %v5085_v3, %v5077_v30  ;;  %v7850_v24 = vpack.c.bf16 %v5114_v56, %v5106_v33  ;;  %v5122_v30 = vld [vmem:[#allocation5 + $0x520] sm:$0xff]  ;;  %v5156_v33 = vld [vmem:[#allocation5 + $0x630] sm:$0xff] }
 0x920   :  { %7829 = vmatprep.subr.bf16.mxu0 %v7828_v49  ;;  %7893 = vmatprep.subr.bf16.mxu1 %v7892_v27  ;;  %v5091_v49 = vld [vmem:[#allocation5 + $0x428] sm:$0xff]  ;;  %v7914_v44 = vpack.c.bf16 %v5116_v25, %v5108_v41  ;;  %v5130_v3 = vld [vmem:[#allocation5 + $0x560] sm:$0xff]  ;;  %v5164_v56 = vld [vmem:[#allocation5 + $0x670] sm:$0xff] }
 0x921   :  { %v5099_v27 = vld [vmem:[#allocation5 + $0x468] sm:$0xff]  ;;  %v5173_v41 = vld [vmem:[#allocation5 + $0x6b8] sm:$0xff] }
 0x922   :  { %v5181_v25 = vld [vmem:[#allocation5 + $0x6f8] sm:$0xff] }
 0x923   :  { %7831 = vmatpush1.bf16.msra.mxu0 %v7830_v48  ;;  %7895 = vmatpush1.bf16.msra.mxu1 %v7894_v13  ;;  %v7844_v48 = vpack.c.bf16 %v5099_v27, %v5091_v49  ;;  %v7908_v13 = vpack.c.bf16 %v5101_v37, %v5093_v52  ;;  %v7854_v49 = vpack.c.bf16 %v5130_v3, %v5122_v30  ;;  %v5138_v52 = vld [vmem:[#allocation5 + $0x5a0] sm:$0xff]  ;;  %v5172_v30 = vld [vmem:[#allocation5 + $0x6b0] sm:$0xff] }
 0x924   :  { %7833 = vmatprep.subr.bf16.mxu0 %v7832_v55  ;;  %7897 = vmatprep.subr.bf16.mxu1 %v7896_v29  ;;  %v5107_v55 = vld [vmem:[#allocation5 + $0x4a8] sm:$0xff]  ;;  %v7918_v27 = vpack.c.bf16 %v5132_v34, %v5124_v4  ;;  %v5146_v37 = vld [vmem:[#allocation5 + $0x5e0] sm:$0xff]  ;;  %v5180_v3 = vld [vmem:[#allocation5 + $0x6f0] sm:$0xff] }
 0x925   :  { %v5115_v29 = vld [vmem:[#allocation5 + $0x4e8] sm:$0xff]  ;;  %v5189_v4 = vld [vmem:[#allocation5 + $0x738] sm:$0xff] }
 0x926   :  { %v5197_v34 = vld [vmem:[#allocation5 + $0x778] sm:$0xff] }
 0x927   :  { %7835 = vmatpush1.bf16.msra.mxu0 %v7834_v28  ;;  %7899 = vmatpush1.bf16.msra.mxu1 %v7898_v38  ;;  %v7848_v28 = vpack.c.bf16 %v5115_v29, %v5107_v55  ;;  %v7912_v38 = vpack.c.bf16 %v5117_v63, %v5109_v16  ;;  %v7858_v55 = vpack.c.bf16 %v5146_v37, %v5138_v52  ;;  %v5154_v16 = vld [vmem:[#allocation5 + $0x620] sm:$0xff]  ;;  %v5188_v52 = vld [vmem:[#allocation5 + $0x730] sm:$0xff] }
 0x928   :  { %7837 = vmatprep.subr.bf16.mxu0 %v7836_v8  ;;  %7901 = vmatprep.subr.bf16.mxu1 %v7900_v11  ;;  %v5123_v8 = vld [vmem:[#allocation5 + $0x528] sm:$0xff]  ;;  %v7922_v29 = vpack.c.bf16 %v5148_v18, %v5140_v21  ;;  %v5162_v63 = vld [vmem:[#allocation5 + $0x660] sm:$0xff]  ;;  %v5196_v37 = vld [vmem:[#allocation5 + $0x770] sm:$0xff] }
 0x929   :  { %v5131_v11 = vld [vmem:[#allocation5 + $0x568] sm:$0xff]  ;;  %v5205_v21 = vld [vmem:[#allocation5 + $0x7b8] sm:$0xff] }
 0x92a   :  { %v5213_v18 = vld [vmem:[#allocation5 + $0x7f8] sm:$0xff] }
 0x92b   :  { %7839 = vmatpush1.bf16.msra.mxu0 %v7838_v12  ;;  %7903 = vmatpush1.bf16.msra.mxu1 %v7902_v9  ;;  %v7852_v12 = vpack.c.bf16 %v5131_v11, %v5123_v8  ;;  %v7916_v9 = vpack.c.bf16 %v5133_v10, %v5125_v58  ;;  %v7862_v8 = vpack.c.bf16 %v5162_v63, %v5154_v16  ;;  %v5170_v58 = vld [vmem:[#allocation5 + $0x6a0] sm:$0xff]  ;;  %v5204_v16 = vld [vmem:[#allocation5 + $0x7b0] sm:$0xff] }
 0x92c   :  { %7841 = vmatprep.subr.bf16.mxu0 %v7840_v47  ;;  %7905 = vmatprep.subr.bf16.mxu1 %v7904_v39  ;;  %v5139_v47 = vld [vmem:[#allocation5 + $0x5a8] sm:$0xff]  ;;  %v7926_v11 = vpack.c.bf16 %v5164_v56, %v5156_v33  ;;  %v5178_v10 = vld [vmem:[#allocation5 + $0x6e0] sm:$0xff]  ;;  %v5212_v63 = vld [vmem:[#allocation5 + $0x7f0] sm:$0xff] }
 0x92d   :  { %v5147_v39 = vld [vmem:[#allocation5 + $0x5e8] sm:$0xff]  ;;  %v7938_v56 = vpack.c.bf16 %v5212_v63, %v5204_v16 }
 0x92f   :  { %7843 = vmatpush1.bf16.msra.mxu0 %v7842_v5  ;;  %7907 = vmatpush1.bf16.msra.mxu1 %v7906_v2  ;;  %v7856_v5 = vpack.c.bf16 %v5147_v39, %v5139_v47  ;;  %v7920_v2 = vpack.c.bf16 %v5149_v17, %v5141_v15  ;;  %v7866_v47 = vpack.c.bf16 %v5178_v10, %v5170_v58  ;;  %v5186_v15 = vld [vmem:[#allocation5 + $0x720] sm:$0xff]  ;;  %v5577_v10 = vld [vmem:[%s9197_s4 + $0x10] sm:$0xff] }
 0x930   :  { %7845 = vmatprep.subr.bf16.mxu0 %v7844_v48  ;;  %7909 = vmatprep.subr.bf16.mxu1 %v7908_v13  ;;  %v5155_v48 = vld [vmem:[#allocation5 + $0x628] sm:$0xff]  ;;  %v7930_v39 = vpack.c.bf16 %v5180_v3, %v5172_v30  ;;  %v5194_v17 = vld [vmem:[#allocation5 + $0x760] sm:$0xff] }
 0x931   :  { %v5163_v13 = vld [vmem:[#allocation5 + $0x668] sm:$0xff] }
 0x932   :  { %v5596_v30 = vld [vmem:[%s9197_s4 + $0xa8] sm:$0xff] }
 0x933   :  { %7847 = vmatpush1.bf16.msra.mxu0 %v7846_v7  ;;  %7911 = vmatpush1.bf16.msra.mxu1 %v7910_v19  ;;  %v7860_v7 = vpack.c.bf16 %v5163_v13, %v5155_v48  ;;  %v7924_v19 = vpack.c.bf16 %v5165_v42, %v5157_v43  ;;  %v7870_v48 = vpack.c.bf16 %v5194_v17, %v5186_v15  ;;  %v5202_v43 = vld [vmem:[#allocation5 + $0x7a0] sm:$0xff]  ;;  %v5581_v15 = vld [vmem:[%s9197_s4 + $0x30] sm:$0xff]  ;;  %v5582_v17 = vld [vmem:[%s9197_s4 + $0x38] sm:$0xff] }
 0x934   :  { %7849 = vmatprep.subr.bf16.mxu0 %v7848_v28  ;;  %7913 = vmatprep.subr.bf16.mxu1 %v7912_v38  ;;  %v5171_v28 = vld [vmem:[#allocation5 + $0x6a8] sm:$0xff]  ;;  %v7934_v13 = vpack.c.bf16 %v5196_v37, %v5188_v52  ;;  %v7954_v52 = vpack.c.bf16 %v5582_v17, %v5581_v15 }
 0x935   :  { %v5179_v38 = vld [vmem:[#allocation5 + $0x6e8] sm:$0xff] }
 0x937   :  { %7851 = vmatpush1.bf16.msra.mxu0 %v7850_v24  ;;  %7915 = vmatpush1.bf16.msra.mxu1 %v7914_v44  ;;  %v7864_v24 = vpack.c.bf16 %v5179_v38, %v5171_v28  ;;  %v7928_v44 = vpack.c.bf16 %v5181_v25, %v5173_v41  ;;  %v5575_v38 = vld [vmem:[%s9197_s4] sm:$0xff]  ;;  %v5576_v41 = vld [vmem:[%s9197_s4 + $0x8] sm:$0xff]  ;;  %v5593_v25 = vld [vmem:[%s9197_s4 + $0x90] sm:$0xff] }
 0x938   :  { %7853 = vmatprep.subr.bf16.mxu0 %v7852_v12  ;;  %7917 = vmatprep.subr.bf16.mxu1 %v7916_v9  ;;  %v5187_v12 = vld [vmem:[#allocation5 + $0x728] sm:$0xff] }
 0x939   :  { %v5195_v9 = vld [vmem:[#allocation5 + $0x768] sm:$0xff] }
 0x93b   :  { %7855 = vmatpush1.bf16.msra.mxu0 %v7854_v49  ;;  %7919 = vmatpush1.bf16.msra.mxu1 %v7918_v27  ;;  %v7868_v49 = vpack.c.bf16 %v5195_v9, %v5187_v12  ;;  %v7932_v27 = vpack.c.bf16 %v5197_v34, %v5189_v4  ;;  %v5579_v9 = vld [vmem:[%s9197_s4 + $0x20] sm:$0xff]  ;;  %v5580_v4 = vld [vmem:[%s9197_s4 + $0x28] sm:$0xff]  ;;  %v5597_v34 = vld [vmem:[%s9197_s4 + $0xb0] sm:$0xff] }
 0x93c   :  { %7857 = vmatprep.subr.bf16.mxu0 %v7856_v5  ;;  %7921 = vmatprep.subr.bf16.mxu1 %v7920_v2  ;;  %v5203_v5 = vld [vmem:[#allocation5 + $0x7a8] sm:$0xff] }
 0x93d   :  { %v5211_v2 = vld [vmem:[#allocation5 + $0x7e8] sm:$0xff] }
 0x93e   :  { %v7872_v42 = vpack.c.bf16 %v5211_v2, %v5203_v5  ;;  %v5583_v5 = vld [vmem:[%s9197_s4 + $0x40] sm:$0xff]  ;;  %v5584_v2 = vld [vmem:[%s9197_s4 + $0x48] sm:$0xff] }
 0x93f   :  { %7859 = vmatpush1.bf16.msra.mxu0 %v7858_v55  ;;  %7923 = vmatpush1.bf16.msra.mxu1 %v7922_v29  ;;  %v7936_v55 = vpack.c.bf16 %v5213_v18, %v5205_v21  ;;  %v5210_v29 = vld [vmem:[#allocation5 + $0x7e0] sm:$0xff]  ;;  %v5601_v21 = vld [vmem:[%s9197_s4 + $0xd0] sm:$0xff]  ;;  %v5602_v18 = vld [vmem:[%s9197_s4 + $0xd8] sm:$0xff] }
 0x940   :  { %7861 = vmatprep.subr.bf16.mxu0 %v7860_v7  ;;  %7925 = vmatprep.subr.bf16.mxu1 %v7924_v19  ;;  %v5591_v7 = vld [vmem:[%s9197_s4 + $0x80] sm:$0xff]  ;;  %v5592_v19 = vld [vmem:[%s9197_s4 + $0x88] sm:$0xff]  ;;  %v7874_v33 = vpack.c.bf16 %v5210_v29, %v5202_v43  ;;  %v5585_v43 = vld [vmem:[%s9197_s4 + $0x50] sm:$0xff] }
 0x941   :  { %v7940_v28 = vpack.c.bf16 %v5592_v19, %v5591_v7  ;;  %v5604_v29 = vld [vmem:[%s9197_s4 + $0xe8] sm:$0xff]  ;;  %v5587_v7 = vld [vmem:[%s9197_s4 + $0x60] sm:$0xff] }
 0x942   :  { %v5588_v19 = vld [vmem:[%s9197_s4 + $0x68] sm:$0xff] }
 0x943   :  { %7863 = vmatpush1.bf16.msra.mxu0 %v7862_v8  ;;  %7927 = vmatpush1.bf16.msra.mxu1 %v7926_v11  ;;  %v5594_v8 = vld [vmem:[%s9197_s4 + $0x98] sm:$0xff]  ;;  %v7942_v11 = vpack.c.bf16 %v5576_v41, %v5575_v38  ;;  %v5589_v41 = vld [vmem:[%s9197_s4 + $0x70] sm:$0xff] }
 0x944   :  { %7865 = vmatprep.subr.bf16.mxu0 %v7864_v24  ;;  %7929 = vmatprep.subr.bf16.mxu1 %v7928_v44  ;;  %v7944_v58 = vpack.c.bf16 %v5594_v8, %v5593_v25  ;;  %v5578_v24 = vld [vmem:[%s9197_s4 + $0x18] sm:$0xff]  ;;  %v5595_v44 = vld [vmem:[%s9197_s4 + $0xa0] sm:$0xff] }
 0x945   :  { %v7946_v3 = vpack.c.bf16 %v5578_v24, %v5577_v10  ;;  %v7948_v12 = vpack.c.bf16 %v5596_v30, %v5595_v44  ;;  %v5590_v25 = vld [vmem:[%s9197_s4 + $0x78] sm:$0xff] }
 0x946   :  { %v7970_v8 = vpack.c.bf16 %v5590_v25, %v5589_v41 }
 0x947   :  { %7867 = vmatpush1.bf16.msra.mxu0 %v7866_v47  ;;  %7931 = vmatpush1.bf16.msra.mxu1 %v7930_v39  ;;  %v5598_v47 = vld [vmem:[%s9197_s4 + $0xb8] sm:$0xff] }
 0x948   :  { %7869 = vmatprep.subr.bf16.mxu0 %v7868_v49  ;;  %7933 = vmatprep.subr.bf16.mxu1 %v7932_v27  ;;  %v7952_v39 = vpack.c.bf16 %v5598_v47, %v5597_v34  ;;  %v5599_v49 = vld [vmem:[%s9197_s4 + $0xc0] sm:$0xff]  ;;  %v5600_v27 = vld [vmem:[%s9197_s4 + $0xc8] sm:$0xff] }
 0x949   :  { %v7956_v37 = vpack.c.bf16 %v5600_v27, %v5599_v49 }
 0x94b   :  { %7871 = vmatpush1.bf16.msra.mxu0 %v7870_v48  ;;  %7935 = vmatpush1.bf16.msra.mxu1 %v7934_v13  ;;  %v7958_v48 = vpack.c.bf16 %v5584_v2, %v5583_v5  ;;  %v7960_v13 = vpack.c.bf16 %v5602_v18, %v5601_v21 }
 0x94c   :  { %7873 = vmatprep.subr.bf16.mxu0 %v7872_v42  ;;  %7937 = vmatprep.subr.bf16.mxu1 %v7936_v55  ;;  %v5586_v42 = vld [vmem:[%s9197_s4 + $0x58] sm:$0xff]  ;;  %v5603_v55 = vld [vmem:[%s9197_s4 + $0xe0] sm:$0xff] }
 0x94d   :  { %v7962_v16 = vpack.c.bf16 %v5586_v42, %v5585_v43  ;;  %v7964_v63 = vpack.c.bf16 %v5604_v29, %v5603_v55 }
 0x94f   :  { %7875 = vmatpush1.bf16.msra.mxu0 %v7874_v33  ;;  %7939 = vmatpush1.bf16.msra.mxu1 %v7938_v56  ;;  %v5605_v33 = vld [vmem:[%s9197_s4 + $0xf0] sm:$0xff]  ;;  %v5606_v56 = vld [vmem:[%s9197_s4 + $0xf8] sm:$0xff] }
 0x950   :  { %7941 = vmatprep.subr.bf16.mxu0 %v7940_v28  ;;  %v7966_v28 = vpack.c.bf16 %v5588_v19, %v5587_v7  ;;  %v7968_v38 = vpack.c.bf16 %v5606_v56, %v5605_v33 }
 0x952   :  { %5421 = vmatmul.mubr.f32.vlgmr.msra.gmra.mrb[14].mxu0 %v9031_v45  ;;  %5492 = vmatmul.mubr.f32.vlgmr.msra.gmra.mrb[46].mxu1 %v9031_v45 }
 0x953   :  { %7943 = vmatpush3.bf16.msra.mxu0 %v7942_v11  ;;  %5678 = vmatprep.mubr.f32.mxu0 %v8858_v46  ;;  %v7950_v46 = vpack.c.bf16 %v5580_v4, %v5579_v9 }
 0x954   :  { %7945 = vmatprep.subr.bf16.mxu0 %v7944_v58 }
 0x957   :  { %7947 = vmatpush3.bf16.msra.mxu0 %v7946_v3 }
 0x958   :  { %7949 = vmatprep.subr.bf16.mxu0 %v7948_v12 }
 0x95b   :  { %7951 = vmatpush3.bf16.msra.mxu0 %v7950_v46 }
 0x95c   :  { %7953 = vmatprep.subr.bf16.mxu0 %v7952_v39 }
 0x95f   :  { %7955 = vmatpush3.bf16.msra.mxu0 %v7954_v52 }
 0x960   :  { %7957 = vmatprep.subr.bf16.mxu0 %v7956_v37 }
 0x963   :  { %7959 = vmatpush3.bf16.msra.mxu0 %v7958_v48 }
 0x964   :  { %7961 = vmatprep.subr.bf16.mxu0 %v7960_v13 }
 0x967   :  { %7963 = vmatpush3.bf16.msra.mxu0 %v7962_v16 }
 0x968   :  { %7965 = vmatprep.subr.bf16.mxu0 %v7964_v63  ;;  %v5835_v63 = vld [vmem:[#allocation4] ss:$0 sm:$0xff] }
 0x96b   :  { %7967 = vmatpush3.bf16.msra.mxu0 %v7966_v28 }
 0x96c   :  { %7969 = vmatprep.subr.bf16.mxu0 %v7968_v38 }
 0x96f   :  { %7971 = vmatpush3.bf16.msra.mxu0 %v7970_v8 }
 0x972   :  { %5679 = vmatmul.mubr.f32.vlgmr.msra.gmra.mrb[32].mxu0 %v8860_v51 }
 0x973   :  { %5683 = vmatprep.mubr.f32.mxu0 %v8889_v40 }
 0x976   :  { %5684 = vmatmul.mubr.f32.gmra.mrb[34].mxu0 %v8891_v61 }
 0x977   :  { %5688 = vmatprep.mubr.f32.mxu0 %v8917_v26 }
 0x97a   :  { %5689 = vmatmul.mubr.f32.gmra.mrb[36].mxu0 %v8919_v20 }
 0x97b   :  { %5693 = vmatprep.mubr.f32.mxu0 %v8945_v62 }
 0x97e   :  { %5694 = vmatmul.mubr.f32.gmra.mrb[38].mxu0 %v8947_v6 }
 0x97f   :  { %5698 = vmatprep.mubr.f32.mxu0 %v8973_v14 }
 0x982   :  { %5699 = vmatmul.mubr.f32.gmra.mrb[40].mxu0 %v8975_v32 }
 0x983   :  { %5703 = vmatprep.mubr.f32.mxu0 %v9001_v22 }
 0x986   :  { %5704 = vmatmul.mubr.f32.gmra.mrb[42].mxu0 %v9003_v35 }
 0x987   :  { %5708 = vmatprep.mubr.f32.mxu0 %v9029_v23 }
 0x98a   :  { %5709 = vmatmul.mubr.f32.gmra.mrb[44].mxu0 %v9031_v45 }
 0x9e5   :  { %v5280_v51 = vpop.f32.mrb[30].mxu0  ;;  %v5351_v40 = vpop.f32.mrb[30].mxu1 }
 0x9e6   :  { %v5498_v61 = vadd.f32 %v5280_v51, %v8792_v50  ;;  %v5282_v26 = vpop.f32.mrb[31].mxu0  ;;  %v5353_v20 = vpop.f32.mrb[31].mxu1  ;;  %v8018_v6 = vadd.f32 %v5351_v40, %v8827_v31 }
 0x9e7   :  { %v5499_v62 = vadd.f32 %v5282_v26, %v8795_v53  ;;  %v8019_v14 = vadd.f32 %v5353_v20, %v8830_v57 }
 0x9e8   :  { %v5829_v32 = vmul.f32 -1.442695, %v5498_v61  ;;  %v5831_v22 = vmul.f32 -1.442695, %v8018_v6 }
 0x9e9   :  { %v5830_v11 = vmul.f32 -1.442695, %v5499_v62  ;;  %v5832_v35 = vmul.f32 -1.442695, %v8019_v14 }
 0x9ea   :  { %8328 = vpow2.f32 %v5829_v32 }
 0x9eb   :  { %8330 = vpow2.f32 %v5831_v22 }
 0x9ec   :  { %8332 = vpow2.f32 %v5830_v11 }
 0x9ed   :  { %8334 = vpow2.f32 %v5832_v35 }
 0x9f4   :  { %v8329_v23 = vpop.eup %8328 }
 0x9f5   :  { %v8331_v45 = vpop.eup %8330  ;;  %v5512_v10 = vadd.f32 1.0, %v8329_v23 }
 0x9f6   :  { %v8333_v58 = vpop.eup %8332  ;;  %v5524_v24 = vadd.f32 1.0, %v8331_v45 }
 0x9f7   :  { %v8335_v50 = vpop.eup %8334  ;;  %v5513_v44 = vadd.f32 1.0, %v8333_v58  ;;  %8336 = vrcp.f32 %v5512_v10 }
 0x9f8   :  { %v5525_v53 = vadd.f32 1.0, %v8335_v50  ;;  %8338 = vrcp.f32 %v5524_v24 }
 0x9f9   :  { %8340 = vrcp.f32 %v5513_v44 }
 0x9fa   :  { %8342 = vrcp.f32 %v5525_v53 }
 0xa01   :  { %v8337_v39 = vpop.eup %8336 }
 0xa02   :  { %v8339_v15 = vpop.eup %8338 }
 0xa03   :  { %v8341_v17 = vpop.eup %8340 }
 0xa04   :  { %v8343_v49 = vpop.eup %8342 }
 0xa25   :  { %v5422_v31 = vpop.f32.mrb[14].mxu0  ;;  %v5493_v57 = vpop.f32.mrb[46].mxu1 }
 0xa26   :  { %v8034_v30 = vadd.f32 %v5422_v31, %v8833_v1  ;;  %v8050_v3 = vadd.f32 %v5493_v57, %v8849_v0  ;;  %v5424_v12 = vpop.f32.mrb[15].mxu0  ;;  %v5495_v9 = vpop.f32.mrb[47].mxu1  ;;  %v5544_v0 = vmul.f32 %v8339_v15, %v9023_v54 }
 0xa27   :  { %v8035_v4 = vadd.f32 %v5424_v12, %v8836_v59  ;;  %v8051_v34 = vadd.f32 %v5495_v9, %v8852_v36  ;;  %v5545_v59 = vmul.f32 %v8343_v49, %v9025_v60 }
 0xa28   :  { %8344 = vtanh.f32 %v8034_v30  ;;  %v5833_v47 = vmul.f32 -1.442695, %v8050_v3 }
 0xa29   :  { %8346 = vtanh.f32 %v8035_v4  ;;  %v5834_v46 = vmul.f32 -1.442695, %v8051_v34 }
 0xa2a   :  { %8348 = vpow2.f32 %v5833_v47 }
 0xa2b   :  { %8350 = vpow2.f32 %v5834_v46 }
 0xa32   :  { %v8345_v1 = vpop.eup %8344 }
 0xa33   :  { %v8347_v27 = vpop.eup %8346  ;;  %v5546_v52 = vmul.f32 %v8345_v1, %v8337_v39 }
 0xa34   :  { %v8349_v37 = vpop.eup %8348  ;;  %v5547_v5 = vmul.f32 %v8347_v27, %v8341_v17 }
 0xa35   :  { %v8351_v36 = vpop.eup %8350  ;;  %v5548_v2 = vadd.f32 %v5546_v52, %v5544_v0  ;;  %v5538_v21 = vadd.f32 1.0, %v8349_v37 }
 0xa36   :  { %v5549_v18 = vadd.f32 %v5547_v5, %v5545_v59  ;;  %v5539_v48 = vadd.f32 1.0, %v8351_v36 }
 0xa37   :  { %8352 = vtanh.f32 %v5548_v2 }
 0xa38   :  { %8354 = vrcp.f32 %v5538_v21 }
 0xa39   :  { %8356 = vtanh.f32 %v5549_v18 }
 0xa3a   :  { %8358 = vrcp.f32 %v5539_v48 }
 0xa41   :  { %v8353_v13 = vpop.eup %8352 }
 0xa42   :  { %v8355_v43 = vpop.eup %8354 }
 0xa43   :  { %v8357_v42 = vpop.eup %8356  ;;  %v5552_v55 = vmul.f32 %v8355_v43, %v8353_v13 }
 0xa44   :  { %v8359_v29 = vpop.eup %8358 }
 0xa45   :  { %v5868_v54 = vpop.f32.mrb[32].mxu0  ;;  %v5553_v16 = vmul.f32 %v8359_v29, %v8357_v42 }
 0xa46   :  { %v5869_v7 = vpop.f32.mrb[33].mxu0 }
 0xa47   :  { %5713 = vmatprep.mubr.f32.mxu0 %v5553_v16  ;;  %v5870_v60 = vadd.f32 %v5869_v7, %v5868_v54 }
 0xa48   :  { %5714 = vmatmul.mubr.f32.gmra.mrb[46].mxu0 %v5552_v55 }
 0xa49   :  { %v5681_v19 = vadd.f32 %v5870_v60, %v5835_v63  ;;  %v5871_v33 = vpop.f32.mrb[34].mxu0 }
 0xa4a   :  { %v5872_v56 = vpop.f32.mrb[35].mxu0 }
 0xa4b   :  { %5720 = vst.msk [vmem:[%s9199_s6] sm:$0xff] %vm5719_vm2, %v5681_v19  ;;  %v5873_v28 = vadd.f32 %v5872_v56, %v5871_v33 }
 0xa4d   :  { %v5686_v38 = vadd.f32 %v5873_v28, %v5835_v63  ;;  %v5874_v41 = vpop.f32.mrb[36].mxu0 }
 0xa4e   :  { %v5875_v25 = vpop.f32.mrb[37].mxu0 }
 0xa4f   :  { %5721 = vst.msk [vmem:[%s9199_s6 + $0x8] sm:$0xff] %vm5719_vm2, %v5686_v38  ;;  %v5876_v8 = vadd.f32 %v5875_v25, %v5874_v41 }
 0xa51   :  { %v5691_v51 = vadd.f32 %v5876_v8, %v5835_v63  ;;  %v5877_v40 = vpop.f32.mrb[38].mxu0 }
 0xa52   :  { %v5878_v61 = vpop.f32.mrb[39].mxu0 }
 0xa53   :  { %5722 = vst.msk [vmem:[%s9199_s6 + $0x10] sm:$0xff] %vm5719_vm2, %v5691_v51  ;;  %v5879_v26 = vadd.f32 %v5878_v61, %v5877_v40 }
 0xa55   :  { %v5696_v20 = vadd.f32 %v5879_v26, %v5835_v63  ;;  %v5880_v62 = vpop.f32.mrb[40].mxu0 }
 0xa56   :  { %v5881_v6 = vpop.f32.mrb[41].mxu0 }
 0xa57   :  { %5723 = vst.msk [vmem:[%s9199_s6 + $0x18] sm:$0xff] %vm5719_vm2, %v5696_v20  ;;  %v5882_v14 = vadd.f32 %v5881_v6, %v5880_v62 }
 0xa59   :  { %v5701_v32 = vadd.f32 %v5882_v14, %v5835_v63  ;;  %v5883_v22 = vpop.f32.mrb[42].mxu0 }
 0xa5a   :  { %v5884_v11 = vpop.f32.mrb[43].mxu0 }
 0xa5b   :  { %5724 = vst.msk [vmem:[%s9199_s6 + $0x20] sm:$0xff] %vm5719_vm2, %v5701_v32  ;;  %v5885_v35 = vadd.f32 %v5884_v11, %v5883_v22 }
 0xa5d   :  { %v5706_v23 = vadd.f32 %v5885_v35, %v5835_v63  ;;  %v5886_v45 = vpop.f32.mrb[44].mxu0 }
 0xa5e   :  { %v5887_v58 = vpop.f32.mrb[45].mxu0 }
 0xa5f   :  { %5725 = vst.msk [vmem:[%s9199_s6 + $0x28] sm:$0xff] %vm5719_vm2, %v5706_v23  ;;  %v5888_v50 = vadd.f32 %v5887_v58, %v5886_v45 }
 0xa61   :  { %v5711_v10 = vadd.f32 %v5888_v50, %v5835_v63 }
 0xa63   :  { %5726 = vst.msk [vmem:[%s9199_s6 + $0x30] sm:$0xff] %vm5719_vm2, %v5711_v10 }
 0xb1b   :  { %v5889_v24 = vpop.f32.mrb[46].mxu0 }
 0xb1c   :  { %v5890_v44 = vpop.f32.mrb[47].mxu0 }
 0xb1d   :  { %v5891_v53 = vadd.f32 %v5890_v44, %v5889_v24 }
 0xb1f   :  { %v5716_v31 = vadd.f32 %v5891_v53, %v5835_v63 }
 0xb21   :  { %5727 = vst.msk [vmem:[%s9199_s6 + $0x38] sm:$0xff] %vm5719_vm2, %v5716_v31 }
 0xb22   :  { %5732 = vsyncpa [#allocation6], 1 }

</bundles_post_ra>
